<compile_context>
chip_gen: v7x
topology: tpu7x:2x2x1
jax: 0.10.0
libtpu: 0.0.40
codegen_flags: <defaults>
</compile_context>

<pallas_src>
import functools

import jax
import jax.numpy as jnp
from jax.experimental import pallas as pl
from jax.experimental.pallas import tpu as pltpu


# ----------------------------------------------------------------------------
# Fused Pallas kernel: the whole AttentionNet forward for one image per step.
# ----------------------------------------------------------------------------
def _attention_net_kernel(
    x_ref, m_ref,
    wc1, bc1,
    r1w1, r1b1, r1w2, r1b2, r1wr, r1br, r1wa, r1ba,
    r2w1, r2b1, r2w2, r2b2, r2wr, r2br, r2wa, r2ba,
    wc2, bc2,
    kh_ref, kw_ref,
    o_ref,
    a_scr,
    *, H, W):
  """All activations are (C, H*W): channels on sublanes, pixels on lanes."""
  HW = H * W

  def conv3x3(h, w_ref, b_ref, relu):
    # h: (Cin, HW) f32, w_ref: (Cout, 9*Cin) bf16, b_ref: (Cout, 1) f32.
    cin = h.shape[0]
    # Build the im2col matrix (9*Cin, HW) in VMEM scratch: 9 lane-rolled,
    # border-masked copies of h stacked along sublanes, then ONE big-K matmul.
    for t in range(9):
      dy, dx = divmod(t, 3)
      s = (dy - 1) * W + (dx - 1)                 # flat-pixel shift of this tap
      rolled = h if s == 0 else pltpu.roll(h, (-s) % HW, axis=1)
      a_scr[pl.ds(t * cin, cin), :] = (rolled * m_ref[t]).astype(jnp.bfloat16)
    a = a_scr[pl.ds(0, 9 * cin), :]               # (9*Cin, HW) bf16
    out = jnp.dot(w_ref[...], a, preferred_element_type=jnp.float32)
    out = out + b_ref[...]
    return jnp.maximum(out, 0.0) if relu else out

  def residual_attention_block(h, w1, b1, w2, b2, wr, br, wa, ba):
    # residual 1x1 conv (Cin -> Cout)
    res = jnp.dot(wr[...], h.astype(jnp.bfloat16),
                  preferred_element_type=jnp.float32) + br[...]
    h1 = conv3x3(h, w1, b1, relu=True)
    h2 = conv3x3(h1, w2, b2, relu=True)
    # attention 1x1 conv (Cout -> 1) + BN (folded) + sigmoid
    att = jax.nn.sigmoid(
        jnp.sum(h2 * wa[...], axis=0, keepdims=True) + ba[...])    # (1, HW)
    return jnp.maximum(h2 * att + res, 0.0)

  h = conv3x3(x_ref[...], wc1, bc1, relu=True)                     # (64, HW)
  h = residual_attention_block(h, r1w1, r1b1, r1w2, r1b2,
                               r1wr, r1br, r1wa, r1ba)
  h = residual_attention_block(h, r2w1, r2b1, r2w2, r2b2,
                               r2wr, r2br, r2wa, r2ba)
  y = conv3x3(h, wc2, bc2, relu=False)                             # (32, HW)

  # Bilinear x2 upsample folded in as two matmuls against Kronecker-structured
  # interpolation matrices:  (32, HW) -> (32, 2H*W) -> (32, 2H*2W).
  t1 = jnp.dot(y.astype(jnp.bfloat16), kh_ref[...],
               preferred_element_type=jnp.float32)
  o_ref[...] = jnp.dot(t1.astype(jnp.bfloat16), kw_ref[...],
                       preferred_element_type=jnp.float32)


# ----------------------------------------------------------------------------
# pallas_call wrapper
# ----------------------------------------------------------------------------
def _fused_forward_call(x, masks, kh_t, kw_t, params, H, W):
  # x: (N, 32, HW) f32 -> out: (N, 32, 4*HW) f32 (channel-major, pixels on lanes)
  N = x.shape[0]
  HW = H * W
  p1, p2 = params["rab1"], params["rab2"]
  weights = [
      params["conv1_w"], params["conv1_b"],
      p1["c1_w"], p1["c1_b"], p1["c2_w"], p1["c2_b"],
      p1["res_w"], p1["res_b"], p1["att_w"], p1["att_b"],
      p2["c1_w"], p2["c1_b"], p2["c2_w"], p2["c2_b"],
      p2["res_w"], p2["res_b"], p2["att_w"], p2["att_b"],
      params["conv2_w"], params["conv2_b"],
      kh_t, kw_t,
  ]

  def const_spec(a):
    # Full-array block, constant index -> fetched once, resident across steps.
    return pl.BlockSpec(a.shape, lambda n, _nd=a.ndim: (0,) * _nd)

  in_specs = ([pl.BlockSpec((None, 32, HW), lambda n: (n, 0, 0)),
               const_spec(masks)]
              + [const_spec(w) for w in weights])

  kern = functools.partial(_attention_net_kernel, H=H, W=W)
  return pl.pallas_call(
      kern,
      out_shape=jax.ShapeDtypeStruct((N, 32, 4 * HW), jnp.float32),
      grid=(N,),
      in_specs=in_specs,
      out_specs=pl.BlockSpec((None, 32, 4 * HW), lambda n: (n, 0, 0)),
      scratch_shapes=[pltpu.VMEM((9 * 64, HW), jnp.bfloat16)],
      compiler_params=pltpu.CompilerParams(
          dimension_semantics=("parallel",),
          vmem_limit_bytes=32 * 1024 * 1024),
  )(x, masks, *weights)


# ----------------------------------------------------------------------------
# JAX glue (constant tables; all tiny and built at trace time)
# ----------------------------------------------------------------------------
def _tap_masks(H, W):
  # 0/1 validity mask per 3x3 tap (zero-padding border), shape (9, 1, H*W).
  HW = H * W
  r = jnp.arange(HW)
  hi, wi = r // W, r % W
  ms = []
  for dy in range(3):
    for dx in range(3):
      v = ((hi + dy >= 1) & (hi + dy <= H) &
           (wi + dx >= 1) & (wi + dx <= W))
      ms.append(v.astype(jnp.float32))
  return jnp.stack(ms, 0).reshape(9, 1, HW)


def _interp_matrix(in_size, out_size):
  # PyTorch bilinear, align_corners=False: 1-D interpolation matrix.
  src = (jnp.arange(out_size, dtype=jnp.float32) + 0.5) * (
      in_size / out_size) - 0.5
  src = jnp.clip(src, 0.0, in_size - 1)
  i0 = jnp.clip(jnp.floor(src).astype(jnp.int32), 0, in_size - 1)
  i1 = jnp.minimum(i0 + 1, in_size - 1)
  w1 = src - i0.astype(jnp.float32)
  w0 = 1.0 - w1
  m = jnp.zeros((out_size, in_size), jnp.float32)
  rows = jnp.arange(out_size)
  m = m.at[rows, i0].add(w0)
  m = m.at[rows, i1].add(w1)
  return m


@jax.jit
def attention_net_forward(x_nchw, params):
  N, C, H, W = x_nchw.shape
  HW = H * W
  # NCHW is already channel-major; just flatten spatial and pad channels to 32.
  x = x_nchw.reshape(N, C, HW).astype(jnp.float32)
  x = jnp.pad(x, ((0, 0), (0, 32 - C), (0, 0)))

  masks = _tap_masks(H, W)
  mh = _interp_matrix(H, 2 * H)                       # (2H, H)
  mw = _interp_matrix(W, 2 * W)                       # (2W, W)
  # Transposed Kronecker forms so the upsample is two plain right-matmuls on
  # the flattened (row-major) pixel axis.  Interp weights (0.25/0.75/1.0) are
  # exact in bf16.
  kh_t = jnp.kron(mh.T, jnp.eye(W, dtype=jnp.float32)).astype(jnp.bfloat16)
  kw_t = jnp.kron(jnp.eye(2 * H, dtype=jnp.float32), mw.T).astype(jnp.bfloat16)

  out_t = _fused_forward_call(x, masks, kh_t, kw_t, params, H, W)
  # (N, 32, 4HW) -> NCHW (N, 31, 2H, 2W)
  out = out_t.reshape(N, 32, 2 * H, 2 * W)[:, :C]
  # TODO(synk): the reference `x += F.interpolate(x, size=(2H, 2W))` is
  # shape-inconsistent (PyTorch raises RuntimeError for any H, W); we return
  # the bilinear-upsampled prediction instead of faking a broadcast add.
  return out


# ----------------------------------------------------------------------------
# Deterministic synthetic parameters (BN running stats folded into convs),
# stored in the kernel's channel-major / big-K layout.
# ----------------------------------------------------------------------------
def init_params(key):
  it = iter(jax.random.split(key, 64))

  def nrm(shape, s=0.05):
    return jax.random.normal(next(it), shape, jnp.float32) * s

  def bn_stats(c):
    gamma = jax.random.uniform(next(it), (c,), jnp.float32, 0.5, 1.5)
    beta = nrm((c,), 0.1)
    mean = nrm((c,), 0.1)
    var = jax.random.uniform(next(it), (c,), jnp.float32, 0.5, 1.5)
    return gamma, beta, mean, var

  def conv3x3_folded(cin, cout, cin_pad=None, cout_pad=None, with_bn=True):
    w = nrm((9, cin, cout))                      # (tap, Cin, Cout)
    b = nrm((cout,), 0.1)
    if with_bn:
      g, be, m, v = bn_stats(cout)
      scale = g / jnp.sqrt(v + 1e-5)
      w = w * scale[None, None, :]
      b = (b - m) * scale + be
    if cin_pad and cin_pad > cin:
      w = jnp.pad(w, ((0, 0), (0, cin_pad - cin), (0, 0)))
      cin = cin_pad
    if cout_pad and cout_pad > cout:
      w = jnp.pad(w, ((0, 0), (0, 0), (0, cout_pad - cout)))
      b = jnp.pad(b, ((0, cout_pad - cout),))
      cout = cout_pad
    # -> (Cout, 9*Cin) bf16 for the single big-K MXU matmul.
    w_t = jnp.transpose(w, (2, 0, 1)).reshape(cout, 9 * cin)
    return w_t.astype(jnp.bfloat16), b.reshape(cout, 1)

  def rab(cin, cout):
    c1_w, c1_b = conv3x3_folded(cin, cout)
    c2_w, c2_b = conv3x3_folded(cout, cout)
    # attention: Conv2d(cout, 1, 1) + BN(1), folded -> column vector
    aw = nrm((cout, 1))
    ab = nrm((1, 1), 0.1)
    g, be, m, v = bn_stats(1)
    scale = g[0] / jnp.sqrt(v[0] + 1e-5)
    aw = aw * scale
    ab = (ab - m[0]) * scale + be[0]
    # residual: Conv2d(cin, cout, 1) with bias, stored (Cout, Cin)
    rw = nrm((cout, cin)).astype(jnp.bfloat16)
    rb = nrm((cout, 1), 0.1)
    return dict(c1_w=c1_w, c1_b=c1_b, c2_w=c2_w, c2_b=c2_b,
                att_w=aw, att_b=ab, res_w=rw, res_b=rb)

  conv1_w, conv1_b = conv3x3_folded(31, 64, cin_pad=32)
  conv2_w, conv2_b = conv3x3_folded(64, 31, cout_pad=32, with_bn=False)
  return dict(conv1_w=conv1_w, conv1_b=conv1_b,
              rab1=rab(64, 64), rab2=rab(64, 64),
              conv2_w=conv2_w, conv2_b=conv2_b)


if __name__ == "__main__":
  key = jax.random.PRNGKey(0)
  pkey, xkey = jax.random.split(key)
  params = init_params(pkey)
  # PyTorch-style NCHW input: batch=2, channels=31, spatial=16x16
  x = jax.random.normal(xkey, (2, 31, 16, 16), jnp.float32)
  out = attention_net_forward(x, params)
  jax.block_until_ready(out)
  assert out.shape == (2, 31, 32, 32), out.shape
  assert jnp.all(jnp.isfinite(out))
  print("KERNEL_OK")
</pallas_src>

<mosaic_0001>
module attributes {stable_mosaic.version = 11 : i64} {
  func.func private @main(%arg0: i32) attributes {dimension_semantics = [#tpu.dimension_semantics<core_parallel>], iteration_bounds = array<i64: 2>, tpu.core_type = #tpu.core_type<sc_scalar_subcore>, window_params = []} {
    return
  }
}

module attributes {stable_mosaic.version = 11 : i64} {
  func.func private @main(%arg0: i32) attributes {dimension_semantics = [#tpu.dimension_semantics<core_parallel>], iteration_bounds = array<i64: 2>, tpu.core_type = #tpu.core_type<sc_scalar_subcore>, window_params = []} {
    return
  }
}

module attributes {stable_mosaic.version = 11 : i64} {
  func.func @_attention_net_kernel(%arg0: i32, %arg1: memref<1x32x256xf32, #tpu.memory_space<vmem>>, %arg2: memref<9x1x256xf32, #tpu.memory_space<vmem>>, %arg3: memref<64x288xbf16, #tpu.memory_space<vmem>>, %arg4: memref<64x1xf32, #tpu.memory_space<vmem>>, %arg5: memref<64x576xbf16, #tpu.memory_space<vmem>>, %arg6: memref<64x1xf32, #tpu.memory_space<vmem>>, %arg7: memref<64x576xbf16, #tpu.memory_space<vmem>>, %arg8: memref<64x1xf32, #tpu.memory_space<vmem>>, %arg9: memref<64x64xbf16, #tpu.memory_space<vmem>>, %arg10: memref<64x1xf32, #tpu.memory_space<vmem>>, %arg11: memref<64x1xf32, #tpu.memory_space<vmem>>, %arg12: memref<1x1xf32, #tpu.memory_space<vmem>>, %arg13: memref<64x576xbf16, #tpu.memory_space<vmem>>, %arg14: memref<64x1xf32, #tpu.memory_space<vmem>>, %arg15: memref<64x576xbf16, #tpu.memory_space<vmem>>, %arg16: memref<64x1xf32, #tpu.memory_space<vmem>>, %arg17: memref<64x64xbf16, #tpu.memory_space<vmem>>, %arg18: memref<64x1xf32, #tpu.memory_space<vmem>>, %arg19: memref<64x1xf32, #tpu.memory_space<vmem>>, %arg20: memref<1x1xf32, #tpu.memory_space<vmem>>, %arg21: memref<32x576xbf16, #tpu.memory_space<vmem>>, %arg22: memref<32x1xf32, #tpu.memory_space<vmem>>, %arg23: memref<256x512xbf16, #tpu.memory_space<vmem>>, %arg24: memref<512x1024xbf16, #tpu.memory_space<vmem>>, %arg25: memref<1x32x1024xf32, #tpu.memory_space<vmem>>, %arg26: memref<576x256xbf16, #tpu.memory_space<vmem>>) attributes {dimension_semantics = [#tpu.dimension_semantics<parallel>], iteration_bounds = array<i64: 2>, scalar_prefetch = 0 : i64, scratch_operands = 1 : i64, tpu.core_type = #tpu.core_type<tc>, window_params = [{transform_indices = @transform_0, window_bounds = array<i64: 1, 32, 256>}, {pipeline_mode = #tpu.pipeline_mode<synchronous>, transform_indices = @transform_1, window_bounds = array<i64: 9, 1, 256>}, {pipeline_mode = #tpu.pipeline_mode<synchronous>, transform_indices = @transform_2, window_bounds = array<i64: 64, 288>}, {pipeline_mode = #tpu.pipeline_mode<synchronous>, transform_indices = @transform_3, window_bounds = array<i64: 64, 1>}, {pipeline_mode = #tpu.pipeline_mode<synchronous>, transform_indices = @transform_4, window_bounds = array<i64: 64, 576>}, {pipeline_mode = #tpu.pipeline_mode<synchronous>, transform_indices = @transform_5, window_bounds = array<i64: 64, 1>}, {pipeline_mode = #tpu.pipeline_mode<synchronous>, transform_indices = @transform_6, window_bounds = array<i64: 64, 576>}, {pipeline_mode = #tpu.pipeline_mode<synchronous>, transform_indices = @transform_7, window_bounds = array<i64: 64, 1>}, {pipeline_mode = #tpu.pipeline_mode<synchronous>, transform_indices = @transform_8, window_bounds = array<i64: 64, 64>}, {pipeline_mode = #tpu.pipeline_mode<synchronous>, transform_indices = @transform_9, window_bounds = array<i64: 64, 1>}, {pipeline_mode = #tpu.pipeline_mode<synchronous>, transform_indices = @transform_10, window_bounds = array<i64: 64, 1>}, {pipeline_mode = #tpu.pipeline_mode<synchronous>, transform_indices = @transform_11, window_bounds = array<i64: 1, 1>}, {pipeline_mode = #tpu.pipeline_mode<synchronous>, transform_indices = @transform_12, window_bounds = array<i64: 64, 576>}, {pipeline_mode = #tpu.pipeline_mode<synchronous>, transform_indices = @transform_13, window_bounds = array<i64: 64, 1>}, {pipeline_mode = #tpu.pipeline_mode<synchronous>, transform_indices = @transform_14, window_bounds = array<i64: 64, 576>}, {pipeline_mode = #tpu.pipeline_mode<synchronous>, transform_indices = @transform_15, window_bounds = array<i64: 64, 1>}, {pipeline_mode = #tpu.pipeline_mode<synchronous>, transform_indices = @transform_16, window_bounds = array<i64: 64, 64>}, {pipeline_mode = #tpu.pipeline_mode<synchronous>, transform_indices = @transform_17, window_bounds = array<i64: 64, 1>}, {pipeline_mode = #tpu.pipeline_mode<synchronous>, transform_indices = @transform_18, window_bounds = array<i64: 64, 1>}, {pipeline_mode = #tpu.pipeline_mode<synchronous>, transform_indices = @transform_19, window_bounds = array<i64: 1, 1>}, {pipeline_mode = #tpu.pipeline_mode<synchronous>, transform_indices = @transform_20, window_bounds = array<i64: 32, 576>}, {pipeline_mode = #tpu.pipeline_mode<synchronous>, transform_indices = @transform_21, window_bounds = array<i64: 32, 1>}, {pipeline_mode = #tpu.pipeline_mode<synchronous>, transform_indices = @transform_22, window_bounds = array<i64: 256, 512>}, {pipeline_mode = #tpu.pipeline_mode<synchronous>, transform_indices = @transform_23, window_bounds = array<i64: 512, 1024>}, {transform_indices = @transform_24, window_bounds = array<i64: 1, 32, 1024>}]} {
    %c0 = arith.constant 0 : index
    %c0_0 = arith.constant 0 : index
    %c0_1 = arith.constant 0 : index
    %0 = vector.load %arg1[%c0, %c0_0, %c0_1] : memref<1x32x256xf32, #tpu.memory_space<vmem>>, vector<1x32x256xf32>
    %1 = vector.shape_cast %0 : vector<1x32x256xf32> to vector<32x256xf32>
    %c17_i32 = arith.constant 17 : i32
    %2 = tpu.dynamic_rotate %1 by %c17_i32 dim 1 : vector<32x256xf32>, i32 -> vector<32x256xf32>
    %c0_2 = arith.constant 0 : index
    %c0_3 = arith.constant 0 : index
    %c0_4 = arith.constant 0 : index
    %3 = vector.load %arg2[%c0_2, %c0_3, %c0_4] : memref<9x1x256xf32, #tpu.memory_space<vmem>>, vector<1x1x256xf32>
    %4 = vector.shape_cast %3 : vector<1x1x256xf32> to vector<1x256xf32>
    %5 = vector.broadcast %4 : vector<1x256xf32> to vector<32x256xf32>
    %6 = arith.mulf %2, %5 : vector<32x256xf32>
    %7 = arith.truncf %6 : vector<32x256xf32> to vector<32x256xbf16>
    %c0_5 = arith.constant 0 : index
    %c0_6 = arith.constant 0 : index
    %8 = vector.load %arg26[%c0_5, %c0_6] : memref<576x256xbf16, #tpu.memory_space<vmem>>, vector<32x256xbf16>
    tpu.vector_store %arg26[%c0_5, %c0_6], %7 {strides = array<i32>} : memref<576x256xbf16, #tpu.memory_space<vmem>>, vector<32x256xbf16>,
    %c16_i32 = arith.constant 16 : i32
    %9 = tpu.dynamic_rotate %1 by %c16_i32 dim 1 : vector<32x256xf32>, i32 -> vector<32x256xf32>
    %c1 = arith.constant 1 : index
    %c0_7 = arith.constant 0 : index
    %c0_8 = arith.constant 0 : index
    %10 = vector.load %arg2[%c1, %c0_7, %c0_8] : memref<9x1x256xf32, #tpu.memory_space<vmem>>, vector<1x1x256xf32>
    %11 = vector.shape_cast %10 : vector<1x1x256xf32> to vector<1x256xf32>
    %12 = vector.broadcast %11 : vector<1x256xf32> to vector<32x256xf32>
    %13 = arith.mulf %9, %12 : vector<32x256xf32>
    %14 = arith.truncf %13 : vector<32x256xf32> to vector<32x256xbf16>
    %c32 = arith.constant 32 : index
    %c0_9 = arith.constant 0 : index
    %15 = vector.load %arg26[%c32, %c0_9] : memref<576x256xbf16, #tpu.memory_space<vmem>>, vector<32x256xbf16>
    tpu.vector_store %arg26[%c32, %c0_9], %14 {strides = array<i32>} : memref<576x256xbf16, #tpu.memory_space<vmem>>, vector<32x256xbf16>,
    %c15_i32 = arith.constant 15 : i32
    %16 = tpu.dynamic_rotate %1 by %c15_i32 dim 1 : vector<32x256xf32>, i32 -> vector<32x256xf32>
    %c2 = arith.constant 2 : index
    %c0_10 = arith.constant 0 : index
    %c0_11 = arith.constant 0 : index
    %17 = vector.load %arg2[%c2, %c0_10, %c0_11] : memref<9x1x256xf32, #tpu.memory_space<vmem>>, vector<1x1x256xf32>
    %18 = vector.shape_cast %17 : vector<1x1x256xf32> to vector<1x256xf32>
    %19 = vector.broadcast %18 : vector<1x256xf32> to vector<32x256xf32>
    %20 = arith.mulf %16, %19 : vector<32x256xf32>
    %21 = arith.truncf %20 : vector<32x256xf32> to vector<32x256xbf16>
    %c64 = arith.constant 64 : index
    %c0_12 = arith.constant 0 : index
    %22 = vector.load %arg26[%c64, %c0_12] : memref<576x256xbf16, #tpu.memory_space<vmem>>, vector<32x256xbf16>
    tpu.vector_store %arg26[%c64, %c0_12], %21 {strides = array<i32>} : memref<576x256xbf16, #tpu.memory_space<vmem>>, vector<32x256xbf16>,
    %c1_i32 = arith.constant 1 : i32
    %23 = tpu.dynamic_rotate %1 by %c1_i32 dim 1 : vector<32x256xf32>, i32 -> vector<32x256xf32>
    %c3 = arith.constant 3 : index
    %c0_13 = arith.constant 0 : index
    %c0_14 = arith.constant 0 : index
    %24 = vector.load %arg2[%c3, %c0_13, %c0_14] : memref<9x1x256xf32, #tpu.memory_space<vmem>>, vector<1x1x256xf32>
    %25 = vector.shape_cast %24 : vector<1x1x256xf32> to vector<1x256xf32>
    %26 = vector.broadcast %25 : vector<1x256xf32> to vector<32x256xf32>
    %27 = arith.mulf %23, %26 : vector<32x256xf32>
    %28 = arith.truncf %27 : vector<32x256xf32> to vector<32x256xbf16>
    %c96 = arith.constant 96 : index
    %c0_15 = arith.constant 0 : index
    %29 = vector.load %arg26[%c96, %c0_15] : memref<576x256xbf16, #tpu.memory_space<vmem>>, vector<32x256xbf16>
    tpu.vector_store %arg26[%c96, %c0_15], %28 {strides = array<i32>} : memref<576x256xbf16, #tpu.memory_space<vmem>>, vector<32x256xbf16>,
    %c4 = arith.constant 4 : index
    %c0_16 = arith.constant 0 : index
    %c0_17 = arith.constant 0 : index
    %30 = vector.load %arg2[%c4, %c0_16, %c0_17] : memref<9x1x256xf32, #tpu.memory_space<vmem>>, vector<1x1x256xf32>
    %31 = vector.shape_cast %30 : vector<1x1x256xf32> to vector<1x256xf32>
    %32 = vector.broadcast %31 : vector<1x256xf32> to vector<32x256xf32>
    %33 = arith.mulf %1, %32 : vector<32x256xf32>
    %34 = arith.truncf %33 : vector<32x256xf32> to vector<32x256xbf16>
    %c128 = arith.constant 128 : index
    %c0_18 = arith.constant 0 : index
    %35 = vector.load %arg26[%c128, %c0_18] : memref<576x256xbf16, #tpu.memory_space<vmem>>, vector<32x256xbf16>
    tpu.vector_store %arg26[%c128, %c0_18], %34 {strides = array<i32>} : memref<576x256xbf16, #tpu.memory_space<vmem>>, vector<32x256xbf16>,
    %c255_i32 = arith.constant 255 : i32
    %36 = tpu.dynamic_rotate %1 by %c255_i32 dim 1 : vector<32x256xf32>, i32 -> vector<32x256xf32>
    %c5 = arith.constant 5 : index
    %c0_19 = arith.constant 0 : index
    %c0_20 = arith.constant 0 : index
    %37 = vector.load %arg2[%c5, %c0_19, %c0_20] : memref<9x1x256xf32, #tpu.memory_space<vmem>>, vector<1x1x256xf32>
    %38 = vector.shape_cast %37 : vector<1x1x256xf32> to vector<1x256xf32>
    %39 = vector.broadcast %38 : vector<1x256xf32> to vector<32x256xf32>
    %40 = arith.mulf %36, %39 : vector<32x256xf32>
    %41 = arith.truncf %40 : vector<32x256xf32> to vector<32x256xbf16>
    %c160 = arith.constant 160 : index
    %c0_21 = arith.constant 0 : index
    %42 = vector.load %arg26[%c160, %c0_21] : memref<576x256xbf16, #tpu.memory_space<vmem>>, vector<32x256xbf16>
    tpu.vector_store %arg26[%c160, %c0_21], %41 {strides = array<i32>} : memref<576x256xbf16, #tpu.memory_space<vmem>>, vector<32x256xbf16>,
    %c241_i32 = arith.constant 241 : i32
    %43 = tpu.dynamic_rotate %1 by %c241_i32 dim 1 : vector<32x256xf32>, i32 -> vector<32x256xf32>
    %c6 = arith.constant 6 : index
    %c0_22 = arith.constant 0 : index
    %c0_23 = arith.constant 0 : index
    %44 = vector.load %arg2[%c6, %c0_22, %c0_23] : memref<9x1x256xf32, #tpu.memory_space<vmem>>, vector<1x1x256xf32>
    %45 = vector.shape_cast %44 : vector<1x1x256xf32> to vector<1x256xf32>
    %46 = vector.broadcast %45 : vector<1x256xf32> to vector<32x256xf32>
    %47 = arith.mulf %43, %46 : vector<32x256xf32>
    %48 = arith.truncf %47 : vector<32x256xf32> to vector<32x256xbf16>
    %c192 = arith.constant 192 : index
    %c0_24 = arith.constant 0 : index
    %49 = vector.load %arg26[%c192, %c0_24] : memref<576x256xbf16, #tpu.memory_space<vmem>>, vector<32x256xbf16>
    tpu.vector_store %arg26[%c192, %c0_24], %48 {strides = array<i32>} : memref<576x256xbf16, #tpu.memory_space<vmem>>, vector<32x256xbf16>,
    %c240_i32 = arith.constant 240 : i32
    %50 = tpu.dynamic_rotate %1 by %c240_i32 dim 1 : vector<32x256xf32>, i32 -> vector<32x256xf32>
    %c7 = arith.constant 7 : index
    %c0_25 = arith.constant 0 : index
    %c0_26 = arith.constant 0 : index
    %51 = vector.load %arg2[%c7, %c0_25, %c0_26] : memref<9x1x256xf32, #tpu.memory_space<vmem>>, vector<1x1x256xf32>
    %52 = vector.shape_cast %51 : vector<1x1x256xf32> to vector<1x256xf32>
    %53 = vector.broadcast %52 : vector<1x256xf32> to vector<32x256xf32>
    %54 = arith.mulf %50, %53 : vector<32x256xf32>
    %55 = arith.truncf %54 : vector<32x256xf32> to vector<32x256xbf16>
    %c224 = arith.constant 224 : index
    %c0_27 = arith.constant 0 : index
    %56 = vector.load %arg26[%c224, %c0_27] : memref<576x256xbf16, #tpu.memory_space<vmem>>, vector<32x256xbf16>
    tpu.vector_store %arg26[%c224, %c0_27], %55 {strides = array<i32>} : memref<576x256xbf16, #tpu.memory_space<vmem>>, vector<32x256xbf16>,
    %c239_i32 = arith.constant 239 : i32
    %57 = tpu.dynamic_rotate %1 by %c239_i32 dim 1 : vector<32x256xf32>, i32 -> vector<32x256xf32>
    %c8 = arith.constant 8 : index
    %c0_28 = arith.constant 0 : index
    %c0_29 = arith.constant 0 : index
    %58 = vector.load %arg2[%c8, %c0_28, %c0_29] : memref<9x1x256xf32, #tpu.memory_space<vmem>>, vector<1x1x256xf32>
    %59 = vector.shape_cast %58 : vector<1x1x256xf32> to vector<1x256xf32>
    %60 = vector.broadcast %59 : vector<1x256xf32> to vector<32x256xf32>
    %61 = arith.mulf %57, %60 : vector<32x256xf32>
    %62 = arith.truncf %61 : vector<32x256xf32> to vector<32x256xbf16>
    %c256 = arith.constant 256 : index
    %c0_30 = arith.constant 0 : index
    %63 = vector.load %arg26[%c256, %c0_30] : memref<576x256xbf16, #tpu.memory_space<vmem>>, vector<32x256xbf16>
    tpu.vector_store %arg26[%c256, %c0_30], %62 {strides = array<i32>} : memref<576x256xbf16, #tpu.memory_space<vmem>>, vector<32x256xbf16>,
    %c0_31 = arith.constant 0 : index
    %c0_32 = arith.constant 0 : index
    %64 = vector.load %arg26[%c0_31, %c0_32] : memref<576x256xbf16, #tpu.memory_space<vmem>>, vector<288x256xbf16>
    %c0_33 = arith.constant 0 : index
    %c0_34 = arith.constant 0 : index
    %65 = vector.load %arg3[%c0_33, %c0_34] : memref<64x288xbf16, #tpu.memory_space<vmem>>, vector<64x288xbf16>
    %cst = arith.constant dense<0.000000e+00> : vector<64x256xf32>
    %66 = tpu.matmul %65, %64, %cst {dimension_numbers = #tpu.dot_dimension_numbers<[1], [0], [0], [1], [0, 0, 1, 1], [], []>} : vector<64x288xbf16>, vector<288x256xbf16>, vector<64x256xf32> -> vector<64x256xf32>
    %c0_35 = arith.constant 0 : index
    %c0_36 = arith.constant 0 : index
    %67 = vector.load %arg4[%c0_35, %c0_36] : memref<64x1xf32, #tpu.memory_space<vmem>>, vector<64x1xf32>
    %68 = vector.broadcast %67 : vector<64x1xf32> to vector<64x256xf32>
    %69 = arith.addf %66, %68 : vector<64x256xf32>
    %cst_37 = arith.constant 0.000000e+00 : f32
    %70 = vector.broadcast %cst_37 : f32 to vector<64x256xf32>
    %71 = arith.maximumf %69, %70 : vector<64x256xf32>
    %c0_38 = arith.constant 0 : index
    %c0_39 = arith.constant 0 : index
    %72 = vector.load %arg9[%c0_38, %c0_39] : memref<64x64xbf16, #tpu.memory_space<vmem>>, vector<64x64xbf16>
    %73 = arith.truncf %71 : vector<64x256xf32> to vector<64x256xbf16>
    %cst_40 = arith.constant dense<0.000000e+00> : vector<64x256xf32>
    %74 = tpu.matmul %72, %73, %cst_40 {dimension_numbers = #tpu.dot_dimension_numbers<[1], [0], [0], [1], [0, 0, 1, 1], [], []>} : vector<64x64xbf16>, vector<64x256xbf16>, vector<64x256xf32> -> vector<64x256xf32>
    %c0_41 = arith.constant 0 : index
    %c0_42 = arith.constant 0 : index
    %75 = vector.load %arg10[%c0_41, %c0_42] : memref<64x1xf32, #tpu.memory_space<vmem>>, vector<64x1xf32>
    %76 = vector.broadcast %75 : vector<64x1xf32> to vector<64x256xf32>
    %77 = arith.addf %74, %76 : vector<64x256xf32>
    %c17_i32_43 = arith.constant 17 : i32
    %78 = tpu.dynamic_rotate %71 by %c17_i32_43 dim 1 : vector<64x256xf32>, i32 -> vector<64x256xf32>
    %c0_44 = arith.constant 0 : index
    %c0_45 = arith.constant 0 : index
    %c0_46 = arith.constant 0 : index
    %79 = vector.load %arg2[%c0_44, %c0_45, %c0_46] : memref<9x1x256xf32, #tpu.memory_space<vmem>>, vector<1x1x256xf32>
    %80 = vector.shape_cast %79 : vector<1x1x256xf32> to vector<1x256xf32>
    %81 = vector.broadcast %80 : vector<1x256xf32> to vector<64x256xf32>
    %82 = arith.mulf %78, %81 : vector<64x256xf32>
    %83 = arith.truncf %82 : vector<64x256xf32> to vector<64x256xbf16>
    %c0_47 = arith.constant 0 : index
    %c0_48 = arith.constant 0 : index
    %84 = vector.load %arg26[%c0_47, %c0_48] : memref<576x256xbf16, #tpu.memory_space<vmem>>, vector<64x256xbf16>
    tpu.vector_store %arg26[%c0_47, %c0_48], %83 {strides = array<i32>} : memref<576x256xbf16, #tpu.memory_space<vmem>>, vector<64x256xbf16>,
    %c16_i32_49 = arith.constant 16 : i32
    %85 = tpu.dynamic_rotate %71 by %c16_i32_49 dim 1 : vector<64x256xf32>, i32 -> vector<64x256xf32>
    %c1_50 = arith.constant 1 : index
    %c0_51 = arith.constant 0 : index
    %c0_52 = arith.constant 0 : index
    %86 = vector.load %arg2[%c1_50, %c0_51, %c0_52] : memref<9x1x256xf32, #tpu.memory_space<vmem>>, vector<1x1x256xf32>
    %87 = vector.shape_cast %86 : vector<1x1x256xf32> to vector<1x256xf32>
    %88 = vector.broadcast %87 : vector<1x256xf32> to vector<64x256xf32>
    %89 = arith.mulf %85, %88 : vector<64x256xf32>
    %90 = arith.truncf %89 : vector<64x256xf32> to vector<64x256xbf16>
    %c64_53 = arith.constant 64 : index
    %c0_54 = arith.constant 0 : index
    %91 = vector.load %arg26[%c64_53, %c0_54] : memref<576x256xbf16, #tpu.memory_space<vmem>>, vector<64x256xbf16>
    tpu.vector_store %arg26[%c64_53, %c0_54], %90 {strides = array<i32>} : memref<576x256xbf16, #tpu.memory_space<vmem>>, vector<64x256xbf16>,
    %c15_i32_55 = arith.constant 15 : i32
    %92 = tpu.dynamic_rotate %71 by %c15_i32_55 dim 1 : vector<64x256xf32>, i32 -> vector<64x256xf32>
    %c2_56 = arith.constant 2 : index
    %c0_57 = arith.constant 0 : index
    %c0_58 = arith.constant 0 : index
    %93 = vector.load %arg2[%c2_56, %c0_57, %c0_58] : memref<9x1x256xf32, #tpu.memory_space<vmem>>, vector<1x1x256xf32>
    %94 = vector.shape_cast %93 : vector<1x1x256xf32> to vector<1x256xf32>
    %95 = vector.broadcast %94 : vector<1x256xf32> to vector<64x256xf32>
    %96 = arith.mulf %92, %95 : vector<64x256xf32>
    %97 = arith.truncf %96 : vector<64x256xf32> to vector<64x256xbf16>
    %c128_59 = arith.constant 128 : index
    %c0_60 = arith.constant 0 : index
    %98 = vector.load %arg26[%c128_59, %c0_60] : memref<576x256xbf16, #tpu.memory_space<vmem>>, vector<64x256xbf16>
    tpu.vector_store %arg26[%c128_59, %c0_60], %97 {strides = array<i32>} : memref<576x256xbf16, #tpu.memory_space<vmem>>, vector<64x256xbf16>,
    %c1_i32_61 = arith.constant 1 : i32
    %99 = tpu.dynamic_rotate %71 by %c1_i32_61 dim 1 : vector<64x256xf32>, i32 -> vector<64x256xf32>
    %c3_62 = arith.constant 3 : index
    %c0_63 = arith.constant 0 : index
    %c0_64 = arith.constant 0 : index
    %100 = vector.load %arg2[%c3_62, %c0_63, %c0_64] : memref<9x1x256xf32, #tpu.memory_space<vmem>>, vector<1x1x256xf32>
    %101 = vector.shape_cast %100 : vector<1x1x256xf32> to vector<1x256xf32>
    %102 = vector.broadcast %101 : vector<1x256xf32> to vector<64x256xf32>
    %103 = arith.mulf %99, %102 : vector<64x256xf32>
    %104 = arith.truncf %103 : vector<64x256xf32> to vector<64x256xbf16>
    %c192_65 = arith.constant 192 : index
    %c0_66 = arith.constant 0 : index
    %105 = vector.load %arg26[%c192_65, %c0_66] : memref<576x256xbf16, #tpu.memory_space<vmem>>, vector<64x256xbf16>
    tpu.vector_store %arg26[%c192_65, %c0_66], %104 {strides = array<i32>} : memref<576x256xbf16, #tpu.memory_space<vmem>>, vector<64x256xbf16>,
    %c4_67 = arith.constant 4 : index
    %c0_68 = arith.constant 0 : index
    %c0_69 = arith.constant 0 : index
    %106 = vector.load %arg2[%c4_67, %c0_68, %c0_69] : memref<9x1x256xf32, #tpu.memory_space<vmem>>, vector<1x1x256xf32>
    %107 = vector.shape_cast %106 : vector<1x1x256xf32> to vector<1x256xf32>
    %108 = vector.broadcast %107 : vector<1x256xf32> to vector<64x256xf32>
    %109 = arith.mulf %71, %108 : vector<64x256xf32>
    %110 = arith.truncf %109 : vector<64x256xf32> to vector<64x256xbf16>
    %c256_70 = arith.constant 256 : index
    %c0_71 = arith.constant 0 : index
    %111 = vector.load %arg26[%c256_70, %c0_71] : memref<576x256xbf16, #tpu.memory_space<vmem>>, vector<64x256xbf16>
    tpu.vector_store %arg26[%c256_70, %c0_71], %110 {strides = array<i32>} : memref<576x256xbf16, #tpu.memory_space<vmem>>, vector<64x256xbf16>,
    %c255_i32_72 = arith.constant 255 : i32
    %112 = tpu.dynamic_rotate %71 by %c255_i32_72 dim 1 : vector<64x256xf32>, i32 -> vector<64x256xf32>
    %c5_73 = arith.constant 5 : index
    %c0_74 = arith.constant 0 : index
    %c0_75 = arith.constant 0 : index
    %113 = vector.load %arg2[%c5_73, %c0_74, %c0_75] : memref<9x1x256xf32, #tpu.memory_space<vmem>>, vector<1x1x256xf32>
    %114 = vector.shape_cast %113 : vector<1x1x256xf32> to vector<1x256xf32>
    %115 = vector.broadcast %114 : vector<1x256xf32> to vector<64x256xf32>
    %116 = arith.mulf %112, %115 : vector<64x256xf32>
    %117 = arith.truncf %116 : vector<64x256xf32> to vector<64x256xbf16>
    %c320 = arith.constant 320 : index
    %c0_76 = arith.constant 0 : index
    %118 = vector.load %arg26[%c320, %c0_76] : memref<576x256xbf16, #tpu.memory_space<vmem>>, vector<64x256xbf16>
    tpu.vector_store %arg26[%c320, %c0_76], %117 {strides = array<i32>} : memref<576x256xbf16, #tpu.memory_space<vmem>>, vector<64x256xbf16>,
    %c241_i32_77 = arith.constant 241 : i32
    %119 = tpu.dynamic_rotate %71 by %c241_i32_77 dim 1 : vector<64x256xf32>, i32 -> vector<64x256xf32>
    %c6_78 = arith.constant 6 : index
    %c0_79 = arith.constant 0 : index
    %c0_80 = arith.constant 0 : index
    %120 = vector.load %arg2[%c6_78, %c0_79, %c0_80] : memref<9x1x256xf32, #tpu.memory_space<vmem>>, vector<1x1x256xf32>
    %121 = vector.shape_cast %120 : vector<1x1x256xf32> to vector<1x256xf32>
    %122 = vector.broadcast %121 : vector<1x256xf32> to vector<64x256xf32>
    %123 = arith.mulf %119, %122 : vector<64x256xf32>
    %124 = arith.truncf %123 : vector<64x256xf32> to vector<64x256xbf16>
    %c384 = arith.constant 384 : index
    %c0_81 = arith.constant 0 : index
    %125 = vector.load %arg26[%c384, %c0_81] : memref<576x256xbf16, #tpu.memory_space<vmem>>, vector<64x256xbf16>
    tpu.vector_store %arg26[%c384, %c0_81], %124 {strides = array<i32>} : memref<576x256xbf16, #tpu.memory_space<vmem>>, vector<64x256xbf16>,
    %c240_i32_82 = arith.constant 240 : i32
    %126 = tpu.dynamic_rotate %71 by %c240_i32_82 dim 1 : vector<64x256xf32>, i32 -> vector<64x256xf32>
    %c7_83 = arith.constant 7 : index
    %c0_84 = arith.constant 0 : index
    %c0_85 = arith.constant 0 : index
    %127 = vector.load %arg2[%c7_83, %c0_84, %c0_85] : memref<9x1x256xf32, #tpu.memory_space<vmem>>, vector<1x1x256xf32>
    %128 = vector.shape_cast %127 : vector<1x1x256xf32> to vector<1x256xf32>
    %129 = vector.broadcast %128 : vector<1x256xf32> to vector<64x256xf32>
    %130 = arith.mulf %126, %129 : vector<64x256xf32>
    %131 = arith.truncf %130 : vector<64x256xf32> to vector<64x256xbf16>
    %c448 = arith.constant 448 : index
    %c0_86 = arith.constant 0 : index
    %132 = vector.load %arg26[%c448, %c0_86] : memref<576x256xbf16, #tpu.memory_space<vmem>>, vector<64x256xbf16>
    tpu.vector_store %arg26[%c448, %c0_86], %131 {strides = array<i32>} : memref<576x256xbf16, #tpu.memory_space<vmem>>, vector<64x256xbf16>,
    %c239_i32_87 = arith.constant 239 : i32
    %133 = tpu.dynamic_rotate %71 by %c239_i32_87 dim 1 : vector<64x256xf32>, i32 -> vector<64x256xf32>
    %c8_88 = arith.constant 8 : index
    %c0_89 = arith.constant 0 : index
    %c0_90 = arith.constant 0 : index
    %134 = vector.load %arg2[%c8_88, %c0_89, %c0_90] : memref<9x1x256xf32, #tpu.memory_space<vmem>>, vector<1x1x256xf32>
    %135 = vector.shape_cast %134 : vector<1x1x256xf32> to vector<1x256xf32>
    %136 = vector.broadcast %135 : vector<1x256xf32> to vector<64x256xf32>
    %137 = arith.mulf %133, %136 : vector<64x256xf32>
    %138 = arith.truncf %137 : vector<64x256xf32> to vector<64x256xbf16>
    %c512 = arith.constant 512 : index
    %c0_91 = arith.constant 0 : index
    %139 = vector.load %arg26[%c512, %c0_91] : memref<576x256xbf16, #tpu.memory_space<vmem>>, vector<64x256xbf16>
    tpu.vector_store %arg26[%c512, %c0_91], %138 {strides = array<i32>} : memref<576x256xbf16, #tpu.memory_space<vmem>>, vector<64x256xbf16>,
    %c0_92 = arith.constant 0 : index
    %c0_93 = arith.constant 0 : index
    %140 = vector.load %arg26[%c0_92, %c0_93] : memref<576x256xbf16, #tpu.memory_space<vmem>>, vector<576x256xbf16>
    %c0_94 = arith.constant 0 : index
    %c0_95 = arith.constant 0 : index
    %141 = vector.load %arg5[%c0_94, %c0_95] : memref<64x576xbf16, #tpu.memory_space<vmem>>, vector<64x576xbf16>
    %cst_96 = arith.constant dense<0.000000e+00> : vector<64x256xf32>
    %142 = tpu.matmul %141, %140, %cst_96 {dimension_numbers = #tpu.dot_dimension_numbers<[1], [0], [0], [1], [0, 0, 1, 1], [], []>} : vector<64x576xbf16>, vector<576x256xbf16>, vector<64x256xf32> -> vector<64x256xf32>
    %c0_97 = arith.constant 0 : index
    %c0_98 = arith.constant 0 : index
    %143 = vector.load %arg6[%c0_97, %c0_98] : memref<64x1xf32, #tpu.memory_space<vmem>>, vector<64x1xf32>
    %144 = vector.broadcast %143 : vector<64x1xf32> to vector<64x256xf32>
    %145 = arith.addf %142, %144 : vector<64x256xf32>
    %cst_99 = arith.constant 0.000000e+00 : f32
    %146 = vector.broadcast %cst_99 : f32 to vector<64x256xf32>
    %147 = arith.maximumf %145, %146 : vector<64x256xf32>
    %c17_i32_100 = arith.constant 17 : i32
    %148 = tpu.dynamic_rotate %147 by %c17_i32_100 dim 1 : vector<64x256xf32>, i32 -> vector<64x256xf32>
    %c0_101 = arith.constant 0 : index
    %c0_102 = arith.constant 0 : index
    %c0_103 = arith.constant 0 : index
    %149 = vector.load %arg2[%c0_101, %c0_102, %c0_103] : memref<9x1x256xf32, #tpu.memory_space<vmem>>, vector<1x1x256xf32>
    %150 = vector.shape_cast %149 : vector<1x1x256xf32> to vector<1x256xf32>
    %151 = vector.broadcast %150 : vector<1x256xf32> to vector<64x256xf32>
    %152 = arith.mulf %148, %151 : vector<64x256xf32>
    %153 = arith.truncf %152 : vector<64x256xf32> to vector<64x256xbf16>
    %c0_104 = arith.constant 0 : index
    %c0_105 = arith.constant 0 : index
    %154 = vector.load %arg26[%c0_104, %c0_105] : memref<576x256xbf16, #tpu.memory_space<vmem>>, vector<64x256xbf16>
    tpu.vector_store %arg26[%c0_104, %c0_105], %153 {strides = array<i32>} : memref<576x256xbf16, #tpu.memory_space<vmem>>, vector<64x256xbf16>,
    %c16_i32_106 = arith.constant 16 : i32
    %155 = tpu.dynamic_rotate %147 by %c16_i32_106 dim 1 : vector<64x256xf32>, i32 -> vector<64x256xf32>
    %c1_107 = arith.constant 1 : index
    %c0_108 = arith.constant 0 : index
    %c0_109 = arith.constant 0 : index
    %156 = vector.load %arg2[%c1_107, %c0_108, %c0_109] : memref<9x1x256xf32, #tpu.memory_space<vmem>>, vector<1x1x256xf32>
    %157 = vector.shape_cast %156 : vector<1x1x256xf32> to vector<1x256xf32>
    %158 = vector.broadcast %157 : vector<1x256xf32> to vector<64x256xf32>
    %159 = arith.mulf %155, %158 : vector<64x256xf32>
    %160 = arith.truncf %159 : vector<64x256xf32> to vector<64x256xbf16>
    %c64_110 = arith.constant 64 : index
    %c0_111 = arith.constant 0 : index
    %161 = vector.load %arg26[%c64_110, %c0_111] : memref<576x256xbf16, #tpu.memory_space<vmem>>, vector<64x256xbf16>
    tpu.vector_store %arg26[%c64_110, %c0_111], %160 {strides = array<i32>} : memref<576x256xbf16, #tpu.memory_space<vmem>>, vector<64x256xbf16>,
    %c15_i32_112 = arith.constant 15 : i32
    %162 = tpu.dynamic_rotate %147 by %c15_i32_112 dim 1 : vector<64x256xf32>, i32 -> vector<64x256xf32>
    %c2_113 = arith.constant 2 : index
    %c0_114 = arith.constant 0 : index
    %c0_115 = arith.constant 0 : index
    %163 = vector.load %arg2[%c2_113, %c0_114, %c0_115] : memref<9x1x256xf32, #tpu.memory_space<vmem>>, vector<1x1x256xf32>
    %164 = vector.shape_cast %163 : vector<1x1x256xf32> to vector<1x256xf32>
    %165 = vector.broadcast %164 : vector<1x256xf32> to vector<64x256xf32>
    %166 = arith.mulf %162, %165 : vector<64x256xf32>
    %167 = arith.truncf %166 : vector<64x256xf32> to vector<64x256xbf16>
    %c128_116 = arith.constant 128 : index
    %c0_117 = arith.constant 0 : index
    %168 = vector.load %arg26[%c128_116, %c0_117] : memref<576x256xbf16, #tpu.memory_space<vmem>>, vector<64x256xbf16>
    tpu.vector_store %arg26[%c128_116, %c0_117], %167 {strides = array<i32>} : memref<576x256xbf16, #tpu.memory_space<vmem>>, vector<64x256xbf16>,
    %c1_i32_118 = arith.constant 1 : i32
    %169 = tpu.dynamic_rotate %147 by %c1_i32_118 dim 1 : vector<64x256xf32>, i32 -> vector<64x256xf32>
    %c3_119 = arith.constant 3 : index
    %c0_120 = arith.constant 0 : index
    %c0_121 = arith.constant 0 : index
    %170 = vector.load %arg2[%c3_119, %c0_120, %c0_121] : memref<9x1x256xf32, #tpu.memory_space<vmem>>, vector<1x1x256xf32>
    %171 = vector.shape_cast %170 : vector<1x1x256xf32> to vector<1x256xf32>
    %172 = vector.broadcast %171 : vector<1x256xf32> to vector<64x256xf32>
    %173 = arith.mulf %169, %172 : vector<64x256xf32>
    %174 = arith.truncf %173 : vector<64x256xf32> to vector<64x256xbf16>
    %c192_122 = arith.constant 192 : index
    %c0_123 = arith.constant 0 : index
    %175 = vector.load %arg26[%c192_122, %c0_123] : memref<576x256xbf16, #tpu.memory_space<vmem>>, vector<64x256xbf16>
    tpu.vector_store %arg26[%c192_122, %c0_123], %174 {strides = array<i32>} : memref<576x256xbf16, #tpu.memory_space<vmem>>, vector<64x256xbf16>,
    %c4_124 = arith.constant 4 : index
    %c0_125 = arith.constant 0 : index
    %c0_126 = arith.constant 0 : index
    %176 = vector.load %arg2[%c4_124, %c0_125, %c0_126] : memref<9x1x256xf32, #tpu.memory_space<vmem>>, vector<1x1x256xf32>
    %177 = vector.shape_cast %176 : vector<1x1x256xf32> to vector<1x256xf32>
    %178 = vector.broadcast %177 : vector<1x256xf32> to vector<64x256xf32>
    %179 = arith.mulf %147, %178 : vector<64x256xf32>
    %180 = arith.truncf %179 : vector<64x256xf32> to vector<64x256xbf16>
    %c256_127 = arith.constant 256 : index
    %c0_128 = arith.constant 0 : index
    %181 = vector.load %arg26[%c256_127, %c0_128] : memref<576x256xbf16, #tpu.memory_space<vmem>>, vector<64x256xbf16>
    tpu.vector_store %arg26[%c256_127, %c0_128], %180 {strides = array<i32>} : memref<576x256xbf16, #tpu.memory_space<vmem>>, vector<64x256xbf16>,
    %c255_i32_129 = arith.constant 255 : i32
    %182 = tpu.dynamic_rotate %147 by %c255_i32_129 dim 1 : vector<64x256xf32>, i32 -> vector<64x256xf32>
    %c5_130 = arith.constant 5 : index
    %c0_131 = arith.constant 0 : index
    %c0_132 = arith.constant 0 : index
    %183 = vector.load %arg2[%c5_130, %c0_131, %c0_132] : memref<9x1x256xf32, #tpu.memory_space<vmem>>, vector<1x1x256xf32>
    %184 = vector.shape_cast %183 : vector<1x1x256xf32> to vector<1x256xf32>
    %185 = vector.broadcast %184 : vector<1x256xf32> to vector<64x256xf32>
    %186 = arith.mulf %182, %185 : vector<64x256xf32>
    %187 = arith.truncf %186 : vector<64x256xf32> to vector<64x256xbf16>
    %c320_133 = arith.constant 320 : index
    %c0_134 = arith.constant 0 : index
    %188 = vector.load %arg26[%c320_133, %c0_134] : memref<576x256xbf16, #tpu.memory_space<vmem>>, vector<64x256xbf16>
    tpu.vector_store %arg26[%c320_133, %c0_134], %187 {strides = array<i32>} : memref<576x256xbf16, #tpu.memory_space<vmem>>, vector<64x256xbf16>,
    %c241_i32_135 = arith.constant 241 : i32
    %189 = tpu.dynamic_rotate %147 by %c241_i32_135 dim 1 : vector<64x256xf32>, i32 -> vector<64x256xf32>
    %c6_136 = arith.constant 6 : index
    %c0_137 = arith.constant 0 : index
    %c0_138 = arith.constant 0 : index
    %190 = vector.load %arg2[%c6_136, %c0_137, %c0_138] : memref<9x1x256xf32, #tpu.memory_space<vmem>>, vector<1x1x256xf32>
    %191 = vector.shape_cast %190 : vector<1x1x256xf32> to vector<1x256xf32>
    %192 = vector.broadcast %191 : vector<1x256xf32> to vector<64x256xf32>
    %193 = arith.mulf %189, %192 : vector<64x256xf32>
    %194 = arith.truncf %193 : vector<64x256xf32> to vector<64x256xbf16>
    %c384_139 = arith.constant 384 : index
    %c0_140 = arith.constant 0 : index
    %195 = vector.load %arg26[%c384_139, %c0_140] : memref<576x256xbf16, #tpu.memory_space<vmem>>, vector<64x256xbf16>
    tpu.vector_store %arg26[%c384_139, %c0_140], %194 {strides = array<i32>} : memref<576x256xbf16, #tpu.memory_space<vmem>>, vector<64x256xbf16>,
    %c240_i32_141 = arith.constant 240 : i32
    %196 = tpu.dynamic_rotate %147 by %c240_i32_141 dim 1 : vector<64x256xf32>, i32 -> vector<64x256xf32>
    %c7_142 = arith.constant 7 : index
    %c0_143 = arith.constant 0 : index
    %c0_144 = arith.constant 0 : index
    %197 = vector.load %arg2[%c7_142, %c0_143, %c0_144] : memref<9x1x256xf32, #tpu.memory_space<vmem>>, vector<1x1x256xf32>
    %198 = vector.shape_cast %197 : vector<1x1x256xf32> to vector<1x256xf32>
    %199 = vector.broadcast %198 : vector<1x256xf32> to vector<64x256xf32>
    %200 = arith.mulf %196, %199 : vector<64x256xf32>
    %201 = arith.truncf %200 : vector<64x256xf32> to vector<64x256xbf16>
    %c448_145 = arith.constant 448 : index
    %c0_146 = arith.constant 0 : index
    %202 = vector.load %arg26[%c448_145, %c0_146] : memref<576x256xbf16, #tpu.memory_space<vmem>>, vector<64x256xbf16>
    tpu.vector_store %arg26[%c448_145, %c0_146], %201 {strides = array<i32>} : memref<576x256xbf16, #tpu.memory_space<vmem>>, vector<64x256xbf16>,
    %c239_i32_147 = arith.constant 239 : i32
    %203 = tpu.dynamic_rotate %147 by %c239_i32_147 dim 1 : vector<64x256xf32>, i32 -> vector<64x256xf32>
    %c8_148 = arith.constant 8 : index
    %c0_149 = arith.constant 0 : index
    %c0_150 = arith.constant 0 : index
    %204 = vector.load %arg2[%c8_148, %c0_149, %c0_150] : memref<9x1x256xf32, #tpu.memory_space<vmem>>, vector<1x1x256xf32>
    %205 = vector.shape_cast %204 : vector<1x1x256xf32> to vector<1x256xf32>
    %206 = vector.broadcast %205 : vector<1x256xf32> to vector<64x256xf32>
    %207 = arith.mulf %203, %206 : vector<64x256xf32>
    %208 = arith.truncf %207 : vector<64x256xf32> to vector<64x256xbf16>
    %c512_151 = arith.constant 512 : index
    %c0_152 = arith.constant 0 : index
    %209 = vector.load %arg26[%c512_151, %c0_152] : memref<576x256xbf16, #tpu.memory_space<vmem>>, vector<64x256xbf16>
    tpu.vector_store %arg26[%c512_151, %c0_152], %208 {strides = array<i32>} : memref<576x256xbf16, #tpu.memory_space<vmem>>, vector<64x256xbf16>,
    %c0_153 = arith.constant 0 : index
    %c0_154 = arith.constant 0 : index
    %210 = vector.load %arg26[%c0_153, %c0_154] : memref<576x256xbf16, #tpu.memory_space<vmem>>, vector<576x256xbf16>
    %c0_155 = arith.constant 0 : index
    %c0_156 = arith.constant 0 : index
    %211 = vector.load %arg7[%c0_155, %c0_156] : memref<64x576xbf16, #tpu.memory_space<vmem>>, vector<64x576xbf16>
    %cst_157 = arith.constant dense<0.000000e+00> : vector<64x256xf32>
    %212 = tpu.matmul %211, %210, %cst_157 {dimension_numbers = #tpu.dot_dimension_numbers<[1], [0], [0], [1], [0, 0, 1, 1], [], []>} : vector<64x576xbf16>, vector<576x256xbf16>, vector<64x256xf32> -> vector<64x256xf32>
    %c0_158 = arith.constant 0 : index
    %c0_159 = arith.constant 0 : index
    %213 = vector.load %arg8[%c0_158, %c0_159] : memref<64x1xf32, #tpu.memory_space<vmem>>, vector<64x1xf32>
    %214 = vector.broadcast %213 : vector<64x1xf32> to vector<64x256xf32>
    %215 = arith.addf %212, %214 : vector<64x256xf32>
    %cst_160 = arith.constant 0.000000e+00 : f32
    %216 = vector.broadcast %cst_160 : f32 to vector<64x256xf32>
    %217 = arith.maximumf %215, %216 : vector<64x256xf32>
    %c0_161 = arith.constant 0 : index
    %c0_162 = arith.constant 0 : index
    %218 = vector.load %arg11[%c0_161, %c0_162] : memref<64x1xf32, #tpu.memory_space<vmem>>, vector<64x1xf32>
    %219 = vector.broadcast %218 : vector<64x1xf32> to vector<64x256xf32>
    %220 = arith.mulf %217, %219 : vector<64x256xf32>
    %cst_163 = arith.constant dense<0.000000e+00> : vector<256xf32>
    %221 = vector.multi_reduction <add>, %220, %cst_163 [0] : vector<64x256xf32> to vector<256xf32>
    %222 = vector.shape_cast %221 : vector<256xf32> to vector<1x256xf32>
    %c0_164 = arith.constant 0 : index
    %c0_165 = arith.constant 0 : index
    %223 = vector.load %arg12[%c0_164, %c0_165] : memref<1x1xf32, #tpu.memory_space<vmem>>, vector<1x1xf32>
    %224 = vector.broadcast %223 : vector<1x1xf32> to vector<1x256xf32>
    %225 = arith.addf %222, %224 : vector<1x256xf32>
    %226 = arith.negf %225 : vector<1x256xf32>
    %227 = math.exp %226 : vector<1x256xf32>
    %cst_166 = arith.constant 1.000000e+00 : f32
    %228 = vector.broadcast %cst_166 : f32 to vector<1x256xf32>
    %229 = arith.addf %228, %227 : vector<1x256xf32>
    %230 = arith.divf %228, %229 : vector<1x256xf32>
    %231 = vector.broadcast %230 : vector<1x256xf32> to vector<64x256xf32>
    %232 = arith.mulf %217, %231 : vector<64x256xf32>
    %233 = arith.addf %232, %77 : vector<64x256xf32>
    %cst_167 = arith.constant 0.000000e+00 : f32
    %234 = vector.broadcast %cst_167 : f32 to vector<64x256xf32>
    %235 = arith.maximumf %233, %234 : vector<64x256xf32>
    %c0_168 = arith.constant 0 : index
    %c0_169 = arith.constant 0 : index
    %236 = vector.load %arg17[%c0_168, %c0_169] : memref<64x64xbf16, #tpu.memory_space<vmem>>, vector<64x64xbf16>
    %237 = arith.truncf %235 : vector<64x256xf32> to vector<64x256xbf16>
    %cst_170 = arith.constant dense<0.000000e+00> : vector<64x256xf32>
    %238 = tpu.matmul %236, %237, %cst_170 {dimension_numbers = #tpu.dot_dimension_numbers<[1], [0], [0], [1], [0, 0, 1, 1], [], []>} : vector<64x64xbf16>, vector<64x256xbf16>, vector<64x256xf32> -> vector<64x256xf32>
    %c0_171 = arith.constant 0 : index
    %c0_172 = arith.constant 0 : index
    %239 = vector.load %arg18[%c0_171, %c0_172] : memref<64x1xf32, #tpu.memory_space<vmem>>, vector<64x1xf32>
    %240 = vector.broadcast %239 : vector<64x1xf32> to vector<64x256xf32>
    %241 = arith.addf %238, %240 : vector<64x256xf32>
    %c17_i32_173 = arith.constant 17 : i32
    %242 = tpu.dynamic_rotate %235 by %c17_i32_173 dim 1 : vector<64x256xf32>, i32 -> vector<64x256xf32>
    %c0_174 = arith.constant 0 : index
    %c0_175 = arith.constant 0 : index
    %c0_176 = arith.constant 0 : index
    %243 = vector.load %arg2[%c0_174, %c0_175, %c0_176] : memref<9x1x256xf32, #tpu.memory_space<vmem>>, vector<1x1x256xf32>
    %244 = vector.shape_cast %243 : vector<1x1x256xf32> to vector<1x256xf32>
    %245 = vector.broadcast %244 : vector<1x256xf32> to vector<64x256xf32>
    %246 = arith.mulf %242, %245 : vector<64x256xf32>
    %247 = arith.truncf %246 : vector<64x256xf32> to vector<64x256xbf16>
    %c0_177 = arith.constant 0 : index
    %c0_178 = arith.constant 0 : index
    %248 = vector.load %arg26[%c0_177, %c0_178] : memref<576x256xbf16, #tpu.memory_space<vmem>>, vector<64x256xbf16>
    tpu.vector_store %arg26[%c0_177, %c0_178], %247 {strides = array<i32>} : memref<576x256xbf16, #tpu.memory_space<vmem>>, vector<64x256xbf16>,
    %c16_i32_179 = arith.constant 16 : i32
    %249 = tpu.dynamic_rotate %235 by %c16_i32_179 dim 1 : vector<64x256xf32>, i32 -> vector<64x256xf32>
    %c1_180 = arith.constant 1 : index
    %c0_181 = arith.constant 0 : index
    %c0_182 = arith.constant 0 : index
    %250 = vector.load %arg2[%c1_180, %c0_181, %c0_182] : memref<9x1x256xf32, #tpu.memory_space<vmem>>, vector<1x1x256xf32>
    %251 = vector.shape_cast %250 : vector<1x1x256xf32> to vector<1x256xf32>
    %252 = vector.broadcast %251 : vector<1x256xf32> to vector<64x256xf32>
    %253 = arith.mulf %249, %252 : vector<64x256xf32>
    %254 = arith.truncf %253 : vector<64x256xf32> to vector<64x256xbf16>
    %c64_183 = arith.constant 64 : index
    %c0_184 = arith.constant 0 : index
    %255 = vector.load %arg26[%c64_183, %c0_184] : memref<576x256xbf16, #tpu.memory_space<vmem>>, vector<64x256xbf16>
    tpu.vector_store %arg26[%c64_183, %c0_184], %254 {strides = array<i32>} : memref<576x256xbf16, #tpu.memory_space<vmem>>, vector<64x256xbf16>,
    %c15_i32_185 = arith.constant 15 : i32
    %256 = tpu.dynamic_rotate %235 by %c15_i32_185 dim 1 : vector<64x256xf32>, i32 -> vector<64x256xf32>
    %c2_186 = arith.constant 2 : index
    %c0_187 = arith.constant 0 : index
    %c0_188 = arith.constant 0 : index
    %257 = vector.load %arg2[%c2_186, %c0_187, %c0_188] : memref<9x1x256xf32, #tpu.memory_space<vmem>>, vector<1x1x256xf32>
    %258 = vector.shape_cast %257 : vector<1x1x256xf32> to vector<1x256xf32>
    %259 = vector.broadcast %258 : vector<1x256xf32> to vector<64x256xf32>
    %260 = arith.mulf %256, %259 : vector<64x256xf32>
    %261 = arith.truncf %260 : vector<64x256xf32> to vector<64x256xbf16>
    %c128_189 = arith.constant 128 : index
    %c0_190 = arith.constant 0 : index
    %262 = vector.load %arg26[%c128_189, %c0_190] : memref<576x256xbf16, #tpu.memory_space<vmem>>, vector<64x256xbf16>
    tpu.vector_store %arg26[%c128_189, %c0_190], %261 {strides = array<i32>} : memref<576x256xbf16, #tpu.memory_space<vmem>>, vector<64x256xbf16>,
    %c1_i32_191 = arith.constant 1 : i32
    %263 = tpu.dynamic_rotate %235 by %c1_i32_191 dim 1 : vector<64x256xf32>, i32 -> vector<64x256xf32>
    %c3_192 = arith.constant 3 : index
    %c0_193 = arith.constant 0 : index
    %c0_194 = arith.constant 0 : index
    %264 = vector.load %arg2[%c3_192, %c0_193, %c0_194] : memref<9x1x256xf32, #tpu.memory_space<vmem>>, vector<1x1x256xf32>
    %265 = vector.shape_cast %264 : vector<1x1x256xf32> to vector<1x256xf32>
    %266 = vector.broadcast %265 : vector<1x256xf32> to vector<64x256xf32>
    %267 = arith.mulf %263, %266 : vector<64x256xf32>
    %268 = arith.truncf %267 : vector<64x256xf32> to vector<64x256xbf16>
    %c192_195 = arith.constant 192 : index
    %c0_196 = arith.constant 0 : index
    %269 = vector.load %arg26[%c192_195, %c0_196] : memref<576x256xbf16, #tpu.memory_space<vmem>>, vector<64x256xbf16>
    tpu.vector_store %arg26[%c192_195, %c0_196], %268 {strides = array<i32>} : memref<576x256xbf16, #tpu.memory_space<vmem>>, vector<64x256xbf16>,
    %c4_197 = arith.constant 4 : index
    %c0_198 = arith.constant 0 : index
    %c0_199 = arith.constant 0 : index
    %270 = vector.load %arg2[%c4_197, %c0_198, %c0_199] : memref<9x1x256xf32, #tpu.memory_space<vmem>>, vector<1x1x256xf32>
    %271 = vector.shape_cast %270 : vector<1x1x256xf32> to vector<1x256xf32>
    %272 = vector.broadcast %271 : vector<1x256xf32> to vector<64x256xf32>
    %273 = arith.mulf %235, %272 : vector<64x256xf32>
    %274 = arith.truncf %273 : vector<64x256xf32> to vector<64x256xbf16>
    %c256_200 = arith.constant 256 : index
    %c0_201 = arith.constant 0 : index
    %275 = vector.load %arg26[%c256_200, %c0_201] : memref<576x256xbf16, #tpu.memory_space<vmem>>, vector<64x256xbf16>
    tpu.vector_store %arg26[%c256_200, %c0_201], %274 {strides = array<i32>} : memref<576x256xbf16, #tpu.memory_space<vmem>>, vector<64x256xbf16>,
    %c255_i32_202 = arith.constant 255 : i32
    %276 = tpu.dynamic_rotate %235 by %c255_i32_202 dim 1 : vector<64x256xf32>, i32 -> vector<64x256xf32>
    %c5_203 = arith.constant 5 : index
    %c0_204 = arith.constant 0 : index
    %c0_205 = arith.constant 0 : index
    %277 = vector.load %arg2[%c5_203, %c0_204, %c0_205] : memref<9x1x256xf32, #tpu.memory_space<vmem>>, vector<1x1x256xf32>
    %278 = vector.shape_cast %277 : vector<1x1x256xf32> to vector<1x256xf32>
    %279 = vector.broadcast %278 : vector<1x256xf32> to vector<64x256xf32>
    %280 = arith.mulf %276, %279 : vector<64x256xf32>
    %281 = arith.truncf %280 : vector<64x256xf32> to vector<64x256xbf16>
    %c320_206 = arith.constant 320 : index
    %c0_207 = arith.constant 0 : index
    %282 = vector.load %arg26[%c320_206, %c0_207] : memref<576x256xbf16, #tpu.memory_space<vmem>>, vector<64x256xbf16>
    tpu.vector_store %arg26[%c320_206, %c0_207], %281 {strides = array<i32>} : memref<576x256xbf16, #tpu.memory_space<vmem>>, vector<64x256xbf16>,
    %c241_i32_208 = arith.constant 241 : i32
    %283 = tpu.dynamic_rotate %235 by %c241_i32_208 dim 1 : vector<64x256xf32>, i32 -> vector<64x256xf32>
    %c6_209 = arith.constant 6 : index
    %c0_210 = arith.constant 0 : index
    %c0_211 = arith.constant 0 : index
    %284 = vector.load %arg2[%c6_209, %c0_210, %c0_211] : memref<9x1x256xf32, #tpu.memory_space<vmem>>, vector<1x1x256xf32>
    %285 = vector.shape_cast %284 : vector<1x1x256xf32> to vector<1x256xf32>
    %286 = vector.broadcast %285 : vector<1x256xf32> to vector<64x256xf32>
    %287 = arith.mulf %283, %286 : vector<64x256xf32>
    %288 = arith.truncf %287 : vector<64x256xf32> to vector<64x256xbf16>
    %c384_212 = arith.constant 384 : index
    %c0_213 = arith.constant 0 : index
    %289 = vector.load %arg26[%c384_212, %c0_213] : memref<576x256xbf16, #tpu.memory_space<vmem>>, vector<64x256xbf16>
    tpu.vector_store %arg26[%c384_212, %c0_213], %288 {strides = array<i32>} : memref<576x256xbf16, #tpu.memory_space<vmem>>, vector<64x256xbf16>,
    %c240_i32_214 = arith.constant 240 : i32
    %290 = tpu.dynamic_rotate %235 by %c240_i32_214 dim 1 : vector<64x256xf32>, i32 -> vector<64x256xf32>
    %c7_215 = arith.constant 7 : index
    %c0_216 = arith.constant 0 : index
    %c0_217 = arith.constant 0 : index
    %291 = vector.load %arg2[%c7_215, %c0_216, %c0_217] : memref<9x1x256xf32, #tpu.memory_space<vmem>>, vector<1x1x256xf32>
    %292 = vector.shape_cast %291 : vector<1x1x256xf32> to vector<1x256xf32>
    %293 = vector.broadcast %292 : vector<1x256xf32> to vector<64x256xf32>
    %294 = arith.mulf %290, %293 : vector<64x256xf32>
    %295 = arith.truncf %294 : vector<64x256xf32> to vector<64x256xbf16>
    %c448_218 = arith.constant 448 : index
    %c0_219 = arith.constant 0 : index
    %296 = vector.load %arg26[%c448_218, %c0_219] : memref<576x256xbf16, #tpu.memory_space<vmem>>, vector<64x256xbf16>
    tpu.vector_store %arg26[%c448_218, %c0_219], %295 {strides = array<i32>} : memref<576x256xbf16, #tpu.memory_space<vmem>>, vector<64x256xbf16>,
    %c239_i32_220 = arith.constant 239 : i32
    %297 = tpu.dynamic_rotate %235 by %c239_i32_220 dim 1 : vector<64x256xf32>, i32 -> vector<64x256xf32>
    %c8_221 = arith.constant 8 : index
    %c0_222 = arith.constant 0 : index
    %c0_223 = arith.constant 0 : index
    %298 = vector.load %arg2[%c8_221, %c0_222, %c0_223] : memref<9x1x256xf32, #tpu.memory_space<vmem>>, vector<1x1x256xf32>
    %299 = vector.shape_cast %298 : vector<1x1x256xf32> to vector<1x256xf32>
    %300 = vector.broadcast %299 : vector<1x256xf32> to vector<64x256xf32>
    %301 = arith.mulf %297, %300 : vector<64x256xf32>
    %302 = arith.truncf %301 : vector<64x256xf32> to vector<64x256xbf16>
    %c512_224 = arith.constant 512 : index
    %c0_225 = arith.constant 0 : index
    %303 = vector.load %arg26[%c512_224, %c0_225] : memref<576x256xbf16, #tpu.memory_space<vmem>>, vector<64x256xbf16>
    tpu.vector_store %arg26[%c512_224, %c0_225], %302 {strides = array<i32>} : memref<576x256xbf16, #tpu.memory_space<vmem>>, vector<64x256xbf16>,
    %c0_226 = arith.constant 0 : index
    %c0_227 = arith.constant 0 : index
    %304 = vector.load %arg26[%c0_226, %c0_227] : memref<576x256xbf16, #tpu.memory_space<vmem>>, vector<576x256xbf16>
    %c0_228 = arith.constant 0 : index
    %c0_229 = arith.constant 0 : index
    %305 = vector.load %arg13[%c0_228, %c0_229] : memref<64x576xbf16, #tpu.memory_space<vmem>>, vector<64x576xbf16>
    %cst_230 = arith.constant dense<0.000000e+00> : vector<64x256xf32>
    %306 = tpu.matmul %305, %304, %cst_230 {dimension_numbers = #tpu.dot_dimension_numbers<[1], [0], [0], [1], [0, 0, 1, 1], [], []>} : vector<64x576xbf16>, vector<576x256xbf16>, vector<64x256xf32> -> vector<64x256xf32>
    %c0_231 = arith.constant 0 : index
    %c0_232 = arith.constant 0 : index
    %307 = vector.load %arg14[%c0_231, %c0_232] : memref<64x1xf32, #tpu.memory_space<vmem>>, vector<64x1xf32>
    %308 = vector.broadcast %307 : vector<64x1xf32> to vector<64x256xf32>
    %309 = arith.addf %306, %308 : vector<64x256xf32>
    %cst_233 = arith.constant 0.000000e+00 : f32
    %310 = vector.broadcast %cst_233 : f32 to vector<64x256xf32>
    %311 = arith.maximumf %309, %310 : vector<64x256xf32>
    %c17_i32_234 = arith.constant 17 : i32
    %312 = tpu.dynamic_rotate %311 by %c17_i32_234 dim 1 : vector<64x256xf32>, i32 -> vector<64x256xf32>
    %c0_235 = arith.constant 0 : index
    %c0_236 = arith.constant 0 : index
    %c0_237 = arith.constant 0 : index
    %313 = vector.load %arg2[%c0_235, %c0_236, %c0_237] : memref<9x1x256xf32, #tpu.memory_space<vmem>>, vector<1x1x256xf32>
    %314 = vector.shape_cast %313 : vector<1x1x256xf32> to vector<1x256xf32>
    %315 = vector.broadcast %314 : vector<1x256xf32> to vector<64x256xf32>
    %316 = arith.mulf %312, %315 : vector<64x256xf32>
    %317 = arith.truncf %316 : vector<64x256xf32> to vector<64x256xbf16>
    %c0_238 = arith.constant 0 : index
    %c0_239 = arith.constant 0 : index
    %318 = vector.load %arg26[%c0_238, %c0_239] : memref<576x256xbf16, #tpu.memory_space<vmem>>, vector<64x256xbf16>
    tpu.vector_store %arg26[%c0_238, %c0_239], %317 {strides = array<i32>} : memref<576x256xbf16, #tpu.memory_space<vmem>>, vector<64x256xbf16>,
    %c16_i32_240 = arith.constant 16 : i32
    %319 = tpu.dynamic_rotate %311 by %c16_i32_240 dim 1 : vector<64x256xf32>, i32 -> vector<64x256xf32>
    %c1_241 = arith.constant 1 : index
    %c0_242 = arith.constant 0 : index
    %c0_243 = arith.constant 0 : index
    %320 = vector.load %arg2[%c1_241, %c0_242, %c0_243] : memref<9x1x256xf32, #tpu.memory_space<vmem>>, vector<1x1x256xf32>
    %321 = vector.shape_cast %320 : vector<1x1x256xf32> to vector<1x256xf32>
    %322 = vector.broadcast %321 : vector<1x256xf32> to vector<64x256xf32>
    %323 = arith.mulf %319, %322 : vector<64x256xf32>
    %324 = arith.truncf %323 : vector<64x256xf32> to vector<64x256xbf16>
    %c64_244 = arith.constant 64 : index
    %c0_245 = arith.constant 0 : index
    %325 = vector.load %arg26[%c64_244, %c0_245] : memref<576x256xbf16, #tpu.memory_space<vmem>>, vector<64x256xbf16>
    tpu.vector_store %arg26[%c64_244, %c0_245], %324 {strides = array<i32>} : memref<576x256xbf16, #tpu.memory_space<vmem>>, vector<64x256xbf16>,
    %c15_i32_246 = arith.constant 15 : i32
    %326 = tpu.dynamic_rotate %311 by %c15_i32_246 dim 1 : vector<64x256xf32>, i32 -> vector<64x256xf32>
    %c2_247 = arith.constant 2 : index
    %c0_248 = arith.constant 0 : index
    %c0_249 = arith.constant 0 : index
    %327 = vector.load %arg2[%c2_247, %c0_248, %c0_249] : memref<9x1x256xf32, #tpu.memory_space<vmem>>, vector<1x1x256xf32>
    %328 = vector.shape_cast %327 : vector<1x1x256xf32> to vector<1x256xf32>
    %329 = vector.broadcast %328 : vector<1x256xf32> to vector<64x256xf32>
    %330 = arith.mulf %326, %329 : vector<64x256xf32>
    %331 = arith.truncf %330 : vector<64x256xf32> to vector<64x256xbf16>
    %c128_250 = arith.constant 128 : index
    %c0_251 = arith.constant 0 : index
    %332 = vector.load %arg26[%c128_250, %c0_251] : memref<576x256xbf16, #tpu.memory_space<vmem>>, vector<64x256xbf16>
    tpu.vector_store %arg26[%c128_250, %c0_251], %331 {strides = array<i32>} : memref<576x256xbf16, #tpu.memory_space<vmem>>, vector<64x256xbf16>,
    %c1_i32_252 = arith.constant 1 : i32
    %333 = tpu.dynamic_rotate %311 by %c1_i32_252 dim 1 : vector<64x256xf32>, i32 -> vector<64x256xf32>
    %c3_253 = arith.constant 3 : index
    %c0_254 = arith.constant 0 : index
    %c0_255 = arith.constant 0 : index
    %334 = vector.load %arg2[%c3_253, %c0_254, %c0_255] : memref<9x1x256xf32, #tpu.memory_space<vmem>>, vector<1x1x256xf32>
    %335 = vector.shape_cast %334 : vector<1x1x256xf32> to vector<1x256xf32>
    %336 = vector.broadcast %335 : vector<1x256xf32> to vector<64x256xf32>
    %337 = arith.mulf %333, %336 : vector<64x256xf32>
    %338 = arith.truncf %337 : vector<64x256xf32> to vector<64x256xbf16>
    %c192_256 = arith.constant 192 : index
    %c0_257 = arith.constant 0 : index
    %339 = vector.load %arg26[%c192_256, %c0_257] : memref<576x256xbf16, #tpu.memory_space<vmem>>, vector<64x256xbf16>
    tpu.vector_store %arg26[%c192_256, %c0_257], %338 {strides = array<i32>} : memref<576x256xbf16, #tpu.memory_space<vmem>>, vector<64x256xbf16>,
    %c4_258 = arith.constant 4 : index
    %c0_259 = arith.constant 0 : index
    %c0_260 = arith.constant 0 : index
    %340 = vector.load %arg2[%c4_258, %c0_259, %c0_260] : memref<9x1x256xf32, #tpu.memory_space<vmem>>, vector<1x1x256xf32>
    %341 = vector.shape_cast %340 : vector<1x1x256xf32> to vector<1x256xf32>
    %342 = vector.broadcast %341 : vector<1x256xf32> to vector<64x256xf32>
    %343 = arith.mulf %311, %342 : vector<64x256xf32>
    %344 = arith.truncf %343 : vector<64x256xf32> to vector<64x256xbf16>
    %c256_261 = arith.constant 256 : index
    %c0_262 = arith.constant 0 : index
    %345 = vector.load %arg26[%c256_261, %c0_262] : memref<576x256xbf16, #tpu.memory_space<vmem>>, vector<64x256xbf16>
    tpu.vector_store %arg26[%c256_261, %c0_262], %344 {strides = array<i32>} : memref<576x256xbf16, #tpu.memory_space<vmem>>, vector<64x256xbf16>,
    %c255_i32_263 = arith.constant 255 : i32
    %346 = tpu.dynamic_rotate %311 by %c255_i32_263 dim 1 : vector<64x256xf32>, i32 -> vector<64x256xf32>
    %c5_264 = arith.constant 5 : index
    %c0_265 = arith.constant 0 : index
    %c0_266 = arith.constant 0 : index
    %347 = vector.load %arg2[%c5_264, %c0_265, %c0_266] : memref<9x1x256xf32, #tpu.memory_space<vmem>>, vector<1x1x256xf32>
    %348 = vector.shape_cast %347 : vector<1x1x256xf32> to vector<1x256xf32>
    %349 = vector.broadcast %348 : vector<1x256xf32> to vector<64x256xf32>
    %350 = arith.mulf %346, %349 : vector<64x256xf32>
    %351 = arith.truncf %350 : vector<64x256xf32> to vector<64x256xbf16>
    %c320_267 = arith.constant 320 : index
    %c0_268 = arith.constant 0 : index
    %352 = vector.load %arg26[%c320_267, %c0_268] : memref<576x256xbf16, #tpu.memory_space<vmem>>, vector<64x256xbf16>
    tpu.vector_store %arg26[%c320_267, %c0_268], %351 {strides = array<i32>} : memref<576x256xbf16, #tpu.memory_space<vmem>>, vector<64x256xbf16>,
    %c241_i32_269 = arith.constant 241 : i32
    %353 = tpu.dynamic_rotate %311 by %c241_i32_269 dim 1 : vector<64x256xf32>, i32 -> vector<64x256xf32>
    %c6_270 = arith.constant 6 : index
    %c0_271 = arith.constant 0 : index
    %c0_272 = arith.constant 0 : index
    %354 = vector.load %arg2[%c6_270, %c0_271, %c0_272] : memref<9x1x256xf32, #tpu.memory_space<vmem>>, vector<1x1x256xf32>
    %355 = vector.shape_cast %354 : vector<1x1x256xf32> to vector<1x256xf32>
    %356 = vector.broadcast %355 : vector<1x256xf32> to vector<64x256xf32>
    %357 = arith.mulf %353, %356 : vector<64x256xf32>
    %358 = arith.truncf %357 : vector<64x256xf32> to vector<64x256xbf16>
    %c384_273 = arith.constant 384 : index
    %c0_274 = arith.constant 0 : index
    %359 = vector.load %arg26[%c384_273, %c0_274] : memref<576x256xbf16, #tpu.memory_space<vmem>>, vector<64x256xbf16>
    tpu.vector_store %arg26[%c384_273, %c0_274], %358 {strides = array<i32>} : memref<576x256xbf16, #tpu.memory_space<vmem>>, vector<64x256xbf16>,
    %c240_i32_275 = arith.constant 240 : i32
    %360 = tpu.dynamic_rotate %311 by %c240_i32_275 dim 1 : vector<64x256xf32>, i32 -> vector<64x256xf32>
    %c7_276 = arith.constant 7 : index
    %c0_277 = arith.constant 0 : index
    %c0_278 = arith.constant 0 : index
    %361 = vector.load %arg2[%c7_276, %c0_277, %c0_278] : memref<9x1x256xf32, #tpu.memory_space<vmem>>, vector<1x1x256xf32>
    %362 = vector.shape_cast %361 : vector<1x1x256xf32> to vector<1x256xf32>
    %363 = vector.broadcast %362 : vector<1x256xf32> to vector<64x256xf32>
    %364 = arith.mulf %360, %363 : vector<64x256xf32>
    %365 = arith.truncf %364 : vector<64x256xf32> to vector<64x256xbf16>
    %c448_279 = arith.constant 448 : index
    %c0_280 = arith.constant 0 : index
    %366 = vector.load %arg26[%c448_279, %c0_280] : memref<576x256xbf16, #tpu.memory_space<vmem>>, vector<64x256xbf16>
    tpu.vector_store %arg26[%c448_279, %c0_280], %365 {strides = array<i32>} : memref<576x256xbf16, #tpu.memory_space<vmem>>, vector<64x256xbf16>,
    %c239_i32_281 = arith.constant 239 : i32
    %367 = tpu.dynamic_rotate %311 by %c239_i32_281 dim 1 : vector<64x256xf32>, i32 -> vector<64x256xf32>
    %c8_282 = arith.constant 8 : index
    %c0_283 = arith.constant 0 : index
    %c0_284 = arith.constant 0 : index
    %368 = vector.load %arg2[%c8_282, %c0_283, %c0_284] : memref<9x1x256xf32, #tpu.memory_space<vmem>>, vector<1x1x256xf32>
    %369 = vector.shape_cast %368 : vector<1x1x256xf32> to vector<1x256xf32>
    %370 = vector.broadcast %369 : vector<1x256xf32> to vector<64x256xf32>
    %371 = arith.mulf %367, %370 : vector<64x256xf32>
    %372 = arith.truncf %371 : vector<64x256xf32> to vector<64x256xbf16>
    %c512_285 = arith.constant 512 : index
    %c0_286 = arith.constant 0 : index
    %373 = vector.load %arg26[%c512_285, %c0_286] : memref<576x256xbf16, #tpu.memory_space<vmem>>, vector<64x256xbf16>
    tpu.vector_store %arg26[%c512_285, %c0_286], %372 {strides = array<i32>} : memref<576x256xbf16, #tpu.memory_space<vmem>>, vector<64x256xbf16>,
    %c0_287 = arith.constant 0 : index
    %c0_288 = arith.constant 0 : index
    %374 = vector.load %arg26[%c0_287, %c0_288] : memref<576x256xbf16, #tpu.memory_space<vmem>>, vector<576x256xbf16>
    %c0_289 = arith.constant 0 : index
    %c0_290 = arith.constant 0 : index
    %375 = vector.load %arg15[%c0_289, %c0_290] : memref<64x576xbf16, #tpu.memory_space<vmem>>, vector<64x576xbf16>
    %cst_291 = arith.constant dense<0.000000e+00> : vector<64x256xf32>
    %376 = tpu.matmul %375, %374, %cst_291 {dimension_numbers = #tpu.dot_dimension_numbers<[1], [0], [0], [1], [0, 0, 1, 1], [], []>} : vector<64x576xbf16>, vector<576x256xbf16>, vector<64x256xf32> -> vector<64x256xf32>
    %c0_292 = arith.constant 0 : index
    %c0_293 = arith.constant 0 : index
    %377 = vector.load %arg16[%c0_292, %c0_293] : memref<64x1xf32, #tpu.memory_space<vmem>>, vector<64x1xf32>
    %378 = vector.broadcast %377 : vector<64x1xf32> to vector<64x256xf32>
    %379 = arith.addf %376, %378 : vector<64x256xf32>
    %cst_294 = arith.constant 0.000000e+00 : f32
    %380 = vector.broadcast %cst_294 : f32 to vector<64x256xf32>
    %381 = arith.maximumf %379, %380 : vector<64x256xf32>
    %c0_295 = arith.constant 0 : index
    %c0_296 = arith.constant 0 : index
    %382 = vector.load %arg19[%c0_295, %c0_296] : memref<64x1xf32, #tpu.memory_space<vmem>>, vector<64x1xf32>
    %383 = vector.broadcast %382 : vector<64x1xf32> to vector<64x256xf32>
    %384 = arith.mulf %381, %383 : vector<64x256xf32>
    %cst_297 = arith.constant dense<0.000000e+00> : vector<256xf32>
    %385 = vector.multi_reduction <add>, %384, %cst_297 [0] : vector<64x256xf32> to vector<256xf32>
    %386 = vector.shape_cast %385 : vector<256xf32> to vector<1x256xf32>
    %c0_298 = arith.constant 0 : index
    %c0_299 = arith.constant 0 : index
    %387 = vector.load %arg20[%c0_298, %c0_299] : memref<1x1xf32, #tpu.memory_space<vmem>>, vector<1x1xf32>
    %388 = vector.broadcast %387 : vector<1x1xf32> to vector<1x256xf32>
    %389 = arith.addf %386, %388 : vector<1x256xf32>
    %390 = arith.negf %389 : vector<1x256xf32>
    %391 = math.exp %390 : vector<1x256xf32>
    %cst_300 = arith.constant 1.000000e+00 : f32
    %392 = vector.broadcast %cst_300 : f32 to vector<1x256xf32>
    %393 = arith.addf %392, %391 : vector<1x256xf32>
    %394 = arith.divf %392, %393 : vector<1x256xf32>
    %395 = vector.broadcast %394 : vector<1x256xf32> to vector<64x256xf32>
    %396 = arith.mulf %381, %395 : vector<64x256xf32>
    %397 = arith.addf %396, %241 : vector<64x256xf32>
    %cst_301 = arith.constant 0.000000e+00 : f32
    %398 = vector.broadcast %cst_301 : f32 to vector<64x256xf32>
    %399 = arith.maximumf %397, %398 : vector<64x256xf32>
    %c17_i32_302 = arith.constant 17 : i32
    %400 = tpu.dynamic_rotate %399 by %c17_i32_302 dim 1 : vector<64x256xf32>, i32 -> vector<64x256xf32>
    %c0_303 = arith.constant 0 : index
    %c0_304 = arith.constant 0 : index
    %c0_305 = arith.constant 0 : index
    %401 = vector.load %arg2[%c0_303, %c0_304, %c0_305] : memref<9x1x256xf32, #tpu.memory_space<vmem>>, vector<1x1x256xf32>
    %402 = vector.shape_cast %401 : vector<1x1x256xf32> to vector<1x256xf32>
    %403 = vector.broadcast %402 : vector<1x256xf32> to vector<64x256xf32>
    %404 = arith.mulf %400, %403 : vector<64x256xf32>
    %405 = arith.truncf %404 : vector<64x256xf32> to vector<64x256xbf16>
    %c0_306 = arith.constant 0 : index
    %c0_307 = arith.constant 0 : index
    %406 = vector.load %arg26[%c0_306, %c0_307] : memref<576x256xbf16, #tpu.memory_space<vmem>>, vector<64x256xbf16>
    tpu.vector_store %arg26[%c0_306, %c0_307], %405 {strides = array<i32>} : memref<576x256xbf16, #tpu.memory_space<vmem>>, vector<64x256xbf16>,
    %c16_i32_308 = arith.constant 16 : i32
    %407 = tpu.dynamic_rotate %399 by %c16_i32_308 dim 1 : vector<64x256xf32>, i32 -> vector<64x256xf32>
    %c1_309 = arith.constant 1 : index
    %c0_310 = arith.constant 0 : index
    %c0_311 = arith.constant 0 : index
    %408 = vector.load %arg2[%c1_309, %c0_310, %c0_311] : memref<9x1x256xf32, #tpu.memory_space<vmem>>, vector<1x1x256xf32>
    %409 = vector.shape_cast %408 : vector<1x1x256xf32> to vector<1x256xf32>
    %410 = vector.broadcast %409 : vector<1x256xf32> to vector<64x256xf32>
    %411 = arith.mulf %407, %410 : vector<64x256xf32>
    %412 = arith.truncf %411 : vector<64x256xf32> to vector<64x256xbf16>
    %c64_312 = arith.constant 64 : index
    %c0_313 = arith.constant 0 : index
    %413 = vector.load %arg26[%c64_312, %c0_313] : memref<576x256xbf16, #tpu.memory_space<vmem>>, vector<64x256xbf16>
    tpu.vector_store %arg26[%c64_312, %c0_313], %412 {strides = array<i32>} : memref<576x256xbf16, #tpu.memory_space<vmem>>, vector<64x256xbf16>,
    %c15_i32_314 = arith.constant 15 : i32
    %414 = tpu.dynamic_rotate %399 by %c15_i32_314 dim 1 : vector<64x256xf32>, i32 -> vector<64x256xf32>
    %c2_315 = arith.constant 2 : index
    %c0_316 = arith.constant 0 : index
    %c0_317 = arith.constant 0 : index
    %415 = vector.load %arg2[%c2_315, %c0_316, %c0_317] : memref<9x1x256xf32, #tpu.memory_space<vmem>>, vector<1x1x256xf32>
    %416 = vector.shape_cast %415 : vector<1x1x256xf32> to vector<1x256xf32>
    %417 = vector.broadcast %416 : vector<1x256xf32> to vector<64x256xf32>
    %418 = arith.mulf %414, %417 : vector<64x256xf32>
    %419 = arith.truncf %418 : vector<64x256xf32> to vector<64x256xbf16>
    %c128_318 = arith.constant 128 : index
    %c0_319 = arith.constant 0 : index
    %420 = vector.load %arg26[%c128_318, %c0_319] : memref<576x256xbf16, #tpu.memory_space<vmem>>, vector<64x256xbf16>
    tpu.vector_store %arg26[%c128_318, %c0_319], %419 {strides = array<i32>} : memref<576x256xbf16, #tpu.memory_space<vmem>>, vector<64x256xbf16>,
    %c1_i32_320 = arith.constant 1 : i32
    %421 = tpu.dynamic_rotate %399 by %c1_i32_320 dim 1 : vector<64x256xf32>, i32 -> vector<64x256xf32>
    %c3_321 = arith.constant 3 : index
    %c0_322 = arith.constant 0 : index
    %c0_323 = arith.constant 0 : index
    %422 = vector.load %arg2[%c3_321, %c0_322, %c0_323] : memref<9x1x256xf32, #tpu.memory_space<vmem>>, vector<1x1x256xf32>
    %423 = vector.shape_cast %422 : vector<1x1x256xf32> to vector<1x256xf32>
    %424 = vector.broadcast %423 : vector<1x256xf32> to vector<64x256xf32>
    %425 = arith.mulf %421, %424 : vector<64x256xf32>
    %426 = arith.truncf %425 : vector<64x256xf32> to vector<64x256xbf16>
    %c192_324 = arith.constant 192 : index
    %c0_325 = arith.constant 0 : index
    %427 = vector.load %arg26[%c192_324, %c0_325] : memref<576x256xbf16, #tpu.memory_space<vmem>>, vector<64x256xbf16>
    tpu.vector_store %arg26[%c192_324, %c0_325], %426 {strides = array<i32>} : memref<576x256xbf16, #tpu.memory_space<vmem>>, vector<64x256xbf16>,
    %c4_326 = arith.constant 4 : index
    %c0_327 = arith.constant 0 : index
    %c0_328 = arith.constant 0 : index
    %428 = vector.load %arg2[%c4_326, %c0_327, %c0_328] : memref<9x1x256xf32, #tpu.memory_space<vmem>>, vector<1x1x256xf32>
    %429 = vector.shape_cast %428 : vector<1x1x256xf32> to vector<1x256xf32>
    %430 = vector.broadcast %429 : vector<1x256xf32> to vector<64x256xf32>
    %431 = arith.mulf %399, %430 : vector<64x256xf32>
    %432 = arith.truncf %431 : vector<64x256xf32> to vector<64x256xbf16>
    %c256_329 = arith.constant 256 : index
    %c0_330 = arith.constant 0 : index
    %433 = vector.load %arg26[%c256_329, %c0_330] : memref<576x256xbf16, #tpu.memory_space<vmem>>, vector<64x256xbf16>
    tpu.vector_store %arg26[%c256_329, %c0_330], %432 {strides = array<i32>} : memref<576x256xbf16, #tpu.memory_space<vmem>>, vector<64x256xbf16>,
    %c255_i32_331 = arith.constant 255 : i32
    %434 = tpu.dynamic_rotate %399 by %c255_i32_331 dim 1 : vector<64x256xf32>, i32 -> vector<64x256xf32>
    %c5_332 = arith.constant 5 : index
    %c0_333 = arith.constant 0 : index
    %c0_334 = arith.constant 0 : index
    %435 = vector.load %arg2[%c5_332, %c0_333, %c0_334] : memref<9x1x256xf32, #tpu.memory_space<vmem>>, vector<1x1x256xf32>
    %436 = vector.shape_cast %435 : vector<1x1x256xf32> to vector<1x256xf32>
    %437 = vector.broadcast %436 : vector<1x256xf32> to vector<64x256xf32>
    %438 = arith.mulf %434, %437 : vector<64x256xf32>
    %439 = arith.truncf %438 : vector<64x256xf32> to vector<64x256xbf16>
    %c320_335 = arith.constant 320 : index
    %c0_336 = arith.constant 0 : index
    %440 = vector.load %arg26[%c320_335, %c0_336] : memref<576x256xbf16, #tpu.memory_space<vmem>>, vector<64x256xbf16>
    tpu.vector_store %arg26[%c320_335, %c0_336], %439 {strides = array<i32>} : memref<576x256xbf16, #tpu.memory_space<vmem>>, vector<64x256xbf16>,
    %c241_i32_337 = arith.constant 241 : i32
    %441 = tpu.dynamic_rotate %399 by %c241_i32_337 dim 1 : vector<64x256xf32>, i32 -> vector<64x256xf32>
    %c6_338 = arith.constant 6 : index
    %c0_339 = arith.constant 0 : index
    %c0_340 = arith.constant 0 : index
    %442 = vector.load %arg2[%c6_338, %c0_339, %c0_340] : memref<9x1x256xf32, #tpu.memory_space<vmem>>, vector<1x1x256xf32>
    %443 = vector.shape_cast %442 : vector<1x1x256xf32> to vector<1x256xf32>
    %444 = vector.broadcast %443 : vector<1x256xf32> to vector<64x256xf32>
    %445 = arith.mulf %441, %444 : vector<64x256xf32>
    %446 = arith.truncf %445 : vector<64x256xf32> to vector<64x256xbf16>
    %c384_341 = arith.constant 384 : index
    %c0_342 = arith.constant 0 : index
    %447 = vector.load %arg26[%c384_341, %c0_342] : memref<576x256xbf16, #tpu.memory_space<vmem>>, vector<64x256xbf16>
    tpu.vector_store %arg26[%c384_341, %c0_342], %446 {strides = array<i32>} : memref<576x256xbf16, #tpu.memory_space<vmem>>, vector<64x256xbf16>,
    %c240_i32_343 = arith.constant 240 : i32
    %448 = tpu.dynamic_rotate %399 by %c240_i32_343 dim 1 : vector<64x256xf32>, i32 -> vector<64x256xf32>
    %c7_344 = arith.constant 7 : index
    %c0_345 = arith.constant 0 : index
    %c0_346 = arith.constant 0 : index
    %449 = vector.load %arg2[%c7_344, %c0_345, %c0_346] : memref<9x1x256xf32, #tpu.memory_space<vmem>>, vector<1x1x256xf32>
    %450 = vector.shape_cast %449 : vector<1x1x256xf32> to vector<1x256xf32>
    %451 = vector.broadcast %450 : vector<1x256xf32> to vector<64x256xf32>
    %452 = arith.mulf %448, %451 : vector<64x256xf32>
    %453 = arith.truncf %452 : vector<64x256xf32> to vector<64x256xbf16>
    %c448_347 = arith.constant 448 : index
    %c0_348 = arith.constant 0 : index
    %454 = vector.load %arg26[%c448_347, %c0_348] : memref<576x256xbf16, #tpu.memory_space<vmem>>, vector<64x256xbf16>
    tpu.vector_store %arg26[%c448_347, %c0_348], %453 {strides = array<i32>} : memref<576x256xbf16, #tpu.memory_space<vmem>>, vector<64x256xbf16>,
    %c239_i32_349 = arith.constant 239 : i32
    %455 = tpu.dynamic_rotate %399 by %c239_i32_349 dim 1 : vector<64x256xf32>, i32 -> vector<64x256xf32>
    %c8_350 = arith.constant 8 : index
    %c0_351 = arith.constant 0 : index
    %c0_352 = arith.constant 0 : index
    %456 = vector.load %arg2[%c8_350, %c0_351, %c0_352] : memref<9x1x256xf32, #tpu.memory_space<vmem>>, vector<1x1x256xf32>
    %457 = vector.shape_cast %456 : vector<1x1x256xf32> to vector<1x256xf32>
    %458 = vector.broadcast %457 : vector<1x256xf32> to vector<64x256xf32>
    %459 = arith.mulf %455, %458 : vector<64x256xf32>
    %460 = arith.truncf %459 : vector<64x256xf32> to vector<64x256xbf16>
    %c512_353 = arith.constant 512 : index
    %c0_354 = arith.constant 0 : index
    %461 = vector.load %arg26[%c512_353, %c0_354] : memref<576x256xbf16, #tpu.memory_space<vmem>>, vector<64x256xbf16>
    tpu.vector_store %arg26[%c512_353, %c0_354], %460 {strides = array<i32>} : memref<576x256xbf16, #tpu.memory_space<vmem>>, vector<64x256xbf16>,
    %c0_355 = arith.constant 0 : index
    %c0_356 = arith.constant 0 : index
    %462 = vector.load %arg26[%c0_355, %c0_356] : memref<576x256xbf16, #tpu.memory_space<vmem>>, vector<576x256xbf16>
    %c0_357 = arith.constant 0 : index
    %c0_358 = arith.constant 0 : index
    %463 = vector.load %arg21[%c0_357, %c0_358] : memref<32x576xbf16, #tpu.memory_space<vmem>>, vector<32x576xbf16>
    %cst_359 = arith.constant dense<0.000000e+00> : vector<32x256xf32>
    %464 = tpu.matmul %463, %462, %cst_359 {dimension_numbers = #tpu.dot_dimension_numbers<[1], [0], [0], [1], [0, 0, 1, 1], [], []>} : vector<32x576xbf16>, vector<576x256xbf16>, vector<32x256xf32> -> vector<32x256xf32>
    %c0_360 = arith.constant 0 : index
    %c0_361 = arith.constant 0 : index
    %465 = vector.load %arg22[%c0_360, %c0_361] : memref<32x1xf32, #tpu.memory_space<vmem>>, vector<32x1xf32>
    %466 = vector.broadcast %465 : vector<32x1xf32> to vector<32x256xf32>
    %467 = arith.addf %464, %466 : vector<32x256xf32>
    %468 = arith.truncf %467 : vector<32x256xf32> to vector<32x256xbf16>
    %c0_362 = arith.constant 0 : index
    %c0_363 = arith.constant 0 : index
    %469 = vector.load %arg23[%c0_362, %c0_363] : memref<256x512xbf16, #tpu.memory_space<vmem>>, vector<256x512xbf16>
    %cst_364 = arith.constant dense<0.000000e+00> : vector<32x512xf32>
    %470 = tpu.matmul %468, %469, %cst_364 {dimension_numbers = #tpu.dot_dimension_numbers<[1], [0], [0], [1], [0, 0, 1, 1], [], []>} : vector<32x256xbf16>, vector<256x512xbf16>, vector<32x512xf32> -> vector<32x512xf32>
    %471 = arith.truncf %470 : vector<32x512xf32> to vector<32x512xbf16>
    %c0_365 = arith.constant 0 : index
    %c0_366 = arith.constant 0 : index
    %472 = vector.load %arg24[%c0_365, %c0_366] : memref<512x1024xbf16, #tpu.memory_space<vmem>>, vector<512x1024xbf16>
    %cst_367 = arith.constant dense<0.000000e+00> : vector<32x1024xf32>
    %473 = tpu.matmul %471, %472, %cst_367 {dimension_numbers = #tpu.dot_dimension_numbers<[1], [0], [0], [1], [0, 0, 1, 1], [], []>} : vector<32x512xbf16>, vector<512x1024xbf16>, vector<32x1024xf32> -> vector<32x1024xf32>
    %c0_368 = arith.constant 0 : index
    %c0_369 = arith.constant 0 : index
    %c0_370 = arith.constant 0 : index
    %474 = vector.load %arg25[%c0_368, %c0_369, %c0_370] : memref<1x32x1024xf32, #tpu.memory_space<vmem>>, vector<1x32x1024xf32>
    %475 = vector.shape_cast %474 : vector<1x32x1024xf32> to vector<32x1024xf32>
    %476 = vector.shape_cast %473 : vector<32x1024xf32> to vector<1x32x1024xf32>
    tpu.vector_store %arg25[%c0_368, %c0_369, %c0_370], %476 {strides = array<i32>} : memref<1x32x1024xf32, #tpu.memory_space<vmem>>, vector<1x32x1024xf32>,
    return
  }
  func.func @transform_0(%arg0: i32) -> (i32, i32, i32) {
    %c0_i32 = arith.constant 0 : i32
    %c0_i32_0 = arith.constant 0 : i32
    %c0_i32_1 = arith.constant 0 : i32
    return %arg0, %c0_i32, %c0_i32_0 : i32, i32, i32
  }
  func.func @transform_1(%arg0: i32) -> (i32, i32, i32) {
    %c0_i32 = arith.constant 0 : i32
    %c0_i32_0 = arith.constant 0 : i32
    %c0_i32_1 = arith.constant 0 : i32
    %c0_i32_2 = arith.constant 0 : i32
    return %c0_i32, %c0_i32_0, %c0_i32_1 : i32, i32, i32
  }
  func.func @transform_2(%arg0: i32) -> (i32, i32) {
    %c0_i32 = arith.constant 0 : i32
    %c0_i32_0 = arith.constant 0 : i32
    %c0_i32_1 = arith.constant 0 : i32
    return %c0_i32, %c0_i32_0 : i32, i32
  }
  func.func @transform_3(%arg0: i32) -> (i32, i32) {
    %c0_i32 = arith.constant 0 : i32
    %c0_i32_0 = arith.constant 0 : i32
    %c0_i32_1 = arith.constant 0 : i32
    return %c0_i32, %c0_i32_0 : i32, i32
  }
  func.func @transform_4(%arg0: i32) -> (i32, i32) {
    %c0_i32 = arith.constant 0 : i32
    %c0_i32_0 = arith.constant 0 : i32
    %c0_i32_1 = arith.constant 0 : i32
    return %c0_i32, %c0_i32_0 : i32, i32
  }
  func.func @transform_5(%arg0: i32) -> (i32, i32) {
    %c0_i32 = arith.constant 0 : i32
    %c0_i32_0 = arith.constant 0 : i32
    %c0_i32_1 = arith.constant 0 : i32
    return %c0_i32, %c0_i32_0 : i32, i32
  }
  func.func @transform_6(%arg0: i32) -> (i32, i32) {
    %c0_i32 = arith.constant 0 : i32
    %c0_i32_0 = arith.constant 0 : i32
    %c0_i32_1 = arith.constant 0 : i32
    return %c0_i32, %c0_i32_0 : i32, i32
  }
  func.func @transform_7(%arg0: i32) -> (i32, i32) {
    %c0_i32 = arith.constant 0 : i32
    %c0_i32_0 = arith.constant 0 : i32
    %c0_i32_1 = arith.constant 0 : i32
    return %c0_i32, %c0_i32_0 : i32, i32
  }
  func.func @transform_8(%arg0: i32) -> (i32, i32) {
    %c0_i32 = arith.constant 0 : i32
    %c0_i32_0 = arith.constant 0 : i32
    %c0_i32_1 = arith.constant 0 : i32
    return %c0_i32, %c0_i32_0 : i32, i32
  }
  func.func @transform_9(%arg0: i32) -> (i32, i32) {
    %c0_i32 = arith.constant 0 : i32
    %c0_i32_0 = arith.constant 0 : i32
    %c0_i32_1 = arith.constant 0 : i32
    return %c0_i32, %c0_i32_0 : i32, i32
  }
  func.func @transform_10(%arg0: i32) -> (i32, i32) {
    %c0_i32 = arith.constant 0 : i32
    %c0_i32_0 = arith.constant 0 : i32
    %c0_i32_1 = arith.constant 0 : i32
    return %c0_i32, %c0_i32_0 : i32, i32
  }
  func.func @transform_11(%arg0: i32) -> (i32, i32) {
    %c0_i32 = arith.constant 0 : i32
    %c0_i32_0 = arith.constant 0 : i32
    %c0_i32_1 = arith.constant 0 : i32
    return %c0_i32, %c0_i32_0 : i32, i32
  }
  func.func @transform_12(%arg0: i32) -> (i32, i32) {
    %c0_i32 = arith.constant 0 : i32
    %c0_i32_0 = arith.constant 0 : i32
    %c0_i32_1 = arith.constant 0 : i32
    return %c0_i32, %c0_i32_0 : i32, i32
  }
  func.func @transform_13(%arg0: i32) -> (i32, i32) {
    %c0_i32 = arith.constant 0 : i32
    %c0_i32_0 = arith.constant 0 : i32
    %c0_i32_1 = arith.constant 0 : i32
    return %c0_i32, %c0_i32_0 : i32, i32
  }
  func.func @transform_14(%arg0: i32) -> (i32, i32) {
    %c0_i32 = arith.constant 0 : i32
    %c0_i32_0 = arith.constant 0 : i32
    %c0_i32_1 = arith.constant 0 : i32
    return %c0_i32, %c0_i32_0 : i32, i32
  }
  func.func @transform_15(%arg0: i32) -> (i32, i32) {
    %c0_i32 = arith.constant 0 : i32
    %c0_i32_0 = arith.constant 0 : i32
    %c0_i32_1 = arith.constant 0 : i32
    return %c0_i32, %c0_i32_0 : i32, i32
  }
  func.func @transform_16(%arg0: i32) -> (i32, i32) {
    %c0_i32 = arith.constant 0 : i32
    %c0_i32_0 = arith.constant 0 : i32
    %c0_i32_1 = arith.constant 0 : i32
    return %c0_i32, %c0_i32_0 : i32, i32
  }
  func.func @transform_17(%arg0: i32) -> (i32, i32) {
    %c0_i32 = arith.constant 0 : i32
    %c0_i32_0 = arith.constant 0 : i32
    %c0_i32_1 = arith.constant 0 : i32
    return %c0_i32, %c0_i32_0 : i32, i32
  }
  func.func @transform_18(%arg0: i32) -> (i32, i32) {
    %c0_i32 = arith.constant 0 : i32
    %c0_i32_0 = arith.constant 0 : i32
    %c0_i32_1 = arith.constant 0 : i32
    return %c0_i32, %c0_i32_0 : i32, i32
  }
  func.func @transform_19(%arg0: i32) -> (i32, i32) {
    %c0_i32 = arith.constant 0 : i32
    %c0_i32_0 = arith.constant 0 : i32
    %c0_i32_1 = arith.constant 0 : i32
    return %c0_i32, %c0_i32_0 : i32, i32
  }
  func.func @transform_20(%arg0: i32) -> (i32, i32) {
    %c0_i32 = arith.constant 0 : i32
    %c0_i32_0 = arith.constant 0 : i32
    %c0_i32_1 = arith.constant 0 : i32
    return %c0_i32, %c0_i32_0 : i32, i32
  }
  func.func @transform_21(%arg0: i32) -> (i32, i32) {
    %c0_i32 = arith.constant 0 : i32
    %c0_i32_0 = arith.constant 0 : i32
    %c0_i32_1 = arith.constant 0 : i32
    return %c0_i32, %c0_i32_0 : i32, i32
  }
  func.func @transform_22(%arg0: i32) -> (i32, i32) {
    %c0_i32 = arith.constant 0 : i32
    %c0_i32_0 = arith.constant 0 : i32
    %c0_i32_1 = arith.constant 0 : i32
    return %c0_i32, %c0_i32_0 : i32, i32
  }
  func.func @transform_23(%arg0: i32) -> (i32, i32) {
    %c0_i32 = arith.constant 0 : i32
    %c0_i32_0 = arith.constant 0 : i32
    %c0_i32_1 = arith.constant 0 : i32
    return %c0_i32, %c0_i32_0 : i32, i32
  }
  func.func @transform_24(%arg0: i32) -> (i32, i32, i32) {
    %c0_i32 = arith.constant 0 : i32
    %c0_i32_0 = arith.constant 0 : i32
    %c0_i32_1 = arith.constant 0 : i32
    return %arg0, %c0_i32, %c0_i32_0 : i32, i32, i32
  }
}

</mosaic_0001>

<bundles_post_ra>
// kernel: attention_net_forward.1
= control target key start
LH: loop header
LB: loop body
LE: loop exit
PB: predicated region body
PF: predicated region fallthrough
CT: control target
= control target key end

     0   :  { %s19750_s0 = inlined_call_operand.vmem [shape: f32[2,32,256], index: 0, kind: input, shape index: {}]   ;;  %s19751_s1 = inlined_call_operand.vmem [shape: f32[9,1,256], index: 1, kind: input, shape index: {}]   ;;  %s19752_s2 = inlined_call_operand.vmem [shape: bf16[64,288], index: 2, kind: input, shape index: {}]   ;;  %s19753_s3 = inlined_call_operand.vmem [shape: f32[64,1], index: 3, kind: input, shape index: {}]   ;;  %s19754_s4 = inlined_call_operand.vmem [shape: bf16[64,576], index: 4, kind: input, shape index: {}]   ;;  %s19755_s5 = inlined_call_operand.vmem [shape: f32[64,1], index: 5, kind: input, shape index: {}]   ;;  %s19756_s6 = inlined_call_operand.vmem [shape: bf16[64,576], index: 6, kind: input, shape index: {}]   ;;  %s19757_s7 = inlined_call_operand.vmem [shape: f32[64,1], index: 7, kind: input, shape index: {}]   ;;  %s19758_s8 = inlined_call_operand.vmem [shape: bf16[64,64], index: 8, kind: input, shape index: {}]   ;;  %s19759_s9 = inlined_call_operand.vmem [shape: f32[64,1], index: 9, kind: input, shape index: {}]   ;;  %s19760_s10 = inlined_call_operand.vmem [shape: f32[64,1], index: 10, kind: input, shape index: {}]   ;;  %s19761_s11 = inlined_call_operand.<no memory space> [shape: f32[1,1], index: 11, kind: input, shape index: {}]   ;;  %s19762_s12 = inlined_call_operand.vmem [shape: bf16[64,576], index: 12, kind: input, shape index: {}]   ;;  %s19763_s13 = inlined_call_operand.vmem [shape: f32[64,1], index: 13, kind: input, shape index: {}]   ;;  %s19764_s14 = inlined_call_operand.vmem [shape: bf16[64,576], index: 14, kind: input, shape index: {}]   ;;  %s19765_s15 = inlined_call_operand.vmem [shape: f32[64,1], index: 15, kind: input, shape index: {}]   ;;  %s19766_s16 = inlined_call_operand.vmem [shape: bf16[64,64], index: 16, kind: input, shape index: {}]   ;;  %s19767_s17 = inlined_call_operand.vmem [shape: f32[64,1], index: 17, kind: input, shape index: {}]   ;;  %s19768_s18 = inlined_call_operand.vmem [shape: f32[64,1], index: 18, kind: input, shape index: {}]   ;;  %s19769_s20 = inlined_call_operand.vmem [shape: bf16[32,576], index: 20, kind: input, shape index: {}]   ;;  %s19770_s21 = inlined_call_operand.vmem [shape: f32[32,1], index: 21, kind: input, shape index: {}]   ;;  %s19771_s22 = inlined_call_operand.vmem [shape: bf16[256,512], index: 22, kind: input, shape index: {}]   ;;  %s19772_s23 = inlined_call_operand.vmem [shape: bf16[512,1024], index: 23, kind: input, shape index: {}]   ;;  %s19773_s24 = inlined_call_operand.vmem [shape: f32[2,32,1024], index: 24, kind: output, shape index: {}]   ;;  %s19774_s19 = inlined_call_operand.<no memory space> [shape: f32[1,1], index: 19, kind: input, shape index: {}]  }
   0x1   :  { %19893 = sst [smem:[#allocation35_spill]] %s19750_s0  ;;  %v29_v0 = vstv %s19761_s11  ;;  %v31_v1 = vstv %s19774_s19 }
   0x2   :  { %19894 = sst [smem:[#allocation36_spill]] %s19751_s1  ;;  %30 = vst [vmem:[#allocation3] sm:$0x1] %v29_v0  ;;  %32 = vst [vmem:[#allocation4] sm:$0x1] %v31_v1 }
   0x3   :  { %19895 = sst [smem:[#allocation37_spill]] %s19752_s2 }
   0x4   :  { %19896 = sst [smem:[#allocation38_spill]] %s19753_s3 }
   0x5   :  { %19897 = sst [smem:[#allocation39_spill]] %s19754_s4 }
   0x6   :  { %19898 = sst [smem:[#allocation40_spill]] %s19755_s5 }
   0x7   :  { %19899 = sst [smem:[#allocation41_spill]] %s19756_s6  ;;  %s12181_s6 = smov 0  }
   0x8   :  { %19900 = sst [smem:[#allocation42_spill]] %s19757_s7 }
   0x9   :  { %19901 = sst [smem:[#allocation43_spill]] %s19758_s8 }
   0xa   :  { %19902 = sst [smem:[#allocation44_spill]] %s19773_s24 }
   0xb LB: > { %19903 = sst [smem:[#allocation5_spill]] %s12039_s6  ;;  %s10947_s2 = sadd.s32 4294967295, %s12039_s6   ;;  %s12039_s6 = sphi %s12181_s6, %s38_s6  }
   0xc   : > { %p10951_p0 = scmp.ge.s32.totalorder %s12039_s6, 1  ;;  %p666_p1 = scmp.lt.s32.totalorder %s12039_s6, 3 }
   0xe   : > { %p667_p2 = pnand %p10951_p0, %p666_p1 }
  0x10   : > { %670 = sbr.rel (%p667_p2) target bundleno = 4255 (0x109f), region = 116 }
  0x17   : > { %p732_p3 = scmp.lt.s32.totalorder %s10947_s2, 1  ;;  %s19904_s0 = sld [smem:[#allocation35_spill]]  ;;  %v767_v10 = vlaneseq  ;;  %v19791_v25 = vmov 0   ;;  %vm1373_vm8 = vcmask 261120   ;;  %vm1632_vm9 = vcmask 523264  }
  0x18   : > { %s19812_s30 = smov 17   ;;  %s19810_s3 = smov 16   ;;  %1491 = vmatprep.mubr.bf16.mxu1 %v19791_v25  ;;  %11770 = vset.pattern.permute.xlu1 %v19791_v25 }
  0x19   : > { %s20157_s2 = smov (!%p732_p3, %s10947_s2), 1  ;;  %s19808_s25 = smov 15   ;;  %v781_v11 = vshrl.u32 %v767_v10, 7  ;;  %v12323_v12 = vand.u32 127, %v767_v10  ;;  %11769 = vset.pattern.permute.xlu0 %v19791_v25 }
  0x1a   : > { %s11470_s11 = sshll.u32 %s20157_s2, 6  ;;  %s19806_s8 = smov 1  }
  0x1b   : > { %s19789_s4 = smov 127   ;;  %s19787_s1 = smov 113   ;;  %v12328_v14 = vsub.s32 1, %v781_v11  ;;  %v12337_v16 = vsub.s32 0, %v781_v11  ;;  %vm769_vm0 = vcmp.lt.s32.totalorder %v12323_v12, 17  ;;  %vm822_vm1 = vcmp.lt.s32.totalorder %v12323_v12, 16 }
  0x1c   : > { %s19785_s5 = smov 112   ;;  %s19783_s26 = smov 111   ;;  %vm876_vm2 = vcmp.lt.s32.totalorder %v12323_v12, 15  ;;  %vm930_vm3 = vcmp.lt.s32.totalorder %v12323_v12, 1  ;;  %vm1013_vm4 = vcmp.lt.s32.totalorder %v12323_v12, 127  ;;  %vm1067_vm5 = vcmp.lt.s32.totalorder %v12323_v12, 113 }
  0x1d   : > { %s736_s7 = scalar_lea.vmem %s19904_s0, %s11470_s11  ;;  %s19905_s11 = sld [smem:[#allocation37_spill]]  ;;  %vm1121_vm6 = vcmp.lt.s32.totalorder %v12323_v12, 112  ;;  %vm1175_vm7 = vcmp.lt.s32.totalorder %v12323_v12, 111  ;;  %v11920_v12 = vld [vmem:[%s19769_s20 + $0x38] ss:$20 sps:$4 sm:$0xff]  }
  0x1e   : > { %v12195_v2 = vld [vmem:[%s736_s7 + $0x8] sm:$0xff]  ;;  %v12197_v3 = vld [vmem:[%s736_s7] sm:$0xff]  ;;  %v12203_v4 = vld [vmem:[%s736_s7 + $0x18] sm:$0xff]  ;;  %s19906_s0 = sld [smem:[#allocation36_spill]]  ;;  %s19907_s29 = sld [smem:[#allocation38_spill]] }
  0x1f   : > { %759 = vrot.lane.b32.xlu1 %v12195_v2, %s19812_s30  ;;  %751 = vrot.lane.b32.xlu0 %v12197_v3, %s19812_s30  ;;  %v12205_v5 = vld [vmem:[%s736_s7 + $0x10] sm:$0xff]  ;;  %v12213_v7 = vld [vmem:[%s736_s7 + $0x20] sm:$0xff]  ;;  %s19910_s27 = smov 127   ;;  %s19919_s28 = smov 112  }
  0x20   : > { %v12207_v6 = vld [vmem:[%s736_s7 + $0x30] sm:$0xff]  ;;  %v12215_v8 = vld [vmem:[%s736_s7 + $0x38] sm:$0xff]  ;;  %v12217_v9 = vld [vmem:[%s736_s7 + $0x28] sm:$0xff]  ;;  %s19909_s7 = sld [smem:[#allocation43_spill]]  ;;  %s19927_s19 = sld [smem:[#allocation40_spill]] }
  0x23   : > { %761 = vrot.lane.b32.xlu1 %v12203_v4, %s19812_s30  ;;  %753 = vrot.lane.b32.xlu0 %v12205_v5, %s19812_s30  ;;  %v11773_v13 = vld [vmem:[%s19905_s11 + $0x4] ss:$12 sps:$4 sm:$0xff]  }
  0x24   : > { %v778_v15 = vld [vmem:[%s19906_s0] sm:$0x3]  ;;  %1418 = vmatprep.mubr.bf16.mxu0 %v11773_v13  ;;  %v10956_v46 = vld [vmem:[%s19906_s0 + $0x2] sm:$0x3] }
  0x25   : > { %v787_v19 = vrot.slane %v778_v15, %v12328_v14  ;;  %v783_v21 = vrot.slane %v778_v15, %v12337_v16  ;;  %v837_v51 = vrot.slane %v10956_v46, %v12337_v16  ;;  %v841_v52 = vrot.slane %v10956_v46, %v12328_v14 }
  0x27   : > { %757 = vrot.lane.b32.xlu1 %v12207_v6, %s19812_s30  ;;  %755 = vrot.lane.b32.xlu0 %v12213_v7, %s19812_s30 }
  0x2b   : > { %765 = vrot.lane.b32.xlu1 %v12215_v8, %s19812_s30  ;;  %763 = vrot.lane.b32.xlu0 %v12217_v9, %s19812_s30 }
  0x2f   : > { %808 = vrot.lane.b32.xlu1 %v12205_v5, %s19810_s3  ;;  %806 = vrot.lane.b32.xlu0 %v12197_v3, %s19810_s3 }
  0x33   : > { %816 = vrot.lane.b32.xlu1 %v12203_v4, %s19810_s3  ;;  %814 = vrot.lane.b32.xlu0 %v12195_v2, %s19810_s3 }
  0x37   : > { %812 = vrot.lane.b32.xlu1 %v12207_v6, %s19810_s3  ;;  %810 = vrot.lane.b32.xlu0 %v12213_v7, %s19810_s3 }
  0x3b   : > { %820 = vrot.lane.b32.xlu1 %v12215_v8, %s19810_s3  ;;  %818 = vrot.lane.b32.xlu0 %v12217_v9, %s19810_s3 }
  0x3f   : > { %862 = vrot.lane.b32.xlu1 %v12205_v5, %s19808_s25  ;;  %860 = vrot.lane.b32.xlu0 %v12197_v3, %s19808_s25 }
  0x43   : > { %870 = vrot.lane.b32.xlu1 %v12203_v4, %s19808_s25  ;;  %868 = vrot.lane.b32.xlu0 %v12195_v2, %s19808_s25 }
  0x47   : > { %866 = vrot.lane.b32.xlu1 %v12207_v6, %s19808_s25  ;;  %864 = vrot.lane.b32.xlu0 %v12213_v7, %s19808_s25 }
  0x4b   : > { %874 = vrot.lane.b32.xlu1 %v12215_v8, %s19808_s25  ;;  %872 = vrot.lane.b32.xlu0 %v12217_v9, %s19808_s25 }
  0x4f   : > { %916 = vrot.lane.b32.xlu1 %v12205_v5, %s19806_s8  ;;  %914 = vrot.lane.b32.xlu0 %v12197_v3, %s19806_s8 }
  0x53   : > { %924 = vrot.lane.b32.xlu1 %v12203_v4, %s19806_s8  ;;  %922 = vrot.lane.b32.xlu0 %v12195_v2, %s19806_s8 }
  0x57   : > { %920 = vrot.lane.b32.xlu1 %v12207_v6, %s19806_s8  ;;  %918 = vrot.lane.b32.xlu0 %v12213_v7, %s19806_s8 }
  0x5b   : > { %928 = vrot.lane.b32.xlu1 %v12215_v8, %s19806_s8  ;;  %926 = vrot.lane.b32.xlu0 %v12217_v9, %s19806_s8 }
  0x5f   : > { %999 = vrot.lane.b32.xlu1 %v12205_v5, %s19789_s4  ;;  %997 = vrot.lane.b32.xlu0 %v12197_v3, %s19789_s4 }
  0x63   : > { %1007 = vrot.lane.b32.xlu1 %v12203_v4, %s19789_s4  ;;  %1005 = vrot.lane.b32.xlu0 %v12195_v2, %s19789_s4 }
  0x67   : > { %1003 = vrot.lane.b32.xlu1 %v12207_v6, %s19789_s4  ;;  %1001 = vrot.lane.b32.xlu0 %v12213_v7, %s19789_s4 }
  0x6b   : > { %1011 = vrot.lane.b32.xlu1 %v12215_v8, %s19789_s4  ;;  %1009 = vrot.lane.b32.xlu0 %v12217_v9, %s19789_s4  ;;  %s19913_s4 = sld [smem:[#allocation39_spill]] }
  0x6f   : > { %1053 = vrot.lane.b32.xlu1 %v12205_v5, %s19787_s1  ;;  %1051 = vrot.lane.b32.xlu0 %v12197_v3, %s19787_s1 }
  0x73   : > { %1061 = vrot.lane.b32.xlu1 %v12203_v4, %s19787_s1  ;;  %1059 = vrot.lane.b32.xlu0 %v12195_v2, %s19787_s1 }
  0x77   : > { %1057 = vrot.lane.b32.xlu1 %v12207_v6, %s19787_s1  ;;  %1055 = vrot.lane.b32.xlu0 %v12213_v7, %s19787_s1 }
  0x7b   : > { %1065 = vrot.lane.b32.xlu1 %v12215_v8, %s19787_s1  ;;  %1063 = vrot.lane.b32.xlu0 %v12217_v9, %s19787_s1  ;;  %s19914_s1 = smov 113  }
  0x7f   : > { %1107 = vrot.lane.b32.xlu1 %v12205_v5, %s19785_s5  ;;  %1105 = vrot.lane.b32.xlu0 %v12197_v3, %s19785_s5 }
  0x83   : > { %1115 = vrot.lane.b32.xlu1 %v12203_v4, %s19785_s5  ;;  %1113 = vrot.lane.b32.xlu0 %v12195_v2, %s19785_s5 }
  0x87   : > { %1161 = vrot.lane.b32.xlu1 %v12205_v5, %s19783_s26  ;;  %1159 = vrot.lane.b32.xlu0 %v12197_v3, %s19783_s26 }
  0x8b   : > { %1169 = vrot.lane.b32.xlu1 %v12203_v4, %s19783_s26  ;;  %1167 = vrot.lane.b32.xlu0 %v12195_v2, %s19783_s26 }
  0x8f   : > { %1111 = vrot.lane.b32.xlu1 %v12207_v6, %s19785_s5  ;;  %1109 = vrot.lane.b32.xlu0 %v12213_v7, %s19785_s5 }
  0x91   : > { %v760_v17 = vpop.permute.xlu1 %759  ;;  %v752_v18 = vpop.permute.xlu0 %751 }
  0x92   : > { %v770_v20 = vsel %vm769_vm0, %v752_v18, %v760_v17  ;;  %v774_v22 = vsel %vm769_vm0, %v760_v17, %v752_v18 }
  0x93   : > { %1119 = vrot.lane.b32.xlu1 %v12215_v8, %s19785_s5  ;;  %1117 = vrot.lane.b32.xlu0 %v12217_v9, %s19785_s5  ;;  %v791_v28 = vmul.f32 %v787_v19, %v770_v20  ;;  %v790_v30 = vmul.f32 %v783_v21, %v774_v22 }
  0x95   : > { %v762_v23 = vpop.permute.xlu1 %761  ;;  %v754_v24 = vpop.permute.xlu0 %753 }
  0x96   : > { %v775_v26 = vsel %vm769_vm0, %v762_v23, %v754_v24  ;;  %v771_v27 = vsel %vm769_vm0, %v754_v24, %v762_v23  ;;  %v1266_v24 = vld [vmem:[%s19907_s29 + $0x8] sm:$0xff] }
  0x97   : > { %1165 = vrot.lane.b32.xlu1 %v12207_v6, %s19783_s26  ;;  %1163 = vrot.lane.b32.xlu0 %v12213_v7, %s19783_s26  ;;  %v793_v29 = vmul.f32 %v787_v19, %v771_v27  ;;  %v792_v31 = vmul.f32 %v783_v21, %v775_v26  ;;  %v1265_v26 = vld [vmem:[%s19907_s29] sm:$0xff] }
  0x98   : > { %v10957_v27 = vld [vmem:[%s19906_s0 + $0x4] sm:$0x3] }
  0x99   : > { %v758_v32 = vpop.permute.xlu1 %757  ;;  %v756_v33 = vpop.permute.xlu0 %755  ;;  %v799_v34 = vpack.c.bf16 %v793_v29, %v791_v28  ;;  %v798_v35 = vpack.c.bf16 %v792_v31, %v790_v30 }
  0x9b   : > { %1173 = vrot.lane.b32.xlu1 %v12215_v8, %s19783_s26  ;;  %1171 = vrot.lane.b32.xlu0 %v12217_v9, %s19783_s26  ;;  %s19926_s26 = smov 111  }
  0x9c   : > { %1386 = vmatprep.subr.bf16.mxu0 %v799_v34  ;;  %v891_v34 = vrot.slane %v10957_v27, %v12337_v16 }
  0x9d   : > { %1387 = vmatpush1.bf16.msra.mxu0 %v798_v35  ;;  %v766_v36 = vpop.permute.xlu1 %765  ;;  %v764_v37 = vpop.permute.xlu0 %763  ;;  %v895_v35 = vrot.slane %v10957_v27, %v12328_v14 }
  0x9e   : > { %v773_v38 = vsel %vm769_vm0, %v758_v32, %v766_v36  ;;  %v777_v39 = vsel %vm769_vm0, %v766_v36, %v758_v32  ;;  %v772_v40 = vsel %vm769_vm0, %v756_v33, %v764_v37  ;;  %v776_v41 = vsel %vm769_vm0, %v764_v37, %v756_v33  ;;  %v1267_v32 = vld [vmem:[%s19907_s29 + $0x10] sm:$0xff]  ;;  %v1268_v33 = vld [vmem:[%s19907_s29 + $0x18] sm:$0xff] }
  0x9f   : > { %v796_v42 = vmul.f32 %v783_v21, %v777_v39  ;;  %v797_v43 = vmul.f32 %v787_v19, %v773_v38  ;;  %v794_v44 = vmul.f32 %v783_v21, %v776_v41  ;;  %v795_v45 = vmul.f32 %v787_v19, %v772_v40  ;;  %1280 = vperm.xlu1 %11770, %v1266_v24   ;;  %v1269_v38 = vld [vmem:[%s19907_s29 + $0x20] sm:$0xff] }
  0xa0   : > { %1275 = vperm.xlu0 %11769, %v1265_v26  }
  0xa1   : > { %v809_v47 = vpop.permute.xlu1 %808  ;;  %v807_v48 = vpop.permute.xlu0 %806  ;;  %v801_v49 = vpack.c.bf16 %v797_v43, %v795_v45  ;;  %v800_v50 = vpack.c.bf16 %v796_v42, %v794_v44  ;;  %v1270_v43 = vld [vmem:[%s19907_s29 + $0x28] sm:$0xff] }
  0xa3   : > { %1388 = vmatprep.subr.bf16.mxu0 %v801_v49  ;;  %1285 = vperm.xlu1 %11770, %v1267_v32  }
  0xa4   : > { %1389 = vmatpush1.bf16.msra.mxu0 %v800_v50  ;;  %1290 = vperm.xlu0 %11769, %v1268_v33  }
  0xa5   : > { %v817_v53 = vpop.permute.xlu1 %816  ;;  %v815_v54 = vpop.permute.xlu0 %814 }
  0xa6   : > { %v824_v55 = vsel %vm822_vm1, %v809_v47, %v817_v53  ;;  %v828_v56 = vsel %vm822_vm1, %v817_v53, %v809_v47  ;;  %v823_v57 = vsel %vm822_vm1, %v807_v48, %v815_v54  ;;  %v827_v58 = vsel %vm822_vm1, %v815_v54, %v807_v48  ;;  %v1272_v53 = vld [vmem:[%s19907_s29 + $0x38] sm:$0xff] }
  0xa7   : > { %v846_v59 = vmul.f32 %v837_v51, %v828_v56  ;;  %v847_v60 = vmul.f32 %v841_v52, %v824_v55  ;;  %v844_v61 = vmul.f32 %v837_v51, %v827_v58  ;;  %v845_v62 = vmul.f32 %v841_v52, %v823_v57  ;;  %1295 = vperm.xlu1 %11770, %v1269_v38  }
  0xa8   : > { %1300 = vperm.xlu0 %11769, %v1270_v43  }
  0xa9   : > { %v813_v63 = vpop.permute.xlu1 %812  ;;  %v811_v0 = vpop.permute.xlu0 %810  ;;  %v853_v1 = vpack.c.bf16 %v847_v60, %v845_v62  ;;  %v852_v10 = vpack.c.bf16 %v846_v59, %v844_v61 }
  0xab   : > { %1390 = vmatprep.subr.bf16.mxu0 %v853_v1 }
  0xac   : > { %1391 = vmatpush1.bf16.msra.mxu0 %v852_v10  ;;  %1310 = vperm.xlu0 %11769, %v1272_v53  }
  0xad   : > { %v821_v11 = vpop.permute.xlu1 %820  ;;  %v819_v13 = vpop.permute.xlu0 %818 }
  0xae   : > { %v826_v15 = vsel %vm822_vm1, %v813_v63, %v821_v11  ;;  %v830_v17 = vsel %vm822_vm1, %v821_v11, %v813_v63  ;;  %v825_v18 = vsel %vm822_vm1, %v811_v0, %v819_v13  ;;  %v829_v19 = vsel %vm822_vm1, %v819_v13, %v811_v0  ;;  %v10958_v0 = vld [vmem:[%s19906_s0 + $0x6] sm:$0x3] }
  0xaf   : > { %v850_v20 = vmul.f32 %v837_v51, %v830_v17  ;;  %v851_v21 = vmul.f32 %v841_v52, %v826_v15  ;;  %v848_v22 = vmul.f32 %v837_v51, %v829_v19  ;;  %v849_v23 = vmul.f32 %v841_v52, %v825_v18  ;;  %v1271_v52 = vld [vmem:[%s19907_s29 + $0x30] sm:$0xff] }
  0xb0   : > { %1305 = vperm.xlu1 %11770, %v1271_v52   ;;  %v945_v15 = vrot.slane %v10958_v0, %v12337_v16  ;;  %v949_v17 = vrot.slane %v10958_v0, %v12328_v14 }
  0xb1   : > { %v863_v28 = vpop.permute.xlu1 %862  ;;  %v861_v29 = vpop.permute.xlu0 %860  ;;  %v855_v30 = vpack.c.bf16 %v851_v21, %v849_v23  ;;  %v854_v31 = vpack.c.bf16 %v850_v20, %v848_v22  ;;  %v10959_v20 = vld [vmem:[%s19906_s0 + $0x8] sm:$0x3] }
  0xb3   : > { %1392 = vmatprep.subr.bf16.mxu0 %v855_v30  ;;  %v978_v30 = vrot.slane %v10959_v20, %v12328_v14 }
  0xb4   : > { %1393 = vmatpush1.bf16.msra.mxu0 %v854_v31 }
  0xb5   : > { %v871_v36 = vpop.permute.xlu1 %870  ;;  %v869_v37 = vpop.permute.xlu0 %868 }
  0xb6   : > { %v878_v39 = vsel %vm876_vm2, %v863_v28, %v871_v36  ;;  %v882_v40 = vsel %vm876_vm2, %v871_v36, %v863_v28  ;;  %v877_v41 = vsel %vm876_vm2, %v861_v29, %v869_v37  ;;  %v881_v42 = vsel %vm876_vm2, %v869_v37, %v861_v29 }
  0xb7   : > { %v900_v44 = vmul.f32 %v891_v34, %v882_v40  ;;  %v901_v45 = vmul.f32 %v895_v35, %v878_v39  ;;  %v898_v46 = vmul.f32 %v891_v34, %v881_v42  ;;  %v899_v47 = vmul.f32 %v895_v35, %v877_v41 }
  0xb8   : > { %v984_v36 = vmul.f32 %v978_v30, %v12203_v4  ;;  %v974_v37 = vrot.slane %v10959_v20, %v12337_v16 }
  0xb9   : > { %v867_v48 = vpop.permute.xlu1 %866  ;;  %v865_v49 = vpop.permute.xlu0 %864  ;;  %v907_v50 = vpack.c.bf16 %v901_v45, %v899_v47  ;;  %v906_v51 = vpack.c.bf16 %v900_v44, %v898_v46  ;;  %v10960_v46 = vld [vmem:[%s19906_s0 + $0xa] sm:$0x3] }
  0xbb   : > { %1394 = vmatprep.subr.bf16.mxu0 %v907_v50 }
  0xbc   : > { %1395 = vmatpush1.bf16.msra.mxu0 %v906_v51 }
  0xbd   : > { %v875_v54 = vpop.permute.xlu1 %874  ;;  %v873_v55 = vpop.permute.xlu0 %872 }
  0xbe   : > { %v880_v56 = vsel %vm876_vm2, %v867_v48, %v875_v54  ;;  %v884_v57 = vsel %vm876_vm2, %v875_v54, %v867_v48  ;;  %v879_v58 = vsel %vm876_vm2, %v865_v49, %v873_v55  ;;  %v883_v59 = vsel %vm876_vm2, %v873_v55, %v865_v49 }
  0xbf   : > { %v904_v60 = vmul.f32 %v891_v34, %v884_v57  ;;  %v905_v61 = vmul.f32 %v895_v35, %v880_v56  ;;  %v902_v62 = vmul.f32 %v891_v34, %v883_v59  ;;  %v903_v63 = vmul.f32 %v895_v35, %v879_v58 }
  0xc0   : > { %v982_v35 = vmul.f32 %v978_v30, %v12195_v2  ;;  %v981_v48 = vmul.f32 %v974_v37, %v12197_v3  ;;  %v983_v49 = vmul.f32 %v974_v37, %v12205_v5  ;;  %v986_v54 = vmul.f32 %v978_v30, %v12217_v9 }
  0xc1   : > { %v917_v1 = vpop.permute.xlu1 %916  ;;  %v915_v10 = vpop.permute.xlu0 %914  ;;  %v909_v11 = vpack.c.bf16 %v905_v61, %v903_v63  ;;  %v908_v13 = vpack.c.bf16 %v904_v60, %v902_v62  ;;  %v988_v55 = vmul.f32 %v978_v30, %v12215_v8  ;;  %v1032_v56 = vrot.slane %v10960_v46, %v12328_v14 }
  0xc2   : > { %v990_v47 = vpack.c.bf16 %v984_v36, %v982_v35  ;;  %v989_v57 = vpack.c.bf16 %v983_v49, %v981_v48  ;;  %v985_v58 = vmul.f32 %v974_v37, %v12213_v7  ;;  %v987_v3 = vmul.f32 %v974_v37, %v12207_v6 }
  0xc3   : > { %1396 = vmatprep.subr.bf16.mxu0 %v909_v11  ;;  %v1028_v5 = vrot.slane %v10960_v46, %v12337_v16  ;;  %v992_v61 = vpack.c.bf16 %v988_v55, %v986_v54 }
  0xc4   : > { %1397 = vmatpush1.bf16.msra.mxu0 %v908_v13  ;;  %v991_v0 = vpack.c.bf16 %v987_v3, %v985_v58  ;;  %v10962_v58 = vld [vmem:[%s19906_s0 + $0xe] sm:$0x3] }
  0xc5   : > { %v925_v18 = vpop.permute.xlu1 %924  ;;  %v923_v19 = vpop.permute.xlu0 %922 }
  0xc6   : > { %v932_v21 = vsel %vm930_vm3, %v917_v1, %v925_v18  ;;  %v936_v22 = vsel %vm930_vm3, %v925_v18, %v917_v1  ;;  %v931_v23 = vsel %vm930_vm3, %v915_v10, %v923_v19  ;;  %v935_v24 = vsel %vm930_vm3, %v923_v19, %v915_v10 }
  0xc7   : > { %v954_v26 = vmul.f32 %v945_v15, %v936_v22  ;;  %v955_v27 = vmul.f32 %v949_v17, %v932_v21  ;;  %v952_v28 = vmul.f32 %v945_v15, %v935_v24  ;;  %v953_v29 = vmul.f32 %v949_v17, %v931_v23 }
  0xc9   : > { %v921_v31 = vpop.permute.xlu1 %920  ;;  %v919_v32 = vpop.permute.xlu0 %918  ;;  %v961_v33 = vpack.c.bf16 %v955_v27, %v953_v29  ;;  %v960_v34 = vpack.c.bf16 %v954_v26, %v952_v28  ;;  %v10961_v29 = vld [vmem:[%s19906_s0 + $0xc] sm:$0x3] }
  0xca   : > { %v1086_v35 = vrot.slane %v10961_v29, %v12328_v14 }
  0xcb   : > { %1398 = vmatprep.subr.bf16.mxu0 %v961_v33 }
  0xcc   : > { %1399 = vmatpush1.bf16.msra.mxu0 %v960_v34  ;;  %v1082_v34 = vrot.slane %v10961_v29, %v12337_v16 }
  0xcd   : > { %v929_v38 = vpop.permute.xlu1 %928  ;;  %v927_v39 = vpop.permute.xlu0 %926 }
  0xce   : > { %v934_v40 = vsel %vm930_vm3, %v921_v31, %v929_v38  ;;  %v938_v41 = vsel %vm930_vm3, %v929_v38, %v921_v31  ;;  %v933_v42 = vsel %vm930_vm3, %v919_v32, %v927_v39  ;;  %v937_v43 = vsel %vm930_vm3, %v927_v39, %v919_v32 }
  0xcf   : > { %v958_v44 = vmul.f32 %v945_v15, %v938_v41  ;;  %v959_v2 = vmul.f32 %v949_v17, %v934_v40  ;;  %v956_v45 = vmul.f32 %v945_v15, %v937_v43  ;;  %v957_v4 = vmul.f32 %v949_v17, %v933_v42 }
  0xd1   : > { %v1000_v50 = vpop.permute.xlu1 %999  ;;  %v998_v51 = vpop.permute.xlu0 %997  ;;  %v963_v52 = vpack.c.bf16 %v959_v2, %v957_v4  ;;  %v962_v53 = vpack.c.bf16 %v958_v44, %v956_v45 }
  0xd3   : > { %1400 = vmatprep.subr.bf16.mxu0 %v963_v52 }
  0xd4   : > { %1401 = vmatpush1.bf16.msra.mxu0 %v962_v53 }
  0xd5   : > { %v1008_v59 = vpop.permute.xlu1 %1007  ;;  %v1006_v60 = vpop.permute.xlu0 %1005  ;;  %1402 = vmatprep.subr.bf16.mxu0 %v990_v47 }
  0xd6   : > { %v1015_v8 = vsel %vm1013_vm4, %v1000_v50, %v1008_v59  ;;  %v1019_v9 = vsel %vm1013_vm4, %v1008_v59, %v1000_v50  ;;  %v1014_v62 = vsel %vm1013_vm4, %v998_v51, %v1006_v60  ;;  %v1018_v7 = vsel %vm1013_vm4, %v1006_v60, %v998_v51 }
  0xd7   : > { %v1038_v63 = vmul.f32 %v1032_v56, %v1019_v9  ;;  %v1036_v6 = vmul.f32 %v1032_v56, %v1018_v7  ;;  %v1037_v1 = vmul.f32 %v1028_v5, %v1015_v8  ;;  %v1035_v10 = vmul.f32 %v1028_v5, %v1014_v62 }
  0xd8   : > { %1403 = vmatpush1.bf16.msra.mxu0 %v989_v57  ;;  %v1140_v8 = vrot.slane %v10962_v58, %v12328_v14 }
  0xd9   : > { %v1004_v11 = vpop.permute.xlu1 %1003  ;;  %v1002_v13 = vpop.permute.xlu0 %1001  ;;  %1404 = vmatprep.subr.bf16.mxu0 %v992_v61  ;;  %v1044_v15 = vpack.c.bf16 %v1038_v63, %v1036_v6  ;;  %v1043_v19 = vpack.c.bf16 %v1037_v1, %v1035_v10  ;;  %v1136_v61 = vrot.slane %v10962_v58, %v12337_v16 }
  0xdc   : > { %1405 = vmatpush1.bf16.msra.mxu0 %v991_v0 }
  0xdd   : > { %v1012_v17 = vpop.permute.xlu1 %1011  ;;  %v1010_v18 = vpop.permute.xlu0 %1009  ;;  %1406 = vmatprep.subr.bf16.mxu0 %v1044_v15  ;;  %v10963_v15 = vld [vmem:[%s19906_s0 + $0x10] sm:$0x3] }
  0xde   : > { %v1017_v20 = vsel %vm1013_vm4, %v1004_v11, %v1012_v17  ;;  %v1021_v21 = vsel %vm1013_vm4, %v1012_v17, %v1004_v11  ;;  %v1016_v22 = vsel %vm1013_vm4, %v1002_v13, %v1010_v18  ;;  %v1020_v23 = vsel %vm1013_vm4, %v1010_v18, %v1002_v13 }
  0xdf   : > { %v1041_v24 = vmul.f32 %v1028_v5, %v1017_v20  ;;  %v1042_v26 = vmul.f32 %v1032_v56, %v1021_v21  ;;  %v1039_v27 = vmul.f32 %v1028_v5, %v1016_v22  ;;  %v1040_v28 = vmul.f32 %v1032_v56, %v1020_v23 }
  0xe0   : > { %1407 = vmatpush1.bf16.msra.mxu0 %v1043_v19  ;;  %v1194_v21 = vrot.slane %v10963_v15, %v12328_v14  ;;  %v1190_v22 = vrot.slane %v10963_v15, %v12337_v16 }
  0xe1   : > { %v1054_v30 = vpop.permute.xlu1 %1053  ;;  %v1052_v31 = vpop.permute.xlu0 %1051  ;;  %v1046_v32 = vpack.c.bf16 %v1042_v26, %v1040_v28  ;;  %v1045_v33 = vpack.c.bf16 %v1041_v24, %v1039_v27 }
  0xe3   : > { %1408 = vmatprep.subr.bf16.mxu0 %v1046_v32 }
  0xe4   : > { %1409 = vmatpush1.bf16.msra.mxu0 %v1045_v33 }
  0xe5   : > { %v1062_v36 = vpop.permute.xlu1 %1061  ;;  %v1060_v37 = vpop.permute.xlu0 %1059 }
  0xe6   : > { %v1069_v38 = vsel %vm1067_vm5, %v1054_v30, %v1062_v36  ;;  %v1073_v39 = vsel %vm1067_vm5, %v1062_v36, %v1054_v30  ;;  %v1068_v40 = vsel %vm1067_vm5, %v1052_v31, %v1060_v37  ;;  %v1072_v41 = vsel %vm1067_vm5, %v1060_v37, %v1052_v31 }
  0xe7   : > { %v1091_v42 = vmul.f32 %v1082_v34, %v1069_v38  ;;  %v1092_v43 = vmul.f32 %v1086_v35, %v1073_v39  ;;  %v1089_v44 = vmul.f32 %v1082_v34, %v1068_v40  ;;  %v1090_v2 = vmul.f32 %v1086_v35, %v1072_v41 }
  0xe9   : > { %v1058_v45 = vpop.permute.xlu1 %1057  ;;  %v1056_v4 = vpop.permute.xlu0 %1055  ;;  %v1098_v46 = vpack.c.bf16 %v1092_v43, %v1090_v2  ;;  %v1097_v47 = vpack.c.bf16 %v1091_v42, %v1089_v44 }
  0xeb   : > { %1410 = vmatprep.subr.bf16.mxu0 %v1098_v46 }
  0xec   : > { %1411 = vmatpush1.bf16.msra.mxu0 %v1097_v47 }
  0xed   : > { %v1066_v48 = vpop.permute.xlu1 %1065  ;;  %v1064_v49 = vpop.permute.xlu0 %1063 }
  0xee   : > { %v1071_v50 = vsel %vm1067_vm5, %v1058_v45, %v1066_v48  ;;  %v1075_v51 = vsel %vm1067_vm5, %v1066_v48, %v1058_v45  ;;  %v1070_v52 = vsel %vm1067_vm5, %v1056_v4, %v1064_v49  ;;  %v1074_v53 = vsel %vm1067_vm5, %v1064_v49, %v1056_v4 }
  0xef   : > { %v1095_v54 = vmul.f32 %v1082_v34, %v1071_v50  ;;  %v1096_v55 = vmul.f32 %v1086_v35, %v1075_v51  ;;  %v1093_v56 = vmul.f32 %v1082_v34, %v1070_v52  ;;  %v1094_v57 = vmul.f32 %v1086_v35, %v1074_v53  ;;  %v11771_v50 = vld [vmem:[%s19905_s11] ss:$12 sps:$4 sm:$0xff]   ;;  %v11774_v51 = vld [vmem:[%s19905_s11 + $0x1c] ss:$12 sps:$4 sm:$0xff]  }
  0xf1   : > { %v1108_v3 = vpop.permute.xlu1 %1107  ;;  %v1106_v5 = vpop.permute.xlu0 %1105  ;;  %v1100_v59 = vpack.c.bf16 %v1096_v55, %v1094_v57  ;;  %v1099_v60 = vpack.c.bf16 %v1095_v54, %v1093_v56 }
  0xf3   : > { %1412 = vmatprep.subr.bf16.mxu0 %v1100_v59 }
  0xf4   : > { %1413 = vmatpush1.bf16.msra.mxu0 %v1099_v60 }
  0xf5   : > { %v1116_v9 = vpop.permute.xlu1 %1115  ;;  %v1114_v62 = vpop.permute.xlu0 %1113 }
  0xf6   : > { %v1123_v7 = vsel %vm1121_vm6, %v1108_v3, %v1116_v9  ;;  %v1127_v63 = vsel %vm1121_vm6, %v1116_v9, %v1108_v3  ;;  %v1122_v6 = vsel %vm1121_vm6, %v1106_v5, %v1114_v62  ;;  %v1126_v0 = vsel %vm1121_vm6, %v1114_v62, %v1106_v5  ;;  %v11777_v9 = vld [vmem:[%s19905_s11 + $0x8] ss:$12 sps:$4 sm:$0xff]  }
  0xf7   : > { %v1145_v1 = vmul.f32 %v1136_v61, %v1123_v7  ;;  %v1146_v10 = vmul.f32 %v1140_v8, %v1127_v63  ;;  %v1143_v11 = vmul.f32 %v1136_v61, %v1122_v6  ;;  %v1144_v13 = vmul.f32 %v1140_v8, %v1126_v0  ;;  %v11778_v62 = vld [vmem:[%s19905_s11 + $0x34] ss:$12 sps:$4 sm:$0xff]   ;;  %v11780_v7 = vld [vmem:[%s19905_s11 + $0x30] ss:$12 sps:$4 sm:$0xff]   ;;  %v11782_v6 = vld [vmem:[%s19905_s11 + $0x4c] ss:$12 sps:$4 sm:$0xff]  }
  0xf8   : > { %v11781_v63 = vld [vmem:[%s19905_s11 + $0x20] ss:$12 sps:$4 sm:$0xff]   ;;  %v11784_v0 = vld [vmem:[%s19905_s11 + $0x48] ss:$12 sps:$4 sm:$0xff]  }
  0xf9   : > { %v1162_v17 = vpop.permute.xlu1 %1161  ;;  %v1160_v18 = vpop.permute.xlu0 %1159  ;;  %v1152_v19 = vpack.c.bf16 %v1146_v10, %v1144_v13  ;;  %v1151_v20 = vpack.c.bf16 %v1145_v1, %v1143_v11  ;;  %v11785_v1 = vld [vmem:[%s19905_s11 + $0x38] ss:$12 sps:$4 sm:$0xff]   ;;  %v11786_v10 = vld [vmem:[%s19905_s11 + $0x50] ss:$12 sps:$4 sm:$0xff]  }
  0xfb   : > { %1414 = vmatprep.subr.bf16.mxu0 %v1152_v19 }
  0xfc   : > { %1415 = vmatpush1.bf16.msra.mxu0 %v1151_v20 }
  0xfd   : > { %v1170_v23 = vpop.permute.xlu1 %1169  ;;  %v1168_v24 = vpop.permute.xlu0 %1167 }
  0xfe   : > { %v1177_v26 = vsel %vm1175_vm7, %v1162_v17, %v1170_v23  ;;  %v1176_v27 = vsel %vm1175_vm7, %v1160_v18, %v1168_v24  ;;  %v1180_v28 = vsel %vm1175_vm7, %v1168_v24, %v1160_v18  ;;  %v1181_v29 = vsel %vm1175_vm7, %v1170_v23, %v1162_v17 }
  0xff   : > { %v1198_v30 = vmul.f32 %v1194_v21, %v1180_v28  ;;  %v1200_v31 = vmul.f32 %v1194_v21, %v1181_v29  ;;  %v1197_v32 = vmul.f32 %v1190_v22, %v1176_v27  ;;  %v1199_v33 = vmul.f32 %v1190_v22, %v1177_v26 }
 0x101   : > { %v1112_v34 = vpop.permute.xlu1 %1111  ;;  %v1110_v35 = vpop.permute.xlu0 %1109  ;;  %v1206_v36 = vpack.c.bf16 %v1200_v31, %v1198_v30  ;;  %v1205_v37 = vpack.c.bf16 %v1199_v33, %v1197_v32 }
 0x103   : > { %1459 = vmatprep.subr.bf16.mxu1 %v1206_v36 }
 0x104   : > { %1460 = vmatpush1.bf16.msra.mxu1 %v1205_v37 }
 0x105   : > { %v1120_v38 = vpop.permute.xlu1 %1119  ;;  %v1118_v39 = vpop.permute.xlu0 %1117 }
 0x106   : > { %v1125_v40 = vsel %vm1121_vm6, %v1112_v34, %v1120_v38  ;;  %v1129_v41 = vsel %vm1121_vm6, %v1120_v38, %v1112_v34  ;;  %v1124_v42 = vsel %vm1121_vm6, %v1110_v35, %v1118_v39  ;;  %v1128_v43 = vsel %vm1121_vm6, %v1118_v39, %v1110_v35 }
 0x107   : > { %v1149_v44 = vmul.f32 %v1136_v61, %v1125_v40  ;;  %v1150_v2 = vmul.f32 %v1140_v8, %v1129_v41  ;;  %v1147_v45 = vmul.f32 %v1136_v61, %v1124_v42  ;;  %v1148_v4 = vmul.f32 %v1140_v8, %v1128_v43  ;;  %v11776_v8 = vld [vmem:[%s19905_s11 + $0x18] ss:$12 sps:$4 sm:$0xff]  }
 0x109   : > { %v1166_v46 = vpop.permute.xlu1 %1165  ;;  %v1164_v47 = vpop.permute.xlu0 %1163  ;;  %v1154_v48 = vpack.c.bf16 %v1150_v2, %v1148_v4  ;;  %v1153_v49 = vpack.c.bf16 %v1149_v44, %v1147_v45 }
 0x10b   : > { %1416 = vmatprep.subr.bf16.mxu0 %v1154_v48 }
 0x10c   : > { %1417 = vmatpush1.bf16.msra.mxu0 %v1153_v49 }
 0x10d   : > { %v1174_v52 = vpop.permute.xlu1 %1173  ;;  %v1172_v53 = vpop.permute.xlu0 %1171 }
 0x10e   : > { %v1179_v54 = vsel %vm1175_vm7, %v1166_v46, %v1174_v52  ;;  %v1183_v55 = vsel %vm1175_vm7, %v1174_v52, %v1166_v46  ;;  %v1178_v56 = vsel %vm1175_vm7, %v1164_v47, %v1172_v53  ;;  %v1182_v57 = vsel %vm1175_vm7, %v1172_v53, %v1164_v47 }
 0x10f   : > { %v1203_v58 = vmul.f32 %v1190_v22, %v1179_v54  ;;  %v1204_v3 = vmul.f32 %v1194_v21, %v1183_v55  ;;  %v1201_v5 = vmul.f32 %v1190_v22, %v1178_v56  ;;  %v1202_v59 = vmul.f32 %v1194_v21, %v1182_v57  ;;  %1419 = vmatmul.mubr.bf16.vlgmr.msra.gmra.mrb[0].mxu0 %v11771_v50 }
 0x110   : > { %1428 = vmatprep.mubr.bf16.mxu0 %v11774_v51 }
 0x111   : > { %v1208_v60 = vpack.c.bf16 %v1204_v3, %v1202_v59  ;;  %v1207_v61 = vpack.c.bf16 %v1203_v58, %v1201_v5 }
 0x113   : > { %1461 = vmatprep.subr.bf16.mxu1 %v1208_v60 }
 0x114   : > { %1462 = vmatpush1.bf16.msra.mxu1 %v1207_v61 }
 0x117   : > { %1429 = vmatmul.mubr.bf16.gmra.mrb[4].mxu0 %v11776_v8  ;;  %10976 = vmatmul.mubr.msk.bf16.vlgmr.msra.gmra.mrb[0].mxu1 %vm1373_vm8, %v11777_v9 }
 0x118   : > { %1438 = vmatprep.mubr.bf16.mxu0 %v11778_v62  ;;  %1501 = vmatprep.mubr.bf16.mxu1 %v19791_v25 }
 0x11e   : > { %v1281_v21 = vpop.permute.xlu1 %1280 }
 0x11f   : > { %1439 = vmatmul.mubr.bf16.gmra.mrb[8].mxu0 %v11780_v7  ;;  %10977 = vmatmul.mubr.msk.bf16.gmra.mrb[4].mxu1 %vm1373_vm8, %v11781_v63  ;;  %v1276_v18 = vpop.permute.xlu0 %1275 }
 0x120   : > { %1448 = vmatprep.mubr.bf16.mxu0 %v11782_v6  ;;  %1511 = vmatprep.mubr.bf16.mxu1 %v19791_v25 }
 0x122   : > { %v1286_v39 = vpop.permute.xlu1 %1285 }
 0x123   : > { %v1291_v42 = vpop.permute.xlu0 %1290 }
 0x126   : > { %v1296_v5 = vpop.permute.xlu1 %1295 }
 0x127   : > { %1449 = vmatmul.mubr.bf16.gmra.mrb[12].mxu0 %v11784_v0  ;;  %10978 = vmatmul.mubr.msk.bf16.gmra.mrb[8].mxu1 %vm1373_vm8, %v11785_v1  ;;  %v1301_v61 = vpop.permute.xlu0 %1300 }
 0x128   : > { %1521 = vmatprep.mubr.bf16.mxu1 %v19791_v25 }
 0x12f   : > { %10979 = vmatmul.mubr.msk.bf16.gmra.mrb[12].mxu1 %vm1373_vm8, %v11786_v10 }
 0x130   : > { %1677 = vmatprep.mubr.bf16.mxu1 %v19791_v25 }
 0x1e2   : > { %v1420_v11 = vpop.f32.mrb[0].mxu0 }
 0x1e3   : > { %v1422_v13 = vpop.f32.mrb[1].mxu0  ;;  %v1421_v19 = vadd.f32 %v1420_v11, %v1276_v18 }
 0x1e4   : > { %v1424_v15 = vpop.f32.mrb[2].mxu0  ;;  %v1423_v20 = vadd.f32 %v1422_v13, %v1276_v18 }
 0x1e5   : > { %v1426_v17 = vpop.f32.mrb[3].mxu0  ;;  %v1425_v24 = vadd.f32 %v1424_v15, %v1281_v21 }
 0x1e6   : > { %v1427_v29 = vadd.f32 %v1426_v17, %v1281_v21 }
 0x1ea   : > { %v1493_v22 = vpop.f32.mrb[0].mxu1  ;;  %v1430_v23 = vpop.f32.mrb[4].mxu0 }
 0x1eb   : > { %v1494_v26 = vadd.f32 %v1493_v22, %v1421_v19  ;;  %v1432_v27 = vpop.f32.mrb[5].mxu0  ;;  %v1495_v28 = vpop.f32.mrb[1].mxu1  ;;  %v1431_v43 = vadd.f32 %v1430_v23, %v1286_v39 }
 0x1ec   : > { %v1496_v30 = vadd.f32 %v1495_v28, %v1423_v20  ;;  %v1434_v31 = vpop.f32.mrb[6].mxu0  ;;  %v1497_v32 = vpop.f32.mrb[2].mxu1  ;;  %v1433_v44 = vadd.f32 %v1432_v27, %v1286_v39 }
 0x1ed   : > { %v12605_v33 = vmax.f32 %v1494_v26, 0.0  ;;  %v1498_v34 = vadd.f32 %v1497_v32, %v1425_v24  ;;  %v1436_v35 = vpop.f32.mrb[7].mxu0  ;;  %v1499_v36 = vpop.f32.mrb[3].mxu1  ;;  %v1435_v46 = vadd.f32 %v1434_v31, %v1291_v42 }
 0x1ee   : > { %v1500_v37 = vadd.f32 %v1499_v36, %v1427_v29  ;;  %v12611_v40 = vmax.f32 %v1496_v30, 0.0  ;;  %v1437_v51 = vadd.f32 %v1436_v35, %v1291_v42  ;;  %v1306_v26 = vpop.permute.xlu1 %1305  ;;  %v1311_v31 = vpop.permute.xlu0 %1310 }
 0x1ef   : > { %19908 = vst [vmem:[#allocation6_spill] sm:$0xff] %v12605_v33  ;;  %v12607_v38 = vmax.f32 %v1498_v34, 0.0  ;;  %1718 = vrot.lane.b32.xlu1 %v12605_v33, %s19812_s30 }
 0x1f0   : > { %v12613_v41 = vmax.f32 %v1500_v37, 0.0 }
 0x1f1   : > { %1720 = vrot.lane.b32.xlu0 %v12607_v38, %s19812_s30  ;;  %v1556_v50 = vpack.c.bf16 %v12607_v38, %v12605_v33 }
 0x1f2   : > { %v1440_v2 = vpop.f32.mrb[8].mxu0  ;;  %v1503_v45 = vpop.f32.mrb[4].mxu1  ;;  %v1557_v4 = vpack.c.bf16 %v12613_v41, %v12611_v40 }
 0x1f3   : > { %v1504_v47 = vadd.f32 %v1503_v45, %v1431_v43  ;;  %v1442_v48 = vpop.f32.mrb[9].mxu0  ;;  %v1505_v49 = vpop.f32.mrb[5].mxu1  ;;  %1810 = vrot.lane.b32.xlu1 %v12605_v33, %s19810_s3  ;;  %v1441_v8 = vadd.f32 %v1440_v2, %v1296_v5 }
 0x1f4   : > { %v1506_v52 = vadd.f32 %v1505_v49, %v1433_v44  ;;  %v1444_v53 = vpop.f32.mrb[10].mxu0  ;;  %v1507_v54 = vpop.f32.mrb[6].mxu1  ;;  %1645 = vmatprep.subr.bf16.mxu1 %v1557_v4  ;;  %v1443_v62 = vadd.f32 %v1442_v48, %v1296_v5 }
 0x1f5   : > { %v1508_v55 = vadd.f32 %v1507_v54, %v1435_v46  ;;  %v1446_v56 = vpop.f32.mrb[11].mxu0  ;;  %v1509_v57 = vpop.f32.mrb[7].mxu1  ;;  %1812 = vrot.lane.b32.xlu0 %v12607_v38, %s19810_s3  ;;  %1646 = vmatpush1.bf16.msra.mxu1 %v1556_v50  ;;  %v12633_v9 = vmax.f32 %v1504_v47, 0.0  ;;  %v1445_v0 = vadd.f32 %v1444_v53, %v1301_v61  ;;  %v11787_v53 = vld [vmem:[%s19909_s7] sm:$0xff]  }
 0x1f6   : > { %v1510_v58 = vadd.f32 %v1509_v57, %v1437_v51  ;;  %v12629_v59 = vmax.f32 %v1506_v52, 0.0  ;;  %v1447_v15 = vadd.f32 %v1446_v56, %v1301_v61 }
 0x1f7   : > { %v12625_v3 = vmax.f32 %v1508_v55, 0.0  ;;  %1902 = vrot.lane.b32.xlu1 %v12605_v33, %s19808_s25 }
 0x1f8   : > { %v12631_v60 = vmax.f32 %v1510_v58, 0.0 }
 0x1f9   : > { %1904 = vrot.lane.b32.xlu0 %v12607_v38, %s19808_s25  ;;  %v1558_v13 = vpack.c.bf16 %v12625_v3, %v12633_v9 }
 0x1fa   : > { %v1450_v7 = vpop.f32.mrb[12].mxu0  ;;  %v1513_v63 = vpop.f32.mrb[8].mxu1  ;;  %v1559_v6 = vpack.c.bf16 %v12631_v60, %v12629_v59 }
 0x1fb   : > { %v1514_v1 = vadd.f32 %v1513_v63, %v1441_v8  ;;  %v1452_v10 = vpop.f32.mrb[13].mxu0  ;;  %v1515_v11 = vpop.f32.mrb[9].mxu1  ;;  %1994 = vrot.lane.b32.xlu1 %v12605_v33, %s19806_s8  ;;  %v1451_v29 = vadd.f32 %v1450_v7, %v1306_v26  ;;  %v1766_v8 = vld [vmem:[%s19906_s0] sm:$0x3] }
 0x1fc   : > { %v1516_v17 = vadd.f32 %v1515_v11, %v1443_v62  ;;  %v1454_v18 = vpop.f32.mrb[14].mxu0  ;;  %v1517_v19 = vpop.f32.mrb[10].mxu1  ;;  %1647 = vmatprep.subr.bf16.mxu1 %v1559_v6  ;;  %v1453_v32 = vadd.f32 %v1452_v10, %v1306_v26  ;;  %v11788_v62 = vld [vmem:[%s19909_s7 + $0x8] sm:$0xff]   ;;  %v12810_v63 = vrot.slane %v1766_v8, %v12337_v16  ;;  %v12813_v6 = vrot.slane %v1766_v8, %v12328_v14 }
 0x1fd   : > { %v1518_v20 = vadd.f32 %v1517_v19, %v1445_v0  ;;  %v1456_v21 = vpop.f32.mrb[15].mxu0  ;;  %v1519_v22 = vpop.f32.mrb[11].mxu1  ;;  %1996 = vrot.lane.b32.xlu0 %v12607_v38, %s19806_s8  ;;  %1648 = vmatpush1.bf16.msra.mxu1 %v1558_v13  ;;  %v12653_v30 = vmax.f32 %v1514_v1, 0.0  ;;  %v1455_v36 = vadd.f32 %v1454_v18, %v1311_v31 }
 0x1fe   : > { %v1520_v23 = vadd.f32 %v1519_v22, %v1447_v15  ;;  %v12649_v27 = vmax.f32 %v1516_v17, 0.0  ;;  %v1457_v43 = vadd.f32 %v1456_v21, %v1311_v31  ;;  %v11789_v22 = vld [vmem:[%s19909_s7 + $0x10] sm:$0xff]  }
 0x1ff   : > { %v12645_v24 = vmax.f32 %v1518_v20, 0.0  ;;  %1734 = vrot.lane.b32.xlu1 %v12611_v40, %s19812_s30 }
 0x200   : > { %v12651_v28 = vmax.f32 %v1520_v23, 0.0 }
 0x201   : > { %1736 = vrot.lane.b32.xlu0 %v12613_v41, %s19812_s30  ;;  %v1560_v42 = vpack.c.bf16 %v12645_v24, %v12653_v30 }
 0x202   : > { %v1523_v34 = vpop.f32.mrb[12].mxu1  ;;  %v1561_v35 = vpack.c.bf16 %v12651_v28, %v12649_v27 }
 0x203   : > { %v1524_v37 = vadd.f32 %v1523_v34, %v1451_v29  ;;  %v1525_v39 = vpop.f32.mrb[13].mxu1  ;;  %1826 = vrot.lane.b32.xlu1 %v12611_v40, %s19810_s3 }
 0x204   : > { %v1526_v44 = vadd.f32 %v1525_v39, %v1453_v32  ;;  %v1527_v2 = vpop.f32.mrb[14].mxu1  ;;  %1649 = vmatprep.subr.bf16.mxu1 %v1561_v35  ;;  %v11790_v35 = vld [vmem:[%s19909_s7 + $0x18] sm:$0xff]   ;;  %s19960_s7 = smov 16  }
 0x205   : > { %v1528_v45 = vadd.f32 %v1527_v2, %v1455_v36  ;;  %v1529_v4 = vpop.f32.mrb[15].mxu1  ;;  %1828 = vrot.lane.b32.xlu0 %v12613_v41, %s19810_s3  ;;  %1650 = vmatpush1.bf16.msra.mxu1 %v1560_v42  ;;  %v12673_v50 = vmax.f32 %v1524_v37, 0.0 }
 0x206   : > { %v1530_v46 = vadd.f32 %v1529_v4, %v1457_v43  ;;  %v12669_v48 = vmax.f32 %v1526_v44, 0.0  ;;  %v11793_v44 = vld [vmem:[%s19913_s4 + $0x4] ss:$20 sps:$4 sm:$0xff]  }
 0x207   : > { %v12665_v47 = vmax.f32 %v1528_v45, 0.0  ;;  %1918 = vrot.lane.b32.xlu1 %v12611_v40, %s19808_s25 }
 0x208   : > { %v12671_v49 = vmax.f32 %v1530_v46, 0.0 }
 0x209   : > { %1920 = vrot.lane.b32.xlu0 %v12613_v41, %s19808_s25  ;;  %v1562_v52 = vpack.c.bf16 %v12665_v47, %v12673_v50 }
 0x20a   : > { %v1563_v51 = vpack.c.bf16 %v12671_v49, %v12669_v48 }
 0x20b   : > { %2010 = vrot.lane.b32.xlu1 %v12611_v40, %s19806_s8 }
 0x20c   : > { %1651 = vmatprep.subr.bf16.mxu1 %v1563_v51 }
 0x20d   : > { %2012 = vrot.lane.b32.xlu0 %v12613_v41, %s19806_s8  ;;  %1652 = vmatpush1.bf16.msra.mxu1 %v1562_v52 }
 0x20f   : > { %1722 = vrot.lane.b32.xlu1 %v12633_v9, %s19812_s30 }
 0x210   : > { %10984 = vmatmul.mubr.msk.bf16.vlgmr.msra.gmra.mrb[16].mxu1 %vm1632_vm9, %v11787_v53 }
 0x211   : > { %1724 = vrot.lane.b32.xlu0 %v12625_v3, %s19812_s30  ;;  %1687 = vmatprep.mubr.bf16.mxu1 %v19791_v25 }
 0x213   : > { %1814 = vrot.lane.b32.xlu1 %v12633_v9, %s19810_s3 }
 0x215   : > { %1816 = vrot.lane.b32.xlu0 %v12625_v3, %s19810_s3 }
 0x217   : > { %1906 = vrot.lane.b32.xlu1 %v12633_v9, %s19808_s25 }
 0x218   : > { %10985 = vmatmul.mubr.msk.bf16.gmra.mrb[20].mxu1 %vm1632_vm9, %v11788_v62 }
 0x219   : > { %1908 = vrot.lane.b32.xlu0 %v12625_v3, %s19808_s25  ;;  %1697 = vmatprep.mubr.bf16.mxu1 %v19791_v25 }
 0x21b   : > { %1998 = vrot.lane.b32.xlu1 %v12633_v9, %s19806_s8 }
 0x21d   : > { %2000 = vrot.lane.b32.xlu0 %v12625_v3, %s19806_s8 }
 0x21f   : > { %1738 = vrot.lane.b32.xlu1 %v12629_v59, %s19812_s30 }
 0x220   : > { %10986 = vmatmul.mubr.msk.bf16.gmra.mrb[24].mxu1 %vm1632_vm9, %v11789_v22 }
 0x221   : > { %1740 = vrot.lane.b32.xlu0 %v12631_v60, %s19812_s30  ;;  %1707 = vmatprep.mubr.bf16.mxu1 %v19791_v25 }
 0x223   : > { %1830 = vrot.lane.b32.xlu1 %v12629_v59, %s19810_s3 }
 0x225   : > { %1832 = vrot.lane.b32.xlu0 %v12631_v60, %s19810_s3 }
 0x227   : > { %1922 = vrot.lane.b32.xlu1 %v12629_v59, %s19808_s25 }
 0x228   : > { %10987 = vmatmul.mubr.msk.bf16.gmra.mrb[28].mxu1 %vm1632_vm9, %v11790_v35 }
 0x229   : > { %1924 = vrot.lane.b32.xlu0 %v12631_v60, %s19808_s25  ;;  %2786 = vmatprep.mubr.bf16.mxu1 %v11793_v44 }
 0x22b   : > { %2014 = vrot.lane.b32.xlu1 %v12629_v59, %s19806_s8 }
 0x22d   : > { %2016 = vrot.lane.b32.xlu0 %v12631_v60, %s19806_s8 }
 0x22f   : > { %1726 = vrot.lane.b32.xlu1 %v12653_v30, %s19812_s30 }
 0x231   : > { %1728 = vrot.lane.b32.xlu0 %v12645_v24, %s19812_s30 }
 0x233   : > { %1818 = vrot.lane.b32.xlu1 %v12653_v30, %s19810_s3 }
 0x235   : > { %1820 = vrot.lane.b32.xlu0 %v12645_v24, %s19810_s3 }
 0x237   : > { %1910 = vrot.lane.b32.xlu1 %v12653_v30, %s19808_s25 }
 0x239   : > { %1912 = vrot.lane.b32.xlu0 %v12645_v24, %s19808_s25 }
 0x23b   : > { %2002 = vrot.lane.b32.xlu1 %v12653_v30, %s19806_s8 }
 0x23d   : > { %2004 = vrot.lane.b32.xlu0 %v12645_v24, %s19806_s8 }
 0x23f   : > { %1742 = vrot.lane.b32.xlu1 %v12649_v27, %s19812_s30 }
 0x241   : > { %1744 = vrot.lane.b32.xlu0 %v12651_v28, %s19812_s30 }
 0x243   : > { %1834 = vrot.lane.b32.xlu1 %v12649_v27, %s19810_s3 }
 0x245   : > { %1836 = vrot.lane.b32.xlu0 %v12651_v28, %s19810_s3 }
 0x247   : > { %1926 = vrot.lane.b32.xlu1 %v12649_v27, %s19808_s25 }
 0x249   : > { %1928 = vrot.lane.b32.xlu0 %v12651_v28, %s19808_s25 }
 0x24b   : > { %2018 = vrot.lane.b32.xlu1 %v12649_v27, %s19806_s8 }
 0x24d   : > { %2020 = vrot.lane.b32.xlu0 %v12651_v28, %s19806_s8 }
 0x24f   : > { %1730 = vrot.lane.b32.xlu1 %v12673_v50, %s19812_s30 }
 0x251   : > { %1732 = vrot.lane.b32.xlu0 %v12665_v47, %s19812_s30 }
 0x253   : > { %1822 = vrot.lane.b32.xlu1 %v12673_v50, %s19810_s3 }
 0x255   : > { %1824 = vrot.lane.b32.xlu0 %v12665_v47, %s19810_s3 }
 0x257   : > { %1914 = vrot.lane.b32.xlu1 %v12673_v50, %s19808_s25 }
 0x259   : > { %1916 = vrot.lane.b32.xlu0 %v12665_v47, %s19808_s25 }
 0x25b   : > { %1746 = vrot.lane.b32.xlu1 %v12669_v48, %s19812_s30 }
 0x25d   : > { %1748 = vrot.lane.b32.xlu0 %v12671_v49, %s19812_s30  ;;  %s19959_s30 = smov 17  }
 0x25f   : > { %2006 = vrot.lane.b32.xlu1 %v12673_v50, %s19806_s8 }
 0x261   : > { %2008 = vrot.lane.b32.xlu0 %v12665_v47, %s19806_s8  ;;  %v1719_v54 = vpop.permute.xlu1 %1718 }
 0x263   : > { %v1721_v55 = vpop.permute.xlu0 %1720  ;;  %1838 = vrot.lane.b32.xlu1 %v12669_v48, %s19810_s3 }
 0x265   : > { %2132 = vrot.lane.b32.xlu0 %v12607_v38, %s19910_s27  ;;  %v12778_v56 = vpop.permute.xlu1 %1810 }
 0x267   : > { %v12780_v57 = vpop.permute.xlu0 %1812  ;;  %1930 = vrot.lane.b32.xlu1 %v12669_v48, %s19808_s25 }
 0x269   : > { %2148 = vrot.lane.b32.xlu0 %v12613_v41, %s19910_s27  ;;  %v12786_v58 = vpop.permute.xlu1 %1902 }
 0x26b   : > { %v12788_v5 = vpop.permute.xlu0 %1904  ;;  %2022 = vrot.lane.b32.xlu1 %v12669_v48, %s19806_s8 }
 0x26d   : > { %1840 = vrot.lane.b32.xlu0 %v12671_v49, %s19810_s3  ;;  %v12794_v61 = vpop.permute.xlu1 %1994  ;;  %s19961_s3 = smov 15  }
 0x26e   : > { %19911 = vst [vmem:[#allocation7_spill] sm:$0xff] %v12794_v61 }
 0x26f   : > { %v12802_v7 = vpop.permute.xlu0 %1996  ;;  %2130 = vrot.lane.b32.xlu1 %v12605_v33, %s19910_s27 }
 0x271   : > { %2136 = vrot.lane.b32.xlu0 %v12625_v3, %s19910_s27  ;;  %v1735_v0 = vpop.permute.xlu1 %1734 }
 0x272   : > { %v1750_v1 = vsel %vm769_vm0, %v1719_v54, %v1735_v0  ;;  %v1758_v10 = vsel %vm769_vm0, %v1735_v0, %v1719_v54 }
 0x273   : > { %v1737_v11 = vpop.permute.xlu0 %1736  ;;  %2146 = vrot.lane.b32.xlu1 %v12611_v40, %s19910_s27  ;;  %v1778_v17 = vmul.f32 %v12810_v63, %v1758_v10  ;;  %v1779_v18 = vmul.f32 %v12813_v6, %v1750_v1 }
 0x274   : > { %v1751_v13 = vsel %vm769_vm0, %v1721_v55, %v1737_v11  ;;  %v1759_v15 = vsel %vm769_vm0, %v1737_v11, %v1721_v55 }
 0x275   : > { %v1780_v19 = vmul.f32 %v12810_v63, %v1759_v15  ;;  %v1781_v20 = vmul.f32 %v12813_v6, %v1751_v13  ;;  %2152 = vrot.lane.b32.xlu0 %v12631_v60, %s19910_s27  ;;  %v12832_v21 = vpop.permute.xlu1 %1826 }
 0x277   : > { %v1794_v23 = vpack.c.bf16 %v1780_v19, %v1778_v17  ;;  %v12837_v26 = vpop.permute.xlu0 %1828  ;;  %2134 = vrot.lane.b32.xlu1 %v12633_v9, %s19910_s27  ;;  %v1795_v29 = vpack.c.bf16 %v1781_v20, %v1779_v18 }
 0x279   : > { %2140 = vrot.lane.b32.xlu0 %v12645_v24, %s19910_s27  ;;  %v12844_v31 = vpop.permute.xlu1 %1918  ;;  %2754 = vmatprep.subr.bf16.mxu1 %v1795_v29 }
 0x27a   : > { %2755 = vmatpush1.bf16.msra.mxu1 %v1794_v23 }
 0x27b   : > { %v12847_v32 = vpop.permute.xlu0 %1920  ;;  %2150 = vrot.lane.b32.xlu1 %v12629_v59, %s19910_s27 }
 0x27d   : > { %1932 = vrot.lane.b32.xlu0 %v12671_v49, %s19808_s25  ;;  %v12853_v34 = vpop.permute.xlu1 %2010  ;;  %s19962_s25 = smov 1  }
 0x27e   : > { %19912 = vst [vmem:[#allocation8_spill] sm:$0xff] %v12853_v34 }
 0x27f   : > { %v12858_v36 = vpop.permute.xlu0 %2012  ;;  %2138 = vrot.lane.b32.xlu1 %v12653_v30, %s19910_s27 }
 0x281   : > { %2156 = vrot.lane.b32.xlu0 %v12651_v28, %s19910_s27  ;;  %v1723_v37 = vpop.permute.xlu1 %1722 }
 0x283   : > { %v1725_v39 = vpop.permute.xlu0 %1724  ;;  %2154 = vrot.lane.b32.xlu1 %v12649_v27, %s19910_s27 }
 0x285   : > { %2144 = vrot.lane.b32.xlu0 %v12665_v47, %s19910_s27  ;;  %v12869_v42 = vpop.permute.xlu1 %1814 }
 0x287   : > { %v12871_v43 = vpop.permute.xlu0 %1816  ;;  %2142 = vrot.lane.b32.xlu1 %v12673_v50, %s19910_s27 }
 0x289   : > { %2224 = vrot.lane.b32.xlu0 %v12607_v38, %s19914_s1  ;;  %v12880_v2 = vpop.permute.xlu1 %1906 }
 0x28b   : > { %v12882_v45 = vpop.permute.xlu0 %1908  ;;  %2158 = vrot.lane.b32.xlu1 %v12669_v48, %s19910_s27 }
 0x28d   : > { %2024 = vrot.lane.b32.xlu0 %v12671_v49, %s19806_s8  ;;  %v12888_v4 = vpop.permute.xlu1 %1998  ;;  %s19976_s8 = sld [smem:[#allocation42_spill]] }
 0x28e   : > { %19915 = vst [vmem:[#allocation9_spill] sm:$0xff] %v12888_v4 }
 0x28f   : > { %v12890_v46 = vpop.permute.xlu0 %2000  ;;  %2222 = vrot.lane.b32.xlu1 %v12605_v33, %s19914_s1 }
 0x290   : > { %19916 = vst [vmem:[#allocation10_spill] sm:$0xff] %v12890_v46 }
 0x291   : > { %2240 = vrot.lane.b32.xlu0 %v12613_v41, %s19914_s1  ;;  %v1739_v51 = vpop.permute.xlu1 %1738 }
 0x292   : > { %v1752_v52 = vsel %vm769_vm0, %v1723_v37, %v1739_v51  ;;  %v1760_v53 = vsel %vm769_vm0, %v1739_v51, %v1723_v37 }
 0x293   : > { %v1741_v54 = vpop.permute.xlu0 %1740  ;;  %2238 = vrot.lane.b32.xlu1 %v12611_v40, %s19914_s1  ;;  %v1782_v62 = vmul.f32 %v12810_v63, %v1760_v53  ;;  %v1783_v0 = vmul.f32 %v12813_v6, %v1752_v52 }
 0x294   : > { %v1753_v55 = vsel %vm769_vm0, %v1725_v39, %v1741_v54  ;;  %v1761_v8 = vsel %vm769_vm0, %v1741_v54, %v1725_v39 }
 0x295   : > { %v1784_v1 = vmul.f32 %v12810_v63, %v1761_v8  ;;  %v1785_v10 = vmul.f32 %v12813_v6, %v1753_v55  ;;  %2228 = vrot.lane.b32.xlu0 %v12625_v3, %s19914_s1  ;;  %v12912_v11 = vpop.permute.xlu1 %1830 }
 0x297   : > { %v1796_v13 = vpack.c.bf16 %v1784_v1, %v1782_v62  ;;  %v12914_v15 = vpop.permute.xlu0 %1832  ;;  %2226 = vrot.lane.b32.xlu1 %v12633_v9, %s19914_s1  ;;  %v1797_v17 = vpack.c.bf16 %v1785_v10, %v1783_v0 }
 0x299   : > { %2244 = vrot.lane.b32.xlu0 %v12631_v60, %s19914_s1  ;;  %v12920_v18 = vpop.permute.xlu1 %1922  ;;  %2756 = vmatprep.subr.bf16.mxu1 %v1797_v17 }
 0x29a   : > { %2757 = vmatpush1.bf16.msra.mxu1 %v1796_v13 }
 0x29b   : > { %v12922_v19 = vpop.permute.xlu0 %1924  ;;  %2242 = vrot.lane.b32.xlu1 %v12629_v59, %s19914_s1 }
 0x29d   : > { %2232 = vrot.lane.b32.xlu0 %v12645_v24, %s19914_s1  ;;  %v12928_v20 = vpop.permute.xlu1 %2014 }
 0x29e   : > { %19917 = vst [vmem:[#allocation11_spill] sm:$0xff] %v12928_v20  ;;  %v1842_v20 = vsel %vm822_vm1, %v12778_v56, %v12832_v21 }
 0x29f   : > { %v12930_v22 = vpop.permute.xlu0 %2016  ;;  %2230 = vrot.lane.b32.xlu1 %v12653_v30, %s19914_s1 }
 0x2a0   : > { %19918 = vst [vmem:[#allocation12_spill] sm:$0xff] %v12930_v22  ;;  %v1851_v22 = vsel %vm822_vm1, %v12837_v26, %v12780_v57 }
 0x2a1   : > { %2248 = vrot.lane.b32.xlu0 %v12651_v28, %s19914_s1  ;;  %v1727_v23 = vpop.permute.xlu1 %1726 }
 0x2a3   : > { %v1729_v29 = vpop.permute.xlu0 %1728  ;;  %2246 = vrot.lane.b32.xlu1 %v12649_v27, %s19914_s1 }
 0x2a5   : > { %2236 = vrot.lane.b32.xlu0 %v12665_v47, %s19914_s1  ;;  %v12940_v35 = vpop.permute.xlu1 %1818 }
 0x2a7   : > { %v12942_v37 = vpop.permute.xlu0 %1820  ;;  %2234 = vrot.lane.b32.xlu1 %v12673_v50, %s19914_s1 }
 0x2a9   : > { %2316 = vrot.lane.b32.xlu0 %v12607_v38, %s19919_s28  ;;  %v12948_v39 = vpop.permute.xlu1 %1910 }
 0x2ab   : > { %v12950_v44 = vpop.permute.xlu0 %1912  ;;  %2250 = vrot.lane.b32.xlu1 %v12669_v48, %s19914_s1 }
 0x2ad   : > { %2160 = vrot.lane.b32.xlu0 %v12671_v49, %s19910_s27  ;;  %v12956_v51 = vpop.permute.xlu1 %2002 }
 0x2ae   : > { %19920 = vst [vmem:[#allocation13_spill] sm:$0xff] %v12956_v51  ;;  %v1843_v51 = vsel %vm822_vm1, %v12780_v57, %v12837_v26 }
 0x2af   : > { %v12958_v52 = vpop.permute.xlu0 %2004  ;;  %2314 = vrot.lane.b32.xlu1 %v12605_v33, %s19919_s28 }
 0x2b0   : > { %19921 = vst [vmem:[#allocation14_spill] sm:$0xff] %v12958_v52 }
 0x2b1   : > { %2332 = vrot.lane.b32.xlu0 %v12613_v41, %s19919_s28  ;;  %v1743_v53 = vpop.permute.xlu1 %1742 }
 0x2b2   : > { %v1754_v54 = vsel %vm769_vm0, %v1727_v23, %v1743_v53  ;;  %v1762_v55 = vsel %vm769_vm0, %v1743_v53, %v1727_v23 }
 0x2b3   : > { %v1745_v8 = vpop.permute.xlu0 %1744  ;;  %2330 = vrot.lane.b32.xlu1 %v12611_v40, %s19919_s28  ;;  %v1786_v1 = vmul.f32 %v12810_v63, %v1762_v55  ;;  %v1787_v10 = vmul.f32 %v12813_v6, %v1754_v54 }
 0x2b4   : > { %v1755_v62 = vsel %vm769_vm0, %v1729_v29, %v1745_v8  ;;  %v1763_v0 = vsel %vm769_vm0, %v1745_v8, %v1729_v29 }
 0x2b5   : > { %v1788_v13 = vmul.f32 %v12810_v63, %v1763_v0  ;;  %v1789_v17 = vmul.f32 %v12813_v6, %v1755_v62  ;;  %2320 = vrot.lane.b32.xlu0 %v12625_v3, %s19919_s28  ;;  %v12980_v23 = vpop.permute.xlu1 %1834 }
 0x2b7   : > { %v1798_v53 = vpack.c.bf16 %v1788_v13, %v1786_v1  ;;  %v12982_v25 = vpop.permute.xlu0 %1836  ;;  %2318 = vrot.lane.b32.xlu1 %v12633_v9, %s19919_s28  ;;  %v1799_v29 = vpack.c.bf16 %v1789_v17, %v1787_v10 }
 0x2b9   : > { %2336 = vrot.lane.b32.xlu0 %v12631_v60, %s19919_s28  ;;  %v12988_v54 = vpop.permute.xlu1 %1926  ;;  %2758 = vmatprep.subr.bf16.mxu1 %v1799_v29 }
 0x2ba   : > { %2759 = vmatpush1.bf16.msra.mxu1 %v1798_v53  ;;  %v10988_v53 = vld [vmem:[%s19906_s0 + $0x2] sm:$0x3] }
 0x2bb   : > { %v12990_v55 = vpop.permute.xlu0 %1928  ;;  %2334 = vrot.lane.b32.xlu1 %v12629_v59, %s19919_s28  ;;  %v13032_v52 = vrot.slane %v10988_v53, %v12328_v14  ;;  %v1863_v26 = vrot.slane %v10988_v53, %v12337_v16 }
 0x2bd   : > { %2252 = vrot.lane.b32.xlu0 %v12671_v49, %s19914_s1  ;;  %v12996_v8 = vpop.permute.xlu1 %2018 }
 0x2be   : > { %19922 = vst [vmem:[#allocation15_spill] sm:$0xff] %v12996_v8 }
 0x2bf   : > { %v12998_v62 = vpop.permute.xlu0 %2020  ;;  %2322 = vrot.lane.b32.xlu1 %v12653_v30, %s19919_s28 }
 0x2c0   : > { %19923 = vst [vmem:[#allocation16_spill] sm:$0xff] %v12998_v62 }
 0x2c1   : > { %2324 = vrot.lane.b32.xlu0 %v12645_v24, %s19919_s28  ;;  %v1731_v0 = vpop.permute.xlu1 %1730 }
 0x2c3   : > { %v1733_v1 = vpop.permute.xlu0 %1732  ;;  %2338 = vrot.lane.b32.xlu1 %v12649_v27, %s19919_s28 }
 0x2c5   : > { %2340 = vrot.lane.b32.xlu0 %v12651_v28, %s19919_s28  ;;  %v13008_v10 = vpop.permute.xlu1 %1822 }
 0x2c7   : > { %v13010_v13 = vpop.permute.xlu0 %1824  ;;  %2326 = vrot.lane.b32.xlu1 %v12673_v50, %s19919_s28 }
 0x2c9   : > { %2328 = vrot.lane.b32.xlu0 %v12665_v47, %s19919_s28  ;;  %v13016_v17 = vpop.permute.xlu1 %1914 }
 0x2ca   : > { %19924 = vst [vmem:[#allocation17_spill] sm:$0xff] %v13016_v17 }
 0x2cb   : > { %v13021_v29 = vpop.permute.xlu0 %1916  ;;  %2342 = vrot.lane.b32.xlu1 %v12669_v48, %s19919_s28 }
 0x2cc   : > { %19925 = vst [vmem:[#allocation18_spill] sm:$0xff] %v13021_v29  ;;  %v1873_v29 = vmul.f32 %v13032_v52, %v1843_v51 }
 0x2cd   : > { %2344 = vrot.lane.b32.xlu0 %v12671_v49, %s19919_s28  ;;  %v1747_v8 = vpop.permute.xlu1 %1746 }
 0x2ce   : > { %v1756_v62 = vsel %vm769_vm0, %v1731_v0, %v1747_v8  ;;  %v1764_v4 = vsel %vm769_vm0, %v1747_v8, %v1731_v0 }
 0x2cf   : > { %v1749_v46 = vpop.permute.xlu0 %1748  ;;  %2406 = vrot.lane.b32.xlu1 %v12605_v33, %s19926_s26  ;;  %v1790_v0 = vmul.f32 %v12810_v63, %v1764_v4  ;;  %v1791_v34 = vmul.f32 %v12813_v6, %v1756_v62  ;;  %v1850_v4 = vsel %vm822_vm1, %v12832_v21, %v12778_v56  ;;  %v1872_v62 = vmul.f32 %v1863_v26, %v1851_v22 }
 0x2d0   : > { %v1757_v61 = vsel %vm769_vm0, %v1733_v1, %v1749_v46  ;;  %v1765_v8 = vsel %vm769_vm0, %v1749_v46, %v1733_v1  ;;  %v1845_v46 = vsel %vm822_vm1, %v12871_v43, %v12914_v15  ;;  %v1844_v1 = vsel %vm822_vm1, %v12869_v42, %v12912_v11 }
 0x2d1   : > { %v1792_v17 = vmul.f32 %v12810_v63, %v1765_v8  ;;  %v1793_v33 = vmul.f32 %v12813_v6, %v1757_v61  ;;  %2408 = vrot.lane.b32.xlu0 %v12607_v38, %s19926_s26  ;;  %v13059_v57 = vpop.permute.xlu1 %2006  ;;  %v1871_v63 = vmul.f32 %v13032_v52, %v1842_v20  ;;  %v1853_v56 = vsel %vm822_vm1, %v12914_v15, %v12871_v43 }
 0x2d2   : > { %v1877_v21 = vmul.f32 %v13032_v52, %v1845_v46  ;;  %v1852_v43 = vsel %vm822_vm1, %v12912_v11, %v12869_v42  ;;  %v1875_v15 = vmul.f32 %v13032_v52, %v1844_v1  ;;  %v1846_v8 = vsel %vm822_vm1, %v12940_v35, %v12980_v23 }
 0x2d3   : > { %v1800_v61 = vpack.c.bf16 %v1792_v17, %v1790_v0  ;;  %v13071_v6 = vpop.permute.xlu0 %2008  ;;  %2422 = vrot.lane.b32.xlu1 %v12611_v40, %s19926_s26  ;;  %v1801_v51 = vpack.c.bf16 %v1793_v33, %v1791_v34  ;;  %v1887_v17 = vpack.c.bf16 %v1873_v29, %v1871_v63  ;;  %v1870_v33 = vmul.f32 %v1863_v26, %v1850_v4  ;;  %v10989_v63 = vld [vmem:[%s19906_s0 + $0x4] sm:$0x3] }
 0x2d4   : > { %v1847_v34 = vsel %vm822_vm1, %v12942_v37, %v12982_v25  ;;  %v1876_v29 = vmul.f32 %v1863_v26, %v1853_v56  ;;  %v1855_v42 = vsel %vm822_vm1, %v12982_v25, %v12942_v37  ;;  %v1889_v46 = vpack.c.bf16 %v1877_v21, %v1875_v15 }
 0x2d5   : > { %2424 = vrot.lane.b32.xlu0 %v12613_v41, %s19926_s26  ;;  %v1839_v20 = vpop.permute.xlu1 %1838  ;;  %2760 = vmatprep.subr.bf16.mxu1 %v1801_v51  ;;  %v1886_v53 = vpack.c.bf16 %v1872_v62, %v1870_v33  ;;  %v1881_v11 = vmul.f32 %v13032_v52, %v1847_v34  ;;  %v1874_v4 = vmul.f32 %v1863_v26, %v1852_v43 }
 0x2d6   : > { %2761 = vmatpush1.bf16.msra.mxu1 %v1800_v61  ;;  %v1854_v61 = vsel %vm822_vm1, %v12980_v23, %v12940_v35  ;;  %v1879_v25 = vmul.f32 %v13032_v52, %v1846_v8  ;;  %v1880_v62 = vmul.f32 %v1863_v26, %v1855_v42  ;;  %v1935_v1 = vsel %vm876_vm2, %v12788_v5, %v12847_v32 }
 0x2d7   : > { %v13095_v22 = vpop.permute.xlu0 %2132  ;;  %2410 = vrot.lane.b32.xlu1 %v12633_v9, %s19926_s26  ;;  %2762 = vmatprep.subr.bf16.mxu1 %v1887_v17  ;;  %v1888_v51 = vpack.c.bf16 %v1876_v29, %v1874_v4  ;;  %v13133_v23 = vrot.slane %v10989_v63, %v12328_v14  ;;  %v1878_v21 = vmul.f32 %v1863_v26, %v1854_v61 }
 0x2d8   : > { %v1891_v35 = vpack.c.bf16 %v1881_v11, %v1879_v25  ;;  %v1848_v17 = vsel %vm822_vm1, %v13008_v10, %v1839_v20  ;;  %v1856_v33 = vsel %vm822_vm1, %v1839_v20, %v13008_v10  ;;  %v1934_v34 = vsel %vm876_vm2, %v12786_v58, %v12844_v31 }
 0x2d9   : > { %2412 = vrot.lane.b32.xlu0 %v12625_v3, %s19926_s26  ;;  %v13110_v0 = vpop.permute.xlu1 %1930  ;;  %v1943_v43 = vsel %vm876_vm2, %v12847_v32, %v12788_v5  ;;  %v1890_v29 = vpack.c.bf16 %v1880_v62, %v1878_v21  ;;  %v1882_v8 = vmul.f32 %v1863_v26, %v1856_v33  ;;  %v1883_v42 = vmul.f32 %v13032_v52, %v1848_v17 }
 0x2da   : > { %2763 = vmatpush1.bf16.msra.mxu1 %v1886_v53  ;;  %v1965_v53 = vmul.f32 %v13133_v23, %v1935_v1  ;;  %v1937_v4 = vsel %vm876_vm2, %v12882_v45, %v12922_v19  ;;  %v1939_v21 = vsel %vm876_vm2, %v12950_v44, %v12990_v55 }
 0x2db   : > { %v13120_v37 = vpop.permute.xlu0 %2148  ;;  %2426 = vrot.lane.b32.xlu1 %v12629_v59, %s19926_s26  ;;  %2764 = vmatprep.subr.bf16.mxu1 %v1889_v46  ;;  %v13165_v46 = vrot.slane %v10989_v63, %v12337_v16 }
 0x2dd   : > { %2428 = vrot.lane.b32.xlu0 %v12631_v60, %s19926_s26  ;;  %v13130_v56 = vpop.permute.xlu1 %2022  ;;  %v1964_v25 = vmul.f32 %v13165_v46, %v1943_v43  ;;  %v1938_v43 = vsel %vm876_vm2, %v12948_v39, %v12988_v54 }
 0x2de   : > { %2765 = vmatpush1.bf16.msra.mxu1 %v1888_v51  ;;  %v1936_v51 = vsel %vm876_vm2, %v12880_v2, %v12920_v18 }
 0x2df   : > { %v1841_v15 = vpop.permute.xlu0 %1840  ;;  %2414 = vrot.lane.b32.xlu1 %v12653_v30, %s19926_s26  ;;  %2766 = vmatprep.subr.bf16.mxu1 %v1891_v35 }
 0x2e0   : > { %v1849_v10 = vsel %vm822_vm1, %v13010_v13, %v1841_v15  ;;  %v1857_v20 = vsel %vm822_vm1, %v1841_v15, %v13010_v13  ;;  %v1942_v13 = vsel %vm876_vm2, %v12844_v31, %v12786_v58  ;;  %v1945_v58 = vsel %vm876_vm2, %v12922_v19, %v12882_v45 }
 0x2e1   : > { %v1884_v5 = vmul.f32 %v1863_v26, %v1857_v20  ;;  %v1885_v32 = vmul.f32 %v13032_v52, %v1849_v10  ;;  %2416 = vrot.lane.b32.xlu0 %v12645_v24, %s19926_s26  ;;  %v13162_v11 = vpop.permute.xlu1 %2130  ;;  %v1963_v52 = vmul.f32 %v13133_v23, %v1934_v34  ;;  %v1969_v31 = vmul.f32 %v13133_v23, %v1937_v4  ;;  %v10990_v10 = vld [vmem:[%s19906_s0 + $0x6] sm:$0x3] }
 0x2e2   : > { %2767 = vmatpush1.bf16.msra.mxu1 %v1890_v29  ;;  %v1962_v35 = vmul.f32 %v13165_v46, %v1942_v13  ;;  %v1944_v45 = vsel %vm876_vm2, %v12920_v18, %v12880_v2  ;;  %v1967_v19 = vmul.f32 %v13133_v23, %v1936_v51  ;;  %v1968_v34 = vmul.f32 %v13165_v46, %v1945_v58  ;;  %v19929_v51 = vld [vmem:[#allocation8_spill] sm:$0xff]  ;;  %v19930_v58 = vld [vmem:[#allocation7_spill] sm:$0xff] }
 0x2e3   : > { %v1892_v26 = vpack.c.bf16 %v1884_v5, %v1882_v8  ;;  %v13176_v61 = vpop.permute.xlu0 %2136  ;;  %2430 = vrot.lane.b32.xlu1 %v12649_v27, %s19926_s26  ;;  %v1893_v63 = vpack.c.bf16 %v1885_v32, %v1883_v42  ;;  %v1979_v1 = vpack.c.bf16 %v1965_v53, %v1963_v52  ;;  %v1947_v2 = vsel %vm876_vm2, %v12990_v55, %v12950_v44  ;;  %v2594_v5 = vld [vmem:[%s19927_s19] sm:$0xff] }
 0x2e4   : > { %v1978_v33 = vpack.c.bf16 %v1964_v25, %v1962_v35  ;;  %v1973_v18 = vmul.f32 %v13133_v23, %v1939_v21  ;;  %v1981_v53 = vpack.c.bf16 %v1969_v31, %v1967_v19  ;;  %v1966_v29 = vmul.f32 %v13165_v46, %v1944_v45  ;;  %v19928_v52 = vld [vmem:[#allocation17_spill] sm:$0xff]  ;;  %v2595_v25 = vld [vmem:[%s19927_s19 + $0x8] sm:$0xff] }
 0x2e5   : > { %2432 = vrot.lane.b32.xlu0 %v12651_v28, %s19926_s26  ;;  %v13192_v62 = vpop.permute.xlu1 %2146  ;;  %2768 = vmatprep.subr.bf16.mxu1 %v1893_v63  ;;  %v1946_v44 = vsel %vm876_vm2, %v12988_v54, %v12948_v39  ;;  %v1971_v55 = vmul.f32 %v13133_v23, %v1938_v43  ;;  %v1972_v42 = vmul.f32 %v13165_v46, %v1947_v2  ;;  %v19931_v45 = vld [vmem:[#allocation18_spill] sm:$0xff] }
 0x2e6   : > { %2769 = vmatpush1.bf16.msra.mxu1 %v1892_v26  ;;  %v1980_v8 = vpack.c.bf16 %v1968_v34, %v1966_v29  ;;  %v2027_v39 = vsel %vm930_vm3, %v12802_v7, %v12858_v36  ;;  %v13248_v4 = vrot.slane %v10990_v10, %v12328_v14  ;;  %v1970_v13 = vmul.f32 %v13165_v46, %v1946_v44  ;;  %v2596_v34 = vld [vmem:[%s19927_s19 + $0x10] sm:$0xff]  ;;  %v19933_v44 = vld [vmem:[#allocation10_spill] sm:$0xff] }
 0x2e7   : > { %v13204_v17 = vpop.permute.xlu0 %2152  ;;  %2418 = vrot.lane.b32.xlu1 %v12673_v50, %s19926_s26  ;;  %2770 = vmatprep.subr.bf16.mxu1 %v1979_v1  ;;  %v1983_v32 = vpack.c.bf16 %v1973_v18, %v1971_v55  ;;  %v1940_v26 = vsel %vm876_vm2, %v19928_v52, %v13110_v0  ;;  %v1948_v63 = vsel %vm876_vm2, %v13110_v0, %v19928_v52  ;;  %v19932_v29 = vld [vmem:[#allocation12_spill] sm:$0xff] }
 0x2e8   : > { %v2026_v31 = vsel %vm930_vm3, %v19930_v58, %v19929_v51  ;;  %v2035_v1 = vsel %vm930_vm3, %v12858_v36, %v12802_v7  ;;  %v2057_v0 = vmul.f32 %v13248_v4, %v2027_v39  ;;  %v1982_v21 = vpack.c.bf16 %v1972_v42, %v1970_v13  ;;  %v19935_v13 = vld [vmem:[#allocation9_spill] sm:$0xff] }
 0x2e9   : > { %2420 = vrot.lane.b32.xlu0 %v12665_v47, %s19926_s26  ;;  %v13220_v15 = vpop.permute.xlu1 %2134  ;;  %v1974_v7 = vmul.f32 %v13165_v46, %v1948_v63  ;;  %v1975_v36 = vmul.f32 %v13133_v23, %v1940_v26  ;;  %v2029_v55 = vsel %vm930_vm3, %v19933_v44, %v19932_v29  ;;  %v2598_v26 = vld [vmem:[%s19927_s19 + $0x20] sm:$0xff]  ;;  %v2037_v63 = vsel %vm930_vm3, %v19932_v29, %v19933_v44  ;;  %v2600_v29 = vld [vmem:[%s19927_s19 + $0x30] sm:$0xff] }
 0x2ea   : > { %2771 = vmatpush1.bf16.msra.mxu1 %v1978_v33 }
 0x2eb   : > { %v13231_v20 = vpop.permute.xlu0 %2140  ;;  %2434 = vrot.lane.b32.xlu1 %v12669_v48, %s19926_s26  ;;  %2772 = vmatprep.subr.bf16.mxu1 %v1981_v53  ;;  %v13287_v53 = vrot.slane %v10990_v10, %v12337_v16 }
 0x2ed   : > { %2436 = vrot.lane.b32.xlu0 %v12671_v49, %s19926_s26  ;;  %v13245_v54 = vpop.permute.xlu1 %2150  ;;  %v2056_v39 = vmul.f32 %v13287_v53, %v2035_v1  ;;  %v19936_v1 = vld [vmem:[#allocation16_spill] sm:$0xff] }
 0x2ee   : > { %2773 = vmatpush1.bf16.msra.mxu1 %v1980_v8  ;;  %v2597_v8 = vld [vmem:[%s19927_s19 + $0x18] sm:$0xff] }
 0x2ef   : > { %v1933_v35 = vpop.permute.xlu0 %1932  ;;  %2604 = vperm.xlu1 %11770, %v2594_v5   ;;  %2774 = vmatprep.subr.bf16.mxu1 %v1983_v32  ;;  %v19934_v32 = vld [vmem:[#allocation11_spill] sm:$0xff] }
 0x2f0   : > { %v1941_v19 = vsel %vm876_vm2, %v19931_v45, %v1933_v35  ;;  %v1949_v33 = vsel %vm876_vm2, %v1933_v35, %v19931_v45  ;;  %v2028_v52 = vsel %vm930_vm3, %v19935_v13, %v19934_v32  ;;  %v19937_v35 = vld [vmem:[#allocation14_spill] sm:$0xff] }
 0x2f1   : > { %v1976_v43 = vmul.f32 %v13165_v46, %v1949_v33  ;;  %v1977_v2 = vmul.f32 %v13133_v23, %v1941_v19  ;;  %2609 = vperm.xlu0 %11769, %v2595_v25   ;;  %v13284_v18 = vpop.permute.xlu1 %2138  ;;  %v2034_v23 = vsel %vm930_vm3, %v19929_v51, %v19930_v58  ;;  %v2055_v46 = vmul.f32 %v13248_v4, %v2026_v31  ;;  %v2599_v45 = vld [vmem:[%s19927_s19 + $0x28] sm:$0xff] }
 0x2f2   : > { %2775 = vmatpush1.bf16.msra.mxu1 %v1982_v21  ;;  %v2061_v25 = vmul.f32 %v13248_v4, %v2029_v55  ;;  %v2054_v31 = vmul.f32 %v13287_v53, %v2034_v23  ;;  %v2031_v21 = vsel %vm930_vm3, %v19937_v35, %v19936_v1  ;;  %v2036_v19 = vsel %vm930_vm3, %v19934_v32, %v19935_v13  ;;  %v10991_v13 = vld [vmem:[%s19906_s0 + $0x8] sm:$0x3] }
 0x2f3   : > { %v1984_v42 = vpack.c.bf16 %v1976_v43, %v1974_v7  ;;  %v13301_v10 = vpop.permute.xlu0 %2156  ;;  %2614 = vperm.xlu1 %11770, %v2596_v34   ;;  %v1985_v5 = vpack.c.bf16 %v1977_v2, %v1975_v36  ;;  %v2071_v58 = vpack.c.bf16 %v2057_v0, %v2055_v46  ;;  %v2059_v33 = vmul.f32 %v13248_v4, %v2028_v52  ;;  %v19938_v36 = vld [vmem:[#allocation15_spill] sm:$0xff]  ;;  %v19939_v43 = vld [vmem:[#allocation13_spill] sm:$0xff] }
 0x2f4   : > { %v2070_v34 = vpack.c.bf16 %v2056_v39, %v2054_v31  ;;  %v2060_v7 = vmul.f32 %v13287_v53, %v2037_v63  ;;  %v2030_v2 = vsel %vm930_vm3, %v19939_v43, %v19938_v36  ;;  %v2039_v44 = vsel %vm930_vm3, %v19936_v1, %v19937_v35 }
 0x2f5   : > { %2619 = vperm.xlu0 %11769, %v2597_v8   ;;  %v13316_v51 = vpop.permute.xlu1 %2154  ;;  %2776 = vmatprep.subr.bf16.mxu1 %v1985_v5  ;;  %v2065_v55 = vmul.f32 %v13248_v4, %v2031_v21  ;;  %v2073_v23 = vpack.c.bf16 %v2061_v25, %v2059_v33  ;;  %v2058_v46 = vmul.f32 %v13287_v53, %v2036_v19 }
 0x2f6   : > { %2777 = vmatpush1.bf16.msra.mxu1 %v1984_v42  ;;  %v2601_v42 = vld [vmem:[%s19927_s19 + $0x38] sm:$0xff]  ;;  %v2038_v5 = vsel %vm930_vm3, %v19938_v36, %v19939_v43  ;;  %v2063_v39 = vmul.f32 %v13248_v4, %v2030_v2  ;;  %v2032_v31 = vsel %vm930_vm3, %v13059_v57, %v13130_v56  ;;  %v2040_v1 = vsel %vm930_vm3, %v13130_v56, %v13059_v57  ;;  %v13388_v2 = vpop.f32.mrb[16].mxu1 }
 0x2f7   : > { %v13331_v0 = vpop.permute.xlu0 %2144  ;;  %2624 = vperm.xlu1 %11770, %v2598_v26   ;;  %2778 = vmatprep.subr.bf16.mxu1 %v2071_v58  ;;  %v2072_v52 = vpack.c.bf16 %v2060_v7, %v2058_v46  ;;  %v2064_v26 = vmul.f32 %v13287_v53, %v2039_v44  ;;  %v2062_v58 = vmul.f32 %v13287_v53, %v2038_v5  ;;  %v13391_v44 = vpop.f32.mrb[17].mxu1 }
 0x2f8   : > { %v2075_v25 = vpack.c.bf16 %v2065_v55, %v2063_v39  ;;  %v2095_v35 = vrot.slane %v10991_v13, %v12328_v14  ;;  %v2066_v7 = vmul.f32 %v13287_v53, %v2040_v1  ;;  %v2067_v57 = vmul.f32 %v13248_v4, %v2032_v31  ;;  %19940 = vst [vmem:[#allocation17_spill] sm:$0xff] %v13388_v2  ;;  %v13396_v46 = vpop.f32.mrb[18].mxu1  ;;  %v11791_v39 = vld [vmem:[%s19913_s4] ss:$20 sps:$4 sm:$0xff]  }
 0x2f9   : > { %2629 = vperm.xlu0 %11769, %v2599_v45   ;;  %v13346_v8 = vpop.permute.xlu1 %2142  ;;  %v2074_v45 = vpack.c.bf16 %v2064_v26, %v2062_v58  ;;  %19941 = vst [vmem:[#allocation8_spill] sm:$0xff] %v13391_v44  ;;  %19942 = vst [vmem:[#allocation7_spill] sm:$0xff] %v13396_v46 }
 0x2fa   : > { %2779 = vmatpush1.bf16.msra.mxu1 %v2070_v34  ;;  %v2101_v34 = vmul.f32 %v2095_v35, %v12613_v41 }
 0x2fb   : > { %v13357_v32 = vpop.permute.xlu0 %2224  ;;  %2634 = vperm.xlu1 %11770, %v2600_v29   ;;  %2780 = vmatprep.subr.bf16.mxu1 %v2073_v23  ;;  %v2091_v29 = vrot.slane %v10991_v13, %v12337_v16  ;;  %v2099_v23 = vmul.f32 %v2095_v35, %v12611_v40  ;;  %v2105_v13 = vmul.f32 %v2095_v35, %v12631_v60  ;;  %v11794_v40 = vld [vmem:[%s19913_s4 + $0x2c] ss:$20 sps:$4 sm:$0xff]  }
 0x2fc   : > { %v2109_v60 = vmul.f32 %v2095_v35, %v12651_v28  ;;  %v2113_v28 = vmul.f32 %v2095_v35, %v12671_v49 }
 0x2fd   : > { %2639 = vperm.xlu0 %11769, %v2601_v42   ;;  %v13363_v63 = vpop.permute.xlu1 %2158  ;;  %v2115_v5 = vpack.c.bf16 %v2101_v34, %v2099_v23  ;;  %v2104_v31 = vmul.f32 %v2091_v29, %v12625_v3  ;;  %v2108_v34 = vmul.f32 %v2091_v29, %v12645_v24  ;;  %v11797_v24 = vld [vmem:[%s19913_s4 + $0x54] ss:$20 sps:$4 sm:$0xff]  }
 0x2fe   : > { %2781 = vmatpush1.bf16.msra.mxu1 %v2072_v52  ;;  %v19944_v52 = vld [vmem:[#allocation6_spill] sm:$0xff] }
 0x2ff   : > { %v2025_v21 = vpop.permute.xlu0 %2024  ;;  %2782 = vmatprep.subr.bf16.mxu1 %v2075_v25  ;;  %v2098_v26 = vmul.f32 %v2091_v29, %v19944_v52  ;;  %v2103_v25 = vmul.f32 %v2095_v35, %v12629_v59  ;;  %v10992_v59 = vld [vmem:[%s19906_s0 + $0xa] sm:$0x3] }
 0x300   : > { %v2033_v19 = vsel %vm930_vm3, %v13071_v6, %v2025_v21  ;;  %v2041_v33 = vsel %vm930_vm3, %v2025_v21, %v13071_v6 }
 0x301   : > { %v2068_v56 = vmul.f32 %v13287_v53, %v2041_v33  ;;  %v2069_v36 = vmul.f32 %v13248_v4, %v2033_v19  ;;  %v13386_v43 = vpop.permute.xlu1 %2222  ;;  %v2100_v53 = vmul.f32 %v2091_v29, %v12607_v38  ;;  %v13399_v4 = vpop.f32.mrb[19].mxu1  ;;  %v2117_v21 = vpack.c.bf16 %v2105_v13, %v2103_v25 }
 0x302   : > { %2783 = vmatpush1.bf16.msra.mxu1 %v2074_v45  ;;  %19943 = vst [vmem:[#allocation18_spill] sm:$0xff] %v13399_v4  ;;  %v2102_v45 = vmul.f32 %v2091_v29, %v12633_v9  ;;  %v2107_v33 = vmul.f32 %v2095_v35, %v12649_v27  ;;  %v11796_v9 = vld [vmem:[%s19913_s4 + $0x28] ss:$20 sps:$4 sm:$0xff]   ;;  %v2170_v27 = vsel %vm1013_vm4, %v13192_v62, %v13162_v11 }
 0x303   : > { %v2076_v6 = vpack.c.bf16 %v2068_v56, %v2066_v7  ;;  %v13393_v55 = vpop.permute.xlu0 %2240  ;;  %v2077_v41 = vpack.c.bf16 %v2069_v36, %v2067_v57  ;;  %v2114_v58 = vpack.c.bf16 %v2100_v53, %v2098_v26  ;;  %v2106_v56 = vmul.f32 %v2091_v29, %v12653_v30 }
 0x304   : > { %v2116_v3 = vpack.c.bf16 %v2104_v31, %v2102_v45  ;;  %v2119_v57 = vpack.c.bf16 %v2109_v60, %v2107_v33  ;;  %v13441_v36 = vrot.slane %v10992_v59, %v12328_v14  ;;  %v2112_v30 = vmul.f32 %v2091_v29, %v12665_v47 }
 0x305   : > { %v13401_v42 = vpop.permute.xlu1 %2238  ;;  %2784 = vmatprep.subr.bf16.mxu1 %v2077_v41  ;;  %v2171_v41 = vsel %vm1013_vm4, %v13120_v37, %v13095_v22  ;;  %v2118_v23 = vpack.c.bf16 %v2108_v34, %v2106_v56  ;;  %v2162_v53 = vsel %vm1013_vm4, %v13162_v11, %v13192_v62  ;;  %v2110_v47 = vmul.f32 %v2091_v29, %v12673_v50 }
 0x306   : > { %2785 = vmatpush1.bf16.msra.mxu1 %v2076_v6  ;;  %v2111_v6 = vmul.f32 %v2095_v35, %v12669_v48  ;;  %v13459_v48 = vrot.slane %v10992_v59, %v12337_v16  ;;  %v2172_v35 = vsel %vm1013_vm4, %v13245_v54, %v13220_v15  ;;  %v2163_v11 = vsel %vm1013_vm4, %v13095_v22, %v13120_v37 }
 0x307   : > { %v13411_v38 = vpop.permute.xlu0 %2228  ;;  %2827 = vmatprep.subr.bf16.mxu1 %v2115_v5  ;;  %v2191_v5 = vmul.f32 %v13441_v36, %v2170_v27  ;;  %v2193_v62 = vmul.f32 %v13441_v36, %v2171_v41  ;;  %v2120_v25 = vpack.c.bf16 %v2112_v30, %v2110_v47  ;;  %v2164_v50 = vsel %vm1013_vm4, %v13220_v15, %v13245_v54  ;;  %v11800_v15 = vld [vmem:[%s19913_s4 + $0x7c] ss:$20 sps:$4 sm:$0xff]   ;;  %v11802_v30 = vld [vmem:[%s19913_s4 + $0x78] ss:$20 sps:$4 sm:$0xff]  }
 0x308   : > { %v2121_v13 = vpack.c.bf16 %v2113_v28, %v2111_v6  ;;  %v2190_v26 = vmul.f32 %v13459_v48, %v2162_v53  ;;  %v2195_v22 = vmul.f32 %v13441_v36, %v2172_v35  ;;  %v2192_v31 = vmul.f32 %v13459_v48, %v2163_v11  ;;  %v10993_v6 = vld [vmem:[%s19906_s0 + $0xc] sm:$0x3] }
 0x309   : > { %v13415_v1 = vpop.permute.xlu1 %2226  ;;  %2787 = vmatmul.mubr.bf16.vlgmr.msra.gmra.mrb[32].mxu1 %v11791_v39  ;;  %v2207_v29 = vpack.c.bf16 %v2193_v62, %v2191_v5  ;;  %v2165_v54 = vsel %vm1013_vm4, %v13176_v61, %v13204_v17  ;;  %v2194_v59 = vmul.f32 %v13459_v48, %v2164_v50  ;;  %v2166_v34 = vsel %vm1013_vm4, %v13284_v18, %v13316_v51  ;;  %v11805_v5 = vld [vmem:[%s19913_s4 + $0xc] ss:$20 sps:$4 sm:$0xff]  }
 0x30a   : > { %2828 = vmatpush1.bf16.msra.mxu1 %v2114_v58  ;;  %2796 = vmatprep.mubr.bf16.mxu1 %v11794_v40  ;;  %v2173_v40 = vsel %vm1013_vm4, %v13204_v17, %v13176_v61  ;;  %v11799_v58 = vld [vmem:[%s19913_s4 + $0x50] ss:$20 sps:$4 sm:$0xff]   ;;  %v2206_v33 = vpack.c.bf16 %v2192_v31, %v2190_v26  ;;  %v2196_v28 = vmul.f32 %v13459_v48, %v2165_v54 }
 0x30b   : > { %v13419_v19 = vpop.permute.xlu0 %2244  ;;  %2829 = vmatprep.subr.bf16.mxu1 %v2117_v21  ;;  %v2174_v21 = vsel %vm1013_vm4, %v13316_v51, %v13284_v18  ;;  %v2197_v60 = vmul.f32 %v13441_v36, %v2173_v40  ;;  %v2198_v56 = vmul.f32 %v13459_v48, %v2166_v34  ;;  %v2262_v53 = vsel %vm1067_vm5, %v13401_v42, %v13386_v43 }
 0x30c   : > { %v2199_v61 = vmul.f32 %v13441_v36, %v2174_v21  ;;  %v2208_v51 = vpack.c.bf16 %v2196_v28, %v2194_v59  ;;  %v2263_v11 = vsel %vm1067_vm5, %v13393_v55, %v13357_v32  ;;  %v2254_v40 = vsel %vm1067_vm5, %v13386_v43, %v13401_v42 }
 0x30d   : > { %v13426_v7 = vpop.permute.xlu1 %2242  ;;  %v2255_v43 = vsel %vm1067_vm5, %v13357_v32, %v13393_v55 }
 0x30e   : > { %2830 = vmatpush1.bf16.msra.mxu1 %v2116_v3  ;;  %v2175_v3 = vsel %vm1013_vm4, %v13301_v10, %v13231_v20  ;;  %v2256_v54 = vsel %vm1067_vm5, %v13415_v1, %v13426_v7 }
 0x30f   : > { %v13443_v49 = vpop.permute.xlu0 %2232  ;;  %2831 = vmatprep.subr.bf16.mxu1 %v2119_v57  ;;  %v2209_v57 = vpack.c.bf16 %v2197_v60, %v2195_v22  ;;  %v2201_v27 = vmul.f32 %v13441_v36, %v2175_v3  ;;  %v2257_v3 = vsel %vm1067_vm5, %v13411_v38, %v13419_v19 }
 0x311   : > { %v13456_v39 = vpop.permute.xlu1 %2230  ;;  %2797 = vmatmul.mubr.bf16.gmra.mrb[36].mxu1 %v11796_v9  ;;  %v2167_v9 = vsel %vm1013_vm4, %v13231_v20, %v13301_v10  ;;  %v2176_v10 = vsel %vm1013_vm4, %v13363_v63, %v13346_v8 }
 0x312   : > { %2832 = vmatpush1.bf16.msra.mxu1 %v2118_v23  ;;  %2806 = vmatprep.mubr.bf16.mxu1 %v11797_v24  ;;  %v2168_v24 = vsel %vm1013_vm4, %v13346_v8, %v13363_v63  ;;  %v2200_v20 = vmul.f32 %v13459_v48, %v2167_v9  ;;  %v2211_v23 = vpack.c.bf16 %v2201_v27, %v2199_v61 }
 0x313   : > { %v13471_v52 = vpop.permute.xlu0 %2248  ;;  %2833 = vmatprep.subr.bf16.mxu1 %v2121_v13  ;;  %v2202_v8 = vmul.f32 %v13459_v48, %v2168_v24  ;;  %v13550_v63 = vrot.slane %v10993_v6, %v12328_v14  ;;  %v2203_v47 = vmul.f32 %v13441_v36, %v2176_v10 }
 0x314   : > { %v2210_v13 = vpack.c.bf16 %v2200_v20, %v2198_v56  ;;  %v2259_v56 = vsel %vm1067_vm5, %v13443_v49, %v13471_v52 }
 0x315   : > { %v13483_v37 = vpop.permute.xlu1 %2246  ;;  %v2285_v42 = vmul.f32 %v13550_v63, %v2263_v11 }
 0x316   : > { %2834 = vmatpush1.bf16.msra.mxu1 %v2120_v25  ;;  %v2283_v25 = vmul.f32 %v13550_v63, %v2262_v53  ;;  %v2266_v59 = vsel %vm1067_vm5, %v13483_v37, %v13456_v39  ;;  %v2258_v28 = vsel %vm1067_vm5, %v13456_v39, %v13483_v37  ;;  %v10994_v37 = vld [vmem:[%s19906_s0 + $0xe] sm:$0x3] }
 0x317   : > { %v13501_v45 = vpop.permute.xlu0 %2236  ;;  %2835 = vmatprep.subr.bf16.mxu1 %v2207_v29  ;;  %v2291_v9 = vmul.f32 %v13550_v63, %v2266_v59 }
 0x318   : > { %v2299_v32 = vpack.c.bf16 %v2285_v42, %v2283_v25 }
 0x319   : > { %v13513_v17 = vpop.permute.xlu1 %2234  ;;  %2807 = vmatmul.mubr.bf16.gmra.mrb[40].mxu1 %v11799_v58  ;;  %v2275_v58 = vrot.slane %v10993_v6, %v12337_v16 }
 0x31a   : > { %2836 = vmatpush1.bf16.msra.mxu1 %v2206_v33  ;;  %2816 = vmatprep.mubr.bf16.mxu1 %v11800_v15  ;;  %v2265_v15 = vsel %vm1067_vm5, %v13419_v19, %v13411_v38 }
 0x31b   : > { %v13522_v18 = vpop.permute.xlu0 %2316  ;;  %2837 = vmatprep.subr.bf16.mxu1 %v2209_v57  ;;  %v2282_v21 = vmul.f32 %v2275_v58, %v2254_v40  ;;  %v2284_v55 = vmul.f32 %v2275_v58, %v2255_v43  ;;  %v2289_v34 = vmul.f32 %v13550_v63, %v2265_v15  ;;  %v2286_v61 = vmul.f32 %v2275_v58, %v2256_v54 }
 0x31c   : > { %v2267_v57 = vsel %vm1067_vm5, %v13471_v52, %v13443_v49  ;;  %v2288_v19 = vmul.f32 %v2275_v58, %v2257_v3  ;;  %v2290_v24 = vmul.f32 %v2275_v58, %v2258_v28  ;;  %v2292_v10 = vmul.f32 %v2275_v58, %v2259_v56 }
 0x31d   : > { %v13536_v41 = vpop.permute.xlu1 %2250 }
 0x31e   : > { %2838 = vmatpush1.bf16.msra.mxu1 %v2208_v51  ;;  %v2293_v51 = vmul.f32 %v13550_v63, %v2267_v57  ;;  %v2300_v20 = vpack.c.bf16 %v2288_v19, %v2286_v61  ;;  %v2260_v39 = vsel %vm1067_vm5, %v13513_v17, %v13536_v41  ;;  %v2268_v49 = vsel %vm1067_vm5, %v13536_v41, %v13513_v17 }
 0x31f   : > { %v2161_v35 = vpop.permute.xlu0 %2160  ;;  %2839 = vmatprep.subr.bf16.mxu1 %v2211_v23  ;;  %v2302_v53 = vpack.c.bf16 %v2292_v10, %v2290_v24 }
 0x320   : > { %v2169_v62 = vsel %vm1013_vm4, %v13331_v0, %v2161_v35  ;;  %v2177_v26 = vsel %vm1013_vm4, %v2161_v35, %v13331_v0  ;;  %v2264_v0 = vsel %vm1067_vm5, %v13426_v7, %v13415_v1  ;;  %v2298_v7 = vpack.c.bf16 %v2284_v55, %v2282_v21 }
 0x321   : > { %v2204_v50 = vmul.f32 %v13459_v48, %v2169_v62  ;;  %v2205_v22 = vmul.f32 %v13441_v36, %v2177_v26  ;;  %v2315_v29 = vpop.permute.xlu1 %2314  ;;  %2817 = vmatmul.mubr.bf16.gmra.mrb[44].mxu1 %v11802_v30  ;;  %v2287_v60 = vmul.f32 %v13550_v63, %v2264_v0  ;;  %v2303_v23 = vpack.c.bf16 %v2293_v51, %v2291_v9 }
 0x322   : > { %2840 = vmatpush1.bf16.msra.mxu1 %v2210_v13  ;;  %2859 = vmatprep.mubr.bf16.mxu1 %v11805_v5  ;;  %v2294_v5 = vmul.f32 %v2275_v58, %v2260_v39  ;;  %v13626_v13 = vrot.slane %v10994_v37, %v12328_v14  ;;  %v2295_v35 = vmul.f32 %v13550_v63, %v2268_v49 }
 0x323   : > { %v2212_v48 = vpack.c.bf16 %v2204_v50, %v2202_v8  ;;  %v2333_v36 = vpop.permute.xlu0 %2332  ;;  %v2213_v31 = vpack.c.bf16 %v2205_v22, %v2203_v47  ;;  %v2301_v38 = vpack.c.bf16 %v2289_v34, %v2287_v60  ;;  %v2367_v50 = vrot.slane %v10994_v37, %v12337_v16 }
 0x324   : > { %v2355_v47 = vsel %vm1121_vm6, %v2333_v36, %v13522_v18  ;;  %v2347_v0 = vsel %vm1121_vm6, %v13522_v18, %v2333_v36 }
 0x325   : > { %v2331_v33 = vpop.permute.xlu1 %2330  ;;  %2841 = vmatprep.subr.bf16.mxu1 %v2213_v31  ;;  %v2376_v54 = vmul.f32 %v2367_v50, %v2347_v0 }
 0x326   : > { %2842 = vmatpush1.bf16.msra.mxu1 %v2212_v48  ;;  %v2354_v30 = vsel %vm1121_vm6, %v2331_v33, %v2315_v29  ;;  %v2346_v11 = vsel %vm1121_vm6, %v2315_v29, %v2331_v33 }
 0x327   : > { %v2321_v1 = vpop.permute.xlu0 %2320  ;;  %2843 = vmatprep.subr.bf16.mxu1 %v2299_v32  ;;  %v2375_v62 = vmul.f32 %v13626_v13, %v2354_v30  ;;  %v2374_v48 = vmul.f32 %v2367_v50, %v2346_v11 }
 0x329   : > { %v2319_v27 = vpop.permute.xlu1 %2318  ;;  %v2390_v33 = vpack.c.bf16 %v2376_v54, %v2374_v48 }
 0x32a   : > { %2844 = vmatpush1.bf16.msra.mxu1 %v2298_v7 }
 0x32b   : > { %v2337_v6 = vpop.permute.xlu0 %2336  ;;  %2845 = vmatprep.subr.bf16.mxu1 %v2301_v38 }
 0x32c   : > { %v2349_v18 = vsel %vm1121_vm6, %v2321_v1, %v2337_v6 }
 0x32d   : > { %v2335_v52 = vpop.permute.xlu1 %2334 }
 0x32e   : > { %2846 = vmatpush1.bf16.msra.mxu1 %v2300_v20  ;;  %v2356_v22 = vsel %vm1121_vm6, %v2335_v52, %v2319_v27 }
 0x32f   : > { %v2253_v8 = vpop.permute.xlu0 %2252  ;;  %2847 = vmatprep.subr.bf16.mxu1 %v2303_v23  ;;  %v2379_v31 = vmul.f32 %v13626_v13, %v2356_v22  ;;  %v11806_v22 = vld [vmem:[%s19913_s4 + $0x34] ss:$20 sps:$4 sm:$0xff]  }
 0x330   : > { %v2261_v17 = vsel %vm1067_vm5, %v13501_v45, %v2253_v8  ;;  %v2269_v41 = vsel %vm1067_vm5, %v2253_v8, %v13501_v45  ;;  %v2377_v45 = vmul.f32 %v13626_v13, %v2355_v47 }
 0x331   : > { %v2296_v26 = vmul.f32 %v2275_v58, %v2261_v17  ;;  %v2297_v40 = vmul.f32 %v13550_v63, %v2269_v41  ;;  %v2323_v25 = vpop.permute.xlu1 %2322  ;;  %v2357_v63 = vsel %vm1121_vm6, %v2337_v6, %v2321_v1  ;;  %v2348_v58 = vsel %vm1121_vm6, %v2319_v27, %v2335_v52  ;;  %v13680_v17 = vpop.f32.mrb[20].mxu1 }
 0x332   : > { %2848 = vmatpush1.bf16.msra.mxu1 %v2302_v53  ;;  %v2391_v15 = vpack.c.bf16 %v2377_v45, %v2375_v62  ;;  %v2381_v36 = vmul.f32 %v13626_v13, %v2357_v63  ;;  %v2378_v32 = vmul.f32 %v2367_v50, %v2348_v58  ;;  %v2380_v1 = vmul.f32 %v2367_v50, %v2349_v18  ;;  %v13682_v41 = vpop.f32.mrb[21].mxu1 }
 0x333   : > { %v2304_v43 = vpack.c.bf16 %v2296_v26, %v2294_v5  ;;  %v2325_v29 = vpop.permute.xlu0 %2324  ;;  %v2305_v42 = vpack.c.bf16 %v2297_v40, %v2295_v35  ;;  %v10995_v5 = vld [vmem:[%s19906_s0 + $0x10] sm:$0x3]  ;;  %19945 = vst [vmem:[#allocation12_spill] sm:$0xff] %v13680_v17  ;;  %19946 = vst [vmem:[#allocation10_spill] sm:$0xff] %v13682_v41  ;;  %v11803_v26 = vld [vmem:[%s19913_s4 + $0x8] ss:$20 sps:$4 sm:$0xff]  }
 0x334   : > { %v2393_v61 = vpack.c.bf16 %v2381_v36, %v2379_v31  ;;  %v2392_v27 = vpack.c.bf16 %v2380_v1, %v2378_v32  ;;  %v13685_v11 = vrot.slane %v10995_v5, %v12337_v16  ;;  %v13688_v62 = vrot.slane %v10995_v5, %v12328_v14  ;;  %v13693_v40 = vpop.f32.mrb[22].mxu1 }
 0x335   : > { %v2339_v21 = vpop.permute.xlu1 %2338  ;;  %2849 = vmatprep.subr.bf16.mxu1 %v2305_v42  ;;  %19947 = vst [vmem:[#allocation11_spill] sm:$0xff] %v13693_v40  ;;  %v13702_v0 = vpop.f32.mrb[23].mxu1 }
 0x336   : > { %2850 = vmatpush1.bf16.msra.mxu1 %v2304_v43  ;;  %v2358_v55 = vsel %vm1121_vm6, %v2339_v21, %v2323_v25  ;;  %v2350_v57 = vsel %vm1121_vm6, %v2323_v25, %v2339_v21  ;;  %19948 = vst [vmem:[#allocation9_spill] sm:$0xff] %v13702_v0  ;;  %v13712_v18 = vpop.f32.mrb[24].mxu1 }
 0x337   : > { %v2341_v60 = vpop.permute.xlu0 %2340  ;;  %2851 = vmatprep.subr.bf16.mxu1 %v2391_v15  ;;  %v2383_v28 = vmul.f32 %v13626_v13, %v2358_v55  ;;  %v2382_v51 = vmul.f32 %v2367_v50, %v2350_v57  ;;  %19949 = vst [vmem:[#allocation16_spill] sm:$0xff] %v13712_v18  ;;  %v13714_v36 = vpop.f32.mrb[25].mxu1 }
 0x338   : > { %v2359_v59 = vsel %vm1121_vm6, %v2341_v60, %v2325_v29  ;;  %v2351_v3 = vsel %vm1121_vm6, %v2325_v29, %v2341_v60  ;;  %19950 = vst [vmem:[#allocation14_spill] sm:$0xff] %v13714_v36  ;;  %v13719_v32 = vpop.f32.mrb[26].mxu1 }
 0x339   : > { %v2385_v34 = vmul.f32 %v13626_v13, %v2359_v59  ;;  %v2327_v7 = vpop.permute.xlu1 %2326  ;;  %v2384_v38 = vmul.f32 %v2367_v50, %v2351_v3  ;;  %19951 = vst [vmem:[#allocation15_spill] sm:$0xff] %v13719_v32  ;;  %v11809_v3 = vld [vmem:[%s19913_s4 + $0x5c] ss:$20 sps:$4 sm:$0xff]  }
 0x33a   : > { %2852 = vmatpush1.bf16.msra.mxu1 %v2390_v33  ;;  %v11808_v33 = vld [vmem:[%s19913_s4 + $0x30] ss:$20 sps:$4 sm:$0xff]  }
 0x33b   : > { %v2329_v9 = vpop.permute.xlu0 %2328  ;;  %2853 = vmatprep.subr.bf16.mxu1 %v2393_v61  ;;  %v2395_v56 = vpack.c.bf16 %v2385_v34, %v2383_v28  ;;  %v2394_v39 = vpack.c.bf16 %v2384_v38, %v2382_v51  ;;  %v13728_v34 = vpop.f32.mrb[27].mxu1 }
 0x33c   : > { %19952 = vst [vmem:[#allocation13_spill] sm:$0xff] %v13728_v34 }
 0x33d   : > { %v2343_v19 = vpop.permute.xlu1 %2342 }
 0x33e   : > { %v2352_v24 = vsel %vm1121_vm6, %v2327_v7, %v2343_v19  ;;  %v2360_v6 = vsel %vm1121_vm6, %v2343_v19, %v2327_v7  ;;  %2854 = vmatpush1.bf16.msra.mxu1 %v2392_v27 }
 0x33f   : > { %v2345_v20 = vpop.permute.xlu0 %2344  ;;  %2855 = vmatprep.subr.bf16.mxu1 %v2395_v56  ;;  %v2386_v49 = vmul.f32 %v2367_v50, %v2352_v24  ;;  %v2387_v52 = vmul.f32 %v13626_v13, %v2360_v6  ;;  %v13738_v24 = vpop.f32.mrb[28].mxu1 }
 0x340   : > { %v2353_v37 = vsel %vm1121_vm6, %v2329_v9, %v2345_v20  ;;  %v2361_v10 = vsel %vm1121_vm6, %v2345_v20, %v2329_v9  ;;  %19953 = vst [vmem:[#allocation6_spill] sm:$0xff] %v13738_v24  ;;  %v13740_v6 = vpop.f32.mrb[29].mxu1 }
 0x341   : > { %v2388_v23 = vmul.f32 %v2367_v50, %v2353_v37  ;;  %v2389_v30 = vmul.f32 %v13626_v13, %v2361_v10  ;;  %v2407_v53 = vpop.permute.xlu1 %2406  ;;  %19954 = vst [vmem:[#allocation19_spill] sm:$0xff] %v13740_v6  ;;  %v13745_v37 = vpop.f32.mrb[30].mxu1 }
 0x342   : > { %2856 = vmatpush1.bf16.msra.mxu1 %v2394_v39  ;;  %v11811_v39 = vld [vmem:[%s19913_s4 + $0x58] ss:$20 sps:$4 sm:$0xff]   ;;  %19955 = vst [vmem:[#allocation20_spill] sm:$0xff] %v13745_v37 }
 0x343   : > { %v2396_v8 = vpack.c.bf16 %v2388_v23, %v2386_v49  ;;  %v2409_v35 = vpop.permute.xlu0 %2408  ;;  %v2397_v47 = vpack.c.bf16 %v2389_v30, %v2387_v52  ;;  %v11812_v52 = vld [vmem:[%s19913_s4 + $0x84] ss:$20 sps:$4 sm:$0xff]   ;;  %v13754_v23 = vpop.f32.mrb[31].mxu1 }
 0x344   : > { %19956 = vst [vmem:[#allocation21_spill] sm:$0xff] %v13754_v23 }
 0x345   : > { %v2423_v13 = vpop.permute.xlu1 %2422  ;;  %2857 = vmatprep.subr.bf16.mxu1 %v2397_v47 }
 0x346   : > { %v2438_v25 = vsel %vm1175_vm7, %v2407_v53, %v2423_v13  ;;  %v2446_v50 = vsel %vm1175_vm7, %v2423_v13, %v2407_v53  ;;  %2858 = vmatpush1.bf16.msra.mxu1 %v2396_v8 }
 0x347   : > { %v2425_v45 = vpop.permute.xlu0 %2424  ;;  %v2466_v42 = vmul.f32 %v13685_v11, %v2438_v25  ;;  %v2467_v48 = vmul.f32 %v13688_v62, %v2446_v50 }
 0x348   : > { %v2439_v43 = vsel %vm1175_vm7, %v2409_v35, %v2425_v45  ;;  %v2447_v29 = vsel %vm1175_vm7, %v2425_v45, %v2409_v35 }
 0x349   : > { %v2468_v63 = vmul.f32 %v13685_v11, %v2439_v43  ;;  %v2469_v58 = vmul.f32 %v13688_v62, %v2447_v29  ;;  %v2411_v31 = vpop.permute.xlu1 %2410  ;;  %2860 = vmatmul.mubr.bf16.vlgmr.msra.gmra.mrb[32].mxu1 %v11803_v26  ;;  %v11814_v43 = vld [vmem:[%s19913_s4 + $0x80] ss:$20 sps:$4 sm:$0xff]  }
 0x34a   : > { %2869 = vmatprep.mubr.bf16.mxu1 %v11806_v22 }
 0x34b   : > { %v2482_v21 = vpack.c.bf16 %v2468_v63, %v2466_v42  ;;  %v2413_v15 = vpop.permute.xlu0 %2412  ;;  %v2483_v54 = vpack.c.bf16 %v2469_v58, %v2467_v48 }
 0x34d   : > { %v2427_v60 = vpop.permute.xlu1 %2426  ;;  %2900 = vmatprep.subr.bf16.mxu1 %v2483_v54 }
 0x34e   : > { %v2440_v55 = vsel %vm1175_vm7, %v2411_v31, %v2427_v60  ;;  %v2448_v59 = vsel %vm1175_vm7, %v2427_v60, %v2411_v31  ;;  %2901 = vmatpush1.bf16.msra.mxu1 %v2482_v21  ;;  %v19957_v60 = vmov 0  }
 0x34f   : > { %v2429_v7 = vpop.permute.xlu0 %2428  ;;  %v2470_v57 = vmul.f32 %v13685_v11, %v2440_v55  ;;  %v2471_v28 = vmul.f32 %v13688_v62, %v2448_v59  ;;  %v11815_v59 = vld [vmem:[%s19913_s4 + $0x10] ss:$20 sps:$4 sm:$0xff]  }
 0x350   : > { %v2441_v61 = vsel %vm1175_vm7, %v2413_v15, %v2429_v7  ;;  %v2449_v1 = vsel %vm1175_vm7, %v2429_v7, %v2413_v15 }
 0x351   : > { %v2472_v9 = vmul.f32 %v13685_v11, %v2441_v61  ;;  %v2473_v27 = vmul.f32 %v13688_v62, %v2449_v1  ;;  %v2415_v38 = vpop.permute.xlu1 %2414  ;;  %2870 = vmatmul.mubr.bf16.gmra.mrb[36].mxu1 %v11808_v33 }
 0x352   : > { %2879 = vmatprep.mubr.bf16.mxu1 %v11809_v3  ;;  %v11818_v3 = vld [vmem:[%s19913_s4 + $0x88] ss:$20 sps:$4 sm:$0xff]  }
 0x353   : > { %v2484_v19 = vpack.c.bf16 %v2472_v9, %v2470_v57  ;;  %v2417_v56 = vpop.permute.xlu0 %2416  ;;  %v2485_v51 = vpack.c.bf16 %v2473_v27, %v2471_v28 }
 0x355   : > { %v2431_v20 = vpop.permute.xlu1 %2430  ;;  %2902 = vmatprep.subr.bf16.mxu1 %v2485_v51 }
 0x356   : > { %v2442_v10 = vsel %vm1175_vm7, %v2415_v38, %v2431_v20  ;;  %v2450_v49 = vsel %vm1175_vm7, %v2431_v20, %v2415_v38  ;;  %2903 = vmatpush1.bf16.msra.mxu1 %v2484_v19 }
 0x357   : > { %v2433_v30 = vpop.permute.xlu0 %2432  ;;  %v2474_v8 = vmul.f32 %v13685_v11, %v2442_v10  ;;  %v2475_v35 = vmul.f32 %v13688_v62, %v2450_v49 }
 0x358   : > { %v2443_v53 = vsel %vm1175_vm7, %v2417_v56, %v2433_v30  ;;  %v2451_v5 = vsel %vm1175_vm7, %v2433_v30, %v2417_v56 }
 0x359   : > { %v2476_v47 = vmul.f32 %v13685_v11, %v2443_v53  ;;  %v2477_v13 = vmul.f32 %v13688_v62, %v2451_v5  ;;  %v2419_v26 = vpop.permute.xlu1 %2418  ;;  %2880 = vmatmul.mubr.bf16.gmra.mrb[40].mxu1 %v11811_v39 }
 0x35a   : > { %2889 = vmatprep.mubr.bf16.mxu1 %v11812_v52 }
 0x35b   : > { %v2486_v25 = vpack.c.bf16 %v2476_v47, %v2474_v8  ;;  %v2421_v50 = vpop.permute.xlu0 %2420  ;;  %v2487_v22 = vpack.c.bf16 %v2477_v13, %v2475_v35 }
 0x35d   : > { %v2435_v45 = vpop.permute.xlu1 %2434  ;;  %2904 = vmatprep.subr.bf16.mxu1 %v2487_v22 }
 0x35e   : > { %v2444_v29 = vsel %vm1175_vm7, %v2419_v26, %v2435_v45  ;;  %v2452_v42 = vsel %vm1175_vm7, %v2435_v45, %v2419_v26  ;;  %2905 = vmatpush1.bf16.msra.mxu1 %v2486_v25 }
 0x35f   : > { %v2437_v48 = vpop.permute.xlu0 %2436  ;;  %v2478_v31 = vmul.f32 %v13685_v11, %v2444_v29  ;;  %v2479_v21 = vmul.f32 %v13688_v62, %v2452_v42 }
 0x360   : > { %v2445_v63 = vsel %vm1175_vm7, %v2421_v50, %v2437_v48  ;;  %v2453_v58 = vsel %vm1175_vm7, %v2437_v48, %v2421_v50 }
 0x361   : > { %v2480_v15 = vmul.f32 %v13685_v11, %v2445_v63  ;;  %v2481_v54 = vmul.f32 %v13688_v62, %v2453_v58  ;;  %2890 = vmatmul.mubr.bf16.gmra.mrb[44].mxu1 %v11814_v43  ;;  %v11816_v11 = vld [vmem:[%s19913_s4 + $0x38] ss:$20 sps:$4 sm:$0xff]   ;;  %v11817_v62 = vld [vmem:[%s19913_s4 + $0x60] ss:$20 sps:$4 sm:$0xff]   ;;  %s19965_s4 = sld [smem:[#allocation41_spill]] }
 0x362   : > { %2932 = vmatprep.mubr.bf16.mxu1 %v19957_v60 }
 0x363   : > { %v2488_v33 = vpack.c.bf16 %v2480_v15, %v2478_v31  ;;  %v2489_v55 = vpack.c.bf16 %v2481_v54, %v2479_v21 }
 0x365   : > { %2906 = vmatprep.subr.bf16.mxu1 %v2489_v55 }
 0x366   : > { %2907 = vmatpush1.bf16.msra.mxu1 %v2488_v33 }
 0x369   : > { %11016 = vmatmul.mubr.msk.bf16.vlgmr.msra.gmra.mrb[32].mxu1 %vm1632_vm9, %v11815_v59 }
 0x36a   : > { %2942 = vmatprep.mubr.bf16.mxu1 %v19957_v60 }
 0x36e   : > { %v2605_v7 = vpop.permute.xlu1 %2604 }
 0x370   : > { %v2610_v28 = vpop.permute.xlu0 %2609 }
 0x371   : > { %11017 = vmatmul.mubr.msk.bf16.gmra.mrb[36].mxu1 %vm1632_vm9, %v11816_v11 }
 0x372   : > { %2952 = vmatprep.mubr.bf16.mxu1 %v19957_v60  ;;  %v2615_v22 = vpop.permute.xlu1 %2614 }
 0x374   : > { %v2620_v43 = vpop.permute.xlu0 %2619 }
 0x376   : > { %v2625_v15 = vpop.permute.xlu1 %2624 }
 0x378   : > { %v2630_v33 = vpop.permute.xlu0 %2629 }
 0x379   : > { %11018 = vmatmul.mubr.msk.bf16.gmra.mrb[40].mxu1 %vm1632_vm9, %v11817_v62 }
 0x37a   : > { %2962 = vmatprep.mubr.bf16.mxu1 %v19957_v60 }
 0x381   : > { %11019 = vmatmul.mubr.msk.bf16.gmra.mrb[44].mxu1 %vm1632_vm9, %v11818_v3 }
 0x382   : > { %4550 = vmatprep.mubr.bf16.mxu1 %v19957_v60 }
 0x43c   : > { %v2934_v61 = vpop.f32.mrb[32].mxu1 }
 0x43d   : > { %v11504_v1 = vadd.f32 %v2934_v61, %v2605_v7  ;;  %v2936_v57 = vpop.f32.mrb[33].mxu1 }
 0x43e   : > { %v2938_v9 = vpop.f32.mrb[34].mxu1  ;;  %v11505_v49 = vadd.f32 %v2936_v57, %v2605_v7 }
 0x43f   : > { %v13800_v27 = vmax.f32 %v11504_v1, 0.0  ;;  %v11506_v38 = vadd.f32 %v2938_v9, %v2610_v28  ;;  %v2940_v19 = vpop.f32.mrb[35].mxu1  ;;  %v2635_v1 = vpop.permute.xlu1 %2634 }
 0x440   : > { %v11507_v30 = vadd.f32 %v2940_v19, %v2610_v28  ;;  %v13818_v8 = vmax.f32 %v11505_v49, 0.0  ;;  %v2640_v28 = vpop.permute.xlu0 %2639 }
 0x441   : > { %19958 = vst [vmem:[#allocation22_spill] sm:$0xff] %v13800_v27  ;;  %v13802_v56 = vmax.f32 %v11506_v38, 0.0  ;;  %2989 = vrot.lane.b32.xlu1 %v13800_v27, %s19959_s30 }
 0x442   : > { %v13822_v47 = vmax.f32 %v11507_v30, 0.0 }
 0x443   : > { %2991 = vrot.lane.b32.xlu0 %v13802_v56, %s19959_s30 }
 0x444   : > { %v2944_v51 = vpop.f32.mrb[36].mxu1 }
 0x445   : > { %v2946_v20 = vpop.f32.mrb[37].mxu1  ;;  %3081 = vrot.lane.b32.xlu1 %v13800_v27, %s19960_s7  ;;  %v11508_v45 = vadd.f32 %v2944_v51, %v2615_v22 }
 0x446   : > { %v2948_v39 = vpop.f32.mrb[38].mxu1  ;;  %v11509_v63 = vadd.f32 %v2946_v20, %v2615_v22 }
 0x447   : > { %v2950_v10 = vpop.f32.mrb[39].mxu1  ;;  %3083 = vrot.lane.b32.xlu0 %v13802_v56, %s19960_s7  ;;  %v11510_v29 = vadd.f32 %v2948_v39, %v2620_v43  ;;  %v13842_v42 = vmax.f32 %v11508_v45, 0.0 }
 0x448   : > { %v11511_v58 = vadd.f32 %v2950_v10, %v2620_v43  ;;  %v13862_v31 = vmax.f32 %v11509_v63, 0.0 }
 0x449   : > { %3173 = vrot.lane.b32.xlu1 %v13800_v27, %s19961_s3  ;;  %v13846_v48 = vmax.f32 %v11510_v29, 0.0 }
 0x44a   : > { %v13866_v21 = vmax.f32 %v11511_v58, 0.0 }
 0x44b   : > { %3175 = vrot.lane.b32.xlu0 %v13802_v56, %s19961_s3 }
 0x44c   : > { %v2954_v52 = vpop.f32.mrb[40].mxu1 }
 0x44d   : > { %v2956_v53 = vpop.f32.mrb[41].mxu1  ;;  %3265 = vrot.lane.b32.xlu1 %v13800_v27, %s19962_s25  ;;  %v11512_v54 = vadd.f32 %v2954_v52, %v2625_v15 }
 0x44e   : > { %v2958_v5 = vpop.f32.mrb[42].mxu1  ;;  %v11513_v62 = vadd.f32 %v2956_v53, %v2625_v15 }
 0x44f   : > { %v2960_v35 = vpop.f32.mrb[43].mxu1  ;;  %3267 = vrot.lane.b32.xlu0 %v13802_v56, %s19962_s25  ;;  %v11514_v55 = vadd.f32 %v2958_v5, %v2630_v33  ;;  %v13882_v59 = vmax.f32 %v11512_v54, 0.0 }
 0x450   : > { %v11515_v3 = vadd.f32 %v2960_v35, %v2630_v33  ;;  %v13902_v7 = vmax.f32 %v11513_v62, 0.0 }
 0x451   : > { %3005 = vrot.lane.b32.xlu1 %v13818_v8, %s19959_s30  ;;  %v13886_v11 = vmax.f32 %v11514_v55, 0.0 }
 0x452   : > { %v13906_v61 = vmax.f32 %v11515_v3, 0.0 }
 0x453   : > { %3007 = vrot.lane.b32.xlu0 %v13822_v47, %s19959_s30 }
 0x454   : > { %v2964_v13 = vpop.f32.mrb[44].mxu1 }
 0x455   : > { %v13828_v26 = vpop.f32.mrb[45].mxu1  ;;  %3097 = vrot.lane.b32.xlu1 %v13818_v8, %s19960_s7  ;;  %v11516_v57 = vadd.f32 %v2964_v13, %v2635_v1 }
 0x456   : > { %v2968_v25 = vpop.f32.mrb[46].mxu1  ;;  %v11517_v51 = vadd.f32 %v13828_v26, %v2635_v1  ;;  %v3037_v26 = vld [vmem:[%s19906_s0] sm:$0x3] }
 0x457   : > { %v13832_v50 = vpop.f32.mrb[47].mxu1  ;;  %3099 = vrot.lane.b32.xlu0 %v13822_v47, %s19960_s7  ;;  %v11518_v9 = vadd.f32 %v2968_v25, %v2640_v28  ;;  %v13922_v38 = vmax.f32 %v11516_v57, 0.0  ;;  %v13989_v22 = vrot.slane %v3037_v26, %v12328_v14 }
 0x458   : > { %v11519_v20 = vadd.f32 %v13832_v50, %v2640_v28  ;;  %v13940_v39 = vmax.f32 %v11517_v51, 0.0  ;;  %v13986_v50 = vrot.slane %v3037_v26, %v12337_v16 }
 0x459   : > { %3189 = vrot.lane.b32.xlu1 %v13818_v8, %s19961_s3  ;;  %v13926_v19 = vmax.f32 %v11518_v9, 0.0 }
 0x45a   : > { %v13944_v10 = vmax.f32 %v11519_v20, 0.0 }
 0x45b   : > { %3191 = vrot.lane.b32.xlu0 %v13822_v47, %s19961_s3 }
 0x45d   : > { %3281 = vrot.lane.b32.xlu1 %v13818_v8, %s19962_s25 }
 0x45f   : > { %3283 = vrot.lane.b32.xlu0 %v13822_v47, %s19962_s25 }
 0x461   : > { %2993 = vrot.lane.b32.xlu1 %v13842_v42, %s19959_s30 }
 0x463   : > { %2995 = vrot.lane.b32.xlu0 %v13846_v48, %s19959_s30 }
 0x465   : > { %3085 = vrot.lane.b32.xlu1 %v13842_v42, %s19960_s7 }
 0x467   : > { %3087 = vrot.lane.b32.xlu0 %v13846_v48, %s19960_s7 }
 0x469   : > { %3177 = vrot.lane.b32.xlu1 %v13842_v42, %s19961_s3 }
 0x46b   : > { %3179 = vrot.lane.b32.xlu0 %v13846_v48, %s19961_s3 }
 0x46d   : > { %3269 = vrot.lane.b32.xlu1 %v13842_v42, %s19962_s25 }
 0x46f   : > { %3271 = vrot.lane.b32.xlu0 %v13846_v48, %s19962_s25 }
 0x471   : > { %3009 = vrot.lane.b32.xlu1 %v13862_v31, %s19959_s30 }
 0x473   : > { %3011 = vrot.lane.b32.xlu0 %v13866_v21, %s19959_s30 }
 0x475   : > { %3101 = vrot.lane.b32.xlu1 %v13862_v31, %s19960_s7 }
 0x477   : > { %3103 = vrot.lane.b32.xlu0 %v13866_v21, %s19960_s7 }
 0x479   : > { %3193 = vrot.lane.b32.xlu1 %v13862_v31, %s19961_s3 }
 0x47b   : > { %3195 = vrot.lane.b32.xlu0 %v13866_v21, %s19961_s3 }
 0x47d   : > { %3285 = vrot.lane.b32.xlu1 %v13862_v31, %s19962_s25 }
 0x47f   : > { %3287 = vrot.lane.b32.xlu0 %v13866_v21, %s19962_s25 }
 0x481   : > { %2997 = vrot.lane.b32.xlu1 %v13882_v59, %s19959_s30 }
 0x483   : > { %2999 = vrot.lane.b32.xlu0 %v13886_v11, %s19959_s30 }
 0x485   : > { %3089 = vrot.lane.b32.xlu1 %v13882_v59, %s19960_s7 }
 0x487   : > { %3091 = vrot.lane.b32.xlu0 %v13886_v11, %s19960_s7 }
 0x489   : > { %3181 = vrot.lane.b32.xlu1 %v13882_v59, %s19961_s3 }
 0x48b   : > { %3183 = vrot.lane.b32.xlu0 %v13886_v11, %s19961_s3 }
 0x48d   : > { %3273 = vrot.lane.b32.xlu1 %v13882_v59, %s19962_s25 }
 0x48f   : > { %3275 = vrot.lane.b32.xlu0 %v13886_v11, %s19962_s25 }
 0x491   : > { %3013 = vrot.lane.b32.xlu1 %v13902_v7, %s19959_s30 }
 0x493   : > { %3015 = vrot.lane.b32.xlu0 %v13906_v61, %s19959_s30 }
 0x495   : > { %3105 = vrot.lane.b32.xlu1 %v13902_v7, %s19960_s7 }
 0x497   : > { %3107 = vrot.lane.b32.xlu0 %v13906_v61, %s19960_s7 }
 0x499   : > { %3197 = vrot.lane.b32.xlu1 %v13902_v7, %s19961_s3 }
 0x49b   : > { %3199 = vrot.lane.b32.xlu0 %v13906_v61, %s19961_s3 }
 0x49d   : > { %3289 = vrot.lane.b32.xlu1 %v13902_v7, %s19962_s25 }
 0x49f   : > { %3291 = vrot.lane.b32.xlu0 %v13906_v61, %s19962_s25 }
 0x4a1   : > { %3001 = vrot.lane.b32.xlu1 %v13922_v38, %s19959_s30 }
 0x4a3   : > { %3003 = vrot.lane.b32.xlu0 %v13926_v19, %s19959_s30 }
 0x4a5   : > { %3093 = vrot.lane.b32.xlu1 %v13922_v38, %s19960_s7 }
 0x4a7   : > { %3095 = vrot.lane.b32.xlu0 %v13926_v19, %s19960_s7 }
 0x4a9   : > { %3185 = vrot.lane.b32.xlu1 %v13922_v38, %s19961_s3 }
 0x4ab   : > { %3187 = vrot.lane.b32.xlu0 %v13926_v19, %s19961_s3 }
 0x4ad   : > { %3017 = vrot.lane.b32.xlu1 %v13940_v39, %s19959_s30 }
 0x4af   : > { %3019 = vrot.lane.b32.xlu0 %v13944_v10, %s19959_s30 }
 0x4b1   : > { %3277 = vrot.lane.b32.xlu1 %v13922_v38, %s19962_s25 }
 0x4b3   : > { %3279 = vrot.lane.b32.xlu0 %v13926_v19, %s19962_s25  ;;  %v2990_v49 = vpop.permute.xlu1 %2989 }
 0x4b5   : > { %v2992_v52 = vpop.permute.xlu0 %2991  ;;  %3109 = vrot.lane.b32.xlu1 %v13940_v39, %s19960_s7 }
 0x4b7   : > { %3403 = vrot.lane.b32.xlu0 %v13802_v56, %s19910_s27  ;;  %v13958_v30 = vpop.permute.xlu1 %3081 }
 0x4b9   : > { %v13960_v53 = vpop.permute.xlu0 %3083  ;;  %3201 = vrot.lane.b32.xlu1 %v13940_v39, %s19961_s3 }
 0x4bb   : > { %3419 = vrot.lane.b32.xlu0 %v13822_v47, %s19910_s27  ;;  %v13966_v5 = vpop.permute.xlu1 %3173 }
 0x4bd   : > { %v13968_v35 = vpop.permute.xlu0 %3175  ;;  %3293 = vrot.lane.b32.xlu1 %v13940_v39, %s19962_s25 }
 0x4bf   : > { %3111 = vrot.lane.b32.xlu0 %v13944_v10, %s19960_s7  ;;  %v13974_v13 = vpop.permute.xlu1 %3265 }
 0x4c0   : > { %19963 = vst [vmem:[#allocation23_spill] sm:$0xff] %v13974_v13 }
 0x4c1   : > { %v13979_v25 = vpop.permute.xlu0 %3267  ;;  %3401 = vrot.lane.b32.xlu1 %v13800_v27, %s19910_s27 }
 0x4c3   : > { %3407 = vrot.lane.b32.xlu0 %v13846_v48, %s19910_s27  ;;  %v3006_v45 = vpop.permute.xlu1 %3005 }
 0x4c4   : > { %v3021_v43 = vsel %vm769_vm0, %v2990_v49, %v3006_v45  ;;  %v3029_v29 = vsel %vm769_vm0, %v3006_v45, %v2990_v49 }
 0x4c5   : > { %v3008_v63 = vpop.permute.xlu0 %3007  ;;  %3417 = vrot.lane.b32.xlu1 %v13818_v8, %s19910_s27  ;;  %v3049_v54 = vmul.f32 %v13986_v50, %v3029_v29  ;;  %v3050_v33 = vmul.f32 %v13989_v22, %v3021_v43  ;;  %v11821_v29 = vld [vmem:[%s19965_s4 + $0x4] ss:$20 sps:$4 sm:$0xff]  }
 0x4c6   : > { %v3022_v58 = vsel %vm769_vm0, %v2992_v52, %v3008_v63  ;;  %v3030_v15 = vsel %vm769_vm0, %v3008_v63, %v2992_v52  ;;  %4057 = vmatprep.mubr.bf16.mxu0 %v11821_v29 }
 0x4c7   : > { %v3051_v55 = vmul.f32 %v13986_v50, %v3030_v15  ;;  %v3052_v62 = vmul.f32 %v13989_v22, %v3022_v58  ;;  %3423 = vrot.lane.b32.xlu0 %v13866_v21, %s19910_s27  ;;  %v14007_v3 = vpop.permute.xlu1 %3097 }
 0x4c9   : > { %v3065_v1 = vpack.c.bf16 %v3051_v55, %v3049_v54  ;;  %v14009_v57 = vpop.permute.xlu0 %3099  ;;  %3405 = vrot.lane.b32.xlu1 %v13842_v42, %s19910_s27  ;;  %v3066_v28 = vpack.c.bf16 %v3052_v62, %v3050_v33 }
 0x4cb   : > { %3411 = vrot.lane.b32.xlu0 %v13886_v11, %s19910_s27  ;;  %4025 = vmatprep.subr.bf16.mxu0 %v3066_v28  ;;  %v14015_v9 = vpop.permute.xlu1 %3189 }
 0x4cc   : > { %4026 = vmatpush1.bf16.msra.mxu0 %v3065_v1 }
 0x4cd   : > { %v14017_v51 = vpop.permute.xlu0 %3191  ;;  %3421 = vrot.lane.b32.xlu1 %v13862_v31, %s19910_s27 }
 0x4cf   : > { %3203 = vrot.lane.b32.xlu0 %v13944_v10, %s19961_s3  ;;  %v14023_v20 = vpop.permute.xlu1 %3281 }
 0x4d0   : > { %19964 = vst [vmem:[#allocation24_spill] sm:$0xff] %v14023_v20 }
 0x4d1   : > { %v14025_v49 = vpop.permute.xlu0 %3283  ;;  %3409 = vrot.lane.b32.xlu1 %v13882_v59, %s19910_s27 }
 0x4d3   : > { %3427 = vrot.lane.b32.xlu0 %v13906_v61, %s19910_s27  ;;  %v2994_v52 = vpop.permute.xlu1 %2993 }
 0x4d5   : > { %v2996_v26 = vpop.permute.xlu0 %2995  ;;  %3425 = vrot.lane.b32.xlu1 %v13902_v7, %s19910_s27 }
 0x4d7   : > { %3415 = vrot.lane.b32.xlu0 %v13926_v19, %s19910_s27  ;;  %v14035_v45 = vpop.permute.xlu1 %3085 }
 0x4d9   : > { %v14037_v43 = vpop.permute.xlu0 %3087  ;;  %3413 = vrot.lane.b32.xlu1 %v13922_v38, %s19910_s27 }
 0x4db   : > { %3495 = vrot.lane.b32.xlu0 %v13802_v56, %s19914_s1  ;;  %v14046_v63 = vpop.permute.xlu1 %3177 }
 0x4dd   : > { %v14048_v58 = vpop.permute.xlu0 %3179  ;;  %3429 = vrot.lane.b32.xlu1 %v13940_v39, %s19910_s27 }
 0x4df   : > { %3295 = vrot.lane.b32.xlu0 %v13944_v10, %s19962_s25  ;;  %v14054_v15 = vpop.permute.xlu1 %3269 }
 0x4e0   : > { %19966 = vst [vmem:[#allocation25_spill] sm:$0xff] %v14054_v15 }
 0x4e1   : > { %v14056_v54 = vpop.permute.xlu0 %3271  ;;  %3493 = vrot.lane.b32.xlu1 %v13800_v27, %s19914_s1 }
 0x4e2   : > { %19967 = vst [vmem:[#allocation26_spill] sm:$0xff] %v14056_v54 }
 0x4e3   : > { %3511 = vrot.lane.b32.xlu0 %v13822_v47, %s19914_s1  ;;  %v3010_v33 = vpop.permute.xlu1 %3009 }
 0x4e4   : > { %v3023_v55 = vsel %vm769_vm0, %v2994_v52, %v3010_v33  ;;  %v3031_v62 = vsel %vm769_vm0, %v3010_v33, %v2994_v52 }
 0x4e5   : > { %v3012_v1 = vpop.permute.xlu0 %3011  ;;  %3509 = vrot.lane.b32.xlu1 %v13818_v8, %s19914_s1  ;;  %v3053_v6 = vmul.f32 %v13986_v50, %v3031_v62  ;;  %v3054_v24 = vmul.f32 %v13989_v22, %v3023_v55 }
 0x4e6   : > { %v3024_v28 = vsel %vm769_vm0, %v2996_v26, %v3012_v1  ;;  %v3032_v29 = vsel %vm769_vm0, %v3012_v1, %v2996_v26 }
 0x4e7   : > { %v3055_v34 = vmul.f32 %v13986_v50, %v3032_v29  ;;  %v3056_v32 = vmul.f32 %v13989_v22, %v3024_v28  ;;  %3499 = vrot.lane.b32.xlu0 %v13846_v48, %s19914_s1  ;;  %v14078_v52 = vpop.permute.xlu1 %3101 }
 0x4e9   : > { %v3067_v33 = vpack.c.bf16 %v3055_v34, %v3053_v6  ;;  %v14080_v23 = vpop.permute.xlu0 %3103  ;;  %3497 = vrot.lane.b32.xlu1 %v13842_v42, %s19914_s1  ;;  %v3068_v26 = vpack.c.bf16 %v3056_v32, %v3054_v24 }
 0x4eb   : > { %3515 = vrot.lane.b32.xlu0 %v13866_v21, %s19914_s1  ;;  %4027 = vmatprep.subr.bf16.mxu0 %v3068_v26  ;;  %v14086_v55 = vpop.permute.xlu1 %3193 }
 0x4ec   : > { %4028 = vmatpush1.bf16.msra.mxu0 %v3067_v33 }
 0x4ed   : > { %v14088_v62 = vpop.permute.xlu0 %3195  ;;  %3513 = vrot.lane.b32.xlu1 %v13862_v31, %s19914_s1 }
 0x4ef   : > { %3503 = vrot.lane.b32.xlu0 %v13886_v11, %s19914_s1  ;;  %v14094_v34 = vpop.permute.xlu1 %3285 }
 0x4f0   : > { %19968 = vst [vmem:[#allocation27_spill] sm:$0xff] %v14094_v34  ;;  %v3113_v34 = vsel %vm822_vm1, %v13958_v30, %v14007_v3 }
 0x4f1   : > { %v14096_v6 = vpop.permute.xlu0 %3287  ;;  %3501 = vrot.lane.b32.xlu1 %v13882_v59, %s19914_s1 }
 0x4f2   : > { %19969 = vst [vmem:[#allocation28_spill] sm:$0xff] %v14096_v6  ;;  %v3122_v6 = vsel %vm822_vm1, %v14009_v57, %v13960_v53 }
 0x4f3   : > { %3519 = vrot.lane.b32.xlu0 %v13906_v61, %s19914_s1  ;;  %v2998_v32 = vpop.permute.xlu1 %2997 }
 0x4f5   : > { %v3000_v24 = vpop.permute.xlu0 %2999  ;;  %3517 = vrot.lane.b32.xlu1 %v13902_v7, %s19914_s1 }
 0x4f7   : > { %3507 = vrot.lane.b32.xlu0 %v13926_v19, %s19914_s1  ;;  %v14106_v1 = vpop.permute.xlu1 %3089 }
 0x4f9   : > { %v14108_v28 = vpop.permute.xlu0 %3091  ;;  %3505 = vrot.lane.b32.xlu1 %v13922_v38, %s19914_s1 }
 0x4fb   : > { %3587 = vrot.lane.b32.xlu0 %v13802_v56, %s19919_s28  ;;  %v14114_v29 = vpop.permute.xlu1 %3181 }
 0x4fd   : > { %v14116_v33 = vpop.permute.xlu0 %3183  ;;  %3521 = vrot.lane.b32.xlu1 %v13940_v39, %s19914_s1 }
 0x4ff   : > { %3431 = vrot.lane.b32.xlu0 %v13944_v10, %s19910_s27  ;;  %v14122_v26 = vpop.permute.xlu1 %3273 }
 0x500   : > { %19970 = vst [vmem:[#allocation29_spill] sm:$0xff] %v14122_v26  ;;  %v3114_v26 = vsel %vm822_vm1, %v13960_v53, %v14009_v57 }
 0x501   : > { %v14124_v37 = vpop.permute.xlu0 %3275  ;;  %3585 = vrot.lane.b32.xlu1 %v13800_v27, %s19919_s28 }
 0x502   : > { %19971 = vst [vmem:[#allocation30_spill] sm:$0xff] %v14124_v37 }
 0x503   : > { %3603 = vrot.lane.b32.xlu0 %v13822_v47, %s19919_s28  ;;  %v3014_v36 = vpop.permute.xlu1 %3013 }
 0x504   : > { %v3025_v18 = vsel %vm769_vm0, %v2998_v32, %v3014_v36  ;;  %v3033_v0 = vsel %vm769_vm0, %v3014_v36, %v2998_v32 }
 0x505   : > { %v3016_v40 = vpop.permute.xlu0 %3015  ;;  %3601 = vrot.lane.b32.xlu1 %v13818_v8, %s19919_s28  ;;  %v3057_v4 = vmul.f32 %v13986_v50, %v3033_v0  ;;  %v3058_v46 = vmul.f32 %v13989_v22, %v3025_v18 }
 0x506   : > { %v3026_v41 = vsel %vm769_vm0, %v3000_v24, %v3016_v40  ;;  %v3034_v17 = vsel %vm769_vm0, %v3016_v40, %v3000_v24 }
 0x507   : > { %v3059_v44 = vmul.f32 %v13986_v50, %v3034_v17  ;;  %v3060_v2 = vmul.f32 %v13989_v22, %v3026_v41  ;;  %3591 = vrot.lane.b32.xlu0 %v13846_v48, %s19919_s28  ;;  %v14146_v36 = vpop.permute.xlu1 %3105 }
 0x509   : > { %v3069_v32 = vpack.c.bf16 %v3059_v44, %v3057_v4  ;;  %v14148_v60 = vpop.permute.xlu0 %3107  ;;  %3589 = vrot.lane.b32.xlu1 %v13842_v42, %s19919_s28  ;;  %v3070_v40 = vpack.c.bf16 %v3060_v2, %v3058_v46 }
 0x50b   : > { %3607 = vrot.lane.b32.xlu0 %v13866_v21, %s19919_s28  ;;  %4029 = vmatprep.subr.bf16.mxu0 %v3070_v40  ;;  %v14154_v0 = vpop.permute.xlu1 %3197 }
 0x50c   : > { %4030 = vmatpush1.bf16.msra.mxu0 %v3069_v32  ;;  %v11020_v32 = vld [vmem:[%s19906_s0 + $0x2] sm:$0x3] }
 0x50d   : > { %v14156_v17 = vpop.permute.xlu0 %3199  ;;  %3605 = vrot.lane.b32.xlu1 %v13862_v31, %s19919_s28  ;;  %v14198_v37 = vrot.slane %v11020_v32, %v12328_v14  ;;  %v3134_v57 = vrot.slane %v11020_v32, %v12337_v16 }
 0x50f   : > { %3523 = vrot.lane.b32.xlu0 %v13944_v10, %s19914_s1  ;;  %v14162_v44 = vpop.permute.xlu1 %3289 }
 0x510   : > { %19972 = vst [vmem:[#allocation31_spill] sm:$0xff] %v14162_v44 }
 0x511   : > { %v14164_v4 = vpop.permute.xlu0 %3291  ;;  %3593 = vrot.lane.b32.xlu1 %v13882_v59, %s19919_s28 }
 0x512   : > { %19973 = vst [vmem:[#allocation32_spill] sm:$0xff] %v14164_v4 }
 0x513   : > { %3595 = vrot.lane.b32.xlu0 %v13886_v11, %s19919_s28  ;;  %v3002_v2 = vpop.permute.xlu1 %3001 }
 0x515   : > { %v3004_v46 = vpop.permute.xlu0 %3003  ;;  %3609 = vrot.lane.b32.xlu1 %v13902_v7, %s19919_s28 }
 0x517   : > { %3611 = vrot.lane.b32.xlu0 %v13906_v61, %s19919_s28  ;;  %v14174_v41 = vpop.permute.xlu1 %3093 }
 0x519   : > { %v14176_v18 = vpop.permute.xlu0 %3095  ;;  %3597 = vrot.lane.b32.xlu1 %v13922_v38, %s19919_s28 }
 0x51b   : > { %3599 = vrot.lane.b32.xlu0 %v13926_v19, %s19919_s28  ;;  %v14182_v24 = vpop.permute.xlu1 %3185 }
 0x51c   : > { %19974 = vst [vmem:[#allocation33_spill] sm:$0xff] %v14182_v24 }
 0x51d   : > { %v14187_v40 = vpop.permute.xlu0 %3187  ;;  %3613 = vrot.lane.b32.xlu1 %v13940_v39, %s19919_s28 }
 0x51e   : > { %19975 = vst [vmem:[#allocation34_spill] sm:$0xff] %v14187_v40  ;;  %v3144_v40 = vmul.f32 %v14198_v37, %v3114_v26 }
 0x51f   : > { %3615 = vrot.lane.b32.xlu0 %v13944_v10, %s19919_s28  ;;  %v3018_v44 = vpop.permute.xlu1 %3017 }
 0x520   : > { %v3027_v4 = vsel %vm769_vm0, %v3002_v2, %v3018_v44  ;;  %v3035_v15 = vsel %vm769_vm0, %v3018_v44, %v3002_v2 }
 0x521   : > { %v3020_v54 = vpop.permute.xlu0 %3019  ;;  %3677 = vrot.lane.b32.xlu1 %v13800_v27, %s19926_s26  ;;  %v3061_v2 = vmul.f32 %v13986_v50, %v3035_v15  ;;  %v3062_v20 = vmul.f32 %v13989_v22, %v3027_v4  ;;  %v3121_v15 = vsel %vm822_vm1, %v14007_v3, %v13958_v30  ;;  %v3143_v4 = vmul.f32 %v3134_v57, %v3122_v6 }
 0x522   : > { %v3028_v13 = vsel %vm769_vm0, %v3004_v46, %v3020_v54  ;;  %v3036_v44 = vsel %vm769_vm0, %v3020_v54, %v3004_v46  ;;  %v3116_v54 = vsel %vm822_vm1, %v14037_v43, %v14080_v23  ;;  %v3115_v46 = vsel %vm822_vm1, %v14035_v45, %v14078_v52 }
 0x523   : > { %v3063_v24 = vmul.f32 %v13986_v50, %v3036_v44  ;;  %v3064_v27 = vmul.f32 %v13989_v22, %v3028_v13  ;;  %3679 = vrot.lane.b32.xlu0 %v13802_v56, %s19926_s26  ;;  %v14225_v53 = vpop.permute.xlu1 %3277  ;;  %v3142_v50 = vmul.f32 %v14198_v37, %v3113_v34  ;;  %v3124_v30 = vsel %vm822_vm1, %v14080_v23, %v14037_v43 }
 0x524   : > { %v3148_v3 = vmul.f32 %v14198_v37, %v3116_v54  ;;  %v3123_v23 = vsel %vm822_vm1, %v14078_v52, %v14035_v45  ;;  %v3146_v43 = vmul.f32 %v14198_v37, %v3115_v46  ;;  %v3117_v44 = vsel %vm822_vm1, %v14106_v1, %v14146_v36 }
 0x525   : > { %v3071_v13 = vpack.c.bf16 %v3063_v24, %v3061_v2  ;;  %v14237_v22 = vpop.permute.xlu0 %3279  ;;  %3693 = vrot.lane.b32.xlu1 %v13818_v8, %s19926_s26  ;;  %v3072_v26 = vpack.c.bf16 %v3064_v27, %v3062_v20  ;;  %v3158_v24 = vpack.c.bf16 %v3144_v40, %v3142_v50  ;;  %v3141_v27 = vmul.f32 %v3134_v57, %v3121_v15  ;;  %v11021_v50 = vld [vmem:[%s19906_s0 + $0x4] sm:$0x3] }
 0x526   : > { %v3118_v20 = vsel %vm822_vm1, %v14108_v28, %v14148_v60  ;;  %v3147_v40 = vmul.f32 %v3134_v57, %v3124_v30  ;;  %v3126_v45 = vsel %vm822_vm1, %v14148_v60, %v14108_v28  ;;  %v3160_v54 = vpack.c.bf16 %v3148_v3, %v3146_v43 }
 0x527   : > { %3695 = vrot.lane.b32.xlu0 %v13822_v47, %s19926_s26  ;;  %4031 = vmatprep.subr.bf16.mxu0 %v3072_v26  ;;  %v3110_v34 = vpop.permute.xlu1 %3109  ;;  %v3157_v32 = vpack.c.bf16 %v3143_v4, %v3141_v27  ;;  %v3152_v52 = vmul.f32 %v14198_v37, %v3118_v20  ;;  %v3145_v15 = vmul.f32 %v3134_v57, %v3123_v23 }
 0x528   : > { %4032 = vmatpush1.bf16.msra.mxu0 %v3071_v13  ;;  %v3125_v13 = vsel %vm822_vm1, %v14146_v36, %v14106_v1  ;;  %v3150_v60 = vmul.f32 %v14198_v37, %v3117_v44  ;;  %v3151_v4 = vmul.f32 %v3134_v57, %v3126_v45  ;;  %v3206_v46 = vsel %vm876_vm2, %v13968_v35, %v14017_v51 }
 0x529   : > { %v14261_v6 = vpop.permute.xlu0 %3403  ;;  %3681 = vrot.lane.b32.xlu1 %v13842_v42, %s19926_s26  ;;  %4033 = vmatprep.subr.bf16.mxu0 %v3158_v24  ;;  %v3159_v26 = vpack.c.bf16 %v3147_v40, %v3145_v15  ;;  %v14299_v36 = vrot.slane %v11021_v50, %v12328_v14  ;;  %v3149_v3 = vmul.f32 %v3134_v57, %v3125_v13 }
 0x52a   : > { %v3162_v1 = vpack.c.bf16 %v3152_v52, %v3150_v60  ;;  %v3119_v24 = vsel %vm822_vm1, %v14174_v41, %v3110_v34  ;;  %v3127_v27 = vsel %vm822_vm1, %v3110_v34, %v14174_v41  ;;  %v3205_v20 = vsel %vm876_vm2, %v13966_v5, %v14015_v9 }
 0x52b   : > { %3683 = vrot.lane.b32.xlu0 %v13846_v48, %s19926_s26  ;;  %v14276_v2 = vpop.permute.xlu1 %3201  ;;  %v3214_v23 = vsel %vm876_vm2, %v14017_v51, %v13968_v35  ;;  %v3161_v40 = vpack.c.bf16 %v3151_v4, %v3149_v3  ;;  %v3153_v44 = vmul.f32 %v3134_v57, %v3127_v27  ;;  %v3154_v45 = vmul.f32 %v14198_v37, %v3119_v24 }
 0x52c   : > { %4034 = vmatpush1.bf16.msra.mxu0 %v3157_v32  ;;  %v3236_v32 = vmul.f32 %v14299_v36, %v3206_v46  ;;  %v3208_v15 = vsel %vm876_vm2, %v14048_v58, %v14088_v62  ;;  %v3210_v3 = vsel %vm876_vm2, %v14116_v33, %v14156_v17 }
 0x52d   : > { %v14286_v28 = vpop.permute.xlu0 %3419  ;;  %3697 = vrot.lane.b32.xlu1 %v13862_v31, %s19926_s26  ;;  %4035 = vmatprep.subr.bf16.mxu0 %v3160_v54  ;;  %v14331_v54 = vrot.slane %v11021_v50, %v12337_v16 }
 0x52f   : > { %3699 = vrot.lane.b32.xlu0 %v13866_v21, %s19926_s26  ;;  %v14296_v30 = vpop.permute.xlu1 %3293  ;;  %v3235_v60 = vmul.f32 %v14331_v54, %v3214_v23  ;;  %v3209_v23 = vsel %vm876_vm2, %v14114_v29, %v14154_v0 }
 0x530   : > { %4036 = vmatpush1.bf16.msra.mxu0 %v3159_v26  ;;  %v3207_v26 = vsel %vm876_vm2, %v14046_v63, %v14086_v55 }
 0x531   : > { %v3112_v43 = vpop.permute.xlu0 %3111  ;;  %3685 = vrot.lane.b32.xlu1 %v13882_v59, %s19926_s26  ;;  %4037 = vmatprep.subr.bf16.mxu0 %v3162_v1 }
 0x532   : > { %v3120_v41 = vsel %vm822_vm1, %v14176_v18, %v3112_v43  ;;  %v3128_v34 = vsel %vm822_vm1, %v3112_v43, %v14176_v18  ;;  %v3213_v18 = vsel %vm876_vm2, %v14015_v9, %v13966_v5  ;;  %v3216_v5 = vsel %vm876_vm2, %v14088_v62, %v14048_v58 }
 0x533   : > { %v3155_v35 = vmul.f32 %v3134_v57, %v3128_v34  ;;  %v3156_v51 = vmul.f32 %v14198_v37, %v3120_v41  ;;  %3687 = vrot.lane.b32.xlu0 %v13886_v11, %s19926_s26  ;;  %v14328_v52 = vpop.permute.xlu1 %3401  ;;  %v3234_v37 = vmul.f32 %v14299_v36, %v3205_v20  ;;  %v3240_v9 = vmul.f32 %v14299_v36, %v3208_v15  ;;  %v11022_v41 = vld [vmem:[%s19906_s0 + $0x6] sm:$0x3] }
 0x534   : > { %4038 = vmatpush1.bf16.msra.mxu0 %v3161_v40  ;;  %v3233_v1 = vmul.f32 %v14331_v54, %v3213_v18  ;;  %v3215_v58 = vsel %vm876_vm2, %v14086_v55, %v14046_v63  ;;  %v3238_v62 = vmul.f32 %v14299_v36, %v3207_v26  ;;  %v3239_v20 = vmul.f32 %v14331_v54, %v3216_v5  ;;  %v19978_v26 = vld [vmem:[#allocation24_spill] sm:$0xff]  ;;  %v19979_v5 = vld [vmem:[#allocation23_spill] sm:$0xff] }
 0x535   : > { %v3163_v57 = vpack.c.bf16 %v3155_v35, %v3153_v44  ;;  %v14342_v13 = vpop.permute.xlu0 %3407  ;;  %3701 = vrot.lane.b32.xlu1 %v13902_v7, %s19926_s26  ;;  %v3164_v50 = vpack.c.bf16 %v3156_v51, %v3154_v45  ;;  %v3250_v46 = vpack.c.bf16 %v3236_v32, %v3234_v37  ;;  %v3218_v63 = vsel %vm876_vm2, %v14156_v17, %v14116_v33  ;;  %v3865_v35 = vld [vmem:[%s19976_s8] sm:$0xff] }
 0x536   : > { %v3249_v27 = vpack.c.bf16 %v3235_v60, %v3233_v1  ;;  %v3244_v55 = vmul.f32 %v14299_v36, %v3210_v3  ;;  %v3252_v32 = vpack.c.bf16 %v3240_v9, %v3238_v62  ;;  %v3237_v40 = vmul.f32 %v14331_v54, %v3215_v58  ;;  %v19977_v37 = vld [vmem:[#allocation33_spill] sm:$0xff]  ;;  %v3866_v60 = vld [vmem:[%s19976_s8 + $0x8] sm:$0xff] }
 0x537   : > { %3703 = vrot.lane.b32.xlu0 %v13906_v61, %s19926_s26  ;;  %4039 = vmatprep.subr.bf16.mxu0 %v3164_v50  ;;  %v14358_v4 = vpop.permute.xlu1 %3417  ;;  %v3217_v33 = vsel %vm876_vm2, %v14154_v0, %v14114_v29  ;;  %v3242_v17 = vmul.f32 %v14299_v36, %v3209_v23  ;;  %v3243_v45 = vmul.f32 %v14331_v54, %v3218_v63  ;;  %v19980_v58 = vld [vmem:[#allocation34_spill] sm:$0xff] }
 0x538   : > { %4040 = vmatpush1.bf16.msra.mxu0 %v3163_v57  ;;  %v3251_v44 = vpack.c.bf16 %v3239_v20, %v3237_v40  ;;  %v3298_v29 = vsel %vm930_vm3, %v13979_v25, %v14025_v49  ;;  %v14414_v15 = vrot.slane %v11022_v41, %v12328_v14  ;;  %v3241_v18 = vmul.f32 %v14331_v54, %v3217_v33  ;;  %v3867_v20 = vld [vmem:[%s19976_s8 + $0x10] sm:$0xff]  ;;  %v19982_v33 = vld [vmem:[#allocation26_spill] sm:$0xff] }
 0x539   : > { %v14370_v24 = vpop.permute.xlu0 %3423  ;;  %3689 = vrot.lane.b32.xlu1 %v13922_v38, %s19926_s26  ;;  %4041 = vmatprep.subr.bf16.mxu0 %v3250_v46  ;;  %v3254_v51 = vpack.c.bf16 %v3244_v55, %v3242_v17  ;;  %v3211_v57 = vsel %vm876_vm2, %v19977_v37, %v14276_v2  ;;  %v3219_v50 = vsel %vm876_vm2, %v14276_v2, %v19977_v37  ;;  %v19981_v40 = vld [vmem:[#allocation28_spill] sm:$0xff] }
 0x53a   : > { %v3297_v9 = vsel %vm930_vm3, %v19979_v5, %v19978_v26  ;;  %v3306_v46 = vsel %vm930_vm3, %v14025_v49, %v13979_v25  ;;  %v3328_v2 = vmul.f32 %v14414_v15, %v3298_v29  ;;  %v3253_v3 = vpack.c.bf16 %v3243_v45, %v3241_v18  ;;  %v19984_v18 = vld [vmem:[#allocation25_spill] sm:$0xff] }
 0x53b   : > { %3691 = vrot.lane.b32.xlu0 %v13926_v19, %s19926_s26  ;;  %v14386_v43 = vpop.permute.xlu1 %3405  ;;  %v3245_v25 = vmul.f32 %v14331_v54, %v3219_v50  ;;  %v3246_v49 = vmul.f32 %v14299_v36, %v3211_v57  ;;  %v3300_v17 = vsel %vm930_vm3, %v19982_v33, %v19981_v40  ;;  %v4260_v57 = vld [vmem:[%s19760_s10] sm:$0xff]  ;;  %v3308_v50 = vsel %vm930_vm3, %v19981_v40, %v19982_v33 }
 0x53c   : > { %4042 = vmatpush1.bf16.msra.mxu0 %v3249_v27  ;;  %v3869_v40 = vld [vmem:[%s19976_s8 + $0x20] sm:$0xff] }
 0x53d   : > { %v14397_v34 = vpop.permute.xlu0 %3411  ;;  %3705 = vrot.lane.b32.xlu1 %v13940_v39, %s19926_s26  ;;  %4043 = vmatprep.subr.bf16.mxu0 %v3252_v32  ;;  %v14453_v32 = vrot.slane %v11022_v41, %v12337_v16 }
 0x53f   : > { %3707 = vrot.lane.b32.xlu0 %v13944_v10, %s19926_s26  ;;  %v14411_v0 = vpop.permute.xlu1 %3421  ;;  %v3327_v29 = vmul.f32 %v14453_v32, %v3306_v46  ;;  %v19985_v46 = vld [vmem:[#allocation32_spill] sm:$0xff] }
 0x540   : > { %4044 = vmatpush1.bf16.msra.mxu0 %v3251_v44  ;;  %v3868_v44 = vld [vmem:[%s19976_s8 + $0x18] sm:$0xff] }
 0x541   : > { %v3204_v1 = vpop.permute.xlu0 %3203  ;;  %3875 = vperm.xlu1 %11770, %v3865_v35   ;;  %4045 = vmatprep.subr.bf16.mxu0 %v3254_v51  ;;  %v19983_v51 = vld [vmem:[#allocation27_spill] sm:$0xff] }
 0x542   : > { %v3212_v62 = vsel %vm876_vm2, %v19980_v58, %v3204_v1  ;;  %v3220_v27 = vsel %vm876_vm2, %v3204_v1, %v19980_v58  ;;  %v3299_v37 = vsel %vm930_vm3, %v19984_v18, %v19983_v51  ;;  %v19986_v1 = vld [vmem:[#allocation30_spill] sm:$0xff] }
 0x543   : > { %v3247_v23 = vmul.f32 %v14331_v54, %v3220_v27  ;;  %v3248_v63 = vmul.f32 %v14299_v36, %v3212_v62  ;;  %3880 = vperm.xlu0 %11769, %v3866_v60   ;;  %v14450_v55 = vpop.permute.xlu1 %3409  ;;  %v3305_v36 = vsel %vm930_vm3, %v19978_v26, %v19979_v5  ;;  %v3326_v54 = vmul.f32 %v14414_v15, %v3297_v9  ;;  %v4261_v58 = vld [vmem:[%s19760_s10 + $0x8] sm:$0xff] }
 0x544   : > { %4046 = vmatpush1.bf16.msra.mxu0 %v3253_v3  ;;  %v3332_v60 = vmul.f32 %v14414_v15, %v3300_v17  ;;  %v3325_v9 = vmul.f32 %v14453_v32, %v3305_v36  ;;  %v3302_v3 = vsel %vm930_vm3, %v19986_v1, %v19985_v46  ;;  %v3307_v62 = vsel %vm930_vm3, %v19983_v51, %v19984_v18  ;;  %v11023_v18 = vld [vmem:[%s19906_s0 + $0x8] sm:$0x3] }
 0x545   : > { %v3255_v45 = vpack.c.bf16 %v3247_v23, %v3245_v25  ;;  %v14467_v41 = vpop.permute.xlu0 %3427  ;;  %3885 = vperm.xlu1 %11770, %v3867_v20   ;;  %v3256_v35 = vpack.c.bf16 %v3248_v63, %v3246_v49  ;;  %v3342_v5 = vpack.c.bf16 %v3328_v2, %v3326_v54  ;;  %v3330_v27 = vmul.f32 %v14414_v15, %v3299_v37  ;;  %v19987_v49 = vld [vmem:[#allocation31_spill] sm:$0xff]  ;;  %v19988_v23 = vld [vmem:[#allocation29_spill] sm:$0xff] }
 0x546   : > { %v3341_v20 = vpack.c.bf16 %v3327_v29, %v3325_v9  ;;  %v3331_v25 = vmul.f32 %v14453_v32, %v3308_v50  ;;  %v3301_v63 = vsel %vm930_vm3, %v19988_v23, %v19987_v49  ;;  %v3310_v33 = vsel %vm930_vm3, %v19985_v46, %v19986_v1  ;;  %v3870_v50 = vld [vmem:[%s19976_s8 + $0x28] sm:$0xff] }
 0x547   : > { %3890 = vperm.xlu0 %11769, %v3868_v44   ;;  %4047 = vmatprep.subr.bf16.mxu0 %v3256_v35  ;;  %v14482_v26 = vpop.permute.xlu1 %3425  ;;  %v3336_v17 = vmul.f32 %v14414_v15, %v3302_v3  ;;  %v3344_v36 = vpack.c.bf16 %v3332_v60, %v3330_v27  ;;  %v3329_v54 = vmul.f32 %v14453_v32, %v3307_v62  ;;  %v4263_v3 = vld [vmem:[%s19760_s10 + $0x18] sm:$0xff] }
 0x548   : > { %4048 = vmatpush1.bf16.msra.mxu0 %v3255_v45  ;;  %v4262_v45 = vld [vmem:[%s19760_s10 + $0x10] sm:$0xff]  ;;  %v3309_v35 = vsel %vm930_vm3, %v19987_v49, %v19988_v23  ;;  %v3334_v29 = vmul.f32 %v14414_v15, %v3301_v63  ;;  %v3303_v46 = vsel %vm930_vm3, %v14225_v53, %v14296_v30  ;;  %v3311_v1 = vsel %vm930_vm3, %v14296_v30, %v14225_v53 }
 0x549   : > { %v14497_v2 = vpop.permute.xlu0 %3415  ;;  %4270 = vperm.xlu1 %11770, %v4260_v57   ;;  %4049 = vmatprep.subr.bf16.mxu0 %v3342_v5  ;;  %v3343_v37 = vpack.c.bf16 %v3331_v25, %v3329_v54  ;;  %v3335_v57 = vmul.f32 %v14453_v32, %v3310_v33  ;;  %v3333_v9 = vmul.f32 %v14453_v32, %v3309_v35  ;;  %v3871_v30 = vld [vmem:[%s19976_s8 + $0x30] sm:$0xff] }
 0x54a   : > { %v3346_v5 = vpack.c.bf16 %v3336_v17, %v3334_v29  ;;  %v3337_v49 = vmul.f32 %v14453_v32, %v3311_v1  ;;  %v3338_v23 = vmul.f32 %v14414_v15, %v3303_v46  ;;  %v14570_v17 = vrot.slane %v11023_v18, %v12337_v16  ;;  %v4266_v46 = vld [vmem:[%s19760_s10 + $0x30] sm:$0xff] }
 0x54b   : > { %4275 = vperm.xlu0 %11769, %v4261_v58   ;;  %v14512_v44 = vpop.permute.xlu1 %3413  ;;  %v14547_v58 = vrot.slane %v11023_v18, %v12328_v14  ;;  %v3345_v27 = vpack.c.bf16 %v3335_v57, %v3333_v9  ;;  %v11819_v18 = vld [vmem:[%s19965_s4] ss:$20 sps:$4 sm:$0xff]  }
 0x54c   : > { %4050 = vmatpush1.bf16.msra.mxu0 %v3341_v20  ;;  %v19989_v57 = vld [vmem:[#allocation22_spill] sm:$0xff]  ;;  %v3375_v1 = vmul.f32 %v14570_v17, %v13846_v48 }
 0x54d   : > { %v14523_v51 = vpop.permute.xlu0 %3495  ;;  %3895 = vperm.xlu1 %11770, %v3869_v40   ;;  %4051 = vmatprep.subr.bf16.mxu0 %v3344_v36  ;;  %v3372_v25 = vmul.f32 %v14547_v58, %v13822_v47  ;;  %v3374_v9 = vmul.f32 %v14547_v58, %v13862_v31  ;;  %v4267_v31 = vld [vmem:[%s19760_s10 + $0x38] sm:$0xff]  ;;  %v3378_v48 = vmul.f32 %v14547_v58, %v13902_v7 }
 0x54e   : > { %v11824_v7 = vld [vmem:[%s19965_s4 + $0x28] ss:$20 sps:$4 sm:$0xff]  }
 0x54f   : > { %4280 = vperm.xlu0 %11769, %v4262_v45   ;;  %v14532_v60 = vpop.permute.xlu1 %3429  ;;  %v3371_v45 = vmul.f32 %v14570_v17, %v13802_v56  ;;  %v3369_v56 = vmul.f32 %v14570_v17, %v19989_v57  ;;  %v3434_v57 = vsel %vm1013_vm4, %v14261_v6, %v14286_v28 }
 0x550   : > { %4052 = vmatpush1.bf16.msra.mxu0 %v3343_v37  ;;  %v3376_v37 = vmul.f32 %v14547_v58, %v13866_v21 }
 0x551   : > { %v3296_v62 = vpop.permute.xlu0 %3295  ;;  %3900 = vperm.xlu1 %11770, %v3870_v50   ;;  %4053 = vmatprep.subr.bf16.mxu0 %v3346_v5  ;;  %v11822_v50 = vld [vmem:[%s19965_s4 + $0x2c] ss:$20 sps:$4 sm:$0xff]   ;;  %v3385_v21 = vpack.c.bf16 %v3371_v45, %v3369_v56 }
 0x552   : > { %v3304_v20 = vsel %vm930_vm3, %v14237_v22, %v3296_v62  ;;  %v3312_v53 = vsel %vm930_vm3, %v3296_v62, %v14237_v22  ;;  %v4264_v22 = vld [vmem:[%s19760_s10 + $0x20] sm:$0xff]  ;;  %v3388_v62 = vpack.c.bf16 %v3376_v37, %v3374_v9  ;;  %v1565_v45 = vld [vmem:[%s19759_s9 + $0x8] sm:$0xff] }
 0x553   : > { %v3339_v63 = vmul.f32 %v14453_v32, %v3312_v53  ;;  %v3340_v40 = vmul.f32 %v14414_v15, %v3304_v20  ;;  %4285 = vperm.xlu0 %11769, %v4263_v3   ;;  %v14564_v33 = vpop.permute.xlu1 %3493  ;;  %v3370_v32 = vmul.f32 %v14547_v58, %v13818_v8  ;;  %v3872_v15 = vld [vmem:[%s19976_s8 + $0x38] sm:$0xff]  ;;  %v4265_v8 = vld [vmem:[%s19760_s10 + $0x28] sm:$0xff]  ;;  %v3373_v20 = vmul.f32 %v14570_v17, %v13842_v42 }
 0x554   : > { %4054 = vmatpush1.bf16.msra.mxu0 %v3345_v27  ;;  %v3380_v27 = vmul.f32 %v14547_v58, %v13906_v61  ;;  %v11024_v61 = vld [vmem:[%s19906_s0 + $0xa] sm:$0x3] }
 0x555   : > { %v3347_v47 = vpack.c.bf16 %v3339_v63, %v3337_v49  ;;  %v14572_v36 = vpop.permute.xlu0 %3511  ;;  %3905 = vperm.xlu1 %11770, %v3871_v30   ;;  %v3348_v54 = vpack.c.bf16 %v3340_v40, %v3338_v23  ;;  %v3386_v29 = vpack.c.bf16 %v3372_v25, %v3370_v32  ;;  %v3387_v30 = vpack.c.bf16 %v3375_v1, %v3373_v20  ;;  %v4350_v25 = vld [vmem:[#allocation3] sm:$0x1] }
 0x556   : > { %v3379_v49 = vmul.f32 %v14570_v17, %v13886_v11  ;;  %v3390_v42 = vpack.c.bf16 %v3380_v27, %v3378_v48  ;;  %v3384_v63 = vmul.f32 %v14547_v58, %v13944_v10  ;;  %v3441_v40 = vsel %vm1013_vm4, %v14358_v4, %v14328_v52  ;;  %v1564_v11 = vld [vmem:[%s19759_s9] sm:$0xff]  ;;  %v11825_v10 = vld [vmem:[%s19965_s4 + $0x54] ss:$20 sps:$4 sm:$0xff]  }
 0x557   : > { %4290 = vperm.xlu0 %11769, %v4264_v22   ;;  %4055 = vmatprep.subr.bf16.mxu0 %v3348_v54  ;;  %v14581_v35 = vpop.permute.xlu1 %3509  ;;  %v3377_v22 = vmul.f32 %v14570_v17, %v13882_v59  ;;  %v3382_v32 = vmul.f32 %v14547_v58, %v13940_v39  ;;  %v3436_v20 = vsel %vm1013_vm4, %v14342_v13, %v14370_v24 }
 0x558   : > { %4056 = vmatpush1.bf16.msra.mxu0 %v3347_v47  ;;  %v14643_v47 = vrot.slane %v11024_v61, %v12328_v14 }
 0x559   : > { %v14596_v5 = vpop.permute.xlu0 %3499  ;;  %3910 = vperm.xlu1 %11770, %v3872_v15   ;;  %4098 = vmatprep.subr.bf16.mxu0 %v3386_v29  ;;  %v3442_v15 = vsel %vm1013_vm4, %v14286_v28, %v14261_v6  ;;  %v3389_v59 = vpack.c.bf16 %v3379_v49, %v3377_v22  ;;  %v3383_v29 = vmul.f32 %v14570_v17, %v13926_v19 }
 0x55a   : > { %v3462_v39 = vmul.f32 %v14643_v47, %v3441_v40  ;;  %v3392_v37 = vpack.c.bf16 %v3384_v63, %v3382_v32  ;;  %v3443_v19 = vsel %vm1013_vm4, %v14411_v0, %v14386_v43  ;;  %v3464_v56 = vmul.f32 %v14643_v47, %v3442_v15  ;;  %v1571_v15 = vld [vmem:[%s19759_s9 + $0x38] sm:$0xff] }
 0x55b   : > { %4295 = vperm.xlu0 %11769, %v4265_v8   ;;  %v14605_v3 = vpop.permute.xlu1 %3497  ;;  %4058 = vmatmul.mubr.bf16.vlgmr.msra.gmra.mrb[16].mxu0 %v11819_v18  ;;  %v3433_v18 = vsel %vm1013_vm4, %v14328_v52, %v14358_v4  ;;  %v14666_v8 = vrot.slane %v11024_v61, %v12337_v16  ;;  %v1566_v52 = vld [vmem:[%s19759_s9 + $0x10] sm:$0xff]  ;;  %v3381_v4 = vmul.f32 %v14570_v17, %v13922_v38  ;;  %v1567_v17 = vld [vmem:[%s19759_s9 + $0x18] sm:$0xff] }
 0x55c   : > { %4099 = vmatpush1.bf16.msra.mxu0 %v3385_v21  ;;  %4067 = vmatprep.mubr.bf16.mxu0 %v11822_v50  ;;  %v3444_v21 = vsel %vm1013_vm4, %v14370_v24, %v14342_v13  ;;  %v3435_v6 = vsel %vm1013_vm4, %v14386_v43, %v14411_v0  ;;  %v3466_v28 = vmul.f32 %v14643_v47, %v3443_v19  ;;  %v1568_v43 = vld [vmem:[%s19759_s9 + $0x20] sm:$0xff]  ;;  %v11828_v0 = vld [vmem:[%s19965_s4 + $0x7c] ss:$20 sps:$4 sm:$0xff]   ;;  %v1569_v13 = vld [vmem:[%s19759_s9 + $0x28] sm:$0xff] }
 0x55d   : > { %v14614_v53 = vpop.permute.xlu0 %3515  ;;  %4300 = vperm.xlu1 %11770, %v4266_v46   ;;  %4100 = vmatprep.subr.bf16.mxu0 %v3388_v62  ;;  %v3461_v9 = vmul.f32 %v14666_v8, %v3433_v18  ;;  %v3391_v38 = vpack.c.bf16 %v3383_v29, %v3381_v4  ;;  %v3478_v1 = vpack.c.bf16 %v3464_v56, %v3462_v39  ;;  %v11827_v62 = vld [vmem:[%s19965_s4 + $0x50] ss:$20 sps:$4 sm:$0xff]   ;;  %v11830_v39 = vld [vmem:[%s19965_s4 + $0x78] ss:$20 sps:$4 sm:$0xff]  }
 0x55e   : > { %v3463_v27 = vmul.f32 %v14666_v8, %v3434_v57  ;;  %v3468_v48 = vmul.f32 %v14643_v47, %v3444_v21  ;;  %v3446_v49 = vsel %vm1013_vm4, %v14467_v41, %v14397_v34  ;;  %v3467_v40 = vmul.f32 %v14666_v8, %v3436_v20  ;;  %v11833_v19 = vld [vmem:[%s19965_s4 + $0xc] ss:$20 sps:$4 sm:$0xff]  }
 0x55f   : > { %4305 = vperm.xlu0 %11769, %v4267_v31   ;;  %v14623_v23 = vpop.permute.xlu1 %3513  ;;  %v3445_v31 = vsel %vm1013_vm4, %v14482_v26, %v14450_v55  ;;  %v3534_v56 = vsel %vm1067_vm5, %v14572_v36, %v14523_v51 }
 0x560   : > { %4101 = vmatpush1.bf16.msra.mxu0 %v3387_v30  ;;  %v3477_v30 = vpack.c.bf16 %v3463_v27, %v3461_v9  ;;  %v3470_v24 = vmul.f32 %v14643_v47, %v3445_v31 }
 0x561   : > { %v14645_v54 = vpop.permute.xlu0 %3503  ;;  %4353 = vperm.xlu1 %11770, %v4350_v25   ;;  %4102 = vmatprep.subr.bf16.mxu0 %v3390_v42  ;;  %v3465_v25 = vmul.f32 %v14666_v8, %v3435_v6  ;;  %v3437_v42 = vsel %vm1013_vm4, %v14450_v55, %v14482_v26  ;;  %v1570_v55 = vld [vmem:[%s19759_s9 + $0x30] sm:$0xff]  ;;  %v3472_v26 = vmul.f32 %v14643_v47, %v3446_v49 }
 0x562   : > { %v3469_v22 = vmul.f32 %v14666_v8, %v3437_v42 }
 0x563   : > { %1574 = vperm.xlu0 %11769, %v1564_v11   ;;  %v14663_v58 = vpop.permute.xlu1 %3501  ;;  %4068 = vmatmul.mubr.bf16.gmra.mrb[20].mxu0 %v11824_v7  ;;  %v3480_v7 = vpack.c.bf16 %v3468_v48, %v3466_v28  ;;  %v3438_v11 = vsel %vm1013_vm4, %v14397_v34, %v14467_v41  ;;  %v3479_v32 = vpack.c.bf16 %v3467_v40, %v3465_v25  ;;  %v11025_v41 = vld [vmem:[%s19906_s0 + $0xc] sm:$0x3] }
 0x564   : > { %4103 = vmatpush1.bf16.msra.mxu0 %v3389_v59  ;;  %4077 = vmatprep.mubr.bf16.mxu0 %v11825_v10  ;;  %v3439_v34 = vsel %vm1013_vm4, %v14512_v44, %v14532_v60  ;;  %v3471_v59 = vmul.f32 %v14666_v8, %v3438_v11  ;;  %v3482_v18 = vpack.c.bf16 %v3472_v26, %v3470_v24 }
 0x565   : > { %v14682_v50 = vpop.permute.xlu0 %3519  ;;  %1579 = vperm.xlu1 %11770, %v1565_v45   ;;  %4104 = vmatprep.subr.bf16.mxu0 %v3392_v37  ;;  %v3447_v45 = vsel %vm1013_vm4, %v14532_v60, %v14512_v44  ;;  %v3533_v37 = vsel %vm1067_vm5, %v14581_v35, %v14564_v33  ;;  %v3473_v44 = vmul.f32 %v14666_v8, %v3439_v34 }
 0x566   : > { %v14776_v60 = vrot.slane %v11025_v41, %v12328_v14  ;;  %v3474_v57 = vmul.f32 %v14643_v47, %v3447_v45  ;;  %v3528_v25 = vsel %vm1067_vm5, %v14596_v5, %v14614_v53  ;;  %v3530_v11 = vsel %vm1067_vm5, %v14645_v54, %v14682_v50 }
 0x567   : > { %1584 = vperm.xlu0 %11769, %v1566_v52   ;;  %v14697_v46 = vpop.permute.xlu1 %3517  ;;  %v3481_v52 = vpack.c.bf16 %v3471_v59, %v3469_v22 }
 0x568   : > { %4105 = vmatpush1.bf16.msra.mxu0 %v3391_v38  ;;  %v3525_v38 = vsel %vm1067_vm5, %v14564_v33, %v14581_v35  ;;  %v3526_v33 = vsel %vm1067_vm5, %v14523_v51, %v14572_v36  ;;  %v3556_v35 = vmul.f32 %v14776_v60, %v3534_v56  ;;  %v3529_v24 = vsel %vm1067_vm5, %v14663_v58, %v14697_v46 }
 0x569   : > { %v14718_v61 = vpop.permute.xlu0 %3507  ;;  %1589 = vperm.xlu1 %11770, %v1567_v17   ;;  %4106 = vmatprep.subr.bf16.mxu0 %v3478_v1  ;;  %v3554_v17 = vmul.f32 %v14776_v60, %v3533_v37 }
 0x56b   : > { %1594 = vperm.xlu0 %11769, %v1568_v43   ;;  %v14733_v63 = vpop.permute.xlu1 %3505  ;;  %4078 = vmatmul.mubr.bf16.gmra.mrb[24].mxu0 %v11827_v62  ;;  %v3546_v62 = vrot.slane %v11025_v41, %v12337_v16  ;;  %v3536_v43 = vsel %vm1067_vm5, %v14614_v53, %v14596_v5  ;;  %v3570_v51 = vpack.c.bf16 %v3556_v35, %v3554_v17 }
 0x56c   : > { %4107 = vmatpush1.bf16.msra.mxu0 %v3477_v30  ;;  %4087 = vmatprep.mubr.bf16.mxu0 %v11828_v0  ;;  %v3527_v0 = vsel %vm1067_vm5, %v14605_v3, %v14623_v23  ;;  %v3537_v30 = vsel %vm1067_vm5, %v14697_v46, %v14663_v58  ;;  %v3560_v49 = vmul.f32 %v14776_v60, %v3536_v43  ;;  %v11026_v46 = vld [vmem:[%s19906_s0 + $0xe] sm:$0x3] }
 0x56d   : > { %v14745_v10 = vpop.permute.xlu0 %3587  ;;  %1599 = vperm.xlu1 %11770, %v1569_v13   ;;  %4108 = vmatprep.subr.bf16.mxu0 %v3480_v7  ;;  %v3553_v31 = vmul.f32 %v3546_v62, %v3525_v38  ;;  %v3555_v36 = vmul.f32 %v3546_v62, %v3526_v33  ;;  %v3557_v42 = vmul.f32 %v3546_v62, %v3527_v0 }
 0x56e   : > { %v3538_v13 = vsel %vm1067_vm5, %v14682_v50, %v14645_v54  ;;  %v3562_v7 = vmul.f32 %v14776_v60, %v3537_v30  ;;  %v3559_v53 = vmul.f32 %v3546_v62, %v3528_v25  ;;  %v3561_v26 = vmul.f32 %v3546_v62, %v3529_v24 }
 0x56f   : > { %1604 = vperm.xlu0 %11769, %v1570_v55   ;;  %v14762_v29 = vpop.permute.xlu1 %3521  ;;  %v3564_v55 = vmul.f32 %v14776_v60, %v3538_v13  ;;  %v3563_v34 = vmul.f32 %v3546_v62, %v3530_v11 }
 0x570   : > { %4109 = vmatpush1.bf16.msra.mxu0 %v3479_v32  ;;  %v3571_v32 = vpack.c.bf16 %v3559_v53, %v3557_v42  ;;  %v3531_v58 = vsel %vm1067_vm5, %v14733_v63, %v14762_v29  ;;  %v3539_v54 = vsel %vm1067_vm5, %v14762_v29, %v14733_v63 }
 0x571   : > { %v3432_v4 = vpop.permute.xlu0 %3431  ;;  %1609 = vperm.xlu1 %11770, %v1571_v15   ;;  %4110 = vmatprep.subr.bf16.mxu0 %v3482_v18  ;;  %v3574_v41 = vpack.c.bf16 %v3564_v55, %v3562_v7  ;;  %v3573_v59 = vpack.c.bf16 %v3563_v34, %v3561_v26  ;;  %v3565_v45 = vmul.f32 %v3546_v62, %v3531_v58 }
 0x572   : > { %v3440_v9 = vsel %vm1013_vm4, %v14497_v2, %v3432_v4  ;;  %v3448_v21 = vsel %vm1013_vm4, %v3432_v4, %v14497_v2  ;;  %v3535_v2 = vsel %vm1067_vm5, %v14623_v23, %v14605_v3  ;;  %v3569_v23 = vpack.c.bf16 %v3555_v36, %v3553_v31 }
 0x573   : > { %v3475_v6 = vmul.f32 %v14666_v8, %v3440_v9  ;;  %v3476_v28 = vmul.f32 %v14643_v47, %v3448_v21  ;;  %v3586_v1 = vpop.permute.xlu1 %3585  ;;  %4088 = vmatmul.mubr.bf16.gmra.mrb[28].mxu0 %v11830_v39  ;;  %v3558_v20 = vmul.f32 %v14776_v60, %v3535_v2  ;;  %v14852_v18 = vrot.slane %v11026_v46, %v12328_v14 }
 0x574   : > { %4111 = vmatpush1.bf16.msra.mxu0 %v3481_v52  ;;  %4130 = vmatprep.mubr.bf16.mxu0 %v11833_v19  ;;  %v3566_v37 = vmul.f32 %v14776_v60, %v3539_v54  ;;  %v3638_v9 = vrot.slane %v11026_v46, %v12337_v16 }
 0x575   : > { %v3483_v8 = vpack.c.bf16 %v3475_v6, %v3473_v44  ;;  %v3604_v47 = vpop.permute.xlu0 %3603  ;;  %v3484_v27 = vpack.c.bf16 %v3476_v28, %v3474_v57  ;;  %v3572_v5 = vpack.c.bf16 %v3560_v49, %v3558_v20 }
 0x576   : > { %v3626_v19 = vsel %vm1121_vm6, %v3604_v47, %v14745_v10  ;;  %v3618_v38 = vsel %vm1121_vm6, %v14745_v10, %v3604_v47 }
 0x577   : > { %v3602_v48 = vpop.permute.xlu1 %3601  ;;  %4112 = vmatprep.subr.bf16.mxu0 %v3484_v27 }
 0x578   : > { %4113 = vmatpush1.bf16.msra.mxu0 %v3483_v8  ;;  %v3625_v15 = vsel %vm1121_vm6, %v3602_v48, %v3586_v1  ;;  %v3617_v52 = vsel %vm1121_vm6, %v3586_v1, %v3602_v48  ;;  %v3647_v8 = vmul.f32 %v3638_v9, %v3618_v38 }
 0x579   : > { %v3592_v3 = vpop.permute.xlu0 %3591  ;;  %4114 = vmatprep.subr.bf16.mxu0 %v3570_v51  ;;  %v3646_v44 = vmul.f32 %v14852_v18, %v3625_v15  ;;  %v3645_v1 = vmul.f32 %v3638_v9, %v3617_v52 }
 0x57b   : > { %v3590_v40 = vpop.permute.xlu1 %3589  ;;  %v3661_v31 = vpack.c.bf16 %v3647_v8, %v3645_v1  ;;  %v11836_v1 = vld [vmem:[%s19965_s4 + $0x30] ss:$20 sps:$4 sm:$0xff]  }
 0x57c   : > { %4115 = vmatpush1.bf16.msra.mxu0 %v3569_v23 }
 0x57d   : > { %v3608_v22 = vpop.permute.xlu0 %3607  ;;  %4116 = vmatprep.subr.bf16.mxu0 %v3572_v5 }
 0x57e   : > { %v3620_v10 = vsel %vm1121_vm6, %v3592_v3, %v3608_v22 }
 0x57f   : > { %v3606_v50 = vpop.permute.xlu1 %3605  ;;  %v3651_v25 = vmul.f32 %v3638_v9, %v3620_v10 }
 0x580   : > { %4117 = vmatpush1.bf16.msra.mxu0 %v3571_v32  ;;  %v3627_v21 = vsel %vm1121_vm6, %v3606_v50, %v3590_v40 }
 0x581   : > { %v3524_v39 = vpop.permute.xlu0 %3523  ;;  %4118 = vmatprep.subr.bf16.mxu0 %v3574_v41  ;;  %v3650_v2 = vmul.f32 %v14852_v18, %v3627_v21 }
 0x582   : > { %v3532_v63 = vsel %vm1067_vm5, %v14718_v61, %v3524_v39  ;;  %v3540_v29 = vsel %vm1067_vm5, %v3524_v39, %v14718_v61  ;;  %v3648_v61 = vmul.f32 %v14852_v18, %v3626_v19 }
 0x583   : > { %v3567_v4 = vmul.f32 %v3546_v62, %v3532_v63  ;;  %v3568_v57 = vmul.f32 %v14776_v60, %v3540_v29  ;;  %v3594_v56 = vpop.permute.xlu1 %3593  ;;  %v3628_v60 = vsel %vm1121_vm6, %v3608_v22, %v3592_v3  ;;  %v3619_v62 = vsel %vm1121_vm6, %v3590_v40, %v3606_v50  ;;  %v11027_v50 = vld [vmem:[%s19906_s0 + $0x10] sm:$0x3]  ;;  %v11834_v29 = vld [vmem:[%s19965_s4 + $0x34] ss:$20 sps:$4 sm:$0xff]  }
 0x584   : > { %4119 = vmatpush1.bf16.msra.mxu0 %v3573_v59  ;;  %v3662_v35 = vpack.c.bf16 %v3648_v61, %v3646_v44  ;;  %v3652_v47 = vmul.f32 %v14852_v18, %v3628_v60  ;;  %v3649_v43 = vmul.f32 %v3638_v9, %v3619_v62  ;;  %v14910_v39 = vrot.slane %v11027_v50, %v12328_v14 }
 0x585   : > { %v3575_v17 = vpack.c.bf16 %v3567_v4, %v3565_v45  ;;  %v3596_v6 = vpop.permute.xlu0 %3595  ;;  %v3576_v28 = vpack.c.bf16 %v3568_v57, %v3566_v37  ;;  %v14907_v45 = vrot.slane %v11027_v50, %v12337_v16 }
 0x586   : > { %v3664_v30 = vpack.c.bf16 %v3652_v47, %v3650_v2  ;;  %v3663_v42 = vpack.c.bf16 %v3651_v25, %v3649_v43  ;;  %v11837_v2 = vld [vmem:[%s19965_s4 + $0x5c] ss:$20 sps:$4 sm:$0xff]  }
 0x587   : > { %v3610_v33 = vpop.permute.xlu1 %3609  ;;  %4120 = vmatprep.subr.bf16.mxu0 %v3576_v28 }
 0x588   : > { %4121 = vmatpush1.bf16.msra.mxu0 %v3575_v17  ;;  %v3629_v0 = vsel %vm1121_vm6, %v3610_v33, %v3594_v56  ;;  %v3621_v49 = vsel %vm1121_vm6, %v3594_v56, %v3610_v33 }
 0x589   : > { %v3612_v27 = vpop.permute.xlu0 %3611  ;;  %4122 = vmatprep.subr.bf16.mxu0 %v3662_v35  ;;  %v3654_v3 = vmul.f32 %v14852_v18, %v3629_v0  ;;  %v3653_v40 = vmul.f32 %v3638_v9, %v3621_v49  ;;  %v11840_v49 = vld [vmem:[%s19965_s4 + $0x84] ss:$20 sps:$4 sm:$0xff]  }
 0x58a   : > { %v3630_v20 = vsel %vm1121_vm6, %v3612_v27, %v3596_v6  ;;  %v3622_v48 = vsel %vm1121_vm6, %v3596_v6, %v3612_v27 }
 0x58b   : > { %v3656_v51 = vmul.f32 %v14852_v18, %v3630_v20  ;;  %v3598_v36 = vpop.permute.xlu1 %3597  ;;  %v3655_v13 = vmul.f32 %v3638_v9, %v3622_v48 }
 0x58c   : > { %4123 = vmatpush1.bf16.msra.mxu0 %v3661_v31 }
 0x58d   : > { %v3600_v23 = vpop.permute.xlu0 %3599  ;;  %4124 = vmatprep.subr.bf16.mxu0 %v3664_v30  ;;  %v3666_v7 = vpack.c.bf16 %v3656_v51, %v3654_v3  ;;  %v3665_v55 = vpack.c.bf16 %v3655_v13, %v3653_v40 }
 0x58f   : > { %v3614_v24 = vpop.permute.xlu1 %3613 }
 0x590   : > { %v3623_v5 = vsel %vm1121_vm6, %v3598_v36, %v3614_v24  ;;  %v3631_v53 = vsel %vm1121_vm6, %v3614_v24, %v3598_v36  ;;  %4125 = vmatpush1.bf16.msra.mxu0 %v3663_v42  ;;  %v11839_v36 = vld [vmem:[%s19965_s4 + $0x58] ss:$20 sps:$4 sm:$0xff]  }
 0x591   : > { %v3616_v11 = vpop.permute.xlu0 %3615  ;;  %4126 = vmatprep.subr.bf16.mxu0 %v3666_v7  ;;  %v3657_v32 = vmul.f32 %v3638_v9, %v3623_v5  ;;  %v3658_v58 = vmul.f32 %v14852_v18, %v3631_v53 }
 0x592   : > { %v3624_v26 = vsel %vm1121_vm6, %v3600_v23, %v3616_v11  ;;  %v3632_v22 = vsel %vm1121_vm6, %v3616_v11, %v3600_v23 }
 0x593   : > { %v3659_v46 = vmul.f32 %v3638_v9, %v3624_v26  ;;  %v3660_v34 = vmul.f32 %v14852_v18, %v3632_v22  ;;  %v3678_v54 = vpop.permute.xlu1 %3677  ;;  %v11831_v18 = vld [vmem:[%s19965_s4 + $0x8] ss:$20 sps:$4 sm:$0xff]   ;;  %v11842_v22 = vld [vmem:[%s19965_s4 + $0x80] ss:$20 sps:$4 sm:$0xff]  }
 0x594   : > { %4127 = vmatpush1.bf16.msra.mxu0 %v3665_v55 }
 0x595   : > { %v3667_v41 = vpack.c.bf16 %v3659_v46, %v3657_v32  ;;  %v3680_v15 = vpop.permute.xlu0 %3679  ;;  %v3668_v59 = vpack.c.bf16 %v3660_v34, %v3658_v58 }
 0x597   : > { %v3694_v37 = vpop.permute.xlu1 %3693  ;;  %4128 = vmatprep.subr.bf16.mxu0 %v3668_v59 }
 0x598   : > { %v3709_v19 = vsel %vm1175_vm7, %v3678_v54, %v3694_v37  ;;  %v3717_v63 = vsel %vm1175_vm7, %v3694_v37, %v3678_v54  ;;  %4129 = vmatpush1.bf16.msra.mxu0 %v3667_v41  ;;  %v19990_v37 = vmov 0  }
 0x599   : > { %v3696_v52 = vpop.permute.xlu0 %3695  ;;  %v3737_v57 = vmul.f32 %v14907_v45, %v3709_v19  ;;  %v3738_v56 = vmul.f32 %v14910_v39, %v3717_v63  ;;  %v11843_v63 = vld [vmem:[%s19965_s4 + $0x10] ss:$20 sps:$4 sm:$0xff]  }
 0x59a   : > { %v3710_v44 = vsel %vm1175_vm7, %v3680_v15, %v3696_v52  ;;  %v3718_v4 = vsel %vm1175_vm7, %v3696_v52, %v3680_v15 }
 0x59b   : > { %v3739_v9 = vmul.f32 %v14907_v45, %v3710_v44  ;;  %v3740_v21 = vmul.f32 %v14910_v39, %v3718_v4  ;;  %v3682_v38 = vpop.permute.xlu1 %3681  ;;  %4131 = vmatmul.mubr.bf16.vlgmr.msra.gmra.mrb[16].mxu0 %v11831_v18 }
 0x59c   : > { %4140 = vmatprep.mubr.bf16.mxu0 %v11834_v29  ;;  %v11846_v29 = vld [vmem:[%s19965_s4 + $0x88] ss:$20 sps:$4 sm:$0xff]  }
 0x59d   : > { %v3753_v61 = vpack.c.bf16 %v3739_v9, %v3737_v57  ;;  %v3684_v17 = vpop.permute.xlu0 %3683  ;;  %v3754_v6 = vpack.c.bf16 %v3740_v21, %v3738_v56 }
 0x59f   : > { %v3698_v28 = vpop.permute.xlu1 %3697  ;;  %4171 = vmatprep.subr.bf16.mxu0 %v3754_v6 }
 0x5a0   : > { %v3711_v60 = vsel %vm1175_vm7, %v3682_v38, %v3698_v28  ;;  %v3719_v62 = vsel %vm1175_vm7, %v3698_v28, %v3682_v38  ;;  %4172 = vmatpush1.bf16.msra.mxu0 %v3753_v61 }
 0x5a1   : > { %v3700_v33 = vpop.permute.xlu0 %3699  ;;  %v3741_v10 = vmul.f32 %v14907_v45, %v3711_v60  ;;  %v3742_v47 = vmul.f32 %v14910_v39, %v3719_v62 }
 0x5a2   : > { %v3712_v35 = vsel %vm1175_vm7, %v3684_v17, %v3700_v33  ;;  %v3720_v8 = vsel %vm1175_vm7, %v3700_v33, %v3684_v17 }
 0x5a3   : > { %v3743_v27 = vmul.f32 %v14907_v45, %v3712_v35  ;;  %v3744_v31 = vmul.f32 %v14910_v39, %v3720_v8  ;;  %v3686_v43 = vpop.permute.xlu1 %3685  ;;  %4141 = vmatmul.mubr.bf16.gmra.mrb[20].mxu0 %v11836_v1 }
 0x5a4   : > { %4150 = vmatprep.mubr.bf16.mxu0 %v11837_v2 }
 0x5a5   : > { %v3755_v0 = vpack.c.bf16 %v3743_v27, %v3741_v10  ;;  %v3688_v20 = vpop.permute.xlu0 %3687  ;;  %v3756_v48 = vpack.c.bf16 %v3744_v31, %v3742_v47 }
 0x5a7   : > { %v3702_v51 = vpop.permute.xlu1 %3701  ;;  %4173 = vmatprep.subr.bf16.mxu0 %v3756_v48 }
 0x5a8   : > { %v3713_v30 = vsel %vm1175_vm7, %v3686_v43, %v3702_v51  ;;  %v3721_v25 = vsel %vm1175_vm7, %v3702_v51, %v3686_v43  ;;  %4174 = vmatpush1.bf16.msra.mxu0 %v3755_v0 }
 0x5a9   : > { %v3704_v3 = vpop.permute.xlu0 %3703  ;;  %v3745_v13 = vmul.f32 %v14907_v45, %v3713_v30  ;;  %v3746_v24 = vmul.f32 %v14910_v39, %v3721_v25 }
 0x5aa   : > { %v3714_v23 = vsel %vm1175_vm7, %v3688_v20, %v3704_v3  ;;  %v3722_v42 = vsel %vm1175_vm7, %v3704_v3, %v3688_v20 }
 0x5ab   : > { %v3747_v7 = vmul.f32 %v14907_v45, %v3714_v23  ;;  %v3748_v40 = vmul.f32 %v14910_v39, %v3722_v42  ;;  %v3690_v5 = vpop.permute.xlu1 %3689  ;;  %4151 = vmatmul.mubr.bf16.gmra.mrb[24].mxu0 %v11839_v36 }
 0x5ac   : > { %4160 = vmatprep.mubr.bf16.mxu0 %v11840_v49 }
 0x5ad   : > { %v3757_v53 = vpack.c.bf16 %v3747_v7, %v3745_v13  ;;  %v3692_v11 = vpop.permute.xlu0 %3691  ;;  %v3758_v55 = vpack.c.bf16 %v3748_v40, %v3746_v24 }
 0x5af   : > { %v3706_v26 = vpop.permute.xlu1 %3705  ;;  %4175 = vmatprep.subr.bf16.mxu0 %v3758_v55 }
 0x5b0   : > { %v3715_v32 = vsel %vm1175_vm7, %v3690_v5, %v3706_v26  ;;  %v3723_v58 = vsel %vm1175_vm7, %v3706_v26, %v3690_v5  ;;  %4176 = vmatpush1.bf16.msra.mxu0 %v3757_v53 }
 0x5b1   : > { %v3708_v46 = vpop.permute.xlu0 %3707  ;;  %v3749_v50 = vmul.f32 %v14907_v45, %v3715_v32  ;;  %v3750_v41 = vmul.f32 %v14910_v39, %v3723_v58 }
 0x5b2   : > { %v3716_v34 = vsel %vm1175_vm7, %v3692_v11, %v3708_v46  ;;  %v3724_v54 = vsel %vm1175_vm7, %v3708_v46, %v3692_v11 }
 0x5b3   : > { %v3751_v15 = vmul.f32 %v14907_v45, %v3716_v34  ;;  %v3752_v59 = vmul.f32 %v14910_v39, %v3724_v54  ;;  %4161 = vmatmul.mubr.bf16.gmra.mrb[28].mxu0 %v11842_v22  ;;  %v11844_v45 = vld [vmem:[%s19965_s4 + $0x38] ss:$20 sps:$4 sm:$0xff]   ;;  %v11845_v39 = vld [vmem:[%s19965_s4 + $0x60] ss:$20 sps:$4 sm:$0xff]  }
 0x5b4   : > { %4203 = vmatprep.mubr.bf16.mxu0 %v19990_v37 }
 0x5b5   : > { %v3759_v18 = vpack.c.bf16 %v3751_v15, %v3749_v50  ;;  %v3760_v19 = vpack.c.bf16 %v3752_v59, %v3750_v41 }
 0x5b7   : > { %4177 = vmatprep.subr.bf16.mxu0 %v3760_v19 }
 0x5b8   : > { %4178 = vmatpush1.bf16.msra.mxu0 %v3759_v18 }
 0x5bb   : > { %11048 = vmatmul.mubr.msk.bf16.vlgmr.msra.gmra.mrb[16].mxu0 %vm1632_vm9, %v11843_v63 }
 0x5bc   : > { %4213 = vmatprep.mubr.bf16.mxu0 %v19990_v37 }
 0x5c0   : > { %v3876_v52 = vpop.permute.xlu1 %3875 }
 0x5c2   : > { %v3881_v44 = vpop.permute.xlu0 %3880 }
 0x5c3   : > { %11049 = vmatmul.mubr.msk.bf16.gmra.mrb[20].mxu0 %vm1632_vm9, %v11844_v45 }
 0x5c4   : > { %4223 = vmatprep.mubr.bf16.mxu0 %v19990_v37  ;;  %v3886_v4 = vpop.permute.xlu1 %3885 }
 0x5c6   : > { %v3891_v57 = vpop.permute.xlu0 %3890 }
 0x5c8   : > { %v4271_v56 = vpop.permute.xlu1 %4270 }
 0x5ca   : > { %v4276_v9 = vpop.permute.xlu0 %4275 }
 0x5cb   : > { %11050 = vmatmul.mubr.msk.bf16.gmra.mrb[24].mxu0 %vm1632_vm9, %v11845_v39 }
 0x5cc   : > { %4233 = vmatprep.mubr.bf16.mxu0 %v19990_v37  ;;  %v3896_v28 = vpop.permute.xlu1 %3895 }
 0x5ce   : > { %v4281_v2 = vpop.permute.xlu0 %4280 }
 0x5d0   : > { %v3901_v20 = vpop.permute.xlu1 %3900 }
 0x5d2   : > { %v4286_v30 = vpop.permute.xlu0 %4285 }
 0x5d3   : > { %11051 = vmatmul.mubr.msk.bf16.gmra.mrb[28].mxu0 %vm1632_vm9, %v11846_v29 }
 0x5d4   : > { %v3906_v55 = vpop.permute.xlu1 %3905 }
 0x5d6   : > { %v4291_v32 = vpop.permute.xlu0 %4290 }
 0x68e   : > { %v4205_v21 = vpop.f32.mrb[16].mxu0 }
 0x68f   : > { %v15001_v38 = vadd.f32 %v4205_v21, %v3876_v52  ;;  %v4207_v61 = vpop.f32.mrb[17].mxu0 }
 0x690   : > { %v15003_v17 = vadd.f32 %v4207_v61, %v3876_v52  ;;  %v4209_v6 = vpop.f32.mrb[18].mxu0 }
 0x691   : > { %v4244_v1 = vmax.f32 %v15001_v38, 0.0  ;;  %v15006_v60 = vadd.f32 %v4209_v6, %v3881_v44  ;;  %v4211_v62 = vpop.f32.mrb[19].mxu0 }
 0x692   : > { %v4245_v33 = vmax.f32 %v15003_v17, 0.0  ;;  %v15009_v35 = vadd.f32 %v4211_v62, %v3881_v44 }
 0x693   : > { %v4246_v8 = vmax.f32 %v15006_v60, 0.0  ;;  %v4308_v47 = vmul.f32 %v4271_v56, %v4244_v1 }
 0x694   : > { %v4247_v10 = vmax.f32 %v15009_v35, 0.0  ;;  %v4309_v31 = vmul.f32 %v4271_v56, %v4245_v33 }
 0x695   : > { %v4310_v27 = vmul.f32 %v4276_v9, %v4246_v8 }
 0x696   : > { %v4311_v43 = vmul.f32 %v4276_v9, %v4247_v10  ;;  %v4215_v0 = vpop.f32.mrb[20].mxu0 }
 0x697   : > { %v4324_v48 = vadd.f32 %v4310_v27, %v4308_v47  ;;  %v15021_v51 = vadd.f32 %v4215_v0, %v3886_v4  ;;  %v4217_v36 = vpop.f32.mrb[21].mxu0 }
 0x698   : > { %v4337_v25 = vadd.f32 %v4311_v43, %v4309_v31  ;;  %v15023_v49 = vadd.f32 %v4217_v36, %v3886_v4  ;;  %v4219_v3 = vpop.f32.mrb[22].mxu0  ;;  %v3911_v4 = vpop.permute.xlu1 %3910 }
 0x699   : > { %v4248_v23 = vmax.f32 %v15021_v51, 0.0  ;;  %v15026_v42 = vadd.f32 %v4219_v3, %v3891_v57  ;;  %v4221_v13 = vpop.f32.mrb[23].mxu0 }
 0x69a   : > { %v4249_v24 = vmax.f32 %v15023_v49, 0.0  ;;  %v15029_v7 = vadd.f32 %v4221_v13, %v3891_v57  ;;  %v4296_v57 = vpop.permute.xlu0 %4295 }
 0x69b   : > { %v4312_v40 = vmul.f32 %v4281_v2, %v4248_v23  ;;  %v4250_v5 = vmax.f32 %v15026_v42, 0.0 }
 0x69c   : > { %v4313_v53 = vmul.f32 %v4281_v2, %v4249_v24  ;;  %v4251_v11 = vmax.f32 %v15029_v7, 0.0 }
 0x69d   : > { %v4325_v26 = vadd.f32 %v4324_v48, %v4312_v40  ;;  %v4314_v22 = vmul.f32 %v4286_v30, %v4250_v5 }
 0x69e   : > { %v4338_v58 = vadd.f32 %v4337_v25, %v4313_v53  ;;  %v4315_v46 = vmul.f32 %v4286_v30, %v4251_v11  ;;  %v4225_v34 = vpop.f32.mrb[24].mxu0  ;;  %v4301_v30 = vpop.permute.xlu1 %4300 }
 0x69f   : > { %v4326_v54 = vadd.f32 %v4325_v26, %v4314_v22  ;;  %v15041_v50 = vadd.f32 %v4225_v34, %v3896_v28  ;;  %v4227_v41 = vpop.f32.mrb[25].mxu0  ;;  %v4306_v53 = vpop.permute.xlu0 %4305 }
 0x6a0   : > { %v4339_v15 = vadd.f32 %v4338_v58, %v4315_v46  ;;  %v15043_v59 = vadd.f32 %v4227_v41, %v3896_v28  ;;  %v4229_v18 = vpop.f32.mrb[26].mxu0 }
 0x6a1   : > { %v4252_v19 = vmax.f32 %v15041_v50, 0.0  ;;  %v15046_v63 = vadd.f32 %v4229_v18, %v3901_v20  ;;  %v4231_v45 = vpop.f32.mrb[27].mxu0 }
 0x6a2   : > { %v4253_v39 = vmax.f32 %v15043_v59, 0.0  ;;  %v15049_v29 = vadd.f32 %v4231_v45, %v3901_v20 }
 0x6a3   : > { %v4316_v52 = vmul.f32 %v4291_v32, %v4252_v19  ;;  %v4254_v44 = vmax.f32 %v15046_v63, 0.0 }
 0x6a4   : > { %v4317_v56 = vmul.f32 %v4291_v32, %v4253_v39  ;;  %v4255_v9 = vmax.f32 %v15049_v29, 0.0 }
 0x6a5   : > { %v4327_v21 = vadd.f32 %v4326_v54, %v4316_v52  ;;  %v4318_v61 = vmul.f32 %v4296_v57, %v4254_v44 }
 0x6a6   : > { %v4340_v6 = vadd.f32 %v4339_v15, %v4317_v56  ;;  %v4319_v28 = vmul.f32 %v4296_v57, %v4255_v9  ;;  %v4235_v62 = vpop.f32.mrb[28].mxu0  ;;  %v4354_v56 = vpop.permute.xlu1 %4353 }
 0x6a7   : > { %v4328_v2 = vadd.f32 %v4327_v21, %v4318_v61  ;;  %v15061_v47 = vadd.f32 %v4235_v62, %v3906_v55  ;;  %v4237_v27 = vpop.f32.mrb[29].mxu0 }
 0x6a8   : > { %v4341_v31 = vadd.f32 %v4340_v6, %v4319_v28  ;;  %v15063_v43 = vadd.f32 %v4237_v27, %v3906_v55  ;;  %v4239_v0 = vpop.f32.mrb[30].mxu0  ;;  %v4359_v28 = vrot.slane %v4354_v56, %v12337_v16  ;;  %v19995_v56 = vld [vmem:[#allocation12_spill] sm:$0xff] }
 0x6a9   : > { %v4256_v20 = vmax.f32 %v15061_v47, 0.0  ;;  %v15066_v48 = vadd.f32 %v4239_v0, %v3911_v4  ;;  %v4241_v36 = vpop.f32.mrb[31].mxu0 }
 0x6aa   : > { %v4257_v25 = vmax.f32 %v15063_v43, 0.0  ;;  %v15069_v3 = vadd.f32 %v4241_v36, %v3911_v4  ;;  %v1580_v36 = vpop.permute.xlu1 %1579 }
 0x6ab   : > { %v4320_v13 = vmul.f32 %v4301_v30, %v4256_v20  ;;  %v4258_v40 = vmax.f32 %v15066_v48, 0.0 }
 0x6ac   : > { %v4321_v55 = vmul.f32 %v4301_v30, %v4257_v25  ;;  %v4259_v26 = vmax.f32 %v15069_v3, 0.0  ;;  %v1575_v30 = vpop.permute.xlu0 %1574 }
 0x6ad   : > { %v4329_v22 = vadd.f32 %v4328_v2, %v4320_v13  ;;  %v4322_v32 = vmul.f32 %v4306_v53, %v4258_v40 }
 0x6ae   : > { %v4342_v58 = vadd.f32 %v4341_v31, %v4321_v55  ;;  %v4323_v46 = vmul.f32 %v4306_v53, %v4259_v26  ;;  %v1590_v3 = vpop.permute.xlu1 %1589 }
 0x6af   : > { %v4330_v34 = vadd.f32 %v4329_v22, %v4322_v32 }
 0x6b0   : > { %v4343_v54 = vadd.f32 %v4342_v58, %v4323_v46  ;;  %v1585_v32 = vpop.permute.xlu0 %1584 }
 0x6b1   : > { %v4331_v41 = vrot.slane %v4330_v34, 4 }
 0x6b2   : > { %v4344_v15 = vrot.slane %v4343_v54, 4  ;;  %v1600_v58 = vpop.permute.xlu1 %1599 }
 0x6b3   : > { %v4332_v18 = vadd.f32 %v4331_v41, %v4330_v34 }
 0x6b4   : > { %v4345_v45 = vadd.f32 %v4344_v15, %v4343_v54  ;;  %v1595_v46 = vpop.permute.xlu0 %1594  ;;  %v19991_v54 = vld [vmem:[#allocation17_spill] sm:$0xff]  ;;  %v19992_v15 = vld [vmem:[#allocation8_spill] sm:$0xff] }
 0x6b5   : > { %v4333_v52 = vrot.slane %v4332_v18, 2  ;;  %v1680_v41 = vadd.f32 %v19991_v54, %v1575_v30 }
 0x6b6   : > { %v4346_v4 = vrot.slane %v4345_v45, 2  ;;  %v1610_v34 = vpop.permute.xlu1 %1609 }
 0x6b7   : > { %v4334_v57 = vadd.f32 %v4333_v52, %v4332_v18  ;;  %v1682_v18 = vadd.f32 %v19992_v15, %v1575_v30  ;;  %v20002_v30 = vld [vmem:[#allocation21_spill] sm:$0xff] }
 0x6b8   : > { %v4347_v21 = vadd.f32 %v4346_v4, %v4345_v45  ;;  %v19993_v45 = vld [vmem:[#allocation7_spill] sm:$0xff]  ;;  %v19994_v4 = vld [vmem:[#allocation18_spill] sm:$0xff]  ;;  %v1716_v54 = vadd.f32 %v20002_v30, %v1610_v34 }
 0x6b9   : > { %v4335_v61 = vrot.slane %v4334_v57, 1  ;;  %v1684_v52 = vadd.f32 %v19993_v45, %v1580_v36 }
 0x6ba   : > { %v4348_v6 = vrot.slane %v4347_v21, 1 }
 0x6bb   : > { %v4336_v62 = vadd.f32 %v4335_v61, %v4334_v57  ;;  %v1686_v57 = vadd.f32 %v19994_v4, %v1580_v36  ;;  %v19996_v61 = vld [vmem:[#allocation10_spill] sm:$0xff] }
 0x6bc   : > { %v4349_v2 = vadd.f32 %v4348_v6, %v4347_v21  ;;  %v1690_v21 = vadd.f32 %v19995_v56, %v1585_v32  ;;  %v1692_v6 = vadd.f32 %v19996_v61, %v1585_v32 }
 0x6bd   : > { %v4360_v27 = vadd.f32 %v4359_v28, %v4336_v62 }
 0x6be   : > { %v4361_v31 = vadd.f32 %v4359_v28, %v4349_v2  ;;  %v19997_v28 = vld [vmem:[#allocation11_spill] sm:$0xff]  ;;  %v19998_v2 = vld [vmem:[#allocation9_spill] sm:$0xff] }
 0x6bf   : > { %v11052_v0 = vmul.f32 -1.442695, %v4360_v27  ;;  %v1694_v62 = vadd.f32 %v19997_v28, %v1590_v3  ;;  %v1696_v27 = vadd.f32 %v19998_v2, %v1590_v3 }
 0x6c0   : > { %v11053_v48 = vmul.f32 -1.442695, %v4361_v31 }
 0x6c1   : > { %12017 = vpow2.f32 %v11052_v0  ;;  %v19999_v0 = vld [vmem:[#allocation16_spill] sm:$0xff] }
 0x6c2   : > { %12019 = vpow2.f32 %v11053_v48  ;;  %v1700_v48 = vadd.f32 %v19999_v0, %v1595_v46  ;;  %v20004_v0 = vld [vmem:[#allocation13_spill] sm:$0xff] }
 0x6c3   : > { %v1706_v17 = vadd.f32 %v20004_v0, %v1600_v58 }
 0x6cb   : > { %v12018_v13 = vpop.eup %12017 }
 0x6cc   : > { %v12020_v53 = vpop.eup %12019  ;;  %v4368_v55 = vadd.f32 1.0, %v12018_v13  ;;  %v20000_v13 = vld [vmem:[#allocation14_spill] sm:$0xff] }
 0x6cd   : > { %v4369_v22 = vadd.f32 1.0, %v12020_v53  ;;  %v1702_v53 = vadd.f32 %v20000_v13, %v1595_v46 }
 0x6ce   : > { %12021 = vrcp.f32 %v4368_v55  ;;  %v20001_v55 = vld [vmem:[#allocation20_spill] sm:$0xff] }
 0x6cf   : > { %12023 = vrcp.f32 %v4369_v22  ;;  %v1714_v22 = vadd.f32 %v20001_v55, %v1610_v34 }
 0x6d8   : > { %v12022_v31 = vpop.eup %12021 }
 0x6d9   : > { %v12024_v15 = vpop.eup %12023  ;;  %v4388_v45 = vmul.f32 %v12022_v31, %v4258_v40  ;;  %v4376_v36 = vmul.f32 %v12022_v31, %v4246_v8  ;;  %v4374_v32 = vmul.f32 %v12022_v31, %v4244_v1  ;;  %v4380_v3 = vmul.f32 %v12022_v31, %v4250_v5  ;;  %v1605_v40 = vpop.permute.xlu0 %1604  ;;  %v20003_v5 = vld [vmem:[#allocation15_spill] sm:$0xff] }
 0x6da   : > { %v4389_v4 = vmul.f32 %v12024_v15, %v4259_v26  ;;  %v4375_v56 = vmul.f32 %v12024_v15, %v4245_v33  ;;  %v4377_v46 = vmul.f32 %v12024_v15, %v4247_v10  ;;  %v4378_v34 = vmul.f32 %v12022_v31, %v4248_v23  ;;  %v20005_v10 = vld [vmem:[#allocation6_spill] sm:$0xff]  ;;  %v20006_v23 = vld [vmem:[#allocation19_spill] sm:$0xff] }
 0x6db   : > { %v4404_v61 = vadd.f32 %v4388_v45, %v1714_v22  ;;  %v4392_v60 = vadd.f32 %v4376_v36, %v1684_v52  ;;  %v4390_v8 = vadd.f32 %v4374_v32, %v1680_v41  ;;  %v4396_v28 = vadd.f32 %v4380_v3, %v1694_v62 }
 0x6dc   : > { %v4405_v38 = vadd.f32 %v4389_v4, %v1716_v54  ;;  %v4391_v1 = vadd.f32 %v4375_v56, %v1682_v18  ;;  %v4393_v2 = vadd.f32 %v4377_v46, %v1686_v57  ;;  %v4394_v42 = vadd.f32 %v4378_v34, %v1690_v21  ;;  %v11847_v56 = vld [vmem:[%s19766_s16] sm:$0xff]  }
 0x6dd   : > { %v1704_v26 = vadd.f32 %v20003_v5, %v1600_v58  ;;  %v15104_v33 = vmax.f32 %v4392_v60, 0.0  ;;  %v15106_v35 = vmax.f32 %v4390_v8, 0.0  ;;  %v1710_v51 = vadd.f32 %v20005_v10, %v1605_v40  ;;  %v11849_v10 = vld [vmem:[%s19766_s16 + $0x10] sm:$0xff]  }
 0x6de   : > { %v1712_v13 = vadd.f32 %v20006_v23, %v1605_v40  ;;  %v15110_v55 = vmax.f32 %v4391_v1, 0.0  ;;  %v15112_v41 = vmax.f32 %v4393_v2, 0.0  ;;  %v15118_v18 = vmax.f32 %v4396_v28, 0.0 }
 0x6df   : > { %4593 = vrot.lane.b32.xlu1 %v15104_v33, %s19959_s30  ;;  %4591 = vrot.lane.b32.xlu0 %v15106_v35, %s19959_s30  ;;  %v15120_v58 = vmax.f32 %v4394_v42, 0.0  ;;  %v4379_v52 = vmul.f32 %v12024_v15, %v4249_v24  ;;  %v4381_v57 = vmul.f32 %v12024_v15, %v4251_v11  ;;  %v4430_v62 = vpack.c.bf16 %v15104_v33, %v15106_v35  ;;  %v11848_v42 = vld [vmem:[%s19766_s16 + $0x8] sm:$0xff]  }
 0x6e0   : > { %v4431_v21 = vpack.c.bf16 %v15112_v41, %v15110_v55  ;;  %v4384_v22 = vmul.f32 %v12022_v31, %v4254_v44  ;;  %v4382_v30 = vmul.f32 %v12022_v31, %v4252_v19  ;;  %v4383_v49 = vmul.f32 %v12024_v15, %v4253_v39 }
 0x6e1   : > { %v4395_v54 = vadd.f32 %v4379_v52, %v1692_v6  ;;  %v4397_v45 = vadd.f32 %v4381_v57, %v1696_v27  ;;  %v4385_v24 = vmul.f32 %v12024_v15, %v4255_v9  ;;  %v4386_v36 = vmul.f32 %v12022_v31, %v4256_v20  ;;  %v11850_v57 = vld [vmem:[%s19766_s16 + $0x18] sm:$0xff]  }
 0x6e2   : > { %4518 = vmatprep.subr.bf16.mxu1 %v4431_v21  ;;  %v4400_v7 = vadd.f32 %v4384_v22, %v1704_v26  ;;  %v4398_v11 = vadd.f32 %v4382_v30, %v1700_v48  ;;  %v4387_v63 = vmul.f32 %v12024_v15, %v4257_v25  ;;  %v4399_v19 = vadd.f32 %v4383_v49, %v1702_v53  ;;  %v11853_v22 = vld [vmem:[%s19762_s12 + $0x4] ss:$20 sps:$4 sm:$0xff]  }
 0x6e3   : > { %4597 = vrot.lane.b32.xlu1 %v15118_v18, %s19959_s30  ;;  %4595 = vrot.lane.b32.xlu0 %v15120_v58, %s19959_s30  ;;  %v15146_v50 = vmax.f32 %v4395_v54, 0.0  ;;  %v15148_v59 = vmax.f32 %v4397_v45, 0.0  ;;  %v4401_v39 = vadd.f32 %v4385_v24, %v1706_v17  ;;  %v4402_v29 = vadd.f32 %v4386_v36, %v1710_v51 }
 0x6e4   : > { %4519 = vmatpush1.bf16.msra.mxu1 %v4430_v62  ;;  %v4403_v44 = vadd.f32 %v4387_v63, %v1712_v13  ;;  %v15152_v47 = vmax.f32 %v4400_v7, 0.0  ;;  %v15154_v43 = vmax.f32 %v4399_v19, 0.0  ;;  %v15158_v25 = vmax.f32 %v4398_v11, 0.0 }
 0x6e5   : > { %v4433_v9 = vpack.c.bf16 %v15148_v59, %v15146_v50  ;;  %v15156_v20 = vmax.f32 %v4401_v39, 0.0  ;;  %v4432_v6 = vpack.c.bf16 %v15118_v18, %v15120_v58  ;;  %v15162_v27 = vmax.f32 %v4405_v38, 0.0 }
 0x6e6   : > { %v15168_v48 = vmax.f32 %v4403_v44, 0.0  ;;  %v15172_v53 = vmax.f32 %v4404_v61, 0.0  ;;  %v15174_v15 = vmax.f32 %v4402_v29, 0.0  ;;  %v4434_v32 = vpack.c.bf16 %v15152_v47, %v15158_v25 }
 0x6e7   : > { %4520 = vmatprep.subr.bf16.mxu1 %v4433_v9  ;;  %4601 = vrot.lane.b32.xlu1 %v15152_v47, %s19959_s30  ;;  %v4435_v31 = vpack.c.bf16 %v15156_v20, %v15154_v43 }
 0x6e8   : > { %4599 = vrot.lane.b32.xlu0 %v15158_v25, %s19959_s30  ;;  %4521 = vmatpush1.bf16.msra.mxu1 %v4432_v6  ;;  %v4437_v3 = vpack.c.bf16 %v15162_v27, %v15168_v48  ;;  %v4436_v4 = vpack.c.bf16 %v15172_v53, %v15174_v15 }
 0x6e9   : > { %4522 = vmatprep.subr.bf16.mxu1 %v4435_v31 }
 0x6eb   : > { %4605 = vrot.lane.b32.xlu1 %v15172_v53, %s19959_s30 }
 0x6ec   : > { %4603 = vrot.lane.b32.xlu0 %v15174_v15, %s19959_s30  ;;  %4523 = vmatpush1.bf16.msra.mxu1 %v4434_v32 }
 0x6ed   : > { %4524 = vmatprep.subr.bf16.mxu1 %v4437_v3 }
 0x6ef   : > { %4685 = vrot.lane.b32.xlu1 %v15104_v33, %s19960_s7 }
 0x6f0   : > { %4683 = vrot.lane.b32.xlu0 %v15106_v35, %s19960_s7  ;;  %4525 = vmatpush1.bf16.msra.mxu1 %v4436_v4 }
 0x6f3   : > { %4689 = vrot.lane.b32.xlu1 %v15118_v18, %s19960_s7  ;;  %11058 = vmatmul.mubr.msk.bf16.vlgmr.msra.gmra.mrb[48].mxu1 %vm1632_vm9, %v11847_v56 }
 0x6f4   : > { %4687 = vrot.lane.b32.xlu0 %v15120_v58, %s19960_s7  ;;  %4560 = vmatprep.mubr.bf16.mxu1 %v19990_v37 }
 0x6f7   : > { %4693 = vrot.lane.b32.xlu1 %v15152_v47, %s19960_s7 }
 0x6f8   : > { %4691 = vrot.lane.b32.xlu0 %v15158_v25, %s19960_s7 }
 0x6fb   : > { %4697 = vrot.lane.b32.xlu1 %v15172_v53, %s19960_s7  ;;  %11059 = vmatmul.mubr.msk.bf16.gmra.mrb[52].mxu1 %vm1632_vm9, %v11848_v42 }
 0x6fc   : > { %4695 = vrot.lane.b32.xlu0 %v15174_v15, %s19960_s7  ;;  %4570 = vmatprep.mubr.bf16.mxu1 %v19990_v37 }
 0x6ff   : > { %4777 = vrot.lane.b32.xlu1 %v15104_v33, %s19961_s3 }
 0x700   : > { %4775 = vrot.lane.b32.xlu0 %v15106_v35, %s19961_s3 }
 0x703   : > { %4781 = vrot.lane.b32.xlu1 %v15118_v18, %s19961_s3  ;;  %11060 = vmatmul.mubr.msk.bf16.gmra.mrb[56].mxu1 %vm1632_vm9, %v11849_v10 }
 0x704   : > { %4779 = vrot.lane.b32.xlu0 %v15120_v58, %s19961_s3  ;;  %4580 = vmatprep.mubr.bf16.mxu1 %v19990_v37 }
 0x707   : > { %4785 = vrot.lane.b32.xlu1 %v15152_v47, %s19961_s3 }
 0x708   : > { %4783 = vrot.lane.b32.xlu0 %v15158_v25, %s19961_s3 }
 0x70b   : > { %4789 = vrot.lane.b32.xlu1 %v15172_v53, %s19961_s3  ;;  %11061 = vmatmul.mubr.msk.bf16.gmra.mrb[60].mxu1 %vm1632_vm9, %v11850_v57 }
 0x70c   : > { %4787 = vrot.lane.b32.xlu0 %v15174_v15, %s19961_s3  ;;  %5659 = vmatprep.mubr.bf16.mxu1 %v11853_v22 }
 0x70f   : > { %4869 = vrot.lane.b32.xlu1 %v15104_v33, %s19962_s25 }
 0x710   : > { %4867 = vrot.lane.b32.xlu0 %v15106_v35, %s19962_s25 }
 0x713   : > { %4873 = vrot.lane.b32.xlu1 %v15118_v18, %s19962_s25 }
 0x714   : > { %4871 = vrot.lane.b32.xlu0 %v15120_v58, %s19962_s25 }
 0x717   : > { %4877 = vrot.lane.b32.xlu1 %v15152_v47, %s19962_s25 }
 0x718   : > { %4875 = vrot.lane.b32.xlu0 %v15158_v25, %s19962_s25 }
 0x71b   : > { %4881 = vrot.lane.b32.xlu1 %v15172_v53, %s19962_s25 }
 0x71c   : > { %4879 = vrot.lane.b32.xlu0 %v15174_v15, %s19962_s25 }
 0x71f   : > { %5005 = vrot.lane.b32.xlu1 %v15104_v33, %s19910_s27 }
 0x720   : > { %5003 = vrot.lane.b32.xlu0 %v15106_v35, %s19910_s27 }
 0x723   : > { %5009 = vrot.lane.b32.xlu1 %v15118_v18, %s19910_s27 }
 0x724   : > { %5007 = vrot.lane.b32.xlu0 %v15120_v58, %s19910_s27 }
 0x727   : > { %5013 = vrot.lane.b32.xlu1 %v15152_v47, %s19910_s27 }
 0x728   : > { %5011 = vrot.lane.b32.xlu0 %v15158_v25, %s19910_s27 }
 0x72b   : > { %5017 = vrot.lane.b32.xlu1 %v15172_v53, %s19910_s27 }
 0x72c   : > { %5015 = vrot.lane.b32.xlu0 %v15174_v15, %s19910_s27 }
 0x72f   : > { %5097 = vrot.lane.b32.xlu1 %v15104_v33, %s19914_s1 }
 0x730   : > { %5095 = vrot.lane.b32.xlu0 %v15106_v35, %s19914_s1 }
 0x733   : > { %5101 = vrot.lane.b32.xlu1 %v15118_v18, %s19914_s1 }
 0x734   : > { %5099 = vrot.lane.b32.xlu0 %v15120_v58, %s19914_s1 }
 0x737   : > { %5105 = vrot.lane.b32.xlu1 %v15152_v47, %s19914_s1 }
 0x738   : > { %5103 = vrot.lane.b32.xlu0 %v15158_v25, %s19914_s1 }
 0x73b   : > { %5109 = vrot.lane.b32.xlu1 %v15172_v53, %s19914_s1 }
 0x73c   : > { %5107 = vrot.lane.b32.xlu0 %v15174_v15, %s19914_s1 }
 0x73f   : > { %4609 = vrot.lane.b32.xlu1 %v15112_v41, %s19959_s30 }
 0x740   : > { %4607 = vrot.lane.b32.xlu0 %v15110_v55, %s19959_s30 }
 0x743   : > { %4613 = vrot.lane.b32.xlu1 %v15148_v59, %s19959_s30 }
 0x744   : > { %4611 = vrot.lane.b32.xlu0 %v15146_v50, %s19959_s30 }
 0x747   : > { %4617 = vrot.lane.b32.xlu1 %v15156_v20, %s19959_s30 }
 0x748   : > { %4615 = vrot.lane.b32.xlu0 %v15154_v43, %s19959_s30 }
 0x74b   : > { %4621 = vrot.lane.b32.xlu1 %v15162_v27, %s19959_s30 }
 0x74c   : > { %4619 = vrot.lane.b32.xlu0 %v15168_v48, %s19959_s30 }
 0x74f   : > { %4701 = vrot.lane.b32.xlu1 %v15112_v41, %s19960_s7 }
 0x750   : > { %4699 = vrot.lane.b32.xlu0 %v15110_v55, %s19960_s7 }
 0x751   : > { %v15291_v46 = vpop.permute.xlu1 %4593  ;;  %v15293_v34 = vpop.permute.xlu0 %4591 }
 0x753   : > { %4705 = vrot.lane.b32.xlu1 %v15148_v59, %s19960_s7 }
 0x754   : > { %4703 = vrot.lane.b32.xlu0 %v15146_v50, %s19960_s7 }
 0x755   : > { %v15299_v40 = vpop.permute.xlu1 %4597  ;;  %v15301_v61 = vpop.permute.xlu0 %4595 }
 0x757   : > { %4709 = vrot.lane.b32.xlu1 %v15156_v20, %s19960_s7 }
 0x758   : > { %4707 = vrot.lane.b32.xlu0 %v15154_v43, %s19960_s7 }
 0x759   : > { %v15307_v60 = vpop.permute.xlu1 %4601 }
 0x75a   : > { %v15309_v8 = vpop.permute.xlu0 %4599 }
 0x75b   : > { %4713 = vrot.lane.b32.xlu1 %v15162_v27, %s19960_s7 }
 0x75c   : > { %4711 = vrot.lane.b32.xlu0 %v15168_v48, %s19960_s7 }
 0x75d   : > { %v15315_v28 = vpop.permute.xlu1 %4605 }
 0x75e   : > { %v15317_v38 = vpop.permute.xlu0 %4603 }
 0x75f   : > { %4793 = vrot.lane.b32.xlu1 %v15112_v41, %s19961_s3 }
 0x760   : > { %4791 = vrot.lane.b32.xlu0 %v15110_v55, %s19961_s3 }
 0x761   : > { %v15323_v1 = vpop.permute.xlu1 %4685 }
 0x762   : > { %v15325_v2 = vpop.permute.xlu0 %4683 }
 0x763   : > { %4797 = vrot.lane.b32.xlu1 %v15148_v59, %s19961_s3 }
 0x764   : > { %4795 = vrot.lane.b32.xlu0 %v15146_v50, %s19961_s3 }
 0x765   : > { %v15335_v5 = vpop.permute.xlu1 %4689 }
 0x766   : > { %v15338_v26 = vpop.permute.xlu0 %4687 }
 0x767   : > { %4801 = vrot.lane.b32.xlu1 %v15156_v20, %s19961_s3 }
 0x768   : > { %4799 = vrot.lane.b32.xlu0 %v15154_v43, %s19961_s3 }
 0x769   : > { %v15344_v0 = vpop.permute.xlu1 %4693 }
 0x76a   : > { %v15346_v17 = vpop.permute.xlu0 %4691 }
 0x76b   : > { %4805 = vrot.lane.b32.xlu1 %v15162_v27, %s19961_s3 }
 0x76c   : > { %4803 = vrot.lane.b32.xlu0 %v15168_v48, %s19961_s3 }
 0x76d   : > { %v15356_v51 = vpop.permute.xlu1 %4697 }
 0x76e   : > { %v15359_v23 = vpop.permute.xlu0 %4695 }
 0x76f   : > { %4885 = vrot.lane.b32.xlu1 %v15112_v41, %s19962_s25 }
 0x770   : > { %4883 = vrot.lane.b32.xlu0 %v15110_v55, %s19962_s25 }
 0x771   : > { %v15365_v13 = vpop.permute.xlu1 %4777 }
 0x772   : > { %v15367_v52 = vpop.permute.xlu0 %4775 }
 0x773   : > { %4889 = vrot.lane.b32.xlu1 %v15148_v59, %s19962_s25 }
 0x774   : > { %4887 = vrot.lane.b32.xlu0 %v15146_v50, %s19962_s25 }
 0x775   : > { %v15377_v21 = vpop.permute.xlu1 %4781 }
 0x776   : > { %v15379_v62 = vpop.permute.xlu0 %4779 }
 0x777   : > { %4893 = vrot.lane.b32.xlu1 %v15156_v20, %s19962_s25 }
 0x778   : > { %4891 = vrot.lane.b32.xlu0 %v15154_v43, %s19962_s25 }
 0x779   : > { %v15388_v30 = vpop.permute.xlu1 %4785 }
 0x77a   : > { %v15390_v54 = vpop.permute.xlu0 %4783 }
 0x77b   : > { %4897 = vrot.lane.b32.xlu1 %v15162_v27, %s19962_s25 }
 0x77c   : > { %4895 = vrot.lane.b32.xlu0 %v15168_v48, %s19962_s25 }
 0x77d   : > { %v15396_v45 = vpop.permute.xlu1 %4789 }
 0x77e   : > { %v15398_v49 = vpop.permute.xlu0 %4787 }
 0x77f   : > { %5189 = vrot.lane.b32.xlu1 %v15104_v33, %s19919_s28 }
 0x780   : > { %5187 = vrot.lane.b32.xlu0 %v15106_v35, %s19919_s28 }
 0x781   : > { %v15404_v24 = vpop.permute.xlu1 %4869 }
 0x782   : > { %v15406_v7 = vpop.permute.xlu0 %4867 }
 0x783   : > { %5193 = vrot.lane.b32.xlu1 %v15118_v18, %s19919_s28 }
 0x784   : > { %5191 = vrot.lane.b32.xlu0 %v15120_v58, %s19919_s28 }
 0x785   : > { %v15412_v11 = vpop.permute.xlu1 %4873 }
 0x786   : > { %v15414_v36 = vpop.permute.xlu0 %4871 }
 0x787   : > { %5197 = vrot.lane.b32.xlu1 %v15152_v47, %s19919_s28 }
 0x788   : > { %5195 = vrot.lane.b32.xlu0 %v15158_v25, %s19919_s28 }
 0x789   : > { %v15420_v63 = vpop.permute.xlu1 %4877 }
 0x78a   : > { %v15422_v19 = vpop.permute.xlu0 %4875 }
 0x78b   : > { %5201 = vrot.lane.b32.xlu1 %v15172_v53, %s19919_s28 }
 0x78c   : > { %5199 = vrot.lane.b32.xlu0 %v15174_v15, %s19919_s28 }
 0x78d   : > { %v15428_v39 = vpop.permute.xlu1 %4881 }
 0x78e   : > { %v15430_v29 = vpop.permute.xlu0 %4879 }
 0x78f   : > { %20007 = vst [vmem:[#allocation33_spill] sm:$0xff] %v15430_v29  ;;  %5021 = vrot.lane.b32.xlu1 %v15112_v41, %s19910_s27 }
 0x790   : > { %5019 = vrot.lane.b32.xlu0 %v15110_v55, %s19910_s27 }
 0x791   : > { %v15436_v44 = vpop.permute.xlu1 %5005 }
 0x792   : > { %20008 = vst [vmem:[#allocation24_spill] sm:$0xff] %v15436_v44  ;;  %v15438_v9 = vpop.permute.xlu0 %5003 }
 0x793   : > { %20009 = vst [vmem:[#allocation23_spill] sm:$0xff] %v15438_v9  ;;  %5025 = vrot.lane.b32.xlu1 %v15148_v59, %s19910_s27 }
 0x794   : > { %5023 = vrot.lane.b32.xlu0 %v15146_v50, %s19910_s27 }
 0x795   : > { %v15444_v6 = vpop.permute.xlu1 %5009 }
 0x796   : > { %20010 = vst [vmem:[#allocation34_spill] sm:$0xff] %v15444_v6  ;;  %v15446_v31 = vpop.permute.xlu0 %5007 }
 0x797   : > { %20011 = vst [vmem:[#allocation28_spill] sm:$0xff] %v15446_v31  ;;  %5029 = vrot.lane.b32.xlu1 %v15156_v20, %s19910_s27 }
 0x798   : > { %5027 = vrot.lane.b32.xlu0 %v15154_v43, %s19910_s27 }
 0x799   : > { %v15452_v32 = vpop.permute.xlu1 %5013 }
 0x79a   : > { %20012 = vst [vmem:[#allocation26_spill] sm:$0xff] %v15452_v32  ;;  %v15454_v3 = vpop.permute.xlu0 %5011 }
 0x79b   : > { %20013 = vst [vmem:[#allocation27_spill] sm:$0xff] %v15454_v3  ;;  %5033 = vrot.lane.b32.xlu1 %v15162_v27, %s19910_s27 }
 0x79c   : > { %5031 = vrot.lane.b32.xlu0 %v15168_v48, %s19910_s27 }
 0x79d   : > { %v15460_v4 = vpop.permute.xlu1 %5017 }
 0x79e   : > { %20014 = vst [vmem:[#allocation25_spill] sm:$0xff] %v15460_v4  ;;  %v15462_v56 = vpop.permute.xlu0 %5015 }
 0x79f   : > { %20015 = vst [vmem:[#allocation32_spill] sm:$0xff] %v15462_v56  ;;  %5113 = vrot.lane.b32.xlu1 %v15112_v41, %s19914_s1 }
 0x7a0   : > { %5111 = vrot.lane.b32.xlu0 %v15110_v55, %s19914_s1 }
 0x7a1   : > { %v15468_v42 = vpop.permute.xlu1 %5097 }
 0x7a2   : > { %20016 = vst [vmem:[#allocation30_spill] sm:$0xff] %v15468_v42  ;;  %v15470_v10 = vpop.permute.xlu0 %5095 }
 0x7a3   : > { %20017 = vst [vmem:[#allocation31_spill] sm:$0xff] %v15470_v10  ;;  %5117 = vrot.lane.b32.xlu1 %v15148_v59, %s19914_s1 }
 0x7a4   : > { %5115 = vrot.lane.b32.xlu0 %v15146_v50, %s19914_s1 }
 0x7a5   : > { %v15476_v57 = vpop.permute.xlu1 %5101 }
 0x7a6   : > { %20018 = vst [vmem:[#allocation29_spill] sm:$0xff] %v15476_v57  ;;  %v15478_v22 = vpop.permute.xlu0 %5099 }
 0x7a7   : > { %20019 = vst [vmem:[#allocation22_spill] sm:$0xff] %v15478_v22  ;;  %5121 = vrot.lane.b32.xlu1 %v15156_v20, %s19914_s1  ;;  %v4639_v22 = vld [vmem:[%s19906_s0] sm:$0x3] }
 0x7a8   : > { %5119 = vrot.lane.b32.xlu0 %v15154_v43, %s19914_s1 }
 0x7a9   : > { %v15484_v37 = vpop.permute.xlu1 %5105 }
 0x7aa   : > { %20020 = vst [vmem:[#allocation17_spill] sm:$0xff] %v15484_v37  ;;  %v15486_v42 = vpop.permute.xlu0 %5103  ;;  %v4644_v37 = vrot.slane %v4639_v22, %v12337_v16 }
 0x7ab   : > { %20021 = vst [vmem:[#allocation8_spill] sm:$0xff] %v15486_v42  ;;  %5125 = vrot.lane.b32.xlu1 %v15162_v27, %s19914_s1  ;;  %v4648_v42 = vrot.slane %v4639_v22, %v12328_v14 }
 0x7ac   : > { %5123 = vrot.lane.b32.xlu0 %v15168_v48, %s19914_s1 }
 0x7ad   : > { %v15495_v57 = vpop.permute.xlu1 %5109 }
 0x7ae   : > { %20022 = vst [vmem:[#allocation7_spill] sm:$0xff] %v15495_v57  ;;  %v15497_v10 = vpop.permute.xlu0 %5107 }
 0x7af   : > { %20023 = vst [vmem:[#allocation18_spill] sm:$0xff] %v15497_v10  ;;  %5205 = vrot.lane.b32.xlu1 %v15112_v41, %s19919_s28 }
 0x7b0   : > { %5203 = vrot.lane.b32.xlu0 %v15110_v55, %s19919_s28 }
 0x7b1   : > { %v4610_v56 = vpop.permute.xlu1 %4609 }
 0x7b2   : > { %v4624_v4 = vsel %vm769_vm0, %v15291_v46, %v4610_v56  ;;  %v4632_v57 = vsel %vm769_vm0, %v4610_v56, %v15291_v46  ;;  %v4608_v10 = vpop.permute.xlu0 %4607 }
 0x7b3   : > { %v4653_v3 = vmul.f32 %v4644_v37, %v4632_v57  ;;  %v4654_v32 = vmul.f32 %v4648_v42, %v4624_v4  ;;  %v4623_v31 = vsel %vm769_vm0, %v15293_v34, %v4608_v10  ;;  %v4631_v22 = vsel %vm769_vm0, %v4608_v10, %v15293_v34  ;;  %5209 = vrot.lane.b32.xlu1 %v15148_v59, %s19919_s28 }
 0x7b4   : > { %v4651_v6 = vmul.f32 %v4644_v37, %v4631_v22  ;;  %v4652_v9 = vmul.f32 %v4648_v42, %v4623_v31  ;;  %5207 = vrot.lane.b32.xlu0 %v15146_v50, %s19919_s28 }
 0x7b5   : > { %v4614_v46 = vpop.permute.xlu1 %4613 }
 0x7b6   : > { %v4667_v56 = vpack.c.bf16 %v4653_v3, %v4651_v6  ;;  %v4626_v4 = vsel %vm769_vm0, %v15299_v40, %v4614_v46  ;;  %v4634_v57 = vsel %vm769_vm0, %v4614_v46, %v15299_v40  ;;  %v4612_v44 = vpop.permute.xlu0 %4611  ;;  %v4668_v34 = vpack.c.bf16 %v4654_v32, %v4652_v9 }
 0x7b7   : > { %v4657_v10 = vmul.f32 %v4644_v37, %v4634_v57  ;;  %v4658_v29 = vmul.f32 %v4648_v42, %v4626_v4  ;;  %v4625_v31 = vsel %vm769_vm0, %v15301_v61, %v4612_v44  ;;  %v4633_v6 = vsel %vm769_vm0, %v4612_v44, %v15301_v61  ;;  %5213 = vrot.lane.b32.xlu1 %v15156_v20, %s19919_s28  ;;  %v11062_v4 = vld [vmem:[%s19906_s0 + $0x2] sm:$0x3] }
 0x7b8   : > { %v4655_v3 = vmul.f32 %v4644_v37, %v4633_v6  ;;  %v4656_v22 = vmul.f32 %v4648_v42, %v4625_v31  ;;  %5211 = vrot.lane.b32.xlu0 %v15154_v43, %s19919_s28  ;;  %5627 = vmatprep.subr.bf16.mxu1 %v4668_v34  ;;  %v15557_v6 = vrot.slane %v11062_v4, %v12337_v16 }
 0x7b9   : > { %5628 = vmatpush1.bf16.msra.mxu1 %v4667_v56  ;;  %v4618_v40 = vpop.permute.xlu1 %4617 }
 0x7ba   : > { %v4669_v9 = vpack.c.bf16 %v4657_v10, %v4655_v3  ;;  %v4628_v32 = vsel %vm769_vm0, %v15307_v60, %v4618_v40  ;;  %v4636_v61 = vsel %vm769_vm0, %v4618_v40, %v15307_v60  ;;  %v4616_v44 = vpop.permute.xlu0 %4615  ;;  %v4670_v46 = vpack.c.bf16 %v4658_v29, %v4656_v22 }
 0x7bb   : > { %v4661_v57 = vmul.f32 %v4644_v37, %v4636_v61  ;;  %v4662_v31 = vmul.f32 %v4648_v42, %v4628_v32  ;;  %v4627_v56 = vsel %vm769_vm0, %v15309_v8, %v4616_v44  ;;  %v4635_v34 = vsel %vm769_vm0, %v4616_v44, %v15309_v8  ;;  %5217 = vrot.lane.b32.xlu1 %v15162_v27, %s19919_s28 }
 0x7bc   : > { %v4659_v60 = vmul.f32 %v4644_v37, %v4635_v34  ;;  %v4660_v10 = vmul.f32 %v4648_v42, %v4627_v56  ;;  %5215 = vrot.lane.b32.xlu0 %v15168_v48, %s19919_s28  ;;  %5629 = vmatprep.subr.bf16.mxu1 %v4670_v46  ;;  %v15560_v3 = vrot.slane %v11062_v4, %v12328_v14 }
 0x7bd   : > { %5630 = vmatpush1.bf16.msra.mxu1 %v4669_v9  ;;  %v4622_v29 = vpop.permute.xlu1 %4621 }
 0x7be   : > { %v4671_v22 = vpack.c.bf16 %v4661_v57, %v4659_v60  ;;  %v4630_v8 = vsel %vm769_vm0, %v15315_v28, %v4622_v29  ;;  %v4638_v40 = vsel %vm769_vm0, %v4622_v29, %v15315_v28  ;;  %v4620_v32 = vpop.permute.xlu0 %4619  ;;  %v4672_v61 = vpack.c.bf16 %v4662_v31, %v4660_v10 }
 0x7bf   : > { %v4665_v44 = vmul.f32 %v4644_v37, %v4638_v40  ;;  %v4666_v9 = vmul.f32 %v4648_v42, %v4630_v8  ;;  %v4629_v46 = vsel %vm769_vm0, %v15317_v38, %v4620_v32  ;;  %v4637_v4 = vsel %vm769_vm0, %v4620_v32, %v15317_v38  ;;  %5281 = vrot.lane.b32.xlu1 %v15104_v33, %s19926_s26 }
 0x7c0   : > { %v4663_v57 = vmul.f32 %v4644_v37, %v4637_v4  ;;  %v4664_v56 = vmul.f32 %v4648_v42, %v4629_v46  ;;  %5279 = vrot.lane.b32.xlu0 %v15106_v35, %s19926_s26  ;;  %5631 = vmatprep.subr.bf16.mxu1 %v4672_v61 }
 0x7c1   : > { %5632 = vmatpush1.bf16.msra.mxu1 %v4671_v22  ;;  %v4702_v28 = vpop.permute.xlu1 %4701 }
 0x7c2   : > { %v4673_v31 = vpack.c.bf16 %v4665_v44, %v4663_v57  ;;  %v4716_v34 = vsel %vm822_vm1, %v15323_v1, %v4702_v28  ;;  %v4724_v38 = vsel %vm822_vm1, %v4702_v28, %v15323_v1  ;;  %v4700_v60 = vpop.permute.xlu0 %4699  ;;  %v4674_v10 = vpack.c.bf16 %v4666_v9, %v4664_v56 }
 0x7c3   : > { %v4745_v37 = vmul.f32 %v15557_v6, %v4724_v38  ;;  %v4746_v42 = vmul.f32 %v15560_v3, %v4716_v34  ;;  %v4715_v29 = vsel %vm822_vm1, %v15325_v2, %v4700_v60  ;;  %v4723_v22 = vsel %vm822_vm1, %v4700_v60, %v15325_v2  ;;  %5285 = vrot.lane.b32.xlu1 %v15118_v18, %s19926_s26 }
 0x7c4   : > { %v4743_v8 = vmul.f32 %v15557_v6, %v4723_v22  ;;  %v4744_v1 = vmul.f32 %v15560_v3, %v4715_v29  ;;  %5283 = vrot.lane.b32.xlu0 %v15120_v58, %s19926_s26  ;;  %5633 = vmatprep.subr.bf16.mxu1 %v4674_v10 }
 0x7c5   : > { %5634 = vmatpush1.bf16.msra.mxu1 %v4673_v31  ;;  %v4706_v40 = vpop.permute.xlu1 %4705 }
 0x7c6   : > { %v4759_v32 = vpack.c.bf16 %v4745_v37, %v4743_v8  ;;  %v4718_v61 = vsel %vm822_vm1, %v15335_v5, %v4706_v40  ;;  %v4726_v2 = vsel %vm822_vm1, %v4706_v40, %v15335_v5  ;;  %v4704_v44 = vpop.permute.xlu0 %4703  ;;  %v4760_v9 = vpack.c.bf16 %v4746_v42, %v4744_v1  ;;  %v11063_v37 = vld [vmem:[%s19906_s0 + $0x4] sm:$0x3] }
 0x7c7   : > { %v4749_v46 = vmul.f32 %v15557_v6, %v4726_v2  ;;  %v4750_v4 = vmul.f32 %v15560_v3, %v4718_v61  ;;  %v4717_v57 = vsel %vm822_vm1, %v15338_v26, %v4704_v44  ;;  %v4725_v56 = vsel %vm822_vm1, %v4704_v44, %v15338_v26  ;;  %5289 = vrot.lane.b32.xlu1 %v15152_v47, %s19926_s26 }
 0x7c8   : > { %v4747_v28 = vmul.f32 %v15557_v6, %v4725_v56  ;;  %v4748_v5 = vmul.f32 %v15560_v3, %v4717_v57  ;;  %5287 = vrot.lane.b32.xlu0 %v15158_v25, %s19926_s26  ;;  %5635 = vmatprep.subr.bf16.mxu1 %v4760_v9  ;;  %v15645_v61 = vrot.slane %v11063_v37, %v12328_v14 }
 0x7c9   : > { %5636 = vmatpush1.bf16.msra.mxu1 %v4759_v32  ;;  %v4710_v31 = vpop.permute.xlu1 %4709  ;;  %v15642_v32 = vrot.slane %v11063_v37, %v12337_v16 }
 0x7ca   : > { %v4761_v34 = vpack.c.bf16 %v4749_v46, %v4747_v28  ;;  %v4720_v38 = vsel %vm822_vm1, %v15344_v0, %v4710_v31  ;;  %v4728_v26 = vsel %vm822_vm1, %v4710_v31, %v15344_v0  ;;  %v4708_v60 = vpop.permute.xlu0 %4707  ;;  %v4762_v10 = vpack.c.bf16 %v4750_v4, %v4748_v5 }
 0x7cb   : > { %v4753_v42 = vmul.f32 %v15557_v6, %v4728_v26  ;;  %v4754_v29 = vmul.f32 %v15560_v3, %v4720_v38  ;;  %v4719_v22 = vsel %vm822_vm1, %v15346_v17, %v4708_v60  ;;  %v4727_v8 = vsel %vm822_vm1, %v4708_v60, %v15346_v17  ;;  %5293 = vrot.lane.b32.xlu1 %v15172_v53, %s19926_s26 }
 0x7cc   : > { %v4751_v0 = vmul.f32 %v15557_v6, %v4727_v8  ;;  %v4752_v1 = vmul.f32 %v15560_v3, %v4719_v22  ;;  %5291 = vrot.lane.b32.xlu0 %v15174_v15, %s19926_s26  ;;  %5637 = vmatprep.subr.bf16.mxu1 %v4762_v10 }
 0x7cd   : > { %5638 = vmatpush1.bf16.msra.mxu1 %v4761_v34  ;;  %v4714_v40 = vpop.permute.xlu1 %4713 }
 0x7ce   : > { %v4763_v17 = vpack.c.bf16 %v4753_v42, %v4751_v0  ;;  %v4722_v2 = vsel %vm822_vm1, %v15356_v51, %v4714_v40  ;;  %v4730_v44 = vsel %vm822_vm1, %v4714_v40, %v15356_v51  ;;  %v4712_v9 = vpop.permute.xlu0 %4711  ;;  %v4764_v46 = vpack.c.bf16 %v4754_v29, %v4752_v1 }
 0x7cf   : > { %v4757_v4 = vmul.f32 %v15557_v6, %v4730_v44  ;;  %v4758_v57 = vmul.f32 %v15560_v3, %v4722_v2  ;;  %v4721_v56 = vsel %vm822_vm1, %v15359_v23, %v4712_v9  ;;  %v4729_v28 = vsel %vm822_vm1, %v4712_v9, %v15359_v23  ;;  %5297 = vrot.lane.b32.xlu1 %v15112_v41, %s19926_s26 }
 0x7d0   : > { %v4755_v5 = vmul.f32 %v15557_v6, %v4729_v28  ;;  %v4756_v51 = vmul.f32 %v15560_v3, %v4721_v56  ;;  %5295 = vrot.lane.b32.xlu0 %v15110_v55, %s19926_s26  ;;  %5639 = vmatprep.subr.bf16.mxu1 %v4764_v46 }
 0x7d1   : > { %5640 = vmatpush1.bf16.msra.mxu1 %v4763_v17  ;;  %v4794_v31 = vpop.permute.xlu1 %4793 }
 0x7d2   : > { %v4765_v34 = vpack.c.bf16 %v4757_v4, %v4755_v5  ;;  %v4808_v38 = vsel %vm876_vm2, %v15365_v13, %v4794_v31  ;;  %v4816_v23 = vsel %vm876_vm2, %v4794_v31, %v15365_v13  ;;  %v4792_v26 = vpop.permute.xlu0 %4791  ;;  %v4766_v60 = vpack.c.bf16 %v4758_v57, %v4756_v51  ;;  %v11064_v5 = vld [vmem:[%s19906_s0 + $0x6] sm:$0x3] }
 0x7d3   : > { %v4837_v6 = vmul.f32 %v15642_v32, %v4816_v23  ;;  %v4838_v3 = vmul.f32 %v15645_v61, %v4808_v38  ;;  %v4807_v10 = vsel %vm876_vm2, %v15367_v52, %v4792_v26  ;;  %v4815_v37 = vsel %vm876_vm2, %v4792_v26, %v15367_v52  ;;  %5301 = vrot.lane.b32.xlu1 %v15148_v59, %s19926_s26  ;;  %v5468_v26 = vld [vmem:[%s19763_s13 + $0x8] sm:$0xff] }
 0x7d4   : > { %v4835_v42 = vmul.f32 %v15642_v32, %v4815_v37  ;;  %v4836_v13 = vmul.f32 %v15645_v61, %v4807_v10  ;;  %5299 = vrot.lane.b32.xlu0 %v15146_v50, %s19926_s26  ;;  %5641 = vmatprep.subr.bf16.mxu1 %v4766_v60 }
 0x7d5   : > { %5642 = vmatpush1.bf16.msra.mxu1 %v4765_v34  ;;  %v4798_v29 = vpop.permute.xlu1 %4797 }
 0x7d6   : > { %v4851_v22 = vpack.c.bf16 %v4837_v6, %v4835_v42  ;;  %v4810_v8 = vsel %vm876_vm2, %v15377_v21, %v4798_v29  ;;  %v4818_v52 = vsel %vm876_vm2, %v4798_v29, %v15377_v21  ;;  %v4796_v0 = vpop.permute.xlu0 %4795  ;;  %v4852_v1 = vpack.c.bf16 %v4838_v3, %v4836_v13 }
 0x7d7   : > { %v4841_v40 = vmul.f32 %v15642_v32, %v4818_v52  ;;  %v4842_v17 = vmul.f32 %v15645_v61, %v4810_v8  ;;  %v4809_v2 = vsel %vm876_vm2, %v15379_v62, %v4796_v0  ;;  %v4817_v44 = vsel %vm876_vm2, %v4796_v0, %v15379_v62  ;;  %5305 = vrot.lane.b32.xlu1 %v15156_v20, %s19926_s26 }
 0x7d8   : > { %v4839_v9 = vmul.f32 %v15642_v32, %v4817_v44  ;;  %v4840_v21 = vmul.f32 %v15645_v61, %v4809_v2  ;;  %5303 = vrot.lane.b32.xlu0 %v15154_v43, %s19926_s26  ;;  %5643 = vmatprep.subr.bf16.mxu1 %v4852_v1  ;;  %v15737_v6 = vrot.slane %v11064_v5, %v12337_v16  ;;  %v5469_v2 = vld [vmem:[%s19763_s13 + $0x10] sm:$0xff] }
 0x7d9   : > { %5644 = vmatpush1.bf16.msra.mxu1 %v4851_v22  ;;  %v4802_v46 = vpop.permute.xlu1 %4801  ;;  %v15740_v3 = vrot.slane %v11064_v5, %v12328_v14  ;;  %v5471_v5 = vld [vmem:[%s19763_s13 + $0x20] sm:$0xff] }
 0x7da   : > { %v4853_v4 = vpack.c.bf16 %v4841_v40, %v4839_v9  ;;  %v4812_v57 = vsel %vm876_vm2, %v15388_v30, %v4802_v46  ;;  %v4820_v62 = vsel %vm876_vm2, %v4802_v46, %v15388_v30  ;;  %v4800_v56 = vpop.permute.xlu0 %4799  ;;  %v4854_v28 = vpack.c.bf16 %v4842_v17, %v4840_v21 }
 0x7db   : > { %v4845_v51 = vmul.f32 %v15642_v32, %v4820_v62  ;;  %v4846_v31 = vmul.f32 %v15645_v61, %v4812_v57  ;;  %v4811_v34 = vsel %vm876_vm2, %v15390_v54, %v4800_v56  ;;  %v4819_v38 = vsel %vm876_vm2, %v4800_v56, %v15390_v54  ;;  %5309 = vrot.lane.b32.xlu1 %v15162_v27, %s19926_s26  ;;  %v5467_v54 = vld [vmem:[%s19763_s13] sm:$0xff] }
 0x7dc   : > { %v4843_v30 = vmul.f32 %v15642_v32, %v4819_v38  ;;  %v4844_v23 = vmul.f32 %v15645_v61, %v4811_v34  ;;  %5307 = vrot.lane.b32.xlu0 %v15168_v48, %s19926_s26  ;;  %5645 = vmatprep.subr.bf16.mxu1 %v4854_v28 }
 0x7dd   : > { %5646 = vmatpush1.bf16.msra.mxu1 %v4853_v4  ;;  %v4806_v60 = vpop.permute.xlu1 %4805 }
 0x7de   : > { %v4855_v10 = vpack.c.bf16 %v4845_v51, %v4843_v30  ;;  %v4814_v37 = vsel %vm876_vm2, %v15396_v45, %v4806_v60  ;;  %v4822_v42 = vsel %vm876_vm2, %v4806_v60, %v15396_v45  ;;  %v4804_v13 = vpop.permute.xlu0 %4803  ;;  %v4856_v29 = vpack.c.bf16 %v4846_v31, %v4844_v23  ;;  %v5470_v45 = vld [vmem:[%s19763_s13 + $0x18] sm:$0xff] }
 0x7df   : > { %v4849_v22 = vmul.f32 %v15642_v32, %v4822_v42  ;;  %v4850_v8 = vmul.f32 %v15645_v61, %v4814_v37  ;;  %v4813_v52 = vsel %vm876_vm2, %v15398_v49, %v4804_v13  ;;  %v4821_v0 = vsel %vm876_vm2, %v4804_v13, %v15398_v49  ;;  %5482 = vperm.xlu1 %11770, %v5468_v26   ;;  %v5473_v42 = vld [vmem:[%s19763_s13 + $0x30] sm:$0xff] }
 0x7e0   : > { %v4847_v1 = vmul.f32 %v15642_v32, %v4821_v0  ;;  %v4848_v40 = vmul.f32 %v15645_v61, %v4813_v52  ;;  %5477 = vperm.xlu0 %11769, %v5467_v54   ;;  %5647 = vmatprep.subr.bf16.mxu1 %v4856_v29 }
 0x7e1   : > { %5648 = vmatpush1.bf16.msra.mxu1 %v4855_v10  ;;  %v4886_v17 = vpop.permute.xlu1 %4885 }
 0x7e2   : > { %v4857_v44 = vpack.c.bf16 %v4849_v22, %v4847_v1  ;;  %v4900_v49 = vsel %vm930_vm3, %v15404_v24, %v4886_v17  ;;  %v4908_v32 = vsel %vm930_vm3, %v4886_v17, %v15404_v24  ;;  %v4884_v61 = vpop.permute.xlu0 %4883  ;;  %v4858_v9 = vpack.c.bf16 %v4850_v8, %v4848_v40  ;;  %v5472_v24 = vld [vmem:[%s19763_s13 + $0x28] sm:$0xff] }
 0x7e3   : > { %v4929_v21 = vmul.f32 %v15737_v6, %v4908_v32  ;;  %v4930_v46 = vmul.f32 %v15740_v3, %v4900_v49  ;;  %v4899_v4 = vsel %vm930_vm3, %v15406_v7, %v4884_v61  ;;  %v4907_v57 = vsel %vm930_vm3, %v4884_v61, %v15406_v7  ;;  %5492 = vperm.xlu1 %11770, %v5470_v45  }
 0x7e4   : > { %v4927_v62 = vmul.f32 %v15737_v6, %v4907_v57  ;;  %v4928_v56 = vmul.f32 %v15740_v3, %v4899_v4  ;;  %5487 = vperm.xlu0 %11769, %v5469_v2   ;;  %5649 = vmatprep.subr.bf16.mxu1 %v4858_v9  ;;  %v20024_v57 = vld [vmem:[#allocation33_spill] sm:$0xff] }
 0x7e5   : > { %5650 = vmatpush1.bf16.msra.mxu1 %v4857_v44  ;;  %v4890_v28 = vpop.permute.xlu1 %4889 }
 0x7e6   : > { %v4943_v51 = vpack.c.bf16 %v4929_v21, %v4927_v62  ;;  %v4902_v7 = vsel %vm930_vm3, %v15412_v11, %v4890_v28  ;;  %v4910_v31 = vsel %vm930_vm3, %v4890_v28, %v15412_v11  ;;  %v4888_v34 = vpop.permute.xlu0 %4887  ;;  %v4944_v38 = vpack.c.bf16 %v4930_v46, %v4928_v56  ;;  %v5474_v11 = vld [vmem:[%s19763_s13 + $0x38] sm:$0xff] }
 0x7e7   : > { %v4933_v30 = vmul.f32 %v15737_v6, %v4910_v31  ;;  %v4934_v23 = vmul.f32 %v15740_v3, %v4902_v7  ;;  %v4901_v26 = vsel %vm930_vm3, %v15414_v36, %v4888_v34  ;;  %v4909_v60 = vsel %vm930_vm3, %v4888_v34, %v15414_v36  ;;  %5502 = vperm.xlu1 %11770, %v5472_v24   ;;  %v11065_v36 = vld [vmem:[%s19906_s0 + $0x8] sm:$0x3] }
 0x7e8   : > { %v4931_v54 = vmul.f32 %v15737_v6, %v4909_v60  ;;  %v4932_v10 = vmul.f32 %v15740_v3, %v4901_v26  ;;  %5497 = vperm.xlu0 %11769, %v5471_v5   ;;  %5651 = vmatprep.subr.bf16.mxu1 %v4944_v38  ;;  %v4964_v49 = vrot.slane %v11065_v36, %v12337_v16  ;;  %v11854_v26 = vld [vmem:[%s19762_s12 + $0x2c] ss:$20 sps:$4 sm:$0xff]  }
 0x7e9   : > { %5652 = vmatpush1.bf16.msra.mxu1 %v4943_v51  ;;  %v4894_v37 = vpop.permute.xlu1 %4893 }
 0x7ea   : > { %v4945_v13 = vpack.c.bf16 %v4933_v30, %v4931_v54  ;;  %v4904_v29 = vsel %vm930_vm3, %v15420_v63, %v4894_v37  ;;  %v4912_v22 = vsel %vm930_vm3, %v4894_v37, %v15420_v63  ;;  %v4892_v8 = vpop.permute.xlu0 %4891  ;;  %v4946_v52 = vpack.c.bf16 %v4934_v23, %v4932_v10 }
 0x7eb   : > { %v4937_v0 = vmul.f32 %v15737_v6, %v4912_v22  ;;  %v4938_v1 = vmul.f32 %v15740_v3, %v4904_v29  ;;  %v4903_v40 = vsel %vm930_vm3, %v15422_v19, %v4892_v8  ;;  %v4911_v45 = vsel %vm930_vm3, %v4892_v8, %v15422_v19  ;;  %5512 = vperm.xlu1 %11770, %v5474_v11   ;;  %v11856_v29 = vld [vmem:[%s19762_s12 + $0x28] ss:$20 sps:$4 sm:$0xff]  }
 0x7ec   : > { %v4935_v17 = vmul.f32 %v15737_v6, %v4911_v45  ;;  %v4936_v2 = vmul.f32 %v15740_v3, %v4903_v40  ;;  %5507 = vperm.xlu0 %11769, %v5473_v42   ;;  %5653 = vmatprep.subr.bf16.mxu1 %v4946_v52  ;;  %v4968_v63 = vrot.slane %v11065_v36, %v12328_v14  ;;  %v20025_v45 = vld [vmem:[#allocation24_spill] sm:$0xff] }
 0x7ed   : > { %5654 = vmatpush1.bf16.msra.mxu1 %v4945_v13  ;;  %v4898_v44 = vpop.permute.xlu1 %4897  ;;  %v4971_v38 = vmul.f32 %v4964_v49, %v15106_v35  ;;  %v4973_v30 = vmul.f32 %v4964_v49, %v15104_v33  ;;  %v4975_v60 = vmul.f32 %v4964_v49, %v15120_v58  ;;  %v4977_v54 = vmul.f32 %v4964_v49, %v15118_v18  ;;  %v11066_v18 = vld [vmem:[%s19906_s0 + $0xa] sm:$0x3] }
 0x7ee   : > { %v4947_v32 = vpack.c.bf16 %v4937_v0, %v4935_v17  ;;  %v4906_v61 = vsel %vm930_vm3, %v15428_v39, %v4898_v44  ;;  %v4914_v19 = vsel %vm930_vm3, %v4898_v44, %v15428_v39  ;;  %v4896_v9 = vpop.permute.xlu0 %4895  ;;  %v4948_v21 = vpack.c.bf16 %v4938_v1, %v4936_v2 }
 0x7ef   : > { %v4941_v46 = vmul.f32 %v15737_v6, %v4914_v19  ;;  %v4942_v4 = vmul.f32 %v15740_v3, %v4906_v61  ;;  %v4905_v62 = vsel %vm930_vm3, %v20024_v57, %v4896_v9  ;;  %v4913_v56 = vsel %vm930_vm3, %v4896_v9, %v20024_v57 }
 0x7f0   : > { %v4939_v24 = vmul.f32 %v15737_v6, %v4913_v56  ;;  %v4940_v28 = vmul.f32 %v15740_v3, %v4905_v62  ;;  %5655 = vmatprep.subr.bf16.mxu1 %v4948_v21  ;;  %v4972_v39 = vmul.f32 %v4968_v63, %v15110_v55  ;;  %v4974_v5 = vmul.f32 %v4968_v63, %v15112_v41  ;;  %v11851_v3 = vld [vmem:[%s19762_s12] ss:$20 sps:$4 sm:$0xff]   ;;  %v11859_v21 = vld [vmem:[%s19762_s12 + $0x50] ss:$20 sps:$4 sm:$0xff]  }
 0x7f1   : > { %5656 = vmatpush1.bf16.msra.mxu1 %v4947_v32  ;;  %v15847_v51 = vpop.permute.xlu1 %5189  ;;  %v4976_v55 = vmul.f32 %v4968_v63, %v15146_v50  ;;  %v4978_v41 = vmul.f32 %v4968_v63, %v15148_v59  ;;  %v4987_v33 = vpack.c.bf16 %v4973_v30, %v4971_v38  ;;  %v4980_v50 = vmul.f32 %v4968_v63, %v15154_v43  ;;  %v20027_v62 = vld [vmem:[#allocation34_spill] sm:$0xff] }
 0x7f2   : > { %v4949_v7 = vpack.c.bf16 %v4941_v46, %v4939_v24  ;;  %v15849_v31 = vpop.permute.xlu0 %5187  ;;  %v4950_v34 = vpack.c.bf16 %v4942_v4, %v4940_v28  ;;  %v4988_v6 = vpack.c.bf16 %v4974_v5, %v4972_v39  ;;  %v4982_v59 = vmul.f32 %v4968_v63, %v15156_v20  ;;  %v11860_v4 = vld [vmem:[%s19762_s12 + $0x7c] ss:$20 sps:$4 sm:$0xff]  }
 0x7f3   : > { %v4990_v10 = vpack.c.bf16 %v4978_v41, %v4976_v55  ;;  %v4989_v42 = vpack.c.bf16 %v4977_v54, %v4975_v60  ;;  %v4979_v36 = vmul.f32 %v4964_v49, %v15158_v25  ;;  %v4981_v58 = vmul.f32 %v4964_v49, %v15152_v47  ;;  %v11857_v47 = vld [vmem:[%s19762_s12 + $0x54] ss:$20 sps:$4 sm:$0xff]  }
 0x7f4   : > { %5657 = vmatprep.subr.bf16.mxu1 %v4950_v34  ;;  %v4992_v13 = vpack.c.bf16 %v4982_v59, %v4980_v50  ;;  %v4984_v43 = vmul.f32 %v4968_v63, %v15168_v48  ;;  %v4986_v20 = vmul.f32 %v4968_v63, %v15162_v27  ;;  %v4983_v8 = vmul.f32 %v4964_v49, %v15174_v15  ;;  %v20028_v34 = vld [vmem:[#allocation28_spill] sm:$0xff]  ;;  %v11067_v50 = vld [vmem:[%s19906_s0 + $0xc] sm:$0x3] }
 0x7f5   : > { %5658 = vmatpush1.bf16.msra.mxu1 %v4949_v7  ;;  %v15858_v23 = vpop.permute.xlu1 %5193  ;;  %v4985_v48 = vmul.f32 %v4964_v49, %v15172_v53  ;;  %v4991_v52 = vpack.c.bf16 %v4981_v58, %v4979_v36  ;;  %v15893_v27 = vrot.slane %v11066_v18, %v12337_v16  ;;  %v15896_v0 = vrot.slane %v11066_v18, %v12328_v14  ;;  %v20026_v49 = vld [vmem:[#allocation23_spill] sm:$0xff] }
 0x7f6   : > { %v15863_v35 = vpop.permute.xlu0 %5191  ;;  %5700 = vmatprep.subr.bf16.mxu1 %v4988_v6  ;;  %v4994_v1 = vpack.c.bf16 %v4986_v20, %v4984_v43  ;;  %v20030_v36 = vld [vmem:[#allocation27_spill] sm:$0xff] }
 0x7f7   : > { %v4993_v2 = vpack.c.bf16 %v4985_v48, %v4983_v8  ;;  %v11862_v20 = vld [vmem:[%s19762_s12 + $0x78] ss:$20 sps:$4 sm:$0xff]   ;;  %v15962_v8 = vrot.slane %v11067_v50, %v12328_v14 }
 0x7f8   : > { %5660 = vmatmul.mubr.bf16.vlgmr.msra.gmra.mrb[64].mxu1 %v11851_v3  ;;  %v11865_v48 = vld [vmem:[%s19762_s12 + $0xc] ss:$20 sps:$4 sm:$0xff]  }
 0x7f9   : > { %5701 = vmatpush1.bf16.msra.mxu1 %v4987_v33  ;;  %v15869_v11 = vpop.permute.xlu1 %5197  ;;  %5669 = vmatprep.mubr.bf16.mxu1 %v11854_v26  ;;  %v20029_v26 = vld [vmem:[#allocation26_spill] sm:$0xff] }
 0x7fa   : > { %v15871_v37 = vpop.permute.xlu0 %5195  ;;  %5702 = vmatprep.subr.bf16.mxu1 %v4990_v10 }
 0x7fd   : > { %5703 = vmatpush1.bf16.msra.mxu1 %v4989_v42  ;;  %v15883_v22 = vpop.permute.xlu1 %5201 }
 0x7fe   : > { %v15888_v25 = vpop.permute.xlu0 %5199  ;;  %5704 = vmatprep.subr.bf16.mxu1 %v4992_v13 }
 0x800   : > { %5670 = vmatmul.mubr.bf16.gmra.mrb[68].mxu1 %v11856_v29 }
 0x801   : > { %5705 = vmatpush1.bf16.msra.mxu1 %v4991_v52  ;;  %v5022_v40 = vpop.permute.xlu1 %5021  ;;  %5679 = vmatprep.mubr.bf16.mxu1 %v11857_v47  ;;  %v15959_v47 = vrot.slane %v11067_v50, %v12337_v16  ;;  %v20040_v50 = vld [vmem:[#allocation22_spill] sm:$0xff] }
 0x802   : > { %v5036_v17 = vsel %vm1013_vm4, %v20025_v45, %v5022_v40  ;;  %v5044_v53 = vsel %vm1013_vm4, %v5022_v40, %v20025_v45  ;;  %v5020_v15 = vpop.permute.xlu0 %5019  ;;  %5706 = vmatprep.subr.bf16.mxu1 %v4994_v1  ;;  %v20031_v1 = vld [vmem:[#allocation25_spill] sm:$0xff] }
 0x803   : > { %v5065_v63 = vmul.f32 %v15893_v27, %v5036_v17  ;;  %v5066_v44 = vmul.f32 %v15896_v0, %v5044_v53  ;;  %v5035_v32 = vsel %vm1013_vm4, %v20026_v49, %v5020_v15  ;;  %v5043_v61 = vsel %vm1013_vm4, %v5020_v15, %v20026_v49 }
 0x804   : > { %v5063_v19 = vmul.f32 %v15893_v27, %v5035_v32  ;;  %v5064_v9 = vmul.f32 %v15896_v0, %v5043_v61  ;;  %v15981_v32 = vpop.f32.mrb[48].mxu1 }
 0x805   : > { %5707 = vmatpush1.bf16.msra.mxu1 %v4993_v2  ;;  %v5026_v46 = vpop.permute.xlu1 %5025  ;;  %20033 = vst [vmem:[#allocation12_spill] sm:$0xff] %v15981_v32 }
 0x806   : > { %v5079_v57 = vpack.c.bf16 %v5065_v63, %v5063_v19  ;;  %v5038_v56 = vsel %vm1013_vm4, %v20027_v62, %v5026_v46  ;;  %v5046_v24 = vsel %vm1013_vm4, %v5026_v46, %v20027_v62  ;;  %v5024_v28 = vpop.permute.xlu0 %5023  ;;  %v5080_v39 = vpack.c.bf16 %v5066_v44, %v5064_v9  ;;  %v20032_v63 = vld [vmem:[#allocation32_spill] sm:$0xff]  ;;  %v15985_v9 = vpop.f32.mrb[49].mxu1 }
 0x807   : > { %v5069_v5 = vmul.f32 %v15893_v27, %v5038_v56  ;;  %v5070_v7 = vmul.f32 %v15896_v0, %v5046_v24  ;;  %v5037_v38 = vsel %vm1013_vm4, %v20028_v34, %v5024_v28  ;;  %v5045_v30 = vsel %vm1013_vm4, %v5024_v28, %v20028_v34  ;;  %20034 = vst [vmem:[#allocation10_spill] sm:$0xff] %v15985_v9  ;;  %v15987_v46 = vpop.f32.mrb[50].mxu1 }
 0x808   : > { %v5067_v6 = vmul.f32 %v15893_v27, %v5037_v38  ;;  %v5068_v3 = vmul.f32 %v15896_v0, %v5045_v30  ;;  %5708 = vmatprep.subr.bf16.mxu1 %v5080_v39  ;;  %5680 = vmatmul.mubr.bf16.gmra.mrb[72].mxu1 %v11859_v21  ;;  %20035 = vst [vmem:[#allocation11_spill] sm:$0xff] %v15987_v46  ;;  %v15995_v24 = vpop.f32.mrb[51].mxu1 }
 0x809   : > { %5709 = vmatpush1.bf16.msra.mxu1 %v5079_v57  ;;  %v5030_v55 = vpop.permute.xlu1 %5029  ;;  %5689 = vmatprep.mubr.bf16.mxu1 %v11860_v4  ;;  %v20036_v57 = vld [vmem:[#allocation30_spill] sm:$0xff]  ;;  %20037 = vst [vmem:[#allocation9_spill] sm:$0xff] %v15995_v24 }
 0x80a   : > { %v5081_v41 = vpack.c.bf16 %v5069_v5, %v5067_v6  ;;  %v5040_v33 = vsel %vm1013_vm4, %v20029_v26, %v5030_v55  ;;  %v5048_v60 = vsel %vm1013_vm4, %v5030_v55, %v20029_v26  ;;  %v5028_v54 = vpop.permute.xlu0 %5027  ;;  %v5082_v10 = vpack.c.bf16 %v5070_v7, %v5068_v3  ;;  %v20038_v5 = vld [vmem:[#allocation31_spill] sm:$0xff]  ;;  %v20039_v55 = vld [vmem:[#allocation29_spill] sm:$0xff] }
 0x80b   : > { %v5073_v59 = vmul.f32 %v15893_v27, %v5040_v33  ;;  %v5074_v42 = vmul.f32 %v15896_v0, %v5048_v60  ;;  %v5039_v58 = vsel %vm1013_vm4, %v20030_v36, %v5028_v54  ;;  %v5047_v13 = vsel %vm1013_vm4, %v5028_v54, %v20030_v36 }
 0x80c   : > { %v5071_v18 = vmul.f32 %v15893_v27, %v5039_v58  ;;  %v5072_v43 = vmul.f32 %v15896_v0, %v5047_v13  ;;  %5710 = vmatprep.subr.bf16.mxu1 %v5082_v10 }
 0x80d   : > { %5711 = vmatpush1.bf16.msra.mxu1 %v5081_v41  ;;  %v5034_v29 = vpop.permute.xlu1 %5033 }
 0x80e   : > { %v5083_v52 = vpack.c.bf16 %v5073_v59, %v5071_v18  ;;  %v5042_v40 = vsel %vm1013_vm4, %v20031_v1, %v5034_v29  ;;  %v5050_v45 = vsel %vm1013_vm4, %v5034_v29, %v20031_v1  ;;  %v5032_v17 = vpop.permute.xlu0 %5031  ;;  %v5084_v53 = vpack.c.bf16 %v5074_v42, %v5072_v43  ;;  %v20041_v43 = vld [vmem:[#allocation17_spill] sm:$0xff]  ;;  %v11068_v1 = vld [vmem:[%s19906_s0 + $0xe] sm:$0x3] }
 0x80f   : > { %v5077_v15 = vmul.f32 %v15893_v27, %v5042_v40  ;;  %v5078_v2 = vmul.f32 %v15896_v0, %v5050_v45  ;;  %v5041_v44 = vsel %vm1013_vm4, %v20032_v63, %v5032_v17  ;;  %v5049_v49 = vsel %vm1013_vm4, %v5032_v17, %v20032_v63  ;;  %v20042_v17 = vld [vmem:[#allocation8_spill] sm:$0xff] }
 0x810   : > { %v5075_v61 = vmul.f32 %v15893_v27, %v5041_v44  ;;  %v5076_v19 = vmul.f32 %v15896_v0, %v5049_v49  ;;  %5712 = vmatprep.subr.bf16.mxu1 %v5084_v53  ;;  %5690 = vmatmul.mubr.bf16.gmra.mrb[76].mxu1 %v11862_v20  ;;  %v16043_v49 = vrot.slane %v11068_v1, %v12337_v16 }
 0x811   : > { %5713 = vmatpush1.bf16.msra.mxu1 %v5083_v52  ;;  %v5114_v21 = vpop.permute.xlu1 %5113  ;;  %5732 = vmatprep.mubr.bf16.mxu1 %v11865_v48 }
 0x812   : > { %v5085_v4 = vpack.c.bf16 %v5077_v15, %v5075_v61  ;;  %v5128_v62 = vsel %vm1067_vm5, %v20036_v57, %v5114_v21  ;;  %v5136_v27 = vsel %vm1067_vm5, %v5114_v21, %v20036_v57  ;;  %v5112_v56 = vpop.permute.xlu0 %5111  ;;  %v5086_v0 = vpack.c.bf16 %v5078_v2, %v5076_v19  ;;  %v20043_v21 = vld [vmem:[#allocation7_spill] sm:$0xff] }
 0x813   : > { %v5157_v28 = vmul.f32 %v15959_v47, %v5128_v62  ;;  %v5158_v39 = vmul.f32 %v15962_v8, %v5136_v27  ;;  %v5127_v7 = vsel %vm1067_vm5, %v20038_v5, %v5112_v56  ;;  %v5135_v34 = vsel %vm1067_vm5, %v5112_v56, %v20038_v5 }
 0x814   : > { %v5155_v38 = vmul.f32 %v15959_v47, %v5127_v7  ;;  %v5156_v30 = vmul.f32 %v15962_v8, %v5135_v34  ;;  %5714 = vmatprep.subr.bf16.mxu1 %v5086_v0  ;;  %v16046_v61 = vrot.slane %v11068_v1, %v12328_v14 }
 0x815   : > { %5715 = vmatpush1.bf16.msra.mxu1 %v5085_v4  ;;  %v5118_v6 = vpop.permute.xlu1 %5117 }
 0x816   : > { %v5171_v3 = vpack.c.bf16 %v5157_v28, %v5155_v38  ;;  %v5130_v41 = vsel %vm1067_vm5, %v20039_v55, %v5118_v6  ;;  %v5138_v26 = vsel %vm1067_vm5, %v5118_v6, %v20039_v55  ;;  %v5116_v33 = vpop.permute.xlu0 %5115  ;;  %v5172_v60 = vpack.c.bf16 %v5158_v39, %v5156_v30  ;;  %v20044_v28 = vld [vmem:[#allocation18_spill] sm:$0xff] }
 0x817   : > { %v5161_v54 = vmul.f32 %v15959_v47, %v5130_v41  ;;  %v5162_v10 = vmul.f32 %v15962_v8, %v5138_v26  ;;  %v5129_v59 = vsel %vm1067_vm5, %v20040_v50, %v5116_v33  ;;  %v5137_v42 = vsel %vm1067_vm5, %v5116_v33, %v20040_v50 }
 0x818   : > { %v5159_v36 = vmul.f32 %v15959_v47, %v5129_v59  ;;  %v5160_v58 = vmul.f32 %v15962_v8, %v5137_v42  ;;  %5716 = vmatprep.subr.bf16.mxu1 %v5172_v60 }
 0x819   : > { %5717 = vmatpush1.bf16.msra.mxu1 %v5171_v3  ;;  %v5122_v13 = vpop.permute.xlu1 %5121 }
 0x81a   : > { %v5173_v18 = vpack.c.bf16 %v5161_v54, %v5159_v36  ;;  %v5132_v20 = vsel %vm1067_vm5, %v20041_v43, %v5122_v13  ;;  %v5140_v29 = vsel %vm1067_vm5, %v5122_v13, %v20041_v43  ;;  %v5120_v48 = vpop.permute.xlu0 %5119  ;;  %v5174_v52 = vpack.c.bf16 %v5162_v10, %v5160_v58 }
 0x81b   : > { %v5165_v40 = vmul.f32 %v15959_v47, %v5132_v20  ;;  %v5166_v45 = vmul.f32 %v15962_v8, %v5140_v29  ;;  %v5131_v53 = vsel %vm1067_vm5, %v20042_v17, %v5120_v48  ;;  %v5139_v15 = vsel %vm1067_vm5, %v5120_v48, %v20042_v17 }
 0x81c   : > { %v5163_v2 = vmul.f32 %v15959_v47, %v5131_v53  ;;  %v5164_v63 = vmul.f32 %v15962_v8, %v5139_v15  ;;  %5718 = vmatprep.subr.bf16.mxu1 %v5174_v52 }
 0x81d   : > { %5719 = vmatpush1.bf16.msra.mxu1 %v5173_v18  ;;  %v5126_v44 = vpop.permute.xlu1 %5125 }
 0x81e   : > { %v5175_v19 = vpack.c.bf16 %v5165_v40, %v5163_v2  ;;  %v5134_v4 = vsel %vm1067_vm5, %v20043_v21, %v5126_v44  ;;  %v5142_v57 = vsel %vm1067_vm5, %v5126_v44, %v20043_v21  ;;  %v5124_v62 = vpop.permute.xlu0 %5123  ;;  %v5176_v27 = vpack.c.bf16 %v5166_v45, %v5164_v63 }
 0x81f   : > { %v5169_v56 = vmul.f32 %v15959_v47, %v5134_v4  ;;  %v5170_v0 = vmul.f32 %v15962_v8, %v5142_v57  ;;  %v5133_v39 = vsel %vm1067_vm5, %v20044_v28, %v5124_v62  ;;  %v5141_v5 = vsel %vm1067_vm5, %v5124_v62, %v20044_v28 }
 0x820   : > { %v5167_v7 = vmul.f32 %v15959_v47, %v5133_v39  ;;  %v5168_v34 = vmul.f32 %v15962_v8, %v5141_v5  ;;  %5720 = vmatprep.subr.bf16.mxu1 %v5176_v27 }
 0x821   : > { %5721 = vmatpush1.bf16.msra.mxu1 %v5175_v19  ;;  %v5206_v38 = vpop.permute.xlu1 %5205 }
 0x822   : > { %v5177_v30 = vpack.c.bf16 %v5169_v56, %v5167_v7  ;;  %v5220_v6 = vsel %vm1121_vm6, %v15847_v51, %v5206_v38  ;;  %v5228_v3 = vsel %vm1121_vm6, %v5206_v38, %v15847_v51  ;;  %v5204_v55 = vpop.permute.xlu0 %5203  ;;  %v5178_v41 = vpack.c.bf16 %v5170_v0, %v5168_v34  ;;  %v11863_v7 = vld [vmem:[%s19762_s12 + $0x8] ss:$20 sps:$4 sm:$0xff]   ;;  %v16134_v38 = vpop.f32.mrb[52].mxu1 }
 0x823   : > { %v5249_v26 = vmul.f32 %v16043_v49, %v5220_v6  ;;  %v5250_v47 = vmul.f32 %v16046_v61, %v5228_v3  ;;  %v5219_v8 = vsel %vm1121_vm6, %v15849_v31, %v5204_v55  ;;  %v5227_v33 = vsel %vm1121_vm6, %v5204_v55, %v15849_v31  ;;  %20045 = vst [vmem:[#allocation16_spill] sm:$0xff] %v16134_v38 }
 0x824   : > { %v5247_v60 = vmul.f32 %v16043_v49, %v5219_v8  ;;  %v5248_v54 = vmul.f32 %v16046_v61, %v5227_v33  ;;  %5722 = vmatprep.subr.bf16.mxu1 %v5178_v41  ;;  %v11868_v41 = vld [vmem:[%s19762_s12 + $0x30] ss:$20 sps:$4 sm:$0xff]  }
 0x825   : > { %5723 = vmatpush1.bf16.msra.mxu1 %v5177_v30  ;;  %v5210_v51 = vpop.permute.xlu1 %5209  ;;  %v11869_v8 = vld [vmem:[%s19762_s12 + $0x5c] ss:$20 sps:$4 sm:$0xff]  }
 0x826   : > { %v5263_v10 = vpack.c.bf16 %v5249_v26, %v5247_v60  ;;  %v5222_v50 = vsel %vm1121_vm6, %v15858_v23, %v5210_v51  ;;  %v5230_v59 = vsel %vm1121_vm6, %v5210_v51, %v15858_v23  ;;  %v5208_v42 = vpop.permute.xlu0 %5207  ;;  %v5264_v36 = vpack.c.bf16 %v5250_v47, %v5248_v54  ;;  %v11069_v26 = vld [vmem:[%s19906_s0 + $0x10] sm:$0x3] }
 0x827   : > { %v5253_v31 = vmul.f32 %v16043_v49, %v5222_v50  ;;  %v5254_v58 = vmul.f32 %v16046_v61, %v5230_v59  ;;  %v5221_v13 = vsel %vm1121_vm6, %v15863_v35, %v5208_v42  ;;  %v5229_v18 = vsel %vm1121_vm6, %v5208_v42, %v15863_v35 }
 0x828   : > { %v5251_v43 = vmul.f32 %v16043_v49, %v5221_v13  ;;  %v5252_v20 = vmul.f32 %v16046_v61, %v5229_v18  ;;  %5724 = vmatprep.subr.bf16.mxu1 %v5264_v36  ;;  %v16154_v60 = vrot.slane %v11069_v26, %v12337_v16  ;;  %v16157_v54 = vrot.slane %v11069_v26, %v12328_v14 }
 0x829   : > { %5725 = vmatpush1.bf16.msra.mxu1 %v5263_v10  ;;  %v5214_v23 = vpop.permute.xlu1 %5213 }
 0x82a   : > { %v5265_v29 = vpack.c.bf16 %v5253_v31, %v5251_v43  ;;  %v5224_v48 = vsel %vm1121_vm6, %v15869_v11, %v5214_v23  ;;  %v5232_v52 = vsel %vm1121_vm6, %v5214_v23, %v15869_v11  ;;  %v5212_v1 = vpop.permute.xlu0 %5211  ;;  %v5266_v40 = vpack.c.bf16 %v5254_v58, %v5252_v20 }
 0x82b   : > { %v5257_v35 = vmul.f32 %v16043_v49, %v5224_v48  ;;  %v5258_v45 = vmul.f32 %v16046_v61, %v5232_v52  ;;  %v5223_v17 = vsel %vm1121_vm6, %v15871_v37, %v5212_v1  ;;  %v5231_v53 = vsel %vm1121_vm6, %v5212_v1, %v15871_v37  ;;  %v11871_v48 = vld [vmem:[%s19762_s12 + $0x58] ss:$20 sps:$4 sm:$0xff]  }
 0x82c   : > { %v5255_v15 = vmul.f32 %v16043_v49, %v5223_v17  ;;  %v5256_v2 = vmul.f32 %v16046_v61, %v5231_v53  ;;  %5726 = vmatprep.subr.bf16.mxu1 %v5266_v40  ;;  %v11872_v1 = vld [vmem:[%s19762_s12 + $0x84] ss:$20 sps:$4 sm:$0xff]  }
 0x82d   : > { %5727 = vmatpush1.bf16.msra.mxu1 %v5265_v29  ;;  %v5218_v11 = vpop.permute.xlu1 %5217 }
 0x82e   : > { %v5267_v63 = vpack.c.bf16 %v5257_v35, %v5255_v15  ;;  %v5226_v44 = vsel %vm1121_vm6, %v15883_v22, %v5218_v11  ;;  %v5234_v19 = vsel %vm1121_vm6, %v5218_v11, %v15883_v22  ;;  %v5216_v21 = vpop.permute.xlu0 %5215  ;;  %v5268_v4 = vpack.c.bf16 %v5258_v45, %v5256_v2 }
 0x82f   : > { %v5261_v37 = vmul.f32 %v16043_v49, %v5226_v44  ;;  %v5262_v57 = vmul.f32 %v16046_v61, %v5234_v19  ;;  %v5225_v62 = vsel %vm1121_vm6, %v15888_v25, %v5216_v21  ;;  %v5233_v27 = vsel %vm1121_vm6, %v5216_v21, %v15888_v25  ;;  %v11866_v25 = vld [vmem:[%s19762_s12 + $0x34] ss:$20 sps:$4 sm:$0xff]  }
 0x830   : > { %v5259_v56 = vmul.f32 %v16043_v49, %v5225_v62  ;;  %v5260_v0 = vmul.f32 %v16046_v61, %v5233_v27  ;;  %5728 = vmatprep.subr.bf16.mxu1 %v5268_v4  ;;  %v16136_v61 = vpop.f32.mrb[53].mxu1 }
 0x831   : > { %5729 = vmatpush1.bf16.msra.mxu1 %v5267_v63  ;;  %v5282_v22 = vpop.permute.xlu1 %5281  ;;  %20046 = vst [vmem:[#allocation14_spill] sm:$0xff] %v16136_v61  ;;  %v16138_v6 = vpop.f32.mrb[54].mxu1 }
 0x832   : > { %v5269_v28 = vpack.c.bf16 %v5261_v37, %v5259_v56  ;;  %v5280_v39 = vpop.permute.xlu0 %5279  ;;  %v5270_v5 = vpack.c.bf16 %v5262_v57, %v5260_v0  ;;  %20047 = vst [vmem:[#allocation20_spill] sm:$0xff] %v16138_v6  ;;  %v16140_v55 = vpop.f32.mrb[55].mxu1 }
 0x833   : > { %20048 = vst [vmem:[#allocation21_spill] sm:$0xff] %v16140_v55  ;;  %v16159_v51 = vpop.f32.mrb[56].mxu1 }
 0x834   : > { %5730 = vmatprep.subr.bf16.mxu1 %v5270_v5  ;;  %20049 = vst [vmem:[#allocation15_spill] sm:$0xff] %v16159_v51  ;;  %v16161_v10 = vpop.f32.mrb[57].mxu1 }
 0x835   : > { %5731 = vmatpush1.bf16.msra.mxu1 %v5269_v28  ;;  %v5286_v34 = vpop.permute.xlu1 %5285  ;;  %20050 = vst [vmem:[#allocation13_spill] sm:$0xff] %v16161_v10  ;;  %v16163_v59 = vpop.f32.mrb[58].mxu1 }
 0x836   : > { %v5284_v49 = vpop.permute.xlu0 %5283  ;;  %20051 = vst [vmem:[#allocation6_spill] sm:$0xff] %v16163_v59  ;;  %v16169_v58 = vpop.f32.mrb[59].mxu1 }
 0x837   : > { %20052 = vst [vmem:[#allocation19_spill] sm:$0xff] %v16169_v58  ;;  %v16195_v44 = vpop.f32.mrb[60].mxu1 }
 0x838   : > { %5733 = vmatmul.mubr.bf16.vlgmr.msra.gmra.mrb[64].mxu1 %v11863_v7  ;;  %20053 = vst [vmem:[#allocation33_spill] sm:$0xff] %v16195_v44  ;;  %v16199_v4 = vpop.f32.mrb[61].mxu1 }
 0x839   : > { %v5290_v30 = vpop.permute.xlu1 %5289  ;;  %5742 = vmatprep.mubr.bf16.mxu1 %v11866_v25  ;;  %20054 = vst [vmem:[#allocation24_spill] sm:$0xff] %v16199_v4  ;;  %v16201_v57 = vpop.f32.mrb[62].mxu1 }
 0x83a   : > { %v5288_v3 = vpop.permute.xlu0 %5287  ;;  %20055 = vst [vmem:[#allocation23_spill] sm:$0xff] %v16201_v57  ;;  %v16207_v28 = vpop.f32.mrb[63].mxu1 }
 0x83b   : > { %20056 = vst [vmem:[#allocation34_spill] sm:$0xff] %v16207_v28 }
 0x83d   : > { %v5294_v47 = vpop.permute.xlu1 %5293 }
 0x83e   : > { %v16151_v33 = vpop.permute.xlu0 %5291 }
 0x840   : > { %5743 = vmatmul.mubr.bf16.gmra.mrb[68].mxu1 %v11868_v41 }
 0x841   : > { %v5298_v50 = vpop.permute.xlu1 %5297  ;;  %5752 = vmatprep.mubr.bf16.mxu1 %v11869_v8 }
 0x842   : > { %v5312_v42 = vsel %vm1175_vm7, %v5282_v22, %v5298_v50  ;;  %v5320_v36 = vsel %vm1175_vm7, %v5298_v50, %v5282_v22  ;;  %v5296_v31 = vpop.permute.xlu0 %5295 }
 0x843   : > { %v5341_v13 = vmul.f32 %v16154_v60, %v5312_v42  ;;  %v5342_v18 = vmul.f32 %v16157_v54, %v5320_v36  ;;  %v5311_v43 = vsel %vm1175_vm7, %v5280_v39, %v5296_v31  ;;  %v5319_v20 = vsel %vm1175_vm7, %v5296_v31, %v5280_v39 }
 0x844   : > { %v5339_v23 = vmul.f32 %v16154_v60, %v5311_v43  ;;  %v5340_v29 = vmul.f32 %v16157_v54, %v5319_v20 }
 0x845   : > { %v5302_v52 = vpop.permute.xlu1 %5301 }
 0x846   : > { %v5355_v40 = vpack.c.bf16 %v5341_v13, %v5339_v23  ;;  %v5314_v35 = vsel %vm1175_vm7, %v5286_v34, %v5302_v52  ;;  %v5322_v45 = vsel %vm1175_vm7, %v5302_v52, %v5286_v34  ;;  %v5300_v17 = vpop.permute.xlu0 %5299  ;;  %v5356_v53 = vpack.c.bf16 %v5342_v18, %v5340_v29 }
 0x847   : > { %v5345_v15 = vmul.f32 %v16154_v60, %v5314_v35  ;;  %v5346_v2 = vmul.f32 %v16157_v54, %v5322_v45  ;;  %v5313_v11 = vsel %vm1175_vm7, %v5284_v49, %v5300_v17  ;;  %v5321_v63 = vsel %vm1175_vm7, %v5300_v17, %v5284_v49 }
 0x848   : > { %v5343_v19 = vmul.f32 %v16154_v60, %v5313_v11  ;;  %v5344_v21 = vmul.f32 %v16157_v54, %v5321_v63  ;;  %5753 = vmatmul.mubr.bf16.gmra.mrb[72].mxu1 %v11871_v48  ;;  %5773 = vmatprep.subr.bf16.mxu1 %v5356_v53  ;;  %v11875_v48 = vld [vmem:[%s19762_s12 + $0x10] ss:$20 sps:$4 sm:$0xff]  }
 0x849   : > { %5774 = vmatpush1.bf16.msra.mxu1 %v5355_v40  ;;  %v5306_v37 = vpop.permute.xlu1 %5305  ;;  %5762 = vmatprep.mubr.bf16.mxu1 %v11872_v1 }
 0x84a   : > { %v5357_v62 = vpack.c.bf16 %v5345_v15, %v5343_v19  ;;  %v5316_v27 = vsel %vm1175_vm7, %v5290_v30, %v5306_v37  ;;  %v5324_v56 = vsel %vm1175_vm7, %v5306_v37, %v5290_v30  ;;  %v5304_v0 = vpop.permute.xlu0 %5303  ;;  %v5358_v22 = vpack.c.bf16 %v5346_v2, %v5344_v21  ;;  %v11874_v30 = vld [vmem:[%s19762_s12 + $0x80] ss:$20 sps:$4 sm:$0xff]  }
 0x84b   : > { %v5349_v39 = vmul.f32 %v16154_v60, %v5316_v27  ;;  %v5350_v5 = vmul.f32 %v16157_v54, %v5324_v56  ;;  %v5315_v7 = vsel %vm1175_vm7, %v5288_v3, %v5304_v0  ;;  %v5323_v34 = vsel %vm1175_vm7, %v5304_v0, %v5288_v3 }
 0x84c   : > { %v5347_v25 = vmul.f32 %v16154_v60, %v5315_v7  ;;  %v5348_v49 = vmul.f32 %v16157_v54, %v5323_v34  ;;  %5775 = vmatprep.subr.bf16.mxu1 %v5358_v22 }
 0x84d   : > { %5776 = vmatpush1.bf16.msra.mxu1 %v5357_v62  ;;  %v5310_v41 = vpop.permute.xlu1 %5309 }
 0x84e   : > { %v5359_v26 = vpack.c.bf16 %v5349_v39, %v5347_v25  ;;  %v5318_v8 = vsel %vm1175_vm7, %v5294_v47, %v5310_v41  ;;  %v5326_v50 = vsel %vm1175_vm7, %v5310_v41, %v5294_v47  ;;  %v5308_v42 = vpop.permute.xlu0 %5307  ;;  %v5360_v3 = vpack.c.bf16 %v5350_v5, %v5348_v49 }
 0x84f   : > { %v5353_v36 = vmul.f32 %v16154_v60, %v5318_v8  ;;  %v5354_v31 = vmul.f32 %v16157_v54, %v5326_v50  ;;  %v5317_v13 = vsel %vm1175_vm7, %v16151_v33, %v5308_v42  ;;  %v5325_v18 = vsel %vm1175_vm7, %v5308_v42, %v16151_v33  ;;  %v11876_v33 = vld [vmem:[%s19762_s12 + $0x38] ss:$20 sps:$4 sm:$0xff]  }
 0x850   : > { %v5351_v43 = vmul.f32 %v16154_v60, %v5317_v13  ;;  %v5352_v20 = vmul.f32 %v16157_v54, %v5325_v18  ;;  %5763 = vmatmul.mubr.bf16.gmra.mrb[76].mxu1 %v11874_v30  ;;  %5777 = vmatprep.subr.bf16.mxu1 %v5360_v3  ;;  %v20057_v47 = vmov 0   ;;  %v11877_v60 = vld [vmem:[%s19762_s12 + $0x60] ss:$20 sps:$4 sm:$0xff]   ;;  %v11878_v54 = vld [vmem:[%s19762_s12 + $0x88] ss:$20 sps:$4 sm:$0xff]  }
 0x851   : > { %5778 = vmatpush1.bf16.msra.mxu1 %v5359_v26  ;;  %5805 = vmatprep.mubr.bf16.mxu1 %v20057_v47 }
 0x852   : > { %v5361_v23 = vpack.c.bf16 %v5353_v36, %v5351_v43  ;;  %v5362_v29 = vpack.c.bf16 %v5354_v31, %v5352_v20 }
 0x854   : > { %5779 = vmatprep.subr.bf16.mxu1 %v5362_v29 }
 0x855   : > { %5780 = vmatpush1.bf16.msra.mxu1 %v5361_v23 }
 0x858   : > { %11090 = vmatmul.mubr.msk.bf16.vlgmr.msra.gmra.mrb[64].mxu1 %vm1632_vm9, %v11875_v48 }
 0x859   : > { %5815 = vmatprep.mubr.bf16.mxu1 %v20057_v47 }
 0x85e   : > { %v5483_v45 = vpop.permute.xlu1 %5482 }
 0x85f   : > { %v5478_v52 = vpop.permute.xlu0 %5477 }
 0x860   : > { %11091 = vmatmul.mubr.msk.bf16.gmra.mrb[68].mxu1 %vm1632_vm9, %v11876_v33 }
 0x861   : > { %5825 = vmatprep.mubr.bf16.mxu1 %v20057_v47 }
 0x862   : > { %v5493_v8 = vpop.permute.xlu1 %5492 }
 0x863   : > { %v5488_v41 = vpop.permute.xlu0 %5487 }
 0x866   : > { %v5503_v23 = vpop.permute.xlu1 %5502 }
 0x867   : > { %v5498_v43 = vpop.permute.xlu0 %5497 }
 0x868   : > { %11092 = vmatmul.mubr.msk.bf16.gmra.mrb[72].mxu1 %vm1632_vm9, %v11877_v60 }
 0x869   : > { %5835 = vmatprep.mubr.bf16.mxu1 %v20057_v47 }
 0x870   : > { %11093 = vmatmul.mubr.msk.bf16.gmra.mrb[76].mxu1 %vm1632_vm9, %v11878_v54 }
 0x92b   : > { %v5807_v1 = vpop.f32.mrb[64].mxu1 }
 0x92c   : > { %v11536_v40 = vadd.f32 %v5807_v1, %v5478_v52  ;;  %v5809_v35 = vpop.f32.mrb[65].mxu1 }
 0x92d   : > { %v5811_v17 = vpop.f32.mrb[66].mxu1  ;;  %v11537_v62 = vadd.f32 %v5809_v35, %v5478_v52 }
 0x92e   : > { %v16254_v53 = vmax.f32 %v11536_v40, 0.0  ;;  %v11538_v15 = vadd.f32 %v5811_v17, %v5483_v45  ;;  %v5813_v2 = vpop.f32.mrb[67].mxu1  ;;  %v5508_v40 = vpop.permute.xlu0 %5507 }
 0x92f   : > { %v11539_v56 = vadd.f32 %v5813_v2, %v5483_v45  ;;  %v16272_v39 = vmax.f32 %v11537_v62, 0.0  ;;  %v5513_v45 = vpop.permute.xlu1 %5512 }
 0x930   : > { %20058 = vst [vmem:[#allocation28_spill] sm:$0xff] %v16254_v53  ;;  %v16256_v11 = vmax.f32 %v11538_v15, 0.0  ;;  %5862 = vrot.lane.b32.xlu0 %v16254_v53, %s19959_s30 }
 0x931   : > { %v16276_v7 = vmax.f32 %v11539_v56, 0.0 }
 0x932   : > { %5864 = vrot.lane.b32.xlu1 %v16256_v11, %s19959_s30 }
 0x933   : > { %v5817_v63 = vpop.f32.mrb[68].mxu1 }
 0x934   : > { %v5819_v19 = vpop.f32.mrb[69].mxu1  ;;  %5954 = vrot.lane.b32.xlu0 %v16254_v53, %s19960_s7  ;;  %v11540_v26 = vadd.f32 %v5817_v63, %v5488_v41 }
 0x935   : > { %v5821_v21 = vpop.f32.mrb[70].mxu1  ;;  %v11541_v36 = vadd.f32 %v5819_v19, %v5488_v41 }
 0x936   : > { %v5823_v37 = vpop.f32.mrb[71].mxu1  ;;  %5956 = vrot.lane.b32.xlu1 %v16256_v11, %s19960_s7  ;;  %v11542_v50 = vadd.f32 %v5821_v21, %v5493_v8  ;;  %v16296_v42 = vmax.f32 %v11540_v26, 0.0 }
 0x937   : > { %v11543_v31 = vadd.f32 %v5823_v37, %v5493_v8  ;;  %v16316_v13 = vmax.f32 %v11541_v36, 0.0 }
 0x938   : > { %6046 = vrot.lane.b32.xlu0 %v16254_v53, %s19961_s3  ;;  %v16300_v3 = vmax.f32 %v11542_v50, 0.0 }
 0x939   : > { %v16320_v18 = vmax.f32 %v11543_v31, 0.0 }
 0x93a   : > { %6048 = vrot.lane.b32.xlu1 %v16256_v11, %s19961_s3 }
 0x93b   : > { %v5827_v27 = vpop.f32.mrb[72].mxu1 }
 0x93c   : > { %v5829_v0 = vpop.f32.mrb[73].mxu1  ;;  %6138 = vrot.lane.b32.xlu0 %v16254_v53, %s19962_s25  ;;  %v11544_v20 = vadd.f32 %v5827_v27, %v5498_v43 }
 0x93d   : > { %v5831_v22 = vpop.f32.mrb[74].mxu1  ;;  %v11545_v60 = vadd.f32 %v5829_v0, %v5498_v43 }
 0x93e   : > { %v5833_v5 = vpop.f32.mrb[75].mxu1  ;;  %6140 = vrot.lane.b32.xlu1 %v16256_v11, %s19962_s25  ;;  %v11546_v29 = vadd.f32 %v5831_v22, %v5503_v23  ;;  %v16336_v48 = vmax.f32 %v11544_v20, 0.0 }
 0x93f   : > { %v11547_v54 = vadd.f32 %v5833_v5, %v5503_v23  ;;  %v16356_v52 = vmax.f32 %v11545_v60, 0.0 }
 0x940   : > { %5878 = vrot.lane.b32.xlu0 %v16272_v39, %s19959_s30  ;;  %v16340_v33 = vmax.f32 %v11546_v29, 0.0 }
 0x941   : > { %v16360_v1 = vmax.f32 %v11547_v54, 0.0 }
 0x942   : > { %5880 = vrot.lane.b32.xlu1 %v16276_v7, %s19959_s30 }
 0x943   : > { %v5837_v34 = vpop.f32.mrb[76].mxu1 }
 0x944   : > { %v16282_v25 = vpop.f32.mrb[77].mxu1  ;;  %5970 = vrot.lane.b32.xlu0 %v16272_v39, %s19960_s7  ;;  %v11548_v35 = vadd.f32 %v5837_v34, %v5508_v40 }
 0x945   : > { %v5841_v49 = vpop.f32.mrb[78].mxu1  ;;  %v11549_v63 = vadd.f32 %v16282_v25, %v5508_v40  ;;  %v5910_v25 = vld [vmem:[%s19906_s0] sm:$0x3] }
 0x946   : > { %v16286_v30 = vpop.f32.mrb[79].mxu1  ;;  %5972 = vrot.lane.b32.xlu1 %v16276_v7, %s19960_s7  ;;  %v11550_v17 = vadd.f32 %v5841_v49, %v5513_v45  ;;  %v16376_v15 = vmax.f32 %v11548_v35, 0.0  ;;  %v16443_v41 = vrot.slane %v5910_v25, %v12328_v14 }
 0x947   : > { %v11551_v19 = vadd.f32 %v16286_v30, %v5513_v45  ;;  %v16394_v21 = vmax.f32 %v11549_v63, 0.0  ;;  %v16440_v30 = vrot.slane %v5910_v25, %v12337_v16 }
 0x948   : > { %6062 = vrot.lane.b32.xlu0 %v16272_v39, %s19961_s3  ;;  %v16380_v2 = vmax.f32 %v11550_v17, 0.0 }
 0x949   : > { %v16398_v37 = vmax.f32 %v11551_v19, 0.0 }
 0x94a   : > { %6064 = vrot.lane.b32.xlu1 %v16276_v7, %s19961_s3 }
 0x94c   : > { %6154 = vrot.lane.b32.xlu0 %v16272_v39, %s19962_s25 }
 0x94e   : > { %6156 = vrot.lane.b32.xlu1 %v16276_v7, %s19962_s25 }
 0x950   : > { %5866 = vrot.lane.b32.xlu0 %v16296_v42, %s19959_s30 }
 0x952   : > { %5868 = vrot.lane.b32.xlu1 %v16300_v3, %s19959_s30 }
 0x954   : > { %5958 = vrot.lane.b32.xlu0 %v16296_v42, %s19960_s7 }
 0x956   : > { %5960 = vrot.lane.b32.xlu1 %v16300_v3, %s19960_s7 }
 0x958   : > { %6050 = vrot.lane.b32.xlu0 %v16296_v42, %s19961_s3 }
 0x95a   : > { %6052 = vrot.lane.b32.xlu1 %v16300_v3, %s19961_s3 }
 0x95c   : > { %6142 = vrot.lane.b32.xlu0 %v16296_v42, %s19962_s25 }
 0x95e   : > { %6144 = vrot.lane.b32.xlu1 %v16300_v3, %s19962_s25 }
 0x960   : > { %5882 = vrot.lane.b32.xlu0 %v16316_v13, %s19959_s30 }
 0x962   : > { %5884 = vrot.lane.b32.xlu1 %v16320_v18, %s19959_s30 }
 0x964   : > { %5974 = vrot.lane.b32.xlu0 %v16316_v13, %s19960_s7 }
 0x966   : > { %5976 = vrot.lane.b32.xlu1 %v16320_v18, %s19960_s7 }
 0x968   : > { %6066 = vrot.lane.b32.xlu0 %v16316_v13, %s19961_s3 }
 0x96a   : > { %6068 = vrot.lane.b32.xlu1 %v16320_v18, %s19961_s3 }
 0x96c   : > { %6158 = vrot.lane.b32.xlu0 %v16316_v13, %s19962_s25 }
 0x96e   : > { %6160 = vrot.lane.b32.xlu1 %v16320_v18, %s19962_s25 }
 0x970   : > { %5870 = vrot.lane.b32.xlu0 %v16336_v48, %s19959_s30 }
 0x972   : > { %5872 = vrot.lane.b32.xlu1 %v16340_v33, %s19959_s30 }
 0x974   : > { %5962 = vrot.lane.b32.xlu0 %v16336_v48, %s19960_s7 }
 0x976   : > { %5964 = vrot.lane.b32.xlu1 %v16340_v33, %s19960_s7 }
 0x978   : > { %6054 = vrot.lane.b32.xlu0 %v16336_v48, %s19961_s3 }
 0x97a   : > { %6056 = vrot.lane.b32.xlu1 %v16340_v33, %s19961_s3 }
 0x97c   : > { %6146 = vrot.lane.b32.xlu0 %v16336_v48, %s19962_s25 }
 0x97e   : > { %6148 = vrot.lane.b32.xlu1 %v16340_v33, %s19962_s25 }
 0x980   : > { %5886 = vrot.lane.b32.xlu0 %v16356_v52, %s19959_s30 }
 0x982   : > { %5888 = vrot.lane.b32.xlu1 %v16360_v1, %s19959_s30 }
 0x984   : > { %5978 = vrot.lane.b32.xlu0 %v16356_v52, %s19960_s7 }
 0x986   : > { %5980 = vrot.lane.b32.xlu1 %v16360_v1, %s19960_s7 }
 0x988   : > { %6070 = vrot.lane.b32.xlu0 %v16356_v52, %s19961_s3 }
 0x98a   : > { %6072 = vrot.lane.b32.xlu1 %v16360_v1, %s19961_s3 }
 0x98c   : > { %6162 = vrot.lane.b32.xlu0 %v16356_v52, %s19962_s25 }
 0x98e   : > { %6164 = vrot.lane.b32.xlu1 %v16360_v1, %s19962_s25 }
 0x990   : > { %5874 = vrot.lane.b32.xlu0 %v16376_v15, %s19959_s30 }
 0x992   : > { %5876 = vrot.lane.b32.xlu1 %v16380_v2, %s19959_s30 }
 0x994   : > { %5966 = vrot.lane.b32.xlu0 %v16376_v15, %s19960_s7 }
 0x996   : > { %5968 = vrot.lane.b32.xlu1 %v16380_v2, %s19960_s7 }
 0x998   : > { %6058 = vrot.lane.b32.xlu0 %v16376_v15, %s19961_s3 }
 0x99a   : > { %6060 = vrot.lane.b32.xlu1 %v16380_v2, %s19961_s3 }
 0x99c   : > { %5890 = vrot.lane.b32.xlu0 %v16394_v21, %s19959_s30 }
 0x99e   : > { %5892 = vrot.lane.b32.xlu1 %v16398_v37, %s19959_s30 }
 0x9a0   : > { %6150 = vrot.lane.b32.xlu0 %v16376_v15, %s19962_s25 }
 0x9a2   : > { %6152 = vrot.lane.b32.xlu1 %v16380_v2, %s19962_s25  ;;  %v5863_v62 = vpop.permute.xlu0 %5862 }
 0x9a4   : > { %v5865_v27 = vpop.permute.xlu1 %5864  ;;  %5982 = vrot.lane.b32.xlu0 %v16394_v21, %s19960_s7 }
 0x9a6   : > { %6276 = vrot.lane.b32.xlu1 %v16256_v11, %s19910_s27  ;;  %v16412_v56 = vpop.permute.xlu0 %5954 }
 0x9a8   : > { %v16414_v0 = vpop.permute.xlu1 %5956  ;;  %6074 = vrot.lane.b32.xlu0 %v16394_v21, %s19961_s3 }
 0x9aa   : > { %6292 = vrot.lane.b32.xlu1 %v16276_v7, %s19910_s27  ;;  %v16420_v22 = vpop.permute.xlu0 %6046 }
 0x9ac   : > { %v16422_v5 = vpop.permute.xlu1 %6048  ;;  %6166 = vrot.lane.b32.xlu0 %v16394_v21, %s19962_s25 }
 0x9ae   : > { %5984 = vrot.lane.b32.xlu1 %v16398_v37, %s19960_s7  ;;  %v16428_v34 = vpop.permute.xlu0 %6138 }
 0x9af   : > { %20059 = vst [vmem:[#allocation26_spill] sm:$0xff] %v16428_v34 }
 0x9b0   : > { %v16433_v49 = vpop.permute.xlu1 %6140  ;;  %6274 = vrot.lane.b32.xlu0 %v16254_v53, %s19910_s27 }
 0x9b2   : > { %6280 = vrot.lane.b32.xlu1 %v16300_v3, %s19910_s27  ;;  %v5879_v26 = vpop.permute.xlu0 %5878 }
 0x9b3   : > { %v5894_v8 = vsel %vm769_vm0, %v5863_v62, %v5879_v26  ;;  %v5902_v50 = vsel %vm769_vm0, %v5879_v26, %v5863_v62 }
 0x9b4   : > { %v5881_v36 = vpop.permute.xlu1 %5880  ;;  %6290 = vrot.lane.b32.xlu0 %v16272_v39, %s19910_s27  ;;  %v5922_v20 = vmul.f32 %v16440_v30, %v5902_v50  ;;  %v5923_v23 = vmul.f32 %v16443_v41, %v5894_v8 }
 0x9b5   : > { %v5895_v31 = vsel %vm769_vm0, %v5865_v27, %v5881_v36  ;;  %v5903_v43 = vsel %vm769_vm0, %v5881_v36, %v5865_v27  ;;  %v11881_v36 = vld [vmem:[%s19764_s14 + $0x4] ss:$20 sps:$4 sm:$0xff]  }
 0x9b6   : > { %v5924_v29 = vmul.f32 %v16440_v30, %v5903_v43  ;;  %v5925_v60 = vmul.f32 %v16443_v41, %v5895_v31  ;;  %6296 = vrot.lane.b32.xlu1 %v16320_v18, %s19910_s27  ;;  %v16461_v54 = vpop.permute.xlu0 %5970  ;;  %6930 = vmatprep.mubr.bf16.mxu0 %v11881_v36 }
 0x9b8   : > { %v5938_v40 = vpack.c.bf16 %v5924_v29, %v5922_v20  ;;  %v16463_v35 = vpop.permute.xlu1 %5972  ;;  %6278 = vrot.lane.b32.xlu0 %v16296_v42, %s19910_s27  ;;  %v5939_v45 = vpack.c.bf16 %v5925_v60, %v5923_v23 }
 0x9ba   : > { %6284 = vrot.lane.b32.xlu1 %v16340_v33, %s19910_s27  ;;  %6898 = vmatprep.subr.bf16.mxu0 %v5939_v45  ;;  %v16469_v17 = vpop.permute.xlu0 %6062 }
 0x9bb   : > { %6899 = vmatpush1.bf16.msra.mxu0 %v5938_v40 }
 0x9bc   : > { %v16471_v63 = vpop.permute.xlu1 %6064  ;;  %6294 = vrot.lane.b32.xlu0 %v16316_v13, %s19910_s27 }
 0x9be   : > { %6076 = vrot.lane.b32.xlu1 %v16398_v37, %s19961_s3  ;;  %v16477_v19 = vpop.permute.xlu0 %6154 }
 0x9bf   : > { %20060 = vst [vmem:[#allocation27_spill] sm:$0xff] %v16477_v19 }
 0x9c0   : > { %v16479_v62 = vpop.permute.xlu1 %6156  ;;  %6282 = vrot.lane.b32.xlu0 %v16336_v48, %s19910_s27 }
 0x9c2   : > { %6300 = vrot.lane.b32.xlu1 %v16360_v1, %s19910_s27  ;;  %v5867_v27 = vpop.permute.xlu0 %5866 }
 0x9c4   : > { %v5869_v25 = vpop.permute.xlu1 %5868  ;;  %6298 = vrot.lane.b32.xlu0 %v16356_v52, %s19910_s27 }
 0x9c6   : > { %6288 = vrot.lane.b32.xlu1 %v16380_v2, %s19910_s27  ;;  %v16489_v26 = vpop.permute.xlu0 %5958 }
 0x9c8   : > { %v16491_v8 = vpop.permute.xlu1 %5960  ;;  %6286 = vrot.lane.b32.xlu0 %v16376_v15, %s19910_s27 }
 0x9ca   : > { %6368 = vrot.lane.b32.xlu1 %v16256_v11, %s19914_s1  ;;  %v16497_v50 = vpop.permute.xlu0 %6050 }
 0x9cc   : > { %v16502_v31 = vpop.permute.xlu1 %6052  ;;  %6302 = vrot.lane.b32.xlu0 %v16394_v21, %s19910_s27 }
 0x9ce   : > { %6168 = vrot.lane.b32.xlu1 %v16398_v37, %s19962_s25  ;;  %v16508_v43 = vpop.permute.xlu0 %6142 }
 0x9cf   : > { %20061 = vst [vmem:[#allocation25_spill] sm:$0xff] %v16508_v43 }
 0x9d0   : > { %v16510_v20 = vpop.permute.xlu1 %6144  ;;  %6366 = vrot.lane.b32.xlu0 %v16254_v53, %s19914_s1 }
 0x9d1   : > { %20062 = vst [vmem:[#allocation32_spill] sm:$0xff] %v16510_v20 }
 0x9d2   : > { %6384 = vrot.lane.b32.xlu1 %v16276_v7, %s19914_s1  ;;  %v5883_v23 = vpop.permute.xlu0 %5882 }
 0x9d3   : > { %v5896_v29 = vsel %vm769_vm0, %v5867_v27, %v5883_v23  ;;  %v5904_v60 = vsel %vm769_vm0, %v5883_v23, %v5867_v27 }
 0x9d4   : > { %v5885_v40 = vpop.permute.xlu1 %5884  ;;  %6382 = vrot.lane.b32.xlu0 %v16272_v39, %s19914_s1  ;;  %v5926_v4 = vmul.f32 %v16440_v30, %v5904_v60  ;;  %v5927_v44 = vmul.f32 %v16443_v41, %v5896_v29 }
 0x9d5   : > { %v5897_v45 = vsel %vm769_vm0, %v5869_v25, %v5885_v40  ;;  %v5905_v36 = vsel %vm769_vm0, %v5885_v40, %v5869_v25 }
 0x9d6   : > { %v5928_v58 = vmul.f32 %v16440_v30, %v5905_v36  ;;  %v5929_v10 = vmul.f32 %v16443_v41, %v5897_v45  ;;  %6372 = vrot.lane.b32.xlu1 %v16300_v3, %s19914_s1  ;;  %v16532_v27 = vpop.permute.xlu0 %5974 }
 0x9d8   : > { %v5940_v23 = vpack.c.bf16 %v5928_v58, %v5926_v4  ;;  %v16534_v55 = vpop.permute.xlu1 %5976  ;;  %6370 = vrot.lane.b32.xlu0 %v16296_v42, %s19914_s1  ;;  %v5941_v25 = vpack.c.bf16 %v5929_v10, %v5927_v44 }
 0x9da   : > { %6388 = vrot.lane.b32.xlu1 %v16320_v18, %s19914_s1  ;;  %6900 = vmatprep.subr.bf16.mxu0 %v5941_v25  ;;  %v16540_v29 = vpop.permute.xlu0 %6066 }
 0x9db   : > { %6901 = vmatpush1.bf16.msra.mxu0 %v5940_v23 }
 0x9dc   : > { %v16542_v60 = vpop.permute.xlu1 %6068  ;;  %6386 = vrot.lane.b32.xlu0 %v16316_v13, %s19914_s1 }
 0x9de   : > { %6376 = vrot.lane.b32.xlu1 %v16340_v33, %s19914_s1  ;;  %v16548_v58 = vpop.permute.xlu0 %6158 }
 0x9df   : > { %20063 = vst [vmem:[#allocation30_spill] sm:$0xff] %v16548_v58  ;;  %v5986_v58 = vsel %vm822_vm1, %v16412_v56, %v16461_v54 }
 0x9e0   : > { %v16550_v4 = vpop.permute.xlu1 %6160  ;;  %6374 = vrot.lane.b32.xlu0 %v16336_v48, %s19914_s1 }
 0x9e1   : > { %20064 = vst [vmem:[#allocation31_spill] sm:$0xff] %v16550_v4  ;;  %v5995_v4 = vsel %vm822_vm1, %v16463_v35, %v16414_v0 }
 0x9e2   : > { %6392 = vrot.lane.b32.xlu1 %v16360_v1, %s19914_s1  ;;  %v5871_v10 = vpop.permute.xlu0 %5870 }
 0x9e4   : > { %v5873_v44 = vpop.permute.xlu1 %5872  ;;  %6390 = vrot.lane.b32.xlu0 %v16356_v52, %s19914_s1 }
 0x9e6   : > { %6380 = vrot.lane.b32.xlu1 %v16380_v2, %s19914_s1  ;;  %v16560_v40 = vpop.permute.xlu0 %5962 }
 0x9e8   : > { %v16562_v45 = vpop.permute.xlu1 %5964  ;;  %6378 = vrot.lane.b32.xlu0 %v16376_v15, %s19914_s1 }
 0x9ea   : > { %6460 = vrot.lane.b32.xlu1 %v16256_v11, %s19919_s28  ;;  %v16568_v36 = vpop.permute.xlu0 %6054 }
 0x9ec   : > { %v16570_v23 = vpop.permute.xlu1 %6056  ;;  %6394 = vrot.lane.b32.xlu0 %v16394_v21, %s19914_s1 }
 0x9ee   : > { %6304 = vrot.lane.b32.xlu1 %v16398_v37, %s19910_s27  ;;  %v16576_v25 = vpop.permute.xlu0 %6146 }
 0x9ef   : > { %20065 = vst [vmem:[#allocation29_spill] sm:$0xff] %v16576_v25  ;;  %v5987_v25 = vsel %vm822_vm1, %v16414_v0, %v16463_v35 }
 0x9f0   : > { %v16578_v28 = vpop.permute.xlu1 %6148  ;;  %6458 = vrot.lane.b32.xlu0 %v16254_v53, %s19919_s28 }
 0x9f1   : > { %20066 = vst [vmem:[#allocation22_spill] sm:$0xff] %v16578_v28 }
 0x9f2   : > { %6476 = vrot.lane.b32.xlu1 %v16276_v7, %s19919_s28  ;;  %v5887_v57 = vpop.permute.xlu0 %5886 }
 0x9f3   : > { %v5898_v59 = vsel %vm769_vm0, %v5871_v10, %v5887_v57  ;;  %v5906_v51 = vsel %vm769_vm0, %v5887_v57, %v5871_v10 }
 0x9f4   : > { %v5889_v6 = vpop.permute.xlu1 %5888  ;;  %6474 = vrot.lane.b32.xlu0 %v16272_v39, %s19919_s28  ;;  %v5930_v24 = vmul.f32 %v16440_v30, %v5906_v51  ;;  %v5931_v46 = vmul.f32 %v16443_v41, %v5898_v59 }
 0x9f5   : > { %v5899_v61 = vsel %vm769_vm0, %v5873_v44, %v5889_v6  ;;  %v5907_v38 = vsel %vm769_vm0, %v5889_v6, %v5873_v44 }
 0x9f6   : > { %v5932_v9 = vmul.f32 %v16440_v30, %v5907_v38  ;;  %v5933_v32 = vmul.f32 %v16443_v41, %v5899_v61  ;;  %6464 = vrot.lane.b32.xlu1 %v16300_v3, %s19919_s28  ;;  %v16600_v57 = vpop.permute.xlu0 %5978 }
 0x9f8   : > { %v5942_v10 = vpack.c.bf16 %v5932_v9, %v5930_v24  ;;  %v16602_v47 = vpop.permute.xlu1 %5980  ;;  %6462 = vrot.lane.b32.xlu0 %v16296_v42, %s19919_s28  ;;  %v5943_v6 = vpack.c.bf16 %v5933_v32, %v5931_v46 }
 0x9fa   : > { %6480 = vrot.lane.b32.xlu1 %v16320_v18, %s19919_s28  ;;  %6902 = vmatprep.subr.bf16.mxu0 %v5943_v6  ;;  %v16608_v51 = vpop.permute.xlu0 %6070 }
 0x9fb   : > { %6903 = vmatpush1.bf16.msra.mxu0 %v5942_v10  ;;  %v11094_v10 = vld [vmem:[%s19906_s0 + $0x2] sm:$0x3] }
 0x9fc   : > { %v16610_v38 = vpop.permute.xlu1 %6072  ;;  %6478 = vrot.lane.b32.xlu0 %v16316_v13, %s19919_s28  ;;  %v16652_v28 = vrot.slane %v11094_v10, %v12328_v14  ;;  %v6007_v35 = vrot.slane %v11094_v10, %v12337_v16 }
 0x9fe   : > { %6396 = vrot.lane.b32.xlu1 %v16398_v37, %s19914_s1  ;;  %v16616_v9 = vpop.permute.xlu0 %6162 }
 0x9ff   : > { %20067 = vst [vmem:[#allocation17_spill] sm:$0xff] %v16616_v9 }
 0xa00   : > { %v16618_v24 = vpop.permute.xlu1 %6164  ;;  %6466 = vrot.lane.b32.xlu0 %v16336_v48, %s19919_s28 }
 0xa01   : > { %20068 = vst [vmem:[#allocation8_spill] sm:$0xff] %v16618_v24 }
 0xa02   : > { %6468 = vrot.lane.b32.xlu1 %v16340_v33, %s19919_s28  ;;  %v5875_v32 = vpop.permute.xlu0 %5874 }
 0xa04   : > { %v5877_v46 = vpop.permute.xlu1 %5876  ;;  %6482 = vrot.lane.b32.xlu0 %v16356_v52, %s19919_s28 }
 0xa06   : > { %6484 = vrot.lane.b32.xlu1 %v16360_v1, %s19919_s28  ;;  %v16628_v61 = vpop.permute.xlu0 %5966 }
 0xa08   : > { %v16630_v59 = vpop.permute.xlu1 %5968  ;;  %6470 = vrot.lane.b32.xlu0 %v16376_v15, %s19919_s28 }
 0xa0a   : > { %6472 = vrot.lane.b32.xlu1 %v16380_v2, %s19919_s28  ;;  %v16636_v44 = vpop.permute.xlu0 %6058 }
 0xa0b   : > { %20069 = vst [vmem:[#allocation7_spill] sm:$0xff] %v16636_v44 }
 0xa0c   : > { %v16641_v6 = vpop.permute.xlu1 %6060  ;;  %6486 = vrot.lane.b32.xlu0 %v16394_v21, %s19919_s28 }
 0xa0d   : > { %20070 = vst [vmem:[#allocation18_spill] sm:$0xff] %v16641_v6  ;;  %v6017_v6 = vmul.f32 %v16652_v28, %v5987_v25 }
 0xa0e   : > { %6488 = vrot.lane.b32.xlu1 %v16398_v37, %s19919_s28  ;;  %v5891_v9 = vpop.permute.xlu0 %5890 }
 0xa0f   : > { %v5900_v24 = vsel %vm769_vm0, %v5875_v32, %v5891_v9  ;;  %v5908_v43 = vsel %vm769_vm0, %v5891_v9, %v5875_v32 }
 0xa10   : > { %v5893_v20 = vpop.permute.xlu1 %5892  ;;  %6550 = vrot.lane.b32.xlu0 %v16254_v53, %s19926_s26  ;;  %v5934_v32 = vmul.f32 %v16440_v30, %v5908_v43  ;;  %v5935_v19 = vmul.f32 %v16443_v41, %v5900_v24  ;;  %v5994_v43 = vsel %vm822_vm1, %v16461_v54, %v16412_v56  ;;  %v6016_v24 = vmul.f32 %v6007_v35, %v5995_v4 }
 0xa11   : > { %v5901_v34 = vsel %vm769_vm0, %v5877_v46, %v5893_v20  ;;  %v5909_v9 = vsel %vm769_vm0, %v5893_v20, %v5877_v46  ;;  %v5989_v20 = vsel %vm822_vm1, %v16491_v8, %v16534_v55  ;;  %v5988_v46 = vsel %vm822_vm1, %v16489_v26, %v16532_v27 }
 0xa12   : > { %v5936_v44 = vmul.f32 %v16440_v30, %v5909_v9  ;;  %v5937_v53 = vmul.f32 %v16443_v41, %v5901_v34  ;;  %6552 = vrot.lane.b32.xlu1 %v16256_v11, %s19926_s26  ;;  %v16679_v0 = vpop.permute.xlu0 %6150  ;;  %v6015_v30 = vmul.f32 %v16652_v28, %v5986_v58  ;;  %v5997_v56 = vsel %vm822_vm1, %v16534_v55, %v16491_v8 }
 0xa13   : > { %v6021_v54 = vmul.f32 %v16652_v28, %v5989_v20  ;;  %v5996_v55 = vsel %vm822_vm1, %v16532_v27, %v16489_v26  ;;  %v6019_v8 = vmul.f32 %v16652_v28, %v5988_v46  ;;  %v5990_v9 = vsel %vm822_vm1, %v16560_v40, %v16600_v57 }
 0xa14   : > { %v5944_v34 = vpack.c.bf16 %v5936_v44, %v5934_v32  ;;  %v16691_v41 = vpop.permute.xlu1 %6152  ;;  %6566 = vrot.lane.b32.xlu0 %v16272_v39, %s19926_s26  ;;  %v5945_v25 = vpack.c.bf16 %v5937_v53, %v5935_v19  ;;  %v6031_v44 = vpack.c.bf16 %v6017_v6, %v6015_v30  ;;  %v6014_v53 = vmul.f32 %v6007_v35, %v5994_v43  ;;  %v11095_v30 = vld [vmem:[%s19906_s0 + $0x4] sm:$0x3] }
 0xa15   : > { %v5991_v19 = vsel %vm822_vm1, %v16562_v45, %v16602_v47  ;;  %v6020_v6 = vmul.f32 %v6007_v35, %v5997_v56  ;;  %v5999_v26 = vsel %vm822_vm1, %v16602_v47, %v16562_v45  ;;  %v6033_v20 = vpack.c.bf16 %v6021_v54, %v6019_v8 }
 0xa16   : > { %6568 = vrot.lane.b32.xlu1 %v16276_v7, %s19926_s26  ;;  %6904 = vmatprep.subr.bf16.mxu0 %v5945_v25  ;;  %v5983_v58 = vpop.permute.xlu0 %5982  ;;  %v6030_v10 = vpack.c.bf16 %v6016_v24, %v6014_v53  ;;  %v6025_v27 = vmul.f32 %v16652_v28, %v5991_v19  ;;  %v6018_v43 = vmul.f32 %v6007_v35, %v5996_v55 }
 0xa17   : > { %6905 = vmatpush1.bf16.msra.mxu0 %v5944_v34  ;;  %v5998_v34 = vsel %vm822_vm1, %v16600_v57, %v16560_v40  ;;  %v6023_v47 = vmul.f32 %v16652_v28, %v5990_v9  ;;  %v6024_v24 = vmul.f32 %v6007_v35, %v5999_v26  ;;  %v6079_v46 = vsel %vm876_vm2, %v16422_v5, %v16471_v63 }
 0xa18   : > { %v16715_v4 = vpop.permute.xlu1 %6276  ;;  %6554 = vrot.lane.b32.xlu0 %v16296_v42, %s19926_s26  ;;  %6906 = vmatprep.subr.bf16.mxu0 %v6031_v44  ;;  %v6032_v25 = vpack.c.bf16 %v6020_v6, %v6018_v43  ;;  %v16753_v57 = vrot.slane %v11095_v30, %v12328_v14  ;;  %v6022_v54 = vmul.f32 %v6007_v35, %v5998_v34 }
 0xa19   : > { %v6035_v40 = vpack.c.bf16 %v6025_v27, %v6023_v47  ;;  %v5992_v44 = vsel %vm822_vm1, %v16628_v61, %v5983_v58  ;;  %v6000_v53 = vsel %vm822_vm1, %v5983_v58, %v16628_v61  ;;  %v6078_v19 = vsel %vm876_vm2, %v16420_v22, %v16469_v17 }
 0xa1a   : > { %6556 = vrot.lane.b32.xlu1 %v16300_v3, %s19926_s26  ;;  %v16730_v32 = vpop.permute.xlu0 %6074  ;;  %v6087_v55 = vsel %vm876_vm2, %v16471_v63, %v16422_v5  ;;  %v6034_v6 = vpack.c.bf16 %v6024_v24, %v6022_v54  ;;  %v6026_v9 = vmul.f32 %v6007_v35, %v6000_v53  ;;  %v6027_v26 = vmul.f32 %v16652_v28, %v5992_v44 }
 0xa1b   : > { %6907 = vmatpush1.bf16.msra.mxu0 %v6030_v10  ;;  %v6109_v10 = vmul.f32 %v16753_v57, %v6079_v46  ;;  %v6081_v43 = vsel %vm876_vm2, %v16502_v31, %v16542_v60  ;;  %v6083_v54 = vsel %vm876_vm2, %v16570_v23, %v16610_v38 }
 0xa1c   : > { %v16740_v45 = vpop.permute.xlu1 %6292  ;;  %6570 = vrot.lane.b32.xlu0 %v16316_v13, %s19926_s26  ;;  %6908 = vmatprep.subr.bf16.mxu0 %v6033_v20  ;;  %v16785_v20 = vrot.slane %v11095_v30, %v12337_v16 }
 0xa1e   : > { %6572 = vrot.lane.b32.xlu1 %v16320_v18, %s19926_s26  ;;  %v16750_v56 = vpop.permute.xlu0 %6166  ;;  %v6108_v47 = vmul.f32 %v16785_v20, %v6087_v55  ;;  %v6082_v55 = vsel %vm876_vm2, %v16568_v36, %v16608_v51 }
 0xa1f   : > { %6909 = vmatpush1.bf16.msra.mxu0 %v6032_v25  ;;  %v6080_v25 = vsel %vm876_vm2, %v16497_v50, %v16540_v29 }
 0xa20   : > { %v5985_v8 = vpop.permute.xlu1 %5984  ;;  %6558 = vrot.lane.b32.xlu0 %v16336_v48, %s19926_s26  ;;  %6910 = vmatprep.subr.bf16.mxu0 %v6035_v40 }
 0xa21   : > { %v5993_v61 = vsel %vm822_vm1, %v16630_v59, %v5985_v8  ;;  %v6001_v58 = vsel %vm822_vm1, %v5985_v8, %v16630_v59  ;;  %v6086_v59 = vsel %vm876_vm2, %v16469_v17, %v16420_v22  ;;  %v6089_v22 = vsel %vm876_vm2, %v16542_v60, %v16502_v31 }
 0xa22   : > { %v6028_v5 = vmul.f32 %v6007_v35, %v6001_v58  ;;  %v6029_v63 = vmul.f32 %v16652_v28, %v5993_v61  ;;  %6560 = vrot.lane.b32.xlu1 %v16340_v33, %s19926_s26  ;;  %v16782_v27 = vpop.permute.xlu0 %6274  ;;  %v6107_v28 = vmul.f32 %v16753_v57, %v6078_v19  ;;  %v6113_v17 = vmul.f32 %v16753_v57, %v6081_v43  ;;  %v11096_v61 = vld [vmem:[%s19906_s0 + $0x6] sm:$0x3] }
 0xa23   : > { %6911 = vmatpush1.bf16.msra.mxu0 %v6034_v6  ;;  %v6106_v40 = vmul.f32 %v16785_v20, %v6086_v59  ;;  %v6088_v31 = vsel %vm876_vm2, %v16540_v29, %v16497_v50  ;;  %v6111_v60 = vmul.f32 %v16753_v57, %v6080_v25  ;;  %v6112_v19 = vmul.f32 %v16785_v20, %v6089_v22  ;;  %v20072_v25 = vld [vmem:[#allocation27_spill] sm:$0xff]  ;;  %v20073_v22 = vld [vmem:[#allocation26_spill] sm:$0xff] }
 0xa24   : > { %v6036_v35 = vpack.c.bf16 %v6028_v5, %v6026_v9  ;;  %v16796_v34 = vpop.permute.xlu1 %6280  ;;  %6574 = vrot.lane.b32.xlu0 %v16356_v52, %s19926_s26  ;;  %v6037_v30 = vpack.c.bf16 %v6029_v63, %v6027_v26  ;;  %v6123_v46 = vpack.c.bf16 %v6109_v10, %v6107_v28  ;;  %v6091_v50 = vsel %vm876_vm2, %v16610_v38, %v16570_v23  ;;  %v6738_v5 = vld [vmem:[%s19765_s15] sm:$0xff]  ;;  %v20071_v28 = vld [vmem:[#allocation7_spill] sm:$0xff] }
 0xa25   : > { %v6122_v53 = vpack.c.bf16 %v6108_v47, %v6106_v40  ;;  %v6117_v29 = vmul.f32 %v16753_v57, %v6083_v54  ;;  %v6125_v10 = vpack.c.bf16 %v6113_v17, %v6111_v60  ;;  %v6110_v6 = vmul.f32 %v16785_v20, %v6088_v31  ;;  %v6739_v47 = vld [vmem:[%s19765_s15 + $0x8] sm:$0xff] }
 0xa26   : > { %6576 = vrot.lane.b32.xlu1 %v16360_v1, %s19926_s26  ;;  %6912 = vmatprep.subr.bf16.mxu0 %v6037_v30  ;;  %v16812_v24 = vpop.permute.xlu0 %6290  ;;  %v6090_v23 = vsel %vm876_vm2, %v16608_v51, %v16568_v36  ;;  %v6115_v38 = vmul.f32 %v16753_v57, %v6082_v55  ;;  %v6116_v26 = vmul.f32 %v16785_v20, %v6091_v50  ;;  %v20074_v31 = vld [vmem:[#allocation18_spill] sm:$0xff] }
 0xa27   : > { %6913 = vmatpush1.bf16.msra.mxu0 %v6036_v35  ;;  %v6124_v9 = vpack.c.bf16 %v6112_v19, %v6110_v6  ;;  %v6171_v36 = vsel %vm930_vm3, %v16433_v49, %v16479_v62  ;;  %v16868_v43 = vrot.slane %v11096_v61, %v12328_v14  ;;  %v6114_v59 = vmul.f32 %v16785_v20, %v6090_v23  ;;  %v6740_v19 = vld [vmem:[%s19765_s15 + $0x10] sm:$0xff] }
 0xa28   : > { %v16824_v44 = vpop.permute.xlu1 %6296  ;;  %6562 = vrot.lane.b32.xlu0 %v16376_v15, %s19926_s26  ;;  %6914 = vmatprep.subr.bf16.mxu0 %v6123_v46  ;;  %v6127_v63 = vpack.c.bf16 %v6117_v29, %v6115_v38  ;;  %v6084_v35 = vsel %vm876_vm2, %v20071_v28, %v16730_v32  ;;  %v6092_v30 = vsel %vm876_vm2, %v16730_v32, %v20071_v28  ;;  %v20075_v6 = vld [vmem:[#allocation31_spill] sm:$0xff]  ;;  %v20076_v23 = vld [vmem:[#allocation32_spill] sm:$0xff] }
 0xa29   : > { %v6170_v17 = vsel %vm930_vm3, %v20073_v22, %v20072_v25  ;;  %v6179_v46 = vsel %vm930_vm3, %v16479_v62, %v16433_v49  ;;  %v6201_v32 = vmul.f32 %v16868_v43, %v6171_v36  ;;  %v6126_v54 = vpack.c.bf16 %v6116_v26, %v6114_v59  ;;  %v20078_v59 = vld [vmem:[#allocation25_spill] sm:$0xff] }
 0xa2a   : > { %6564 = vrot.lane.b32.xlu1 %v16380_v2, %s19926_s26  ;;  %v16840_v8 = vpop.permute.xlu0 %6278  ;;  %v6118_v49 = vmul.f32 %v16785_v20, %v6092_v30  ;;  %v6119_v62 = vmul.f32 %v16753_v57, %v6084_v35  ;;  %v6173_v38 = vsel %vm930_vm3, %v20076_v23, %v20075_v6  ;;  %v7133_v35 = vld [vmem:[%s19768_s18] sm:$0xff]  ;;  %v6181_v30 = vsel %vm930_vm3, %v20075_v6, %v20076_v23 }
 0xa2b   : > { %6915 = vmatpush1.bf16.msra.mxu0 %v6122_v53  ;;  %v6742_v6 = vld [vmem:[%s19765_s15 + $0x20] sm:$0xff] }
 0xa2c   : > { %v16851_v58 = vpop.permute.xlu1 %6284  ;;  %6578 = vrot.lane.b32.xlu0 %v16394_v21, %s19926_s26  ;;  %6916 = vmatprep.subr.bf16.mxu0 %v6125_v10  ;;  %v16907_v10 = vrot.slane %v11096_v61, %v12337_v16 }
 0xa2e   : > { %6580 = vrot.lane.b32.xlu1 %v16398_v37, %s19926_s26  ;;  %v16865_v51 = vpop.permute.xlu0 %6294  ;;  %v6200_v36 = vmul.f32 %v16907_v10, %v6179_v46  ;;  %v20079_v46 = vld [vmem:[#allocation8_spill] sm:$0xff] }
 0xa2f   : > { %6917 = vmatpush1.bf16.msra.mxu0 %v6124_v9  ;;  %v6741_v9 = vld [vmem:[%s19765_s15 + $0x18] sm:$0xff] }
 0xa30   : > { %v6077_v40 = vpop.permute.xlu1 %6076  ;;  %6748 = vperm.xlu0 %11769, %v6738_v5   ;;  %6918 = vmatprep.subr.bf16.mxu0 %v6127_v63  ;;  %v20077_v63 = vld [vmem:[#allocation30_spill] sm:$0xff] }
 0xa31   : > { %v6085_v60 = vsel %vm876_vm2, %v20074_v31, %v6077_v40  ;;  %v6093_v53 = vsel %vm876_vm2, %v6077_v40, %v20074_v31  ;;  %v6172_v28 = vsel %vm930_vm3, %v20078_v59, %v20077_v63  ;;  %v20080_v40 = vld [vmem:[#allocation22_spill] sm:$0xff] }
 0xa32   : > { %v6120_v55 = vmul.f32 %v16785_v20, %v6093_v53  ;;  %v6121_v50 = vmul.f32 %v16753_v57, %v6085_v60  ;;  %6753 = vperm.xlu1 %11770, %v6739_v47   ;;  %v16904_v29 = vpop.permute.xlu0 %6282  ;;  %v6178_v57 = vsel %vm930_vm3, %v20072_v25, %v20073_v22  ;;  %v6199_v20 = vmul.f32 %v16868_v43, %v6170_v17  ;;  %v7134_v31 = vld [vmem:[%s19768_s18 + $0x8] sm:$0xff] }
 0xa33   : > { %6919 = vmatpush1.bf16.msra.mxu0 %v6126_v54  ;;  %v6205_v47 = vmul.f32 %v16868_v43, %v6173_v38  ;;  %v6198_v17 = vmul.f32 %v16907_v10, %v6178_v57  ;;  %v6175_v54 = vsel %vm930_vm3, %v20080_v40, %v20079_v46  ;;  %v6180_v60 = vsel %vm930_vm3, %v20077_v63, %v20078_v59  ;;  %v11097_v59 = vld [vmem:[%s19906_s0 + $0x8] sm:$0x3] }
 0xa34   : > { %v6128_v26 = vpack.c.bf16 %v6120_v55, %v6118_v49  ;;  %v16921_v61 = vpop.permute.xlu1 %6300  ;;  %6758 = vperm.xlu0 %11769, %v6740_v19   ;;  %v6129_v5 = vpack.c.bf16 %v6121_v50, %v6119_v62  ;;  %v6215_v22 = vpack.c.bf16 %v6201_v32, %v6199_v20  ;;  %v6203_v53 = vmul.f32 %v16868_v43, %v6172_v28  ;;  %v20081_v62 = vld [vmem:[#allocation17_spill] sm:$0xff] }
 0xa35   : > { %v6214_v19 = vpack.c.bf16 %v6200_v36, %v6198_v17  ;;  %v6204_v49 = vmul.f32 %v16907_v10, %v6181_v30  ;;  %v20082_v55 = vld [vmem:[#allocation29_spill] sm:$0xff]  ;;  %v6183_v23 = vsel %vm930_vm3, %v20079_v46, %v20080_v40  ;;  %v6209_v38 = vmul.f32 %v16868_v43, %v6175_v54  ;;  %v6743_v30 = vld [vmem:[%s19765_s15 + $0x28] sm:$0xff] }
 0xa36   : > { %6763 = vperm.xlu1 %11770, %v6741_v9   ;;  %6920 = vmatprep.subr.bf16.mxu0 %v6129_v5  ;;  %v16936_v25 = vpop.permute.xlu0 %6298  ;;  %v6174_v50 = vsel %vm930_vm3, %v20082_v55, %v20081_v62  ;;  %v6217_v57 = vpack.c.bf16 %v6205_v47, %v6203_v53  ;;  %v6202_v20 = vmul.f32 %v16907_v10, %v6180_v60  ;;  %v7136_v54 = vld [vmem:[%s19768_s18 + $0x18] sm:$0xff] }
 0xa37   : > { %6921 = vmatpush1.bf16.msra.mxu0 %v6128_v26  ;;  %v7135_v26 = vld [vmem:[%s19768_s18 + $0x10] sm:$0xff]  ;;  %v6182_v5 = vsel %vm930_vm3, %v20081_v62, %v20082_v55  ;;  %v6207_v36 = vmul.f32 %v16868_v43, %v6174_v50  ;;  %v6176_v46 = vsel %vm930_vm3, %v16679_v0, %v16750_v56  ;;  %v6184_v40 = vsel %vm930_vm3, %v16750_v56, %v16679_v0 }
 0xa38   : > { %v16951_v32 = vpop.permute.xlu1 %6288  ;;  %7143 = vperm.xlu0 %11769, %v7133_v35   ;;  %6922 = vmatprep.subr.bf16.mxu0 %v6215_v22  ;;  %v6216_v28 = vpack.c.bf16 %v6204_v49, %v6202_v20  ;;  %v6208_v35 = vmul.f32 %v16907_v10, %v6183_v23  ;;  %v6206_v17 = vmul.f32 %v16907_v10, %v6182_v5  ;;  %v6744_v56 = vld [vmem:[%s19765_s15 + $0x30] sm:$0xff] }
 0xa39   : > { %v6219_v22 = vpack.c.bf16 %v6209_v38, %v6207_v36  ;;  %v6210_v62 = vmul.f32 %v16907_v10, %v6184_v40  ;;  %v6211_v55 = vmul.f32 %v16868_v43, %v6176_v46  ;;  %v17024_v38 = vrot.slane %v11097_v59, %v12337_v16  ;;  %v7139_v46 = vld [vmem:[%s19768_s18 + $0x30] sm:$0xff] }
 0xa3a   : > { %7148 = vperm.xlu1 %11770, %v7134_v31   ;;  %v16966_v9 = vpop.permute.xlu0 %6286  ;;  %v17001_v31 = vrot.slane %v11097_v59, %v12328_v14  ;;  %v6218_v53 = vpack.c.bf16 %v6208_v35, %v6206_v17  ;;  %v11879_v59 = vld [vmem:[%s19764_s14] ss:$20 sps:$4 sm:$0xff]  }
 0xa3b   : > { %6923 = vmatpush1.bf16.msra.mxu0 %v6214_v19  ;;  %v20083_v35 = vld [vmem:[#allocation28_spill] sm:$0xff]  ;;  %v6248_v40 = vmul.f32 %v17024_v38, %v16300_v3 }
 0xa3c   : > { %v16977_v63 = vpop.permute.xlu1 %6368  ;;  %6768 = vperm.xlu0 %11769, %v6742_v6   ;;  %6924 = vmatprep.subr.bf16.mxu0 %v6217_v57  ;;  %v6245_v49 = vmul.f32 %v17001_v31, %v16276_v7  ;;  %v6247_v17 = vmul.f32 %v17001_v31, %v16316_v13  ;;  %v7140_v13 = vld [vmem:[%s19768_s18 + $0x38] sm:$0xff]  ;;  %v6251_v3 = vmul.f32 %v17001_v31, %v16356_v52 }
 0xa3d   : > { %v11884_v52 = vld [vmem:[%s19764_s14 + $0x28] ss:$20 sps:$4 sm:$0xff]  }
 0xa3e   : > { %7153 = vperm.xlu1 %11770, %v7135_v26   ;;  %v16986_v47 = vpop.permute.xlu0 %6302  ;;  %v6244_v26 = vmul.f32 %v17024_v38, %v16256_v11  ;;  %v6242_v11 = vmul.f32 %v17024_v38, %v20083_v35  ;;  %v6307_v35 = vsel %vm1013_vm4, %v16715_v4, %v16740_v45 }
 0xa3f   : > { %6925 = vmatpush1.bf16.msra.mxu0 %v6216_v28  ;;  %v6249_v28 = vmul.f32 %v17001_v31, %v16320_v18 }
 0xa40   : > { %v6169_v60 = vpop.permute.xlu1 %6168  ;;  %6773 = vperm.xlu0 %11769, %v6743_v30   ;;  %6926 = vmatprep.subr.bf16.mxu0 %v6219_v22  ;;  %v11882_v30 = vld [vmem:[%s19764_s14 + $0x2c] ss:$20 sps:$4 sm:$0xff]   ;;  %v6258_v18 = vpack.c.bf16 %v6244_v26, %v6242_v11 }
 0xa41   : > { %v6177_v19 = vsel %vm930_vm3, %v16691_v41, %v6169_v60  ;;  %v6185_v0 = vsel %vm930_vm3, %v6169_v60, %v16691_v41  ;;  %v7137_v41 = vld [vmem:[%s19768_s18 + $0x20] sm:$0xff]  ;;  %v6261_v60 = vpack.c.bf16 %v6249_v28, %v6247_v17  ;;  %v4439_v26 = vld [vmem:[%s19767_s17 + $0x8] sm:$0xff] }
 0xa42   : > { %v6212_v50 = vmul.f32 %v16907_v10, %v6185_v0  ;;  %v6213_v6 = vmul.f32 %v16868_v43, %v6177_v19  ;;  %7158 = vperm.xlu1 %11770, %v7136_v54   ;;  %v17018_v23 = vpop.permute.xlu0 %6366  ;;  %v6243_v10 = vmul.f32 %v17001_v31, %v16272_v39  ;;  %v6745_v43 = vld [vmem:[%s19765_s15 + $0x38] sm:$0xff]  ;;  %v7138_v39 = vld [vmem:[%s19768_s18 + $0x28] sm:$0xff]  ;;  %v6246_v19 = vmul.f32 %v17024_v38, %v16296_v42 }
 0xa43   : > { %6927 = vmatpush1.bf16.msra.mxu0 %v6218_v53  ;;  %v6253_v53 = vmul.f32 %v17001_v31, %v16360_v1  ;;  %v11098_v1 = vld [vmem:[%s19906_s0 + $0xa] sm:$0x3] }
 0xa44   : > { %v6220_v7 = vpack.c.bf16 %v6212_v50, %v6210_v62  ;;  %v17026_v57 = vpop.permute.xlu1 %6384  ;;  %6778 = vperm.xlu0 %11769, %v6744_v56   ;;  %v6221_v20 = vpack.c.bf16 %v6213_v6, %v6211_v55  ;;  %v6259_v36 = vpack.c.bf16 %v6245_v49, %v6243_v10  ;;  %v6260_v56 = vpack.c.bf16 %v6248_v40, %v6246_v19  ;;  %v7223_v49 = vld [vmem:[#allocation4] sm:$0x1] }
 0xa45   : > { %v6252_v62 = vmul.f32 %v17024_v38, %v16340_v33  ;;  %v6263_v42 = vpack.c.bf16 %v6253_v53, %v6251_v3  ;;  %v6257_v50 = vmul.f32 %v17001_v31, %v16398_v37  ;;  %v6314_v6 = vsel %vm1013_vm4, %v16812_v24, %v16782_v27  ;;  %v4438_v33 = vld [vmem:[%s19767_s17] sm:$0xff]  ;;  %v11885_v37 = vld [vmem:[%s19764_s14 + $0x54] ss:$20 sps:$4 sm:$0xff]  }
 0xa46   : > { %7163 = vperm.xlu1 %11770, %v7137_v41   ;;  %6928 = vmatprep.subr.bf16.mxu0 %v6221_v20  ;;  %v17035_v5 = vpop.permute.xlu0 %6382  ;;  %v6250_v41 = vmul.f32 %v17024_v38, %v16336_v48  ;;  %v6255_v10 = vmul.f32 %v17001_v31, %v16394_v21  ;;  %v6309_v19 = vsel %vm1013_vm4, %v16796_v34, %v16824_v44 }
 0xa47   : > { %6929 = vmatpush1.bf16.msra.mxu0 %v6220_v7  ;;  %v17097_v7 = vrot.slane %v11098_v1, %v12328_v14 }
 0xa48   : > { %v17050_v22 = vpop.permute.xlu1 %6372  ;;  %6783 = vperm.xlu0 %11769, %v6745_v43   ;;  %6971 = vmatprep.subr.bf16.mxu0 %v6259_v36  ;;  %v6315_v43 = vsel %vm1013_vm4, %v16740_v45, %v16715_v4  ;;  %v6262_v48 = vpack.c.bf16 %v6252_v62, %v6250_v41  ;;  %v6256_v36 = vmul.f32 %v17024_v38, %v16380_v2 }
 0xa49   : > { %v6335_v21 = vmul.f32 %v17097_v7, %v6314_v6  ;;  %v6265_v28 = vpack.c.bf16 %v6257_v50, %v6255_v10  ;;  %v6316_v2 = vsel %vm1013_vm4, %v16865_v51, %v16840_v8  ;;  %v6337_v11 = vmul.f32 %v17097_v7, %v6315_v43  ;;  %v4445_v43 = vld [vmem:[%s19767_s17 + $0x38] sm:$0xff] }
 0xa4a   : > { %7168 = vperm.xlu1 %11770, %v7138_v39   ;;  %v17059_v54 = vpop.permute.xlu0 %6370  ;;  %6931 = vmatmul.mubr.bf16.vlgmr.msra.gmra.mrb[32].mxu0 %v11879_v59  ;;  %v6306_v59 = vsel %vm1013_vm4, %v16782_v27, %v16812_v24  ;;  %v17120_v39 = vrot.slane %v11098_v1, %v12337_v16  ;;  %v4440_v27 = vld [vmem:[%s19767_s17 + $0x10] sm:$0xff]  ;;  %v6254_v24 = vmul.f32 %v17024_v38, %v16376_v15  ;;  %v4441_v38 = vld [vmem:[%s19767_s17 + $0x18] sm:$0xff] }
 0xa4b   : > { %6972 = vmatpush1.bf16.msra.mxu0 %v6258_v18  ;;  %6940 = vmatprep.mubr.bf16.mxu0 %v11882_v30  ;;  %v6317_v18 = vsel %vm1013_vm4, %v16824_v44, %v16796_v34  ;;  %v6308_v4 = vsel %vm1013_vm4, %v16840_v8, %v16865_v51  ;;  %v6339_v45 = vmul.f32 %v17097_v7, %v6316_v2  ;;  %v4442_v8 = vld [vmem:[%s19767_s17 + $0x20] sm:$0xff]  ;;  %v11888_v51 = vld [vmem:[%s19764_s14 + $0x7c] ss:$20 sps:$4 sm:$0xff]   ;;  %v4443_v34 = vld [vmem:[%s19767_s17 + $0x28] sm:$0xff] }
 0xa4c   : > { %v17068_v0 = vpop.permute.xlu1 %6388  ;;  %7173 = vperm.xlu0 %11769, %v7139_v46   ;;  %6973 = vmatprep.subr.bf16.mxu0 %v6261_v60  ;;  %v6334_v17 = vmul.f32 %v17120_v39, %v6306_v59  ;;  %v6264_v15 = vpack.c.bf16 %v6256_v36, %v6254_v24  ;;  %v6351_v40 = vpack.c.bf16 %v6337_v11, %v6335_v21  ;;  %v11887_v60 = vld [vmem:[%s19764_s14 + $0x50] ss:$20 sps:$4 sm:$0xff]   ;;  %v11890_v21 = vld [vmem:[%s19764_s14 + $0x78] ss:$20 sps:$4 sm:$0xff]  }
 0xa4d   : > { %v6336_v53 = vmul.f32 %v17120_v39, %v6307_v35  ;;  %v6341_v3 = vmul.f32 %v17097_v7, %v6317_v18  ;;  %v6319_v62 = vsel %vm1013_vm4, %v16921_v61, %v16851_v58  ;;  %v6340_v6 = vmul.f32 %v17120_v39, %v6309_v19  ;;  %v11893_v2 = vld [vmem:[%s19764_s14 + $0xc] ss:$20 sps:$4 sm:$0xff]  }
 0xa4e   : > { %7178 = vperm.xlu1 %11770, %v7140_v13   ;;  %v17077_v55 = vpop.permute.xlu0 %6386  ;;  %v6318_v13 = vsel %vm1013_vm4, %v16936_v25, %v16904_v29  ;;  %v6407_v11 = vsel %vm1067_vm5, %v17026_v57, %v16977_v63 }
 0xa4f   : > { %6974 = vmatpush1.bf16.msra.mxu0 %v6260_v56  ;;  %v6350_v56 = vpack.c.bf16 %v6336_v53, %v6334_v17  ;;  %v6343_v44 = vmul.f32 %v17097_v7, %v6318_v13 }
 0xa50   : > { %v17099_v20 = vpop.permute.xlu1 %6376  ;;  %7226 = vperm.xlu0 %11769, %v7223_v49   ;;  %6975 = vmatprep.subr.bf16.mxu0 %v6263_v42  ;;  %v6338_v49 = vmul.f32 %v17120_v39, %v6308_v4  ;;  %v6310_v42 = vsel %vm1013_vm4, %v16904_v29, %v16936_v25  ;;  %v4444_v29 = vld [vmem:[%s19767_s17 + $0x30] sm:$0xff]  ;;  %v6345_v25 = vmul.f32 %v17097_v7, %v6319_v62 }
 0xa51   : > { %v6342_v41 = vmul.f32 %v17120_v39, %v6310_v42 }
 0xa52   : > { %4448 = vperm.xlu1 %11770, %v4438_v33   ;;  %v17117_v31 = vpop.permute.xlu0 %6374  ;;  %6941 = vmatmul.mubr.bf16.gmra.mrb[36].mxu0 %v11884_v52  ;;  %v6353_v52 = vpack.c.bf16 %v6341_v3, %v6339_v45  ;;  %v6311_v33 = vsel %vm1013_vm4, %v16851_v58, %v16921_v61  ;;  %v6352_v10 = vpack.c.bf16 %v6340_v6, %v6338_v49  ;;  %v11099_v61 = vld [vmem:[%s19906_s0 + $0xc] sm:$0x3] }
 0xa53   : > { %6976 = vmatpush1.bf16.msra.mxu0 %v6262_v48  ;;  %6950 = vmatprep.mubr.bf16.mxu0 %v11885_v37  ;;  %v6312_v58 = vsel %vm1013_vm4, %v16966_v9, %v16986_v47  ;;  %v6344_v48 = vmul.f32 %v17120_v39, %v6311_v33  ;;  %v6355_v59 = vpack.c.bf16 %v6345_v25, %v6343_v44 }
 0xa54   : > { %v17136_v30 = vpop.permute.xlu1 %6392  ;;  %4453 = vperm.xlu0 %11769, %v4439_v26   ;;  %6977 = vmatprep.subr.bf16.mxu0 %v6265_v28  ;;  %v6320_v26 = vsel %vm1013_vm4, %v16986_v47, %v16966_v9  ;;  %v6406_v28 = vsel %vm1067_vm5, %v17035_v5, %v17018_v23  ;;  %v6346_v9 = vmul.f32 %v17120_v39, %v6312_v58 }
 0xa55   : > { %v17230_v47 = vrot.slane %v11099_v61, %v12328_v14  ;;  %v6347_v35 = vmul.f32 %v17097_v7, %v6320_v26  ;;  %v6401_v49 = vsel %vm1067_vm5, %v17050_v22, %v17068_v0  ;;  %v6403_v33 = vsel %vm1067_vm5, %v17099_v20, %v17136_v30 }
 0xa56   : > { %4458 = vperm.xlu1 %11770, %v4440_v27   ;;  %v17151_v46 = vpop.permute.xlu0 %6390  ;;  %v6354_v27 = vpack.c.bf16 %v6344_v48, %v6342_v41 }
 0xa57   : > { %6978 = vmatpush1.bf16.msra.mxu0 %v6264_v15  ;;  %v6398_v15 = vsel %vm1067_vm5, %v17018_v23, %v17035_v5  ;;  %v6399_v23 = vsel %vm1067_vm5, %v16977_v63, %v17026_v57  ;;  %v6429_v5 = vmul.f32 %v17230_v47, %v6407_v11  ;;  %v6402_v44 = vsel %vm1067_vm5, %v17117_v31, %v17151_v46 }
 0xa58   : > { %v17172_v1 = vpop.permute.xlu1 %6380  ;;  %4463 = vperm.xlu0 %11769, %v4441_v38   ;;  %6979 = vmatprep.subr.bf16.mxu0 %v6351_v40  ;;  %v6427_v38 = vmul.f32 %v17230_v47, %v6406_v28 }
 0xa5a   : > { %4468 = vperm.xlu1 %11770, %v4442_v8   ;;  %v17187_v50 = vpop.permute.xlu0 %6378  ;;  %6951 = vmatmul.mubr.bf16.gmra.mrb[40].mxu0 %v11887_v60  ;;  %v6419_v60 = vrot.slane %v11099_v61, %v12337_v16  ;;  %v6409_v8 = vsel %vm1067_vm5, %v17068_v0, %v17050_v22  ;;  %v6443_v63 = vpack.c.bf16 %v6429_v5, %v6427_v38 }
 0xa5b   : > { %6980 = vmatpush1.bf16.msra.mxu0 %v6350_v56  ;;  %6960 = vmatprep.mubr.bf16.mxu0 %v11888_v51  ;;  %v6400_v51 = vsel %vm1067_vm5, %v17059_v54, %v17077_v55  ;;  %v6410_v56 = vsel %vm1067_vm5, %v17151_v46, %v17117_v31  ;;  %v6433_v62 = vmul.f32 %v17230_v47, %v6409_v8  ;;  %v11100_v46 = vld [vmem:[%s19906_s0 + $0xe] sm:$0x3] }
 0xa5c   : > { %v17199_v37 = vpop.permute.xlu1 %6460  ;;  %4473 = vperm.xlu0 %11769, %v4443_v34   ;;  %6981 = vmatprep.subr.bf16.mxu0 %v6353_v52  ;;  %v6426_v13 = vmul.f32 %v6419_v60, %v6398_v15  ;;  %v6428_v57 = vmul.f32 %v6419_v60, %v6399_v23  ;;  %v6430_v42 = vmul.f32 %v6419_v60, %v6400_v51 }
 0xa5d   : > { %v6411_v34 = vsel %vm1067_vm5, %v17136_v30, %v17099_v20  ;;  %v6435_v52 = vmul.f32 %v17230_v47, %v6410_v56  ;;  %v6432_v0 = vmul.f32 %v6419_v60, %v6401_v49  ;;  %v6434_v25 = vmul.f32 %v6419_v60, %v6402_v44 }
 0xa5e   : > { %4478 = vperm.xlu1 %11770, %v4444_v29   ;;  %v17216_v36 = vpop.permute.xlu0 %6394  ;;  %v6437_v29 = vmul.f32 %v17230_v47, %v6411_v34  ;;  %v6436_v58 = vmul.f32 %v6419_v60, %v6403_v33 }
 0xa5f   : > { %6982 = vmatpush1.bf16.msra.mxu0 %v6352_v10  ;;  %v6444_v10 = vpack.c.bf16 %v6432_v0, %v6430_v42  ;;  %v6404_v31 = vsel %vm1067_vm5, %v17187_v50, %v17216_v36  ;;  %v6412_v20 = vsel %vm1067_vm5, %v17216_v36, %v17187_v50 }
 0xa60   : > { %v6305_v24 = vpop.permute.xlu1 %6304  ;;  %4483 = vperm.xlu0 %11769, %v4445_v43   ;;  %6983 = vmatprep.subr.bf16.mxu0 %v6355_v59  ;;  %v6447_v61 = vpack.c.bf16 %v6437_v29, %v6435_v52  ;;  %v6446_v48 = vpack.c.bf16 %v6436_v58, %v6434_v25  ;;  %v6438_v26 = vmul.f32 %v6419_v60, %v6404_v31 }
 0xa61   : > { %v6313_v17 = vsel %vm1013_vm4, %v16951_v32, %v6305_v24  ;;  %v6321_v18 = vsel %vm1013_vm4, %v6305_v24, %v16951_v32  ;;  %v6408_v32 = vsel %vm1067_vm5, %v17077_v55, %v17059_v54  ;;  %v6442_v55 = vpack.c.bf16 %v6428_v57, %v6426_v13 }
 0xa62   : > { %v6348_v4 = vmul.f32 %v17120_v39, %v6313_v17  ;;  %v6349_v45 = vmul.f32 %v17097_v7, %v6321_v18  ;;  %v6459_v40 = vpop.permute.xlu0 %6458  ;;  %6961 = vmatmul.mubr.bf16.gmra.mrb[44].mxu0 %v11890_v21  ;;  %v6431_v19 = vmul.f32 %v17230_v47, %v6408_v32  ;;  %v17306_v59 = vrot.slane %v11100_v46, %v12328_v14 }
 0xa63   : > { %6984 = vmatpush1.bf16.msra.mxu0 %v6354_v27  ;;  %7003 = vmatprep.mubr.bf16.mxu0 %v11893_v2  ;;  %v6439_v28 = vmul.f32 %v17230_v47, %v6412_v20  ;;  %v6511_v17 = vrot.slane %v11100_v46, %v12337_v16 }
 0xa64   : > { %v6356_v39 = vpack.c.bf16 %v6348_v4, %v6346_v9  ;;  %v6477_v7 = vpop.permute.xlu1 %6476  ;;  %v6357_v53 = vpack.c.bf16 %v6349_v45, %v6347_v35  ;;  %v6445_v22 = vpack.c.bf16 %v6433_v62, %v6431_v19 }
 0xa65   : > { %v6499_v2 = vsel %vm1121_vm6, %v6477_v7, %v17199_v37  ;;  %v6491_v15 = vsel %vm1121_vm6, %v17199_v37, %v6477_v7 }
 0xa66   : > { %v6475_v3 = vpop.permute.xlu0 %6474  ;;  %6985 = vmatprep.subr.bf16.mxu0 %v6357_v53 }
 0xa67   : > { %6986 = vmatpush1.bf16.msra.mxu0 %v6356_v39  ;;  %v6498_v43 = vsel %vm1121_vm6, %v6475_v3, %v6459_v40  ;;  %v6490_v27 = vsel %vm1121_vm6, %v6459_v40, %v6475_v3  ;;  %v6520_v39 = vmul.f32 %v6511_v17, %v6491_v15 }
 0xa68   : > { %v6465_v54 = vpop.permute.xlu1 %6464  ;;  %6987 = vmatprep.subr.bf16.mxu0 %v6443_v63  ;;  %v6519_v9 = vmul.f32 %v17306_v59, %v6498_v43  ;;  %v6518_v40 = vmul.f32 %v6511_v17, %v6490_v27 }
 0xa6a   : > { %v6463_v6 = vpop.permute.xlu0 %6462  ;;  %v6534_v13 = vpack.c.bf16 %v6520_v39, %v6518_v40  ;;  %v11896_v40 = vld [vmem:[%s19764_s14 + $0x30] ss:$20 sps:$4 sm:$0xff]  }
 0xa6b   : > { %6988 = vmatpush1.bf16.msra.mxu0 %v6442_v55 }
 0xa6c   : > { %v6481_v41 = vpop.permute.xlu1 %6480  ;;  %6989 = vmatprep.subr.bf16.mxu0 %v6445_v22 }
 0xa6d   : > { %v6493_v37 = vsel %vm1121_vm6, %v6465_v54, %v6481_v41 }
 0xa6e   : > { %v6479_v30 = vpop.permute.xlu0 %6478  ;;  %v6524_v49 = vmul.f32 %v6511_v17, %v6493_v37 }
 0xa6f   : > { %6990 = vmatpush1.bf16.msra.mxu0 %v6444_v10  ;;  %v6500_v18 = vsel %vm1121_vm6, %v6479_v30, %v6463_v6 }
 0xa70   : > { %v6397_v21 = vpop.permute.xlu1 %6396  ;;  %6991 = vmatprep.subr.bf16.mxu0 %v6447_v61  ;;  %v6523_v32 = vmul.f32 %v17306_v59, %v6500_v18 }
 0xa71   : > { %v6405_v50 = vsel %vm1067_vm5, %v17172_v1, %v6397_v21  ;;  %v6413_v36 = vsel %vm1067_vm5, %v6397_v21, %v17172_v1  ;;  %v6521_v1 = vmul.f32 %v17306_v59, %v6499_v2 }
 0xa72   : > { %v6440_v24 = vmul.f32 %v6419_v60, %v6405_v50  ;;  %v6441_v35 = vmul.f32 %v17230_v47, %v6413_v36  ;;  %v6467_v11 = vpop.permute.xlu0 %6466  ;;  %v6501_v47 = vsel %vm1121_vm6, %v6481_v41, %v6465_v54  ;;  %v6492_v60 = vsel %vm1121_vm6, %v6463_v6, %v6479_v30  ;;  %v11101_v30 = vld [vmem:[%s19906_s0 + $0x10] sm:$0x3]  ;;  %v11894_v36 = vld [vmem:[%s19764_s14 + $0x34] ss:$20 sps:$4 sm:$0xff]  }
 0xa73   : > { %6992 = vmatpush1.bf16.msra.mxu0 %v6446_v48  ;;  %v6535_v5 = vpack.c.bf16 %v6521_v1, %v6519_v9  ;;  %v6525_v7 = vmul.f32 %v17306_v59, %v6501_v47  ;;  %v6522_v8 = vmul.f32 %v6511_v17, %v6492_v60  ;;  %v17364_v21 = vrot.slane %v11101_v30, %v12328_v14 }
 0xa74   : > { %v6448_v38 = vpack.c.bf16 %v6440_v24, %v6438_v26  ;;  %v6469_v4 = vpop.permute.xlu1 %6468  ;;  %v6449_v45 = vpack.c.bf16 %v6441_v35, %v6439_v28  ;;  %v17361_v26 = vrot.slane %v11101_v30, %v12337_v16 }
 0xa75   : > { %v6537_v56 = vpack.c.bf16 %v6525_v7, %v6523_v32  ;;  %v6536_v42 = vpack.c.bf16 %v6524_v49, %v6522_v8  ;;  %v11897_v32 = vld [vmem:[%s19764_s14 + $0x5c] ss:$20 sps:$4 sm:$0xff]  }
 0xa76   : > { %v6483_v23 = vpop.permute.xlu0 %6482  ;;  %6993 = vmatprep.subr.bf16.mxu0 %v6449_v45 }
 0xa77   : > { %6994 = vmatpush1.bf16.msra.mxu0 %v6448_v38  ;;  %v6502_v51 = vsel %vm1121_vm6, %v6483_v23, %v6467_v11  ;;  %v6494_v62 = vsel %vm1121_vm6, %v6467_v11, %v6483_v23 }
 0xa78   : > { %v6485_v53 = vpop.permute.xlu1 %6484  ;;  %6995 = vmatprep.subr.bf16.mxu0 %v6535_v5  ;;  %v6527_v54 = vmul.f32 %v17306_v59, %v6502_v51  ;;  %v6526_v6 = vmul.f32 %v6511_v17, %v6494_v62  ;;  %v11900_v62 = vld [vmem:[%s19764_s14 + $0x84] ss:$20 sps:$4 sm:$0xff]  }
 0xa79   : > { %v6503_v19 = vsel %vm1121_vm6, %v6485_v53, %v6469_v4  ;;  %v6495_v3 = vsel %vm1121_vm6, %v6469_v4, %v6485_v53 }
 0xa7a   : > { %v6529_v63 = vmul.f32 %v17306_v59, %v6503_v19  ;;  %v6471_v57 = vpop.permute.xlu0 %6470  ;;  %v6528_v34 = vmul.f32 %v6511_v17, %v6495_v3 }
 0xa7b   : > { %6996 = vmatpush1.bf16.msra.mxu0 %v6534_v13 }
 0xa7c   : > { %v6473_v55 = vpop.permute.xlu1 %6472  ;;  %6997 = vmatprep.subr.bf16.mxu0 %v6537_v56  ;;  %v6539_v52 = vpack.c.bf16 %v6529_v63, %v6527_v54  ;;  %v6538_v29 = vpack.c.bf16 %v6528_v34, %v6526_v6 }
 0xa7e   : > { %v6487_v44 = vpop.permute.xlu0 %6486 }
 0xa7f   : > { %v6496_v22 = vsel %vm1121_vm6, %v6471_v57, %v6487_v44  ;;  %v6504_v0 = vsel %vm1121_vm6, %v6487_v44, %v6471_v57  ;;  %6998 = vmatpush1.bf16.msra.mxu0 %v6536_v42  ;;  %v11899_v57 = vld [vmem:[%s19764_s14 + $0x58] ss:$20 sps:$4 sm:$0xff]  }
 0xa80   : > { %v6489_v33 = vpop.permute.xlu1 %6488  ;;  %6999 = vmatprep.subr.bf16.mxu0 %v6539_v52  ;;  %v6530_v10 = vmul.f32 %v6511_v17, %v6496_v22  ;;  %v6531_v31 = vmul.f32 %v17306_v59, %v6504_v0 }
 0xa81   : > { %v6497_v25 = vsel %vm1121_vm6, %v6473_v55, %v6489_v33  ;;  %v6505_v41 = vsel %vm1121_vm6, %v6489_v33, %v6473_v55 }
 0xa82   : > { %v6532_v46 = vmul.f32 %v6511_v17, %v6497_v25  ;;  %v6533_v58 = vmul.f32 %v17306_v59, %v6505_v41  ;;  %v6551_v20 = vpop.permute.xlu0 %6550  ;;  %v11891_v59 = vld [vmem:[%s19764_s14 + $0x8] ss:$20 sps:$4 sm:$0xff]   ;;  %v11902_v41 = vld [vmem:[%s19764_s14 + $0x80] ss:$20 sps:$4 sm:$0xff]  }
 0xa83   : > { %7000 = vmatpush1.bf16.msra.mxu0 %v6538_v29 }
 0xa84   : > { %v6540_v61 = vpack.c.bf16 %v6532_v46, %v6530_v10  ;;  %v6553_v43 = vpop.permute.xlu1 %6552  ;;  %v6541_v48 = vpack.c.bf16 %v6533_v58, %v6531_v31 }
 0xa86   : > { %v6567_v28 = vpop.permute.xlu0 %6566  ;;  %7001 = vmatprep.subr.bf16.mxu0 %v6541_v48 }
 0xa87   : > { %v6582_v2 = vsel %vm1175_vm7, %v6551_v20, %v6567_v28  ;;  %v6590_v50 = vsel %vm1175_vm7, %v6567_v28, %v6551_v20  ;;  %7002 = vmatpush1.bf16.msra.mxu0 %v6540_v61  ;;  %v20084_v28 = vmov 0  }
 0xa88   : > { %v6569_v27 = vpop.permute.xlu1 %6568  ;;  %v6610_v35 = vmul.f32 %v17361_v26, %v6582_v2  ;;  %v6611_v11 = vmul.f32 %v17364_v21, %v6590_v50  ;;  %v11903_v50 = vld [vmem:[%s19764_s14 + $0x10] ss:$20 sps:$4 sm:$0xff]  }
 0xa89   : > { %v6583_v9 = vsel %vm1175_vm7, %v6553_v43, %v6569_v27  ;;  %v6591_v24 = vsel %vm1175_vm7, %v6569_v27, %v6553_v43 }
 0xa8a   : > { %v6612_v17 = vmul.f32 %v17361_v26, %v6583_v9  ;;  %v6613_v18 = vmul.f32 %v17364_v21, %v6591_v24  ;;  %v6555_v15 = vpop.permute.xlu0 %6554  ;;  %7004 = vmatmul.mubr.bf16.vlgmr.msra.gmra.mrb[32].mxu0 %v11891_v59 }
 0xa8b   : > { %7013 = vmatprep.mubr.bf16.mxu0 %v11894_v36  ;;  %v11906_v36 = vld [vmem:[%s19764_s14 + $0x88] ss:$20 sps:$4 sm:$0xff]  }
 0xa8c   : > { %v6626_v1 = vpack.c.bf16 %v6612_v17, %v6610_v35  ;;  %v6557_v38 = vpop.permute.xlu1 %6556  ;;  %v6627_v4 = vpack.c.bf16 %v6613_v18, %v6611_v11 }
 0xa8e   : > { %v6571_v45 = vpop.permute.xlu0 %6570  ;;  %7044 = vmatprep.subr.bf16.mxu0 %v6627_v4 }
 0xa8f   : > { %v6584_v47 = vsel %vm1175_vm7, %v6555_v15, %v6571_v45  ;;  %v6592_v60 = vsel %vm1175_vm7, %v6571_v45, %v6555_v15  ;;  %7045 = vmatpush1.bf16.msra.mxu0 %v6626_v1 }
 0xa90   : > { %v6573_v23 = vpop.permute.xlu1 %6572  ;;  %v6614_v37 = vmul.f32 %v17361_v26, %v6584_v47  ;;  %v6615_v7 = vmul.f32 %v17364_v21, %v6592_v60 }
 0xa91   : > { %v6585_v5 = vsel %vm1175_vm7, %v6557_v38, %v6573_v23  ;;  %v6593_v39 = vsel %vm1175_vm7, %v6573_v23, %v6557_v38 }
 0xa92   : > { %v6616_v53 = vmul.f32 %v17361_v26, %v6585_v5  ;;  %v6617_v13 = vmul.f32 %v17364_v21, %v6593_v39  ;;  %v6559_v8 = vpop.permute.xlu0 %6558  ;;  %7014 = vmatmul.mubr.bf16.gmra.mrb[36].mxu0 %v11896_v40 }
 0xa93   : > { %7023 = vmatprep.mubr.bf16.mxu0 %v11897_v32 }
 0xa94   : > { %v6628_v51 = vpack.c.bf16 %v6616_v53, %v6614_v37  ;;  %v6561_v19 = vpop.permute.xlu1 %6560  ;;  %v6629_v3 = vpack.c.bf16 %v6617_v13, %v6615_v7 }
 0xa96   : > { %v6575_v63 = vpop.permute.xlu0 %6574  ;;  %7046 = vmatprep.subr.bf16.mxu0 %v6629_v3 }
 0xa97   : > { %v6586_v56 = vsel %vm1175_vm7, %v6559_v8, %v6575_v63  ;;  %v6594_v49 = vsel %vm1175_vm7, %v6575_v63, %v6559_v8  ;;  %7047 = vmatpush1.bf16.msra.mxu0 %v6628_v51 }
 0xa98   : > { %v6577_v54 = vpop.permute.xlu1 %6576  ;;  %v6618_v34 = vmul.f32 %v17361_v26, %v6586_v56  ;;  %v6619_v44 = vmul.f32 %v17364_v21, %v6594_v49 }
 0xa99   : > { %v6587_v55 = vsel %vm1175_vm7, %v6561_v19, %v6577_v54  ;;  %v6595_v42 = vsel %vm1175_vm7, %v6577_v54, %v6561_v19 }
 0xa9a   : > { %v6620_v52 = vmul.f32 %v17361_v26, %v6587_v55  ;;  %v6621_v6 = vmul.f32 %v17364_v21, %v6595_v42  ;;  %v6563_v22 = vpop.permute.xlu0 %6562  ;;  %7024 = vmatmul.mubr.bf16.gmra.mrb[40].mxu0 %v11899_v57 }
 0xa9b   : > { %7033 = vmatprep.mubr.bf16.mxu0 %v11900_v62 }
 0xa9c   : > { %v6630_v0 = vpack.c.bf16 %v6620_v52, %v6618_v34  ;;  %v6565_v33 = vpop.permute.xlu1 %6564  ;;  %v6631_v29 = vpack.c.bf16 %v6621_v6, %v6619_v44 }
 0xa9e   : > { %v6579_v25 = vpop.permute.xlu0 %6578  ;;  %7048 = vmatprep.subr.bf16.mxu0 %v6631_v29 }
 0xa9f   : > { %v6588_v10 = vsel %vm1175_vm7, %v6563_v22, %v6579_v25  ;;  %v6596_v31 = vsel %vm1175_vm7, %v6579_v25, %v6563_v22  ;;  %7049 = vmatpush1.bf16.msra.mxu0 %v6630_v0 }
 0xaa0   : > { %v6581_v46 = vpop.permute.xlu1 %6580  ;;  %v6622_v30 = vmul.f32 %v17361_v26, %v6588_v10  ;;  %v6623_v61 = vmul.f32 %v17364_v21, %v6596_v31 }
 0xaa1   : > { %v6589_v58 = vsel %vm1175_vm7, %v6565_v33, %v6581_v46  ;;  %v6597_v20 = vsel %vm1175_vm7, %v6581_v46, %v6565_v33 }
 0xaa2   : > { %v6624_v43 = vmul.f32 %v17361_v26, %v6589_v58  ;;  %v6625_v48 = vmul.f32 %v17364_v21, %v6597_v20  ;;  %7034 = vmatmul.mubr.bf16.gmra.mrb[44].mxu0 %v11902_v41  ;;  %v11904_v26 = vld [vmem:[%s19764_s14 + $0x38] ss:$20 sps:$4 sm:$0xff]   ;;  %v11905_v21 = vld [vmem:[%s19764_s14 + $0x60] ss:$20 sps:$4 sm:$0xff]  }
 0xaa3   : > { %7076 = vmatprep.mubr.bf16.mxu0 %v20084_v28 }
 0xaa4   : > { %v6632_v59 = vpack.c.bf16 %v6624_v43, %v6622_v30  ;;  %v6633_v2 = vpack.c.bf16 %v6625_v48, %v6623_v61 }
 0xaa6   : > { %7050 = vmatprep.subr.bf16.mxu0 %v6633_v2 }
 0xaa7   : > { %7051 = vmatpush1.bf16.msra.mxu0 %v6632_v59 }
 0xaaa   : > { %11122 = vmatmul.mubr.msk.bf16.vlgmr.msra.gmra.mrb[32].mxu0 %vm1632_vm9, %v11903_v50 }
 0xaab   : > { %7086 = vmatprep.mubr.bf16.mxu0 %v20084_v28 }
 0xaaf   : > { %v6749_v27 = vpop.permute.xlu0 %6748 }
 0xab1   : > { %v6754_v9 = vpop.permute.xlu1 %6753 }
 0xab2   : > { %11123 = vmatmul.mubr.msk.bf16.gmra.mrb[36].mxu0 %vm1632_vm9, %v11904_v26 }
 0xab3   : > { %7096 = vmatprep.mubr.bf16.mxu0 %v20084_v28  ;;  %v6759_v24 = vpop.permute.xlu0 %6758 }
 0xab5   : > { %v6764_v35 = vpop.permute.xlu1 %6763 }
 0xab7   : > { %v7144_v11 = vpop.permute.xlu0 %7143 }
 0xab9   : > { %v7149_v17 = vpop.permute.xlu1 %7148 }
 0xaba   : > { %11124 = vmatmul.mubr.msk.bf16.gmra.mrb[40].mxu0 %vm1632_vm9, %v11905_v21 }
 0xabb   : > { %7106 = vmatprep.mubr.bf16.mxu0 %v20084_v28  ;;  %v6769_v45 = vpop.permute.xlu0 %6768 }
 0xabd   : > { %v7154_v32 = vpop.permute.xlu1 %7153 }
 0xabf   : > { %v6774_v19 = vpop.permute.xlu0 %6773 }
 0xac1   : > { %v7159_v56 = vpop.permute.xlu1 %7158 }
 0xac2   : > { %11125 = vmatmul.mubr.msk.bf16.gmra.mrb[44].mxu0 %vm1632_vm9, %v11906_v36 }
 0xac3   : > { %v6779_v29 = vpop.permute.xlu0 %6778 }
 0xac5   : > { %v7164_v10 = vpop.permute.xlu1 %7163 }
 0xb7d   : > { %v7078_v18 = vpop.f32.mrb[32].mxu0 }
 0xb7e   : > { %v17455_v15 = vadd.f32 %v7078_v18, %v6749_v27  ;;  %v7080_v1 = vpop.f32.mrb[33].mxu0 }
 0xb7f   : > { %v17457_v38 = vadd.f32 %v7080_v1, %v6749_v27  ;;  %v7082_v4 = vpop.f32.mrb[34].mxu0 }
 0xb80   : > { %v7117_v40 = vmax.f32 %v17455_v15, 0.0  ;;  %v17460_v47 = vadd.f32 %v7082_v4, %v6754_v9  ;;  %v7084_v60 = vpop.f32.mrb[35].mxu0 }
 0xb81   : > { %v7118_v23 = vmax.f32 %v17457_v38, 0.0  ;;  %v17463_v5 = vadd.f32 %v7084_v60, %v6754_v9 }
 0xb82   : > { %v7119_v39 = vmax.f32 %v17460_v47, 0.0  ;;  %v7181_v7 = vmul.f32 %v7144_v11, %v7117_v40 }
 0xb83   : > { %v7120_v37 = vmax.f32 %v17463_v5, 0.0  ;;  %v7182_v13 = vmul.f32 %v7144_v11, %v7118_v23 }
 0xb84   : > { %v7183_v53 = vmul.f32 %v7149_v17, %v7119_v39 }
 0xb85   : > { %v7184_v8 = vmul.f32 %v7149_v17, %v7120_v37  ;;  %v7088_v51 = vpop.f32.mrb[36].mxu0 }
 0xb86   : > { %v7197_v3 = vadd.f32 %v7183_v53, %v7181_v7  ;;  %v17475_v63 = vadd.f32 %v7088_v51, %v6759_v24  ;;  %v7090_v57 = vpop.f32.mrb[37].mxu0 }
 0xb87   : > { %v7210_v49 = vadd.f32 %v7184_v8, %v7182_v13  ;;  %v17477_v62 = vadd.f32 %v7090_v57, %v6759_v24  ;;  %v7092_v54 = vpop.f32.mrb[38].mxu0  ;;  %v6784_v24 = vpop.permute.xlu0 %6783 }
 0xb88   : > { %v7121_v55 = vmax.f32 %v17475_v63, 0.0  ;;  %v17480_v42 = vadd.f32 %v7092_v54, %v6764_v35  ;;  %v7094_v34 = vpop.f32.mrb[39].mxu0  ;;  %v20097_v63 = vld [vmem:[#allocation13_spill] sm:$0xff] }
 0xb89   : > { %v7122_v44 = vmax.f32 %v17477_v62, 0.0  ;;  %v17483_v52 = vadd.f32 %v7094_v34, %v6764_v35  ;;  %v7169_v35 = vpop.permute.xlu1 %7168 }
 0xb8a   : > { %v7185_v6 = vmul.f32 %v7154_v32, %v7121_v55  ;;  %v7123_v22 = vmax.f32 %v17480_v42, 0.0 }
 0xb8b   : > { %v7186_v0 = vmul.f32 %v7154_v32, %v7122_v44  ;;  %v7124_v33 = vmax.f32 %v17483_v52, 0.0 }
 0xb8c   : > { %v7198_v25 = vadd.f32 %v7197_v3, %v7185_v6  ;;  %v7187_v41 = vmul.f32 %v7159_v56, %v7123_v22 }
 0xb8d   : > { %v7211_v31 = vadd.f32 %v7210_v49, %v7186_v0  ;;  %v7188_v46 = vmul.f32 %v7159_v56, %v7124_v33  ;;  %v7098_v58 = vpop.f32.mrb[40].mxu0  ;;  %v7174_v56 = vpop.permute.xlu0 %7173 }
 0xb8e   : > { %v7199_v20 = vadd.f32 %v7198_v25, %v7187_v41  ;;  %v17495_v30 = vadd.f32 %v7098_v58, %v6769_v45  ;;  %v7100_v61 = vpop.f32.mrb[41].mxu0  ;;  %v7179_v0 = vpop.permute.xlu1 %7178 }
 0xb8f   : > { %v7212_v43 = vadd.f32 %v7211_v31, %v7188_v46  ;;  %v17497_v48 = vadd.f32 %v7100_v61, %v6769_v45  ;;  %v7102_v59 = vpop.f32.mrb[42].mxu0 }
 0xb90   : > { %v7125_v2 = vmax.f32 %v17495_v30, 0.0  ;;  %v17500_v50 = vadd.f32 %v7102_v59, %v6774_v19  ;;  %v7104_v26 = vpop.f32.mrb[43].mxu0  ;;  %v20098_v30 = vld [vmem:[#allocation19_spill] sm:$0xff] }
 0xb91   : > { %v7126_v21 = vmax.f32 %v17497_v48, 0.0  ;;  %v17503_v36 = vadd.f32 %v7104_v26, %v6774_v19 }
 0xb92   : > { %v7189_v27 = vmul.f32 %v7164_v10, %v7125_v2  ;;  %v7127_v9 = vmax.f32 %v17500_v50, 0.0 }
 0xb93   : > { %v7190_v11 = vmul.f32 %v7164_v10, %v7126_v21  ;;  %v7128_v17 = vmax.f32 %v17503_v36, 0.0 }
 0xb94   : > { %v7200_v18 = vadd.f32 %v7199_v20, %v7189_v27  ;;  %v7191_v1 = vmul.f32 %v7169_v35, %v7127_v9 }
 0xb95   : > { %v7213_v4 = vadd.f32 %v7212_v43, %v7190_v11  ;;  %v7192_v45 = vmul.f32 %v7169_v35, %v7128_v17  ;;  %v7108_v60 = vpop.f32.mrb[44].mxu0  ;;  %v7227_v11 = vpop.permute.xlu0 %7226 }
 0xb96   : > { %v7201_v32 = vadd.f32 %v7200_v18, %v7191_v1  ;;  %v17515_v7 = vadd.f32 %v7108_v60, %v6779_v29  ;;  %v7110_v53 = vpop.f32.mrb[45].mxu0 }
 0xb97   : > { %v7214_v13 = vadd.f32 %v7213_v4, %v7192_v45  ;;  %v17517_v8 = vadd.f32 %v7110_v53, %v6779_v29  ;;  %v7112_v51 = vpop.f32.mrb[46].mxu0  ;;  %v7232_v45 = vrot.slane %v7227_v11, %v12337_v16  ;;  %v20089_v11 = vld [vmem:[#allocation16_spill] sm:$0xff] }
 0xb98   : > { %v7129_v19 = vmax.f32 %v17515_v7, 0.0  ;;  %v17520_v3 = vadd.f32 %v7112_v51, %v6784_v24  ;;  %v7114_v57 = vpop.f32.mrb[47].mxu0 }
 0xb99   : > { %v7130_v49 = vmax.f32 %v17517_v8, 0.0  ;;  %v17523_v54 = vadd.f32 %v7114_v57, %v6784_v24  ;;  %v4454_v57 = vpop.permute.xlu0 %4453 }
 0xb9a   : > { %v7193_v34 = vmul.f32 %v7174_v56, %v7129_v19  ;;  %v7131_v6 = vmax.f32 %v17520_v3, 0.0 }
 0xb9b   : > { %v7194_v29 = vmul.f32 %v7174_v56, %v7130_v49  ;;  %v7132_v25 = vmax.f32 %v17523_v54, 0.0  ;;  %v4449_v56 = vpop.permute.xlu1 %4448 }
 0xb9c   : > { %v7202_v41 = vadd.f32 %v7201_v32, %v7193_v34  ;;  %v7195_v10 = vmul.f32 %v7179_v0, %v7131_v6 }
 0xb9d   : > { %v7215_v31 = vadd.f32 %v7214_v13, %v7194_v29  ;;  %v7196_v46 = vmul.f32 %v7179_v0, %v7132_v25  ;;  %v4464_v54 = vpop.permute.xlu0 %4463 }
 0xb9e   : > { %v7203_v58 = vadd.f32 %v7202_v41, %v7195_v10 }
 0xb9f   : > { %v7216_v20 = vadd.f32 %v7215_v31, %v7196_v46  ;;  %v4459_v10 = vpop.permute.xlu1 %4458 }
 0xba0   : > { %v7204_v61 = vrot.slane %v7203_v58, 4 }
 0xba1   : > { %v7217_v43 = vrot.slane %v7216_v20, 4  ;;  %v4474_v31 = vpop.permute.xlu0 %4473 }
 0xba2   : > { %v7205_v59 = vadd.f32 %v7204_v61, %v7203_v58 }
 0xba3   : > { %v7218_v26 = vadd.f32 %v7217_v43, %v7216_v20  ;;  %v4469_v46 = vpop.permute.xlu1 %4468  ;;  %v20085_v20 = vld [vmem:[#allocation12_spill] sm:$0xff]  ;;  %v20086_v43 = vld [vmem:[#allocation10_spill] sm:$0xff] }
 0xba4   : > { %v7206_v27 = vrot.slane %v7205_v59, 2  ;;  %v4553_v61 = vadd.f32 %v20085_v20, %v4449_v56 }
 0xba5   : > { %v7219_v24 = vrot.slane %v7218_v26, 2  ;;  %v4484_v58 = vpop.permute.xlu0 %4483 }
 0xba6   : > { %v7207_v35 = vadd.f32 %v7206_v27, %v7205_v59  ;;  %v4555_v59 = vadd.f32 %v20086_v43, %v4449_v56 }
 0xba7   : > { %v7220_v18 = vadd.f32 %v7219_v24, %v7218_v26  ;;  %v20087_v26 = vld [vmem:[#allocation11_spill] sm:$0xff]  ;;  %v20088_v24 = vld [vmem:[#allocation9_spill] sm:$0xff] }
 0xba8   : > { %v7208_v1 = vrot.slane %v7207_v35, 1  ;;  %v4557_v27 = vadd.f32 %v20087_v26, %v4454_v57 }
 0xba9   : > { %v7221_v4 = vrot.slane %v7220_v18, 1 }
 0xbaa   : > { %v7209_v60 = vadd.f32 %v7208_v1, %v7207_v35  ;;  %v4559_v35 = vadd.f32 %v20088_v24, %v4454_v57  ;;  %v20090_v1 = vld [vmem:[#allocation14_spill] sm:$0xff] }
 0xbab   : > { %v7222_v32 = vadd.f32 %v7221_v4, %v7220_v18  ;;  %v4563_v18 = vadd.f32 %v20089_v11, %v4459_v10  ;;  %v4565_v4 = vadd.f32 %v20090_v1, %v4459_v10 }
 0xbac   : > { %v7233_v53 = vadd.f32 %v7232_v45, %v7209_v60 }
 0xbad   : > { %v7234_v13 = vadd.f32 %v7232_v45, %v7222_v32  ;;  %v20091_v45 = vld [vmem:[#allocation20_spill] sm:$0xff] }
 0xbae   : > { %v11126_v51 = vmul.f32 -1.442695, %v7233_v53  ;;  %v4567_v60 = vadd.f32 %v20091_v45, %v4464_v54  ;;  %v20092_v53 = vld [vmem:[#allocation15_spill] sm:$0xff] }
 0xbaf   : > { %v11127_v3 = vmul.f32 -1.442695, %v7234_v13  ;;  %v4573_v13 = vadd.f32 %v20092_v53, %v4469_v46 }
 0xbb0   : > { %12025 = vpow2.f32 %v11126_v51  ;;  %v20093_v51 = vld [vmem:[#allocation6_spill] sm:$0xff] }
 0xbb1   : > { %12027 = vpow2.f32 %v11127_v3  ;;  %v4577_v3 = vadd.f32 %v20093_v51, %v4474_v31 }
 0xbba   : > { %v12026_v34 = vpop.eup %12025 }
 0xbbb   : > { %v12028_v0 = vpop.eup %12027  ;;  %v7241_v29 = vadd.f32 1.0, %v12026_v34  ;;  %v20094_v34 = vld [vmem:[#allocation23_spill] sm:$0xff] }
 0xbbc   : > { %v7242_v41 = vadd.f32 1.0, %v12028_v0  ;;  %v4587_v0 = vadd.f32 %v20094_v34, %v4484_v58 }
 0xbbd   : > { %12029 = vrcp.f32 %v7241_v29  ;;  %v20095_v29 = vld [vmem:[#allocation34_spill] sm:$0xff] }
 0xbbe   : > { %12031 = vrcp.f32 %v7242_v41  ;;  %v4589_v41 = vadd.f32 %v20095_v29, %v4484_v58 }
 0xbc7   : > { %v12030_v32 = vpop.eup %12029 }
 0xbc8   : > { %v12032_v56 = vpop.eup %12031  ;;  %v7261_v20 = vmul.f32 %v12030_v32, %v7131_v6  ;;  %v7249_v57 = vmul.f32 %v12030_v32, %v7119_v39  ;;  %v7247_v43 = vmul.f32 %v12030_v32, %v7117_v40  ;;  %v7253_v10 = vmul.f32 %v12030_v32, %v7123_v22  ;;  %v4479_v6 = vpop.permute.xlu1 %4478 }
 0xbc9   : > { %v7262_v26 = vmul.f32 %v12032_v56, %v7132_v25  ;;  %v7251_v24 = vmul.f32 %v12030_v32, %v7121_v55  ;;  %v7257_v11 = vmul.f32 %v12030_v32, %v7127_v9  ;;  %v7255_v58 = vmul.f32 %v12030_v32, %v7125_v2  ;;  %v20096_v25 = vld [vmem:[#allocation21_spill] sm:$0xff] }
 0xbca   : > { %v7277_v1 = vadd.f32 %v7261_v20, %v4587_v0  ;;  %v7265_v47 = vadd.f32 %v7249_v57, %v4557_v27  ;;  %v7263_v39 = vadd.f32 %v7247_v43, %v4553_v61  ;;  %v7269_v45 = vadd.f32 %v7253_v10, %v4567_v60  ;;  %v20099_v9 = vld [vmem:[#allocation33_spill] sm:$0xff]  ;;  %v20100_v27 = vld [vmem:[#allocation24_spill] sm:$0xff] }
 0xbcb   : > { %v17555_v15 = vadd.f32 %v7262_v26, %v4589_v41  ;;  %v7267_v40 = vadd.f32 %v7251_v24, %v4563_v18  ;;  %v7273_v42 = vadd.f32 %v7257_v11, %v4577_v3  ;;  %v7271_v22 = vadd.f32 %v7255_v58, %v4573_v13 }
 0xbcc   : > { %v4569_v53 = vadd.f32 %v20096_v25, %v4464_v54  ;;  %v4575_v55 = vadd.f32 %v20097_v63, %v4469_v46  ;;  %v17559_v51 = vmax.f32 %v7265_v47, 0.0  ;;  %v17561_v50 = vmax.f32 %v7263_v39, 0.0 }
 0xbcd   : > { %v4579_v2 = vadd.f32 %v20098_v30, %v4474_v31  ;;  %v4583_v34 = vadd.f32 %v20099_v9, %v4479_v6  ;;  %v4585_v61 = vadd.f32 %v20100_v27, %v4479_v6  ;;  %v17566_v60 = vmax.f32 %v7269_v45, 0.0 }
 0xbce   : > { %7297 = vrot.lane.b32.xlu0 %v17559_v51, %s19959_s30  ;;  %7295 = vrot.lane.b32.xlu1 %v17561_v50, %s19959_s30  ;;  %v17572_v54 = vmax.f32 %v7267_v40, 0.0  ;;  %v7259_v46 = vmul.f32 %v12030_v32, %v7129_v19  ;;  %v7250_v31 = vmul.f32 %v12032_v56, %v7120_v37  ;;  %v7248_v18 = vmul.f32 %v12032_v56, %v7118_v23 }
 0xbcf   : > { %v7254_v13 = vmul.f32 %v12032_v56, %v7124_v33  ;;  %v7252_v3 = vmul.f32 %v12032_v56, %v7122_v44  ;;  %v7258_v0 = vmul.f32 %v12032_v56, %v7128_v17  ;;  %v7256_v29 = vmul.f32 %v12032_v56, %v7126_v21 }
 0xbd0   : > { %v7275_v7 = vadd.f32 %v7259_v46, %v4583_v34  ;;  %v17588_v19 = vadd.f32 %v7250_v31, %v4559_v35  ;;  %v17590_v5 = vadd.f32 %v7248_v18, %v4555_v59  ;;  %v7260_v38 = vmul.f32 %v12032_v56, %v7130_v49  ;;  %v11909_v46 = vld [vmem:[%s19769_s20 + $0x4] ss:$20 sps:$4 sm:$0xff]  }
 0xbd1   : > { %v17594_v23 = vadd.f32 %v7254_v13, %v4569_v53  ;;  %v17596_v37 = vadd.f32 %v7252_v3, %v4565_v4  ;;  %v17598_v62 = vadd.f32 %v7258_v0, %v4579_v2  ;;  %v17600_v44 = vadd.f32 %v7256_v29, %v4575_v55  ;;  %8271 = vmatprep.mubr.bf16.mxu1 %v11909_v46 }
 0xbd2   : > { %7301 = vrot.lane.b32.xlu0 %v17566_v60, %s19959_s30  ;;  %7299 = vrot.lane.b32.xlu1 %v17572_v54, %s19959_s30  ;;  %v17606_v52 = vadd.f32 %v7260_v38, %v4585_v61  ;;  %v17608_v33 = vmax.f32 %v7273_v42, 0.0  ;;  %v17610_v48 = vmax.f32 %v7271_v22, 0.0  ;;  %v17616_v21 = vmax.f32 %v7277_v1, 0.0 }
 0xbd3   : > { %v17618_v36 = vmax.f32 %v7275_v7, 0.0  ;;  %v17721_v17 = vmax.f32 %v17588_v19, 0.0  ;;  %v17724_v8 = vmax.f32 %v17590_v5, 0.0  ;;  %v17735_v35 = vmax.f32 %v17594_v23, 0.0 }
 0xbd4   : > { %20101 = vst [vmem:[#allocation7_spill] sm:$0xff] %v17616_v21  ;;  %v17738_v4 = vmax.f32 %v17596_v37, 0.0  ;;  %v17749_v56 = vmax.f32 %v17598_v62, 0.0  ;;  %v17752_v20 = vmax.f32 %v17600_v44, 0.0  ;;  %v17759_v57 = vmax.f32 %v17555_v15, 0.0 }
 0xbd5   : > { %20102 = vst [vmem:[#allocation27_spill] sm:$0xff] %v17618_v36  ;;  %v17766_v26 = vmax.f32 %v17606_v52, 0.0 }
 0xbd6   : > { %7305 = vrot.lane.b32.xlu0 %v17608_v33, %s19959_s30  ;;  %7303 = vrot.lane.b32.xlu1 %v17610_v48, %s19959_s30 }
 0xbda   : > { %7309 = vrot.lane.b32.xlu0 %v17616_v21, %s19959_s30  ;;  %7307 = vrot.lane.b32.xlu1 %v17618_v36, %s19959_s30 }
 0xbde   : > { %7389 = vrot.lane.b32.xlu0 %v17559_v51, %s19960_s7  ;;  %7387 = vrot.lane.b32.xlu1 %v17561_v50, %s19960_s7 }
 0xbe2   : > { %7393 = vrot.lane.b32.xlu0 %v17566_v60, %s19960_s7  ;;  %7391 = vrot.lane.b32.xlu1 %v17572_v54, %s19960_s7 }
 0xbe6   : > { %7397 = vrot.lane.b32.xlu0 %v17608_v33, %s19960_s7  ;;  %7395 = vrot.lane.b32.xlu1 %v17610_v48, %s19960_s7 }
 0xbea   : > { %7401 = vrot.lane.b32.xlu0 %v17616_v21, %s19960_s7  ;;  %7399 = vrot.lane.b32.xlu1 %v17618_v36, %s19960_s7 }
 0xbee   : > { %7481 = vrot.lane.b32.xlu0 %v17559_v51, %s19961_s3  ;;  %7479 = vrot.lane.b32.xlu1 %v17561_v50, %s19961_s3 }
 0xbf2   : > { %7485 = vrot.lane.b32.xlu0 %v17566_v60, %s19961_s3  ;;  %7483 = vrot.lane.b32.xlu1 %v17572_v54, %s19961_s3 }
 0xbf6   : > { %7489 = vrot.lane.b32.xlu0 %v17608_v33, %s19961_s3  ;;  %7487 = vrot.lane.b32.xlu1 %v17610_v48, %s19961_s3 }
 0xbfa   : > { %7493 = vrot.lane.b32.xlu0 %v17616_v21, %s19961_s3  ;;  %7491 = vrot.lane.b32.xlu1 %v17618_v36, %s19961_s3 }
 0xbfe   : > { %7573 = vrot.lane.b32.xlu0 %v17559_v51, %s19962_s25  ;;  %7571 = vrot.lane.b32.xlu1 %v17561_v50, %s19962_s25 }
 0xc02   : > { %7577 = vrot.lane.b32.xlu0 %v17566_v60, %s19962_s25  ;;  %7575 = vrot.lane.b32.xlu1 %v17572_v54, %s19962_s25 }
 0xc06   : > { %7581 = vrot.lane.b32.xlu0 %v17608_v33, %s19962_s25  ;;  %7579 = vrot.lane.b32.xlu1 %v17610_v48, %s19962_s25 }
 0xc0a   : > { %7585 = vrot.lane.b32.xlu0 %v17616_v21, %s19962_s25  ;;  %7583 = vrot.lane.b32.xlu1 %v17618_v36, %s19962_s25 }
 0xc0e   : > { %7709 = vrot.lane.b32.xlu0 %v17559_v51, %s19910_s27  ;;  %7707 = vrot.lane.b32.xlu1 %v17561_v50, %s19910_s27 }
 0xc12   : > { %7713 = vrot.lane.b32.xlu0 %v17566_v60, %s19910_s27  ;;  %7711 = vrot.lane.b32.xlu1 %v17572_v54, %s19910_s27 }
 0xc16   : > { %7717 = vrot.lane.b32.xlu0 %v17608_v33, %s19910_s27  ;;  %7715 = vrot.lane.b32.xlu1 %v17610_v48, %s19910_s27 }
 0xc1a   : > { %7721 = vrot.lane.b32.xlu0 %v17616_v21, %s19910_s27  ;;  %7719 = vrot.lane.b32.xlu1 %v17618_v36, %s19910_s27 }
 0xc1e   : > { %7801 = vrot.lane.b32.xlu0 %v17559_v51, %s19914_s1  ;;  %7799 = vrot.lane.b32.xlu1 %v17561_v50, %s19914_s1 }
 0xc22   : > { %7805 = vrot.lane.b32.xlu0 %v17566_v60, %s19914_s1  ;;  %7803 = vrot.lane.b32.xlu1 %v17572_v54, %s19914_s1 }
 0xc26   : > { %7809 = vrot.lane.b32.xlu0 %v17608_v33, %s19914_s1  ;;  %7807 = vrot.lane.b32.xlu1 %v17610_v48, %s19914_s1 }
 0xc2a   : > { %7813 = vrot.lane.b32.xlu0 %v17616_v21, %s19914_s1  ;;  %7811 = vrot.lane.b32.xlu1 %v17618_v36, %s19914_s1 }
 0xc2e   : > { %7893 = vrot.lane.b32.xlu0 %v17559_v51, %s19919_s28  ;;  %7891 = vrot.lane.b32.xlu1 %v17561_v50, %s19919_s28 }
 0xc32   : > { %7897 = vrot.lane.b32.xlu0 %v17566_v60, %s19919_s28  ;;  %7895 = vrot.lane.b32.xlu1 %v17572_v54, %s19919_s28 }
 0xc36   : > { %7901 = vrot.lane.b32.xlu0 %v17608_v33, %s19919_s28  ;;  %7899 = vrot.lane.b32.xlu1 %v17610_v48, %s19919_s28 }
 0xc3a   : > { %7905 = vrot.lane.b32.xlu0 %v17616_v21, %s19919_s28  ;;  %7903 = vrot.lane.b32.xlu1 %v17618_v36, %s19919_s28 }
 0xc3e   : > { %7313 = vrot.lane.b32.xlu0 %v17721_v17, %s19959_s30  ;;  %7311 = vrot.lane.b32.xlu1 %v17724_v8, %s19959_s30 }
 0xc40   : > { %v17730_v49 = vpop.permute.xlu0 %7297  ;;  %v17732_v59 = vpop.permute.xlu1 %7295 }
 0xc42   : > { %7317 = vrot.lane.b32.xlu0 %v17735_v35, %s19959_s30  ;;  %7315 = vrot.lane.b32.xlu1 %v17738_v4, %s19959_s30 }
 0xc44   : > { %v17744_v32 = vpop.permute.xlu0 %7301  ;;  %v17746_v41 = vpop.permute.xlu1 %7299 }
 0xc46   : > { %7321 = vrot.lane.b32.xlu0 %v17749_v56, %s19959_s30  ;;  %7319 = vrot.lane.b32.xlu1 %v17752_v20, %s19959_s30 }
 0xc48   : > { %v17761_v43 = vpop.permute.xlu0 %7305  ;;  %v17763_v10 = vpop.permute.xlu1 %7303 }
 0xc4a   : > { %7325 = vrot.lane.b32.xlu0 %v17759_v57, %s19959_s30  ;;  %7323 = vrot.lane.b32.xlu1 %v17766_v26, %s19959_s30  ;;  %s11471_s30 = sshll.u32 %s20157_s2, 8 }
 0xc4c   : > { %v17772_v24 = vpop.permute.xlu0 %7309  ;;  %v17774_v11 = vpop.permute.xlu1 %7307 }
 0xc4e   : > { %7405 = vrot.lane.b32.xlu0 %v17721_v17, %s19960_s7  ;;  %7403 = vrot.lane.b32.xlu1 %v17724_v8, %s19960_s7 }
 0xc50   : > { %v17780_v58 = vpop.permute.xlu0 %7389  ;;  %v17782_v6 = vpop.permute.xlu1 %7387 }
 0xc52   : > { %7409 = vrot.lane.b32.xlu0 %v17735_v35, %s19960_s7  ;;  %7407 = vrot.lane.b32.xlu1 %v17738_v4, %s19960_s7 }
 0xc54   : > { %v17788_v1 = vpop.permute.xlu0 %7393  ;;  %v17790_v47 = vpop.permute.xlu1 %7391 }
 0xc56   : > { %7413 = vrot.lane.b32.xlu0 %v17749_v56, %s19960_s7  ;;  %7411 = vrot.lane.b32.xlu1 %v17752_v20, %s19960_s7 }
 0xc58   : > { %v17796_v39 = vpop.permute.xlu0 %7397  ;;  %v17798_v45 = vpop.permute.xlu1 %7395 }
 0xc5a   : > { %7417 = vrot.lane.b32.xlu0 %v17759_v57, %s19960_s7  ;;  %7415 = vrot.lane.b32.xlu1 %v17766_v26, %s19960_s7 }
 0xc5c   : > { %v17804_v15 = vpop.permute.xlu0 %7401  ;;  %v17806_v40 = vpop.permute.xlu1 %7399 }
 0xc5e   : > { %7497 = vrot.lane.b32.xlu0 %v17721_v17, %s19961_s3  ;;  %7495 = vrot.lane.b32.xlu1 %v17724_v8, %s19961_s3 }
 0xc60   : > { %v17812_v42 = vpop.permute.xlu0 %7481  ;;  %v17814_v22 = vpop.permute.xlu1 %7479 }
 0xc62   : > { %7501 = vrot.lane.b32.xlu0 %v17735_v35, %s19961_s3  ;;  %7499 = vrot.lane.b32.xlu1 %v17738_v4, %s19961_s3 }
 0xc64   : > { %v17820_v25 = vpop.permute.xlu0 %7485  ;;  %v17822_v53 = vpop.permute.xlu1 %7483 }
 0xc66   : > { %7505 = vrot.lane.b32.xlu0 %v17749_v56, %s19961_s3  ;;  %7503 = vrot.lane.b32.xlu1 %v17752_v20, %s19961_s3 }
 0xc68   : > { %v17828_v63 = vpop.permute.xlu0 %7489  ;;  %v17830_v55 = vpop.permute.xlu1 %7487 }
 0xc6a   : > { %7509 = vrot.lane.b32.xlu0 %v17759_v57, %s19961_s3  ;;  %7507 = vrot.lane.b32.xlu1 %v17766_v26, %s19961_s3  ;;  %s20154_s3 = sld [smem:[#allocation44_spill]] }
 0xc6c   : > { %v17836_v30 = vpop.permute.xlu0 %7493  ;;  %v17838_v2 = vpop.permute.xlu1 %7491 }
 0xc6e   : > { %7589 = vrot.lane.b32.xlu0 %v17721_v17, %s19962_s25  ;;  %7587 = vrot.lane.b32.xlu1 %v17724_v8, %s19962_s25 }
 0xc70   : > { %v17844_v9 = vpop.permute.xlu0 %7573  ;;  %v17846_v34 = vpop.permute.xlu1 %7571 }
 0xc72   : > { %7593 = vrot.lane.b32.xlu0 %v17735_v35, %s19962_s25  ;;  %7591 = vrot.lane.b32.xlu1 %v17738_v4, %s19962_s25 }
 0xc74   : > { %v17852_v27 = vpop.permute.xlu0 %7577  ;;  %v17854_v61 = vpop.permute.xlu1 %7575 }
 0xc76   : > { %7597 = vrot.lane.b32.xlu0 %v17749_v56, %s19962_s25  ;;  %7595 = vrot.lane.b32.xlu1 %v17752_v20, %s19962_s25 }
 0xc78   : > { %v17863_v31 = vpop.permute.xlu0 %7581  ;;  %v17865_v18 = vpop.permute.xlu1 %7579 }
 0xc7a   : > { %7601 = vrot.lane.b32.xlu0 %v17759_v57, %s19962_s25  ;;  %7599 = vrot.lane.b32.xlu1 %v17766_v26, %s19962_s25 }
 0xc7c   : > { %v17871_v13 = vpop.permute.xlu0 %7585  ;;  %v17873_v3 = vpop.permute.xlu1 %7583 }
 0xc7e   : > { %7985 = vrot.lane.b32.xlu0 %v17559_v51, %s19926_s26  ;;  %7983 = vrot.lane.b32.xlu1 %v17561_v50, %s19926_s26 }
 0xc80   : > { %v17879_v0 = vpop.permute.xlu0 %7709  ;;  %v17881_v29 = vpop.permute.xlu1 %7707 }
 0xc81   : > { %20103 = vst [vmem:[#allocation26_spill] sm:$0xff] %v17879_v0  ;;  %20104 = vst [vmem:[#allocation18_spill] sm:$0xff] %v17881_v29 }
 0xc82   : > { %7989 = vrot.lane.b32.xlu0 %v17566_v60, %s19926_s26  ;;  %7987 = vrot.lane.b32.xlu1 %v17572_v54, %s19926_s26 }
 0xc84   : > { %v17887_v7 = vpop.permute.xlu0 %7713  ;;  %v17889_v19 = vpop.permute.xlu1 %7711 }
 0xc85   : > { %20105 = vst [vmem:[#allocation31_spill] sm:$0xff] %v17887_v7  ;;  %20106 = vst [vmem:[#allocation32_spill] sm:$0xff] %v17889_v19 }
 0xc86   : > { %7993 = vrot.lane.b32.xlu0 %v17608_v33, %s19926_s26  ;;  %7991 = vrot.lane.b32.xlu1 %v17610_v48, %s19926_s26 }
 0xc88   : > { %v17895_v5 = vpop.permute.xlu0 %7717  ;;  %v17897_v38 = vpop.permute.xlu1 %7715 }
 0xc89   : > { %20107 = vst [vmem:[#allocation30_spill] sm:$0xff] %v17895_v5  ;;  %20108 = vst [vmem:[#allocation25_spill] sm:$0xff] %v17897_v38 }
 0xc8a   : > { %7997 = vrot.lane.b32.xlu0 %v17616_v21, %s19926_s26  ;;  %7995 = vrot.lane.b32.xlu1 %v17618_v36, %s19926_s26 }
 0xc8c   : > { %v17903_v23 = vpop.permute.xlu0 %7721  ;;  %v17905_v37 = vpop.permute.xlu1 %7719 }
 0xc8d   : > { %20109 = vst [vmem:[#allocation8_spill] sm:$0xff] %v17903_v23  ;;  %20110 = vst [vmem:[#allocation22_spill] sm:$0xff] %v17905_v37 }
 0xc8e   : > { %7725 = vrot.lane.b32.xlu0 %v17721_v17, %s19910_s27  ;;  %7723 = vrot.lane.b32.xlu1 %v17724_v8, %s19910_s27 }
 0xc90   : > { %v17911_v62 = vpop.permute.xlu0 %7801  ;;  %v17913_v44 = vpop.permute.xlu1 %7799 }
 0xc91   : > { %20111 = vst [vmem:[#allocation17_spill] sm:$0xff] %v17911_v62  ;;  %20112 = vst [vmem:[#allocation29_spill] sm:$0xff] %v17913_v44 }
 0xc92   : > { %7729 = vrot.lane.b32.xlu0 %v17735_v35, %s19910_s27  ;;  %7727 = vrot.lane.b32.xlu1 %v17738_v4, %s19910_s27 }
 0xc94   : > { %v17919_v52 = vpop.permute.xlu0 %7805  ;;  %v17921_v46 = vpop.permute.xlu1 %7803 }
 0xc95   : > { %20113 = vst [vmem:[#allocation28_spill] sm:$0xff] %v17919_v52  ;;  %20114 = vst [vmem:[#allocation12_spill] sm:$0xff] %v17921_v46 }
 0xc96   : > { %7733 = vrot.lane.b32.xlu0 %v17749_v56, %s19910_s27  ;;  %7731 = vrot.lane.b32.xlu1 %v17752_v20, %s19910_s27 }
 0xc98   : > { %v17927_v28 = vpop.permute.xlu0 %7809  ;;  %v17929_v62 = vpop.permute.xlu1 %7807 }
 0xc99   : > { %20115 = vst [vmem:[#allocation10_spill] sm:$0xff] %v17927_v28  ;;  %20116 = vst [vmem:[#allocation11_spill] sm:$0xff] %v17929_v62 }
 0xc9a   : > { %7737 = vrot.lane.b32.xlu0 %v17759_v57, %s19910_s27  ;;  %7735 = vrot.lane.b32.xlu1 %v17766_v26, %s19910_s27 }
 0xc9c   : > { %v17935_v44 = vpop.permute.xlu0 %7813  ;;  %v17937_v52 = vpop.permute.xlu1 %7811 }
 0xc9d   : > { %20117 = vst [vmem:[#allocation9_spill] sm:$0xff] %v17935_v44  ;;  %20118 = vst [vmem:[#allocation16_spill] sm:$0xff] %v17937_v52 }
 0xc9e   : > { %7817 = vrot.lane.b32.xlu0 %v17721_v17, %s19914_s1  ;;  %7815 = vrot.lane.b32.xlu1 %v17724_v8, %s19914_s1 }
 0xca0   : > { %v17943_v46 = vpop.permute.xlu0 %7893  ;;  %v17945_v28 = vpop.permute.xlu1 %7891 }
 0xca1   : > { %20119 = vst [vmem:[#allocation14_spill] sm:$0xff] %v17943_v46  ;;  %20120 = vst [vmem:[#allocation20_spill] sm:$0xff] %v17945_v28 }
 0xca2   : > { %7821 = vrot.lane.b32.xlu0 %v17735_v35, %s19914_s1  ;;  %7819 = vrot.lane.b32.xlu1 %v17738_v4, %s19914_s1 }
 0xca4   : > { %v17951_v62 = vpop.permute.xlu0 %7897  ;;  %v17953_v44 = vpop.permute.xlu1 %7895 }
 0xca5   : > { %20121 = vst [vmem:[#allocation15_spill] sm:$0xff] %v17951_v62  ;;  %20122 = vst [vmem:[#allocation6_spill] sm:$0xff] %v17953_v44  ;;  %v7343_v44 = vld [vmem:[%s19906_s0] sm:$0x3] }
 0xca6   : > { %7825 = vrot.lane.b32.xlu0 %v17749_v56, %s19914_s1  ;;  %7823 = vrot.lane.b32.xlu1 %v17752_v20, %s19914_s1 }
 0xca8   : > { %v17959_v52 = vpop.permute.xlu0 %7901  ;;  %v17961_v46 = vpop.permute.xlu1 %7899 }
 0xca9   : > { %20123 = vst [vmem:[#allocation23_spill] sm:$0xff] %v17959_v52  ;;  %20124 = vst [vmem:[#allocation34_spill] sm:$0xff] %v17961_v46  ;;  %v7348_v46 = vrot.slane %v7343_v44, %v12337_v16  ;;  %v7352_v52 = vrot.slane %v7343_v44, %v12328_v14 }
 0xcaa   : > { %7829 = vrot.lane.b32.xlu0 %v17759_v57, %s19914_s1  ;;  %7827 = vrot.lane.b32.xlu1 %v17766_v26, %s19914_s1  ;;  %s19713_s1 = scalar_lea.vmem %s20154_s3, %s11471_s30 }
 0xcac   : > { %v17970_v62 = vpop.permute.xlu0 %7905  ;;  %v17972_v28 = vpop.permute.xlu1 %7903 }
 0xcad   : > { %20125 = vst [vmem:[#allocation21_spill] sm:$0xff] %v17970_v62  ;;  %20126 = vst [vmem:[#allocation13_spill] sm:$0xff] %v17972_v28 }
 0xcae   : > { %7909 = vrot.lane.b32.xlu0 %v17721_v17, %s19919_s28  ;;  %7907 = vrot.lane.b32.xlu1 %v17724_v8, %s19919_s28 }
 0xcb0   : > { %v7314_v37 = vpop.permute.xlu0 %7313  ;;  %v7312_v23 = vpop.permute.xlu1 %7311 }
 0xcb1   : > { %v7328_v38 = vsel %vm769_vm0, %v17730_v49, %v7314_v37  ;;  %v7336_v28 = vsel %vm769_vm0, %v7314_v37, %v17730_v49  ;;  %v7327_v62 = vsel %vm769_vm0, %v17732_v59, %v7312_v23  ;;  %v7335_v5 = vsel %vm769_vm0, %v7312_v23, %v17732_v59 }
 0xcb2   : > { %v7357_v19 = vmul.f32 %v7348_v46, %v7336_v28  ;;  %v7358_v44 = vmul.f32 %v7352_v52, %v7328_v38  ;;  %v7355_v7 = vmul.f32 %v7348_v46, %v7335_v5  ;;  %v7356_v29 = vmul.f32 %v7352_v52, %v7327_v62  ;;  %7913 = vrot.lane.b32.xlu0 %v17735_v35, %s19919_s28 }
 0xcb3   : > { %7911 = vrot.lane.b32.xlu1 %v17738_v4, %s19919_s28 }
 0xcb4   : > { %v7371_v0 = vpack.c.bf16 %v7357_v19, %v7355_v7  ;;  %v7318_v49 = vpop.permute.xlu0 %7317  ;;  %v7316_v37 = vpop.permute.xlu1 %7315  ;;  %v7372_v21 = vpack.c.bf16 %v7358_v44, %v7356_v29 }
 0xcb5   : > { %v7330_v36 = vsel %vm769_vm0, %v17744_v32, %v7318_v49  ;;  %v7338_v28 = vsel %vm769_vm0, %v7318_v49, %v17744_v32  ;;  %v7329_v59 = vsel %vm769_vm0, %v17746_v41, %v7316_v37  ;;  %v7337_v5 = vsel %vm769_vm0, %v7316_v37, %v17746_v41 }
 0xcb6   : > { %v7361_v7 = vmul.f32 %v7348_v46, %v7338_v28  ;;  %v7362_v19 = vmul.f32 %v7352_v52, %v7330_v36  ;;  %v7359_v38 = vmul.f32 %v7348_v46, %v7337_v5  ;;  %v7360_v29 = vmul.f32 %v7352_v52, %v7329_v59  ;;  %7917 = vrot.lane.b32.xlu0 %v17749_v56, %s19919_s28 }
 0xcb7   : > { %7915 = vrot.lane.b32.xlu1 %v17752_v20, %s19919_s28  ;;  %8239 = vmatprep.subr.bf16.mxu1 %v7372_v21 }
 0xcb8   : > { %v7373_v32 = vpack.c.bf16 %v7361_v7, %v7359_v38  ;;  %8240 = vmatpush1.bf16.msra.mxu1 %v7371_v0  ;;  %v7322_v23 = vpop.permute.xlu0 %7321  ;;  %v7320_v62 = vpop.permute.xlu1 %7319  ;;  %v7374_v44 = vpack.c.bf16 %v7362_v19, %v7360_v29  ;;  %v11128_v0 = vld [vmem:[%s19906_s0 + $0x2] sm:$0x3] }
 0xcb9   : > { %v7332_v41 = vsel %vm769_vm0, %v17761_v43, %v7322_v23  ;;  %v7340_v36 = vsel %vm769_vm0, %v7322_v23, %v17761_v43  ;;  %v7331_v49 = vsel %vm769_vm0, %v17763_v10, %v7320_v62  ;;  %v7339_v21 = vsel %vm769_vm0, %v7320_v62, %v17763_v10 }
 0xcba   : > { %v7365_v37 = vmul.f32 %v7348_v46, %v7340_v36  ;;  %v7366_v28 = vmul.f32 %v7352_v52, %v7332_v41  ;;  %v7363_v59 = vmul.f32 %v7348_v46, %v7339_v21  ;;  %v7364_v5 = vmul.f32 %v7352_v52, %v7331_v49  ;;  %7921 = vrot.lane.b32.xlu0 %v17759_v57, %s19919_s28 }
 0xcbb   : > { %7919 = vrot.lane.b32.xlu1 %v17766_v26, %s19919_s28  ;;  %8241 = vmatprep.subr.bf16.mxu1 %v7374_v44  ;;  %v18032_v38 = vrot.slane %v11128_v0, %v12337_v16  ;;  %v18035_v29 = vrot.slane %v11128_v0, %v12328_v14 }
 0xcbc   : > { %v7375_v43 = vpack.c.bf16 %v7365_v37, %v7363_v59  ;;  %8242 = vmatpush1.bf16.msra.mxu1 %v7373_v32  ;;  %v7326_v7 = vpop.permute.xlu0 %7325  ;;  %v7324_v19 = vpop.permute.xlu1 %7323  ;;  %v7376_v10 = vpack.c.bf16 %v7366_v28, %v7364_v5 }
 0xcbd   : > { %v7334_v23 = vsel %vm769_vm0, %v17772_v24, %v7326_v7  ;;  %v7342_v62 = vsel %vm769_vm0, %v7326_v7, %v17772_v24  ;;  %v7333_v32 = vsel %vm769_vm0, %v17774_v11, %v7324_v19  ;;  %v7341_v44 = vsel %vm769_vm0, %v7324_v19, %v17774_v11 }
 0xcbe   : > { %v7369_v41 = vmul.f32 %v7348_v46, %v7342_v62  ;;  %v7370_v36 = vmul.f32 %v7352_v52, %v7334_v23  ;;  %v7367_v49 = vmul.f32 %v7348_v46, %v7341_v44  ;;  %v7368_v21 = vmul.f32 %v7352_v52, %v7333_v32  ;;  %8001 = vrot.lane.b32.xlu0 %v17721_v17, %s19926_s26 }
 0xcbf   : > { %7999 = vrot.lane.b32.xlu1 %v17724_v8, %s19926_s26  ;;  %8243 = vmatprep.subr.bf16.mxu1 %v7376_v10 }
 0xcc0   : > { %v7377_v24 = vpack.c.bf16 %v7369_v41, %v7367_v49  ;;  %8244 = vmatpush1.bf16.msra.mxu1 %v7375_v43  ;;  %v7406_v0 = vpop.permute.xlu0 %7405  ;;  %v7404_v37 = vpop.permute.xlu1 %7403  ;;  %v7378_v28 = vpack.c.bf16 %v7370_v36, %v7368_v21 }
 0xcc1   : > { %v7420_v11 = vsel %vm822_vm1, %v17780_v58, %v7406_v0  ;;  %v7428_v52 = vsel %vm822_vm1, %v7406_v0, %v17780_v58  ;;  %v7419_v46 = vsel %vm822_vm1, %v17782_v6, %v7404_v37  ;;  %v7427_v59 = vsel %vm822_vm1, %v7404_v37, %v17782_v6 }
 0xcc2   : > { %v7449_v5 = vmul.f32 %v18032_v38, %v7428_v52  ;;  %v7450_v43 = vmul.f32 %v18035_v29, %v7420_v11  ;;  %v7447_v7 = vmul.f32 %v18032_v38, %v7427_v59  ;;  %v7448_v19 = vmul.f32 %v18035_v29, %v7419_v46  ;;  %8005 = vrot.lane.b32.xlu0 %v17735_v35, %s19926_s26  ;;  %v11129_v59 = vld [vmem:[%s19906_s0 + $0x4] sm:$0x3] }
 0xcc3   : > { %8003 = vrot.lane.b32.xlu1 %v17738_v4, %s19926_s26  ;;  %8245 = vmatprep.subr.bf16.mxu1 %v7378_v28 }
 0xcc4   : > { %v7463_v58 = vpack.c.bf16 %v7449_v5, %v7447_v7  ;;  %8246 = vmatpush1.bf16.msra.mxu1 %v7377_v24  ;;  %v7410_v10 = vpop.permute.xlu0 %7409  ;;  %v7408_v23 = vpop.permute.xlu1 %7407  ;;  %v7464_v6 = vpack.c.bf16 %v7450_v43, %v7448_v19 }
 0xcc5   : > { %v7422_v62 = vsel %vm822_vm1, %v17788_v1, %v7410_v10  ;;  %v7430_v32 = vsel %vm822_vm1, %v7410_v10, %v17788_v1  ;;  %v7421_v44 = vsel %vm822_vm1, %v17790_v47, %v7408_v23  ;;  %v7429_v41 = vsel %vm822_vm1, %v7408_v23, %v17790_v47  ;;  %v8159_v23 = vld [vmem:[%s19770_s21] sm:$0xff] }
 0xcc6   : > { %v7453_v36 = vmul.f32 %v18032_v38, %v7430_v32  ;;  %v7454_v49 = vmul.f32 %v18035_v29, %v7422_v62  ;;  %v7451_v21 = vmul.f32 %v18032_v38, %v7429_v41  ;;  %v7452_v24 = vmul.f32 %v18035_v29, %v7421_v44  ;;  %8009 = vrot.lane.b32.xlu0 %v17749_v56, %s19926_s26 }
 0xcc7   : > { %8007 = vrot.lane.b32.xlu1 %v17752_v20, %s19926_s26  ;;  %8247 = vmatprep.subr.bf16.mxu1 %v7464_v6  ;;  %v18123_v62 = vrot.slane %v11129_v59, %v12337_v16  ;;  %v18126_v32 = vrot.slane %v11129_v59, %v12328_v14 }
 0xcc8   : > { %v7465_v1 = vpack.c.bf16 %v7453_v36, %v7451_v21  ;;  %8248 = vmatpush1.bf16.msra.mxu1 %v7463_v58  ;;  %v7414_v0 = vpop.permute.xlu0 %7413  ;;  %v7412_v37 = vpop.permute.xlu1 %7411  ;;  %v7466_v47 = vpack.c.bf16 %v7454_v49, %v7452_v24 }
 0xcc9   : > { %v7424_v28 = vsel %vm822_vm1, %v17796_v39, %v7414_v0  ;;  %v7432_v11 = vsel %vm822_vm1, %v7414_v0, %v17796_v39  ;;  %v7423_v52 = vsel %vm822_vm1, %v17798_v45, %v7412_v37  ;;  %v7431_v46 = vsel %vm822_vm1, %v7412_v37, %v17798_v45  ;;  %v8160_v45 = vld [vmem:[%s19770_s21 + $0x8] sm:$0xff] }
 0xcca   : > { %v7457_v5 = vmul.f32 %v18032_v38, %v7432_v11  ;;  %v7458_v43 = vmul.f32 %v18035_v29, %v7424_v28  ;;  %v7455_v7 = vmul.f32 %v18032_v38, %v7431_v46  ;;  %v7456_v39 = vmul.f32 %v18035_v29, %v7423_v52  ;;  %8013 = vrot.lane.b32.xlu0 %v17759_v57, %s19926_s26 }
 0xccb   : > { %8011 = vrot.lane.b32.xlu1 %v17766_v26, %s19926_s26  ;;  %8249 = vmatprep.subr.bf16.mxu1 %v7466_v47 }
 0xccc   : > { %v7467_v19 = vpack.c.bf16 %v7457_v5, %v7455_v7  ;;  %8250 = vmatpush1.bf16.msra.mxu1 %v7465_v1  ;;  %v7418_v58 = vpop.permute.xlu0 %7417  ;;  %v7416_v10 = vpop.permute.xlu1 %7415  ;;  %v7468_v6 = vpack.c.bf16 %v7458_v43, %v7456_v39  ;;  %v11923_v39 = vld [vmem:[%s19771_s22 + $0x4] ss:$16 sps:$4 sm:$0xff]  }
 0xccd   : > { %v7426_v44 = vsel %vm822_vm1, %v17804_v15, %v7418_v58  ;;  %v7434_v41 = vsel %vm822_vm1, %v7418_v58, %v17804_v15  ;;  %v7425_v36 = vsel %vm822_vm1, %v17806_v40, %v7416_v10  ;;  %v7433_v49 = vsel %vm822_vm1, %v7416_v10, %v17806_v40  ;;  %v8162_v15 = vld [vmem:[%s19770_s21 + $0x18] sm:$0xff]  ;;  %v8161_v40 = vld [vmem:[%s19770_s21 + $0x10] sm:$0xff]  ;;  %8786 = vmatprep.subr.bf16.mxu0 %v11923_v39 }
 0xcce   : > { %v7461_v21 = vmul.f32 %v18032_v38, %v7434_v41  ;;  %v7462_v24 = vmul.f32 %v18035_v29, %v7426_v44  ;;  %v7459_v1 = vmul.f32 %v18032_v38, %v7433_v49  ;;  %v7460_v0 = vmul.f32 %v18035_v29, %v7425_v36  ;;  %8170 = vperm.xlu0 %11769, %v8160_v45   ;;  %v11924_v36 = vld [vmem:[%s19771_s22 + $0x20] ss:$16 sps:$4 sm:$0xff]  }
 0xccf   : > { %8165 = vperm.xlu1 %11770, %v8159_v23   ;;  %8251 = vmatprep.subr.bf16.mxu1 %v7468_v6 }
 0xcd0   : > { %v7469_v37 = vpack.c.bf16 %v7461_v21, %v7459_v1  ;;  %8252 = vmatpush1.bf16.msra.mxu1 %v7467_v19  ;;  %v7498_v47 = vpop.permute.xlu0 %7497  ;;  %v7496_v28 = vpop.permute.xlu1 %7495  ;;  %v7470_v11 = vpack.c.bf16 %v7462_v24, %v7460_v0  ;;  %v11929_v1 = vld [vmem:[%s19771_s22 + $0x44] ss:$16 sps:$4 sm:$0xff]  }
 0xcd1   : > { %v7512_v38 = vsel %vm876_vm2, %v17812_v42, %v7498_v47  ;;  %v7520_v29 = vsel %vm876_vm2, %v7498_v47, %v17812_v42  ;;  %v7511_v52 = vsel %vm876_vm2, %v17814_v22, %v7496_v28  ;;  %v7519_v46 = vsel %vm876_vm2, %v7496_v28, %v17814_v22  ;;  %v11921_v42 = vld [vmem:[%s19771_s22] ss:$16 sps:$4 sm:$0xff]   ;;  %v11926_v22 = vld [vmem:[%s19771_s22 + $0x24] ss:$16 sps:$4 sm:$0xff]  }
 0xcd2   : > { %v7541_v59 = vmul.f32 %v18123_v62, %v7520_v29  ;;  %v7542_v5 = vmul.f32 %v18126_v32, %v7512_v38  ;;  %v7539_v43 = vmul.f32 %v18123_v62, %v7519_v46  ;;  %v7540_v7 = vmul.f32 %v18126_v32, %v7511_v52  ;;  %8180 = vperm.xlu0 %11769, %v8162_v15   ;;  %v11130_v38 = vld [vmem:[%s19906_s0 + $0x6] sm:$0x3]  ;;  %v11927_v29 = vld [vmem:[%s19771_s22 + $0x40] ss:$16 sps:$4 sm:$0xff]  }
 0xcd3   : > { %8175 = vperm.xlu1 %11770, %v8161_v40   ;;  %8253 = vmatprep.subr.bf16.mxu1 %v7470_v11  ;;  %v18223_v39 = vrot.slane %v11130_v38, %v12337_v16 }
 0xcd4   : > { %v7555_v45 = vpack.c.bf16 %v7541_v59, %v7539_v43  ;;  %8254 = vmatpush1.bf16.msra.mxu1 %v7469_v37  ;;  %v7502_v19 = vpop.permute.xlu0 %7501  ;;  %v7500_v58 = vpop.permute.xlu1 %7499  ;;  %v7556_v10 = vpack.c.bf16 %v7542_v5, %v7540_v7  ;;  %8787 = vmatpush1.bf16.msra.mxu0 %v11921_v42 }
 0xcd5   : > { %v7514_v23 = vsel %vm876_vm2, %v17820_v25, %v7502_v19  ;;  %v7522_v6 = vsel %vm876_vm2, %v7502_v19, %v17820_v25  ;;  %v7513_v44 = vsel %vm876_vm2, %v17822_v53, %v7500_v58  ;;  %v7521_v41 = vsel %vm876_vm2, %v7500_v58, %v17822_v53  ;;  %8788 = vmatprep.subr.bf16.mxu0 %v11926_v22 }
 0xcd6   : > { %v7545_v49 = vmul.f32 %v18123_v62, %v7522_v6  ;;  %v7546_v21 = vmul.f32 %v18126_v32, %v7514_v23  ;;  %v7543_v24 = vmul.f32 %v18123_v62, %v7521_v41  ;;  %v7544_v25 = vmul.f32 %v18126_v32, %v7513_v44  ;;  %8255 = vmatprep.subr.bf16.mxu1 %v7556_v10  ;;  %v11930_v23 = vld [vmem:[%s19771_s22 + $0x60] ss:$16 sps:$4 sm:$0xff]  }
 0xcd7   : > { %v18226_v22 = vrot.slane %v11130_v38, %v12328_v14 }
 0xcd8   : > { %v7557_v53 = vpack.c.bf16 %v7545_v49, %v7543_v24  ;;  %8256 = vmatpush1.bf16.msra.mxu1 %v7555_v45  ;;  %v7506_v0 = vpop.permute.xlu0 %7505  ;;  %v7504_v15 = vpop.permute.xlu1 %7503  ;;  %v7558_v37 = vpack.c.bf16 %v7546_v21, %v7544_v25  ;;  %8789 = vmatpush1.bf16.msra.mxu0 %v11924_v36  ;;  %v11935_v36 = vld [vmem:[%s19771_s22 + $0x84] ss:$16 sps:$4 sm:$0xff]  }
 0xcd9   : > { %v7516_v47 = vsel %vm876_vm2, %v17828_v63, %v7506_v0  ;;  %v7524_v28 = vsel %vm876_vm2, %v7506_v0, %v17828_v63  ;;  %v7515_v40 = vsel %vm876_vm2, %v17830_v55, %v7504_v15  ;;  %v7523_v11 = vsel %vm876_vm2, %v7504_v15, %v17830_v55  ;;  %8790 = vmatprep.subr.bf16.mxu0 %v11929_v1  ;;  %v11932_v55 = vld [vmem:[%s19771_s22 + $0x64] ss:$16 sps:$4 sm:$0xff]  }
 0xcda   : > { %v7549_v52 = vmul.f32 %v18123_v62, %v7524_v28  ;;  %v7550_v63 = vmul.f32 %v18126_v32, %v7516_v47  ;;  %v7547_v46 = vmul.f32 %v18123_v62, %v7523_v11  ;;  %v7548_v59 = vmul.f32 %v18126_v32, %v7515_v40  ;;  %8257 = vmatprep.subr.bf16.mxu1 %v7558_v37  ;;  %v11938_v47 = vld [vmem:[%s19771_s22 + $0xa4] ss:$16 sps:$4 sm:$0xff]  }
 0xcdc   : > { %v7559_v5 = vpack.c.bf16 %v7549_v52, %v7547_v46  ;;  %8258 = vmatpush1.bf16.msra.mxu1 %v7557_v53  ;;  %v7510_v43 = vpop.permute.xlu0 %7509  ;;  %v7508_v7 = vpop.permute.xlu1 %7507  ;;  %v7560_v42 = vpack.c.bf16 %v7550_v63, %v7548_v59  ;;  %8791 = vmatpush1.bf16.msra.mxu0 %v11927_v29  ;;  %v11933_v53 = vld [vmem:[%s19771_s22 + $0x80] ss:$16 sps:$4 sm:$0xff]  }
 0xcdd   : > { %v7518_v45 = vsel %vm876_vm2, %v17836_v30, %v7510_v43  ;;  %v7526_v19 = vsel %vm876_vm2, %v7510_v43, %v17836_v30  ;;  %v7517_v58 = vsel %vm876_vm2, %v17838_v2, %v7508_v7  ;;  %v7525_v10 = vsel %vm876_vm2, %v7508_v7, %v17838_v2  ;;  %8792 = vmatprep.subr.bf16.mxu0 %v11932_v55  ;;  %v11936_v46 = vld [vmem:[%s19771_s22 + $0xa0] ss:$16 sps:$4 sm:$0xff]   ;;  %v11941_v43 = vld [vmem:[%s19771_s22 + $0xc4] ss:$16 sps:$4 sm:$0xff]  }
 0xcde   : > { %v7553_v6 = vmul.f32 %v18123_v62, %v7526_v19  ;;  %v7554_v44 = vmul.f32 %v18126_v32, %v7518_v45  ;;  %v7551_v41 = vmul.f32 %v18123_v62, %v7525_v10  ;;  %v7552_v30 = vmul.f32 %v18126_v32, %v7517_v58  ;;  %8259 = vmatprep.subr.bf16.mxu1 %v7560_v42  ;;  %v11131_v19 = vld [vmem:[%s19906_s0 + $0x8] sm:$0x3] }
 0xce0   : > { %v7561_v2 = vpack.c.bf16 %v7553_v6, %v7551_v41  ;;  %8260 = vmatpush1.bf16.msra.mxu1 %v7559_v5  ;;  %v7590_v49 = vpop.permute.xlu0 %7589  ;;  %v7588_v21 = vpop.permute.xlu1 %7587  ;;  %v7562_v24 = vpack.c.bf16 %v7554_v44, %v7552_v30  ;;  %8793 = vmatpush1.bf16.msra.mxu0 %v11930_v23  ;;  %v11939_v44 = vld [vmem:[%s19771_s22 + $0xc0] ss:$16 sps:$4 sm:$0xff]  }
 0xce1   : > { %v7604_v25 = vsel %vm930_vm3, %v17844_v9, %v7590_v49  ;;  %v7612_v62 = vsel %vm930_vm3, %v7590_v49, %v17844_v9  ;;  %v7603_v32 = vsel %vm930_vm3, %v17846_v34, %v7588_v21  ;;  %v7611_v1 = vsel %vm930_vm3, %v7588_v21, %v17846_v34  ;;  %8794 = vmatprep.subr.bf16.mxu0 %v11935_v36 }
 0xce2   : > { %v7633_v0 = vmul.f32 %v18223_v39, %v7612_v62  ;;  %v7634_v15 = vmul.f32 %v18226_v22, %v7604_v25  ;;  %v7631_v37 = vmul.f32 %v18223_v39, %v7611_v1  ;;  %v7632_v9 = vmul.f32 %v18226_v22, %v7603_v32  ;;  %8261 = vmatprep.subr.bf16.mxu1 %v7562_v24 }
 0xce3   : > { %v18323_v62 = vrot.slane %v11131_v19, %v12337_v16 }
 0xce4   : > { %v7647_v34 = vpack.c.bf16 %v7633_v0, %v7631_v37  ;;  %8262 = vmatpush1.bf16.msra.mxu1 %v7561_v2  ;;  %v7594_v28 = vpop.permute.xlu0 %7593  ;;  %v7592_v40 = vpop.permute.xlu1 %7591  ;;  %v7648_v11 = vpack.c.bf16 %v7634_v15, %v7632_v9  ;;  %8795 = vmatpush1.bf16.msra.mxu0 %v11933_v53  ;;  %v18317_v2 = vrot.slane %v11131_v19, %v12328_v14  ;;  %v11942_v15 = vld [vmem:[%s19771_s22 + $0xe0] ss:$16 sps:$4 sm:$0xff]  }
 0xce5   : > { %v7606_v38 = vsel %vm930_vm3, %v17852_v27, %v7594_v28  ;;  %v7614_v29 = vsel %vm930_vm3, %v7594_v28, %v17852_v27  ;;  %v7605_v52 = vsel %vm930_vm3, %v17854_v61, %v7592_v40  ;;  %v7613_v63 = vsel %vm930_vm3, %v7592_v40, %v17854_v61  ;;  %8796 = vmatprep.subr.bf16.mxu0 %v11938_v47 }
 0xce6   : > { %v7637_v59 = vmul.f32 %v18223_v39, %v7614_v29  ;;  %v7638_v55 = vmul.f32 %v18226_v22, %v7606_v38  ;;  %v7635_v5 = vmul.f32 %v18223_v39, %v7613_v63  ;;  %v7636_v27 = vmul.f32 %v18226_v22, %v7605_v52  ;;  %8263 = vmatprep.subr.bf16.mxu1 %v7648_v11  ;;  %v11950_v29 = vld [vmem:[%s19771_s22 + $0x124] ss:$16 sps:$4 sm:$0xff]  }
 0xce7   : > { %v7678_v28 = vmul.f32 %v18317_v2, %v17721_v17  ;;  %v7677_v17 = vmul.f32 %v18323_v62, %v17559_v51  ;;  %v11907_v63 = vld [vmem:[%s19769_s20] ss:$20 sps:$4 sm:$0xff]  }
 0xce8   : > { %v7649_v61 = vpack.c.bf16 %v7637_v59, %v7635_v5  ;;  %8264 = vmatpush1.bf16.msra.mxu1 %v7647_v34  ;;  %v7598_v7 = vpop.permute.xlu0 %7597  ;;  %v7596_v42 = vpop.permute.xlu1 %7595  ;;  %v7650_v45 = vpack.c.bf16 %v7638_v55, %v7636_v27  ;;  %8797 = vmatpush1.bf16.msra.mxu0 %v11936_v46  ;;  %v11947_v34 = vld [vmem:[%s19771_s22 + $0x104] ss:$16 sps:$4 sm:$0xff]   ;;  %v7680_v46 = vmul.f32 %v18317_v2, %v17738_v4  ;;  %v11910_v55 = vld [vmem:[%s19769_s20 + $0x2c] ss:$20 sps:$4 sm:$0xff]  }
 0xce9   : > { %v7608_v58 = vsel %vm930_vm3, %v17863_v31, %v7598_v7  ;;  %v7616_v10 = vsel %vm930_vm3, %v7598_v7, %v17863_v31  ;;  %v7607_v23 = vsel %vm930_vm3, %v17865_v18, %v7596_v42  ;;  %v7615_v6 = vsel %vm930_vm3, %v7596_v42, %v17865_v18  ;;  %8798 = vmatprep.subr.bf16.mxu0 %v11941_v43  ;;  %v11944_v18 = vld [vmem:[%s19771_s22 + $0xe4] ss:$16 sps:$4 sm:$0xff]   ;;  %v11948_v5 = vld [vmem:[%s19771_s22 + $0x120] ss:$16 sps:$4 sm:$0xff]  }
 0xcea   : > { %v7641_v41 = vmul.f32 %v18223_v39, %v7616_v10  ;;  %v7642_v30 = vmul.f32 %v18226_v22, %v7608_v58  ;;  %v7639_v36 = vmul.f32 %v18223_v39, %v7615_v6  ;;  %v7640_v31 = vmul.f32 %v18226_v22, %v7607_v23  ;;  %8265 = vmatprep.subr.bf16.mxu1 %v7650_v45  ;;  %v11953_v43 = vld [vmem:[%s19771_s22 + $0x144] ss:$16 sps:$4 sm:$0xff]   ;;  %v11132_v23 = vld [vmem:[%s19906_s0 + $0xa] sm:$0x3] }
 0xceb   : > { %v7682_v59 = vmul.f32 %v18317_v2, %v17735_v35  ;;  %v7679_v4 = vmul.f32 %v18323_v62, %v17572_v54  ;;  %v7681_v35 = vmul.f32 %v18323_v62, %v17566_v60  ;;  %v7684_v7 = vmul.f32 %v18317_v2, %v17752_v20  ;;  %v11951_v60 = vld [vmem:[%s19771_s22 + $0x140] ss:$16 sps:$4 sm:$0xff]  }
 0xcec   : > { %v7651_v49 = vpack.c.bf16 %v7641_v41, %v7639_v36  ;;  %8266 = vmatpush1.bf16.msra.mxu1 %v7649_v61  ;;  %v7602_v21 = vpop.permute.xlu0 %7601  ;;  %v7600_v24 = vpop.permute.xlu1 %7599  ;;  %v7652_v25 = vpack.c.bf16 %v7642_v30, %v7640_v31  ;;  %8799 = vmatpush1.bf16.msra.mxu0 %v11939_v44  ;;  %v7686_v42 = vmul.f32 %v18317_v2, %v17749_v56  ;;  %v11956_v56 = vld [vmem:[%s19771_s22 + $0x164] ss:$16 sps:$4 sm:$0xff]   ;;  %v20127_v30 = vld [vmem:[#allocation27_spill] sm:$0xff] }
 0xced   : > { %v7610_v32 = vsel %vm930_vm3, %v17871_v13, %v7602_v21  ;;  %v7618_v1 = vsel %vm930_vm3, %v7602_v21, %v17871_v13  ;;  %v7609_v53 = vsel %vm930_vm3, %v17873_v3, %v7600_v24  ;;  %v7617_v0 = vsel %vm930_vm3, %v7600_v24, %v17873_v3  ;;  %8800 = vmatprep.subr.bf16.mxu0 %v11944_v18  ;;  %v20128_v31 = vld [vmem:[#allocation7_spill] sm:$0xff] }
 0xcee   : > { %v7645_v37 = vmul.f32 %v18223_v39, %v7618_v1  ;;  %v7646_v9 = vmul.f32 %v18226_v22, %v7610_v32  ;;  %v7643_v47 = vmul.f32 %v18223_v39, %v7617_v0  ;;  %v7644_v13 = vmul.f32 %v18226_v22, %v7609_v53  ;;  %8267 = vmatprep.subr.bf16.mxu1 %v7652_v25  ;;  %v11945_v22 = vld [vmem:[%s19771_s22 + $0x100] ss:$16 sps:$4 sm:$0xff]   ;;  %v11959_v25 = vld [vmem:[%s19771_s22 + $0x184] ss:$16 sps:$4 sm:$0xff]  }
 0xcef   : > { %v7676_v3 = vmul.f32 %v18317_v2, %v17724_v8  ;;  %v7675_v8 = vmul.f32 %v18323_v62, %v17561_v50  ;;  %v7694_v61 = vpack.c.bf16 %v7682_v59, %v7680_v46  ;;  %v7693_v19 = vpack.c.bf16 %v7681_v35, %v7679_v4  ;;  %v11954_v21 = vld [vmem:[%s19771_s22 + $0x160] ss:$16 sps:$4 sm:$0xff]  }
 0xcf0   : > { %v7653_v40 = vpack.c.bf16 %v7645_v37, %v7643_v47  ;;  %8268 = vmatpush1.bf16.msra.mxu1 %v7651_v49  ;;  %v18351_v11 = vpop.permute.xlu0 %7985  ;;  %v18353_v38 = vpop.permute.xlu1 %7983  ;;  %v7654_v39 = vpack.c.bf16 %v7646_v9, %v7644_v13  ;;  %8801 = vmatpush1.bf16.msra.mxu0 %v11942_v15  ;;  %v7683_v58 = vmul.f32 %v18323_v62, %v17610_v48  ;;  %v20129_v53 = vld [vmem:[#allocation26_spill] sm:$0xff]  ;;  %v20132_v59 = vld [vmem:[#allocation32_spill] sm:$0xff] }
 0xcf1   : > { %8802 = vmatprep.subr.bf16.mxu0 %v11947_v34  ;;  %v7692_v52 = vpack.c.bf16 %v7678_v28, %v7676_v3  ;;  %v7691_v27 = vpack.c.bf16 %v7677_v17, %v7675_v8  ;;  %v7685_v20 = vmul.f32 %v18323_v62, %v17608_v33  ;;  %v7696_v10 = vpack.c.bf16 %v7686_v42, %v7684_v7  ;;  %v11912_v33 = vld [vmem:[%s19769_s20 + $0x28] ss:$20 sps:$4 sm:$0xff]  }
 0xcf2   : > { %8269 = vmatprep.subr.bf16.mxu1 %v7654_v39  ;;  %v7688_v6 = vmul.f32 %v18317_v2, %v17766_v26  ;;  %v7690_v44 = vmul.f32 %v18317_v2, %v17759_v57  ;;  %v7687_v36 = vmul.f32 %v18323_v62, %v20127_v30  ;;  %v7689_v18 = vmul.f32 %v18323_v62, %v20128_v31  ;;  %v11915_v26 = vld [vmem:[%s19769_s20 + $0xc] ss:$20 sps:$4 sm:$0xff]  }
 0xcf3   : > { %v7695_v57 = vpack.c.bf16 %v7685_v20, %v7683_v58  ;;  %v18429_v2 = vrot.slane %v11132_v23, %v12337_v16  ;;  %v18432_v49 = vrot.slane %v11132_v23, %v12328_v14  ;;  %v20130_v37 = vld [vmem:[#allocation18_spill] sm:$0xff] }
 0xcf4   : > { %8270 = vmatpush1.bf16.msra.mxu1 %v7653_v40  ;;  %v18372_v50 = vpop.permute.xlu0 %7989  ;;  %v18374_v51 = vpop.permute.xlu1 %7987  ;;  %8803 = vmatpush1.bf16.msra.mxu0 %v11945_v22  ;;  %v7698_v24 = vpack.c.bf16 %v7690_v44, %v7688_v6  ;;  %v7697_v1 = vpack.c.bf16 %v7689_v18, %v7687_v36  ;;  %v11957_v40 = vld [vmem:[%s19771_s22 + $0x180] ss:$16 sps:$4 sm:$0xff]   ;;  %v11133_v44 = vld [vmem:[%s19906_s0 + $0xc] sm:$0x3] }
 0xcf5   : > { %8292 = vmatprep.subr.bf16.mxu1 %v7692_v52  ;;  %8804 = vmatprep.subr.bf16.mxu0 %v11950_v29  ;;  %v11962_v29 = vld [vmem:[%s19771_s22 + $0x1a4] ss:$16 sps:$4 sm:$0xff]   ;;  %v20131_v52 = vld [vmem:[#allocation31_spill] sm:$0xff] }
 0xcf6   : > { %v20133_v58 = vld [vmem:[#allocation30_spill] sm:$0xff] }
 0xcf7   : > { %8272 = vmatmul.mubr.bf16.vlgmr.msra.gmra.mrb[80].mxu1 %v11907_v63 }
 0xcf8   : > { %8293 = vmatpush1.bf16.msra.mxu1 %v7691_v27  ;;  %v18393_v45 = vpop.permute.xlu0 %7993  ;;  %v18395_v54 = vpop.permute.xlu1 %7991  ;;  %8281 = vmatprep.mubr.bf16.mxu1 %v11910_v55 }
 0xcf9   : > { %8294 = vmatprep.subr.bf16.mxu1 %v7694_v61  ;;  %8805 = vmatpush1.bf16.msra.mxu0 %v11948_v5  ;;  %v11960_v61 = vld [vmem:[%s19771_s22 + $0x1a0] ss:$16 sps:$4 sm:$0xff]  }
 0xcfa   : > { %8806 = vmatprep.subr.bf16.mxu0 %v11953_v43 }
 0xcfc   : > { %8295 = vmatpush1.bf16.msra.mxu1 %v7693_v19  ;;  %v18417_v48 = vpop.permute.xlu0 %7997  ;;  %v18419_v41 = vpop.permute.xlu1 %7995 }
 0xcfd   : > { %8296 = vmatprep.subr.bf16.mxu1 %v7696_v10  ;;  %8807 = vmatpush1.bf16.msra.mxu0 %v11951_v60  ;;  %v20134_v10 = vld [vmem:[#allocation25_spill] sm:$0xff] }
 0xcfe   : > { %8808 = vmatprep.subr.bf16.mxu0 %v11956_v56 }
 0xcff   : > { %8282 = vmatmul.mubr.bf16.gmra.mrb[84].mxu1 %v11912_v33 }
 0xd00   : > { %8297 = vmatpush1.bf16.msra.mxu1 %v7695_v57  ;;  %v7726_v62 = vpop.permute.xlu0 %7725  ;;  %v7724_v32 = vpop.permute.xlu1 %7723  ;;  %8324 = vmatprep.mubr.bf16.mxu1 %v11915_v26 }
 0xd01   : > { %v7740_v0 = vsel %vm1013_vm4, %v20129_v53, %v7726_v62  ;;  %v7748_v15 = vsel %vm1013_vm4, %v7726_v62, %v20129_v53  ;;  %v7739_v9 = vsel %vm1013_vm4, %v20130_v37, %v7724_v32  ;;  %v7747_v47 = vsel %vm1013_vm4, %v7724_v32, %v20130_v37  ;;  %8298 = vmatprep.subr.bf16.mxu1 %v7698_v24  ;;  %v20135_v62 = vld [vmem:[#allocation8_spill] sm:$0xff]  ;;  %v20136_v53 = vld [vmem:[#allocation22_spill] sm:$0xff] }
 0xd02   : > { %v7769_v13 = vmul.f32 %v18429_v2, %v7740_v0  ;;  %v7770_v34 = vmul.f32 %v18432_v49, %v7748_v15  ;;  %v7767_v3 = vmul.f32 %v18429_v2, %v7739_v9  ;;  %v7768_v28 = vmul.f32 %v18432_v49, %v7747_v47  ;;  %8809 = vmatpush1.bf16.msra.mxu0 %v11954_v21 }
 0xd03   : > { %8810 = vmatprep.subr.bf16.mxu0 %v11959_v25  ;;  %v18501_v24 = vrot.slane %v11133_v44, %v12337_v16  ;;  %v18504_v25 = vrot.slane %v11133_v44, %v12328_v14  ;;  %v20141_v44 = vld [vmem:[#allocation10_spill] sm:$0xff] }
 0xd04   : > { %v7783_v39 = vpack.c.bf16 %v7769_v13, %v7767_v3  ;;  %8299 = vmatpush1.bf16.msra.mxu1 %v7697_v1  ;;  %v7730_v22 = vpop.permute.xlu0 %7729  ;;  %v7728_v8 = vpop.permute.xlu1 %7727  ;;  %v7784_v17 = vpack.c.bf16 %v7770_v34, %v7768_v28 }
 0xd05   : > { %v7742_v63 = vsel %vm1013_vm4, %v20131_v52, %v7730_v22  ;;  %v7750_v46 = vsel %vm1013_vm4, %v7730_v22, %v20131_v52  ;;  %v7741_v55 = vsel %vm1013_vm4, %v20132_v59, %v7728_v8  ;;  %v7749_v5 = vsel %vm1013_vm4, %v7728_v8, %v20132_v59 }
 0xd06   : > { %v7773_v27 = vmul.f32 %v18429_v2, %v7742_v63  ;;  %v7774_v4 = vmul.f32 %v18432_v49, %v7750_v46  ;;  %v7771_v35 = vmul.f32 %v18429_v2, %v7741_v55  ;;  %v7772_v43 = vmul.f32 %v18432_v49, %v7749_v5  ;;  %8300 = vmatprep.subr.bf16.mxu1 %v7784_v17  ;;  %v20138_v17 = vld [vmem:[#allocation29_spill] sm:$0xff] }
 0xd07   : > { %8811 = vmatpush1.bf16.msra.mxu0 %v11957_v40 }
 0xd08   : > { %v7785_v7 = vpack.c.bf16 %v7773_v27, %v7771_v35  ;;  %8301 = vmatpush1.bf16.msra.mxu1 %v7783_v39  ;;  %v7734_v42 = vpop.permute.xlu0 %7733  ;;  %v7732_v60 = vpop.permute.xlu1 %7731  ;;  %v7786_v19 = vpack.c.bf16 %v7774_v4, %v7772_v43  ;;  %8812 = vmatprep.subr.bf16.mxu0 %v11962_v29  ;;  %v20137_v39 = vld [vmem:[#allocation17_spill] sm:$0xff]  ;;  %v20139_v4 = vld [vmem:[#allocation28_spill] sm:$0xff] }
 0xd09   : > { %v7744_v20 = vsel %vm1013_vm4, %v20133_v58, %v7734_v42  ;;  %v7752_v56 = vsel %vm1013_vm4, %v7734_v42, %v20133_v58  ;;  %v7743_v23 = vsel %vm1013_vm4, %v20134_v10, %v7732_v60  ;;  %v7751_v6 = vsel %vm1013_vm4, %v7732_v60, %v20134_v10 }
 0xd0a   : > { %v7777_v33 = vmul.f32 %v18429_v2, %v7744_v20  ;;  %v7778_v30 = vmul.f32 %v18432_v49, %v7752_v56  ;;  %v7775_v36 = vmul.f32 %v18429_v2, %v7743_v23  ;;  %v7776_v31 = vmul.f32 %v18432_v49, %v7751_v6  ;;  %8302 = vmatprep.subr.bf16.mxu1 %v7786_v19 }
 0xd0b   : > { %8813 = vmatpush1.bf16.msra.mxu0 %v11960_v61  ;;  %v20140_v61 = vld [vmem:[#allocation12_spill] sm:$0xff] }
 0xd0c   : > { %v7787_v18 = vpack.c.bf16 %v7777_v33, %v7775_v36  ;;  %8303 = vmatpush1.bf16.msra.mxu1 %v7785_v7  ;;  %v7738_v26 = vpop.permute.xlu0 %7737  ;;  %v7736_v57 = vpop.permute.xlu1 %7735  ;;  %v7788_v21 = vpack.c.bf16 %v7778_v30, %v7776_v31  ;;  %v20142_v36 = vld [vmem:[#allocation11_spill] sm:$0xff] }
 0xd0d   : > { %v7746_v32 = vsel %vm1013_vm4, %v20135_v62, %v7738_v26  ;;  %v7754_v1 = vsel %vm1013_vm4, %v7738_v26, %v20135_v62  ;;  %v7745_v0 = vsel %vm1013_vm4, %v20136_v53, %v7736_v57  ;;  %v7753_v15 = vsel %vm1013_vm4, %v7736_v57, %v20136_v53  ;;  %v11134_v26 = vld [vmem:[%s19906_s0 + $0xe] sm:$0x3] }
 0xd0e   : > { %v7781_v37 = vmul.f32 %v18429_v2, %v7746_v32  ;;  %v7782_v9 = vmul.f32 %v18432_v49, %v7754_v1  ;;  %v7779_v47 = vmul.f32 %v18429_v2, %v7745_v0  ;;  %v7780_v13 = vmul.f32 %v18432_v49, %v7753_v15  ;;  %8304 = vmatprep.subr.bf16.mxu1 %v7788_v21 }
 0xd10   : > { %v7789_v34 = vpack.c.bf16 %v7781_v37, %v7779_v47  ;;  %8305 = vmatpush1.bf16.msra.mxu1 %v7787_v18  ;;  %v7818_v3 = vpop.permute.xlu0 %7817  ;;  %v7816_v28 = vpop.permute.xlu1 %7815  ;;  %v7790_v40 = vpack.c.bf16 %v7782_v9, %v7780_v13  ;;  %v18574_v37 = vrot.slane %v11134_v26, %v12337_v16  ;;  %v18577_v9 = vrot.slane %v11134_v26, %v12328_v14  ;;  %v20143_v47 = vld [vmem:[#allocation9_spill] sm:$0xff] }
 0xd11   : > { %v7832_v22 = vsel %vm1067_vm5, %v20137_v39, %v7818_v3  ;;  %v7840_v8 = vsel %vm1067_vm5, %v7818_v3, %v20137_v39  ;;  %v7831_v2 = vsel %vm1067_vm5, %v20138_v17, %v7816_v28  ;;  %v7839_v49 = vsel %vm1067_vm5, %v7816_v28, %v20138_v17  ;;  %v20144_v3 = vld [vmem:[#allocation16_spill] sm:$0xff] }
 0xd12   : > { %v7861_v29 = vmul.f32 %v18501_v24, %v7832_v22  ;;  %v7862_v52 = vmul.f32 %v18504_v25, %v7840_v8  ;;  %v7859_v63 = vmul.f32 %v18501_v24, %v7831_v2  ;;  %v7860_v46 = vmul.f32 %v18504_v25, %v7839_v49  ;;  %8306 = vmatprep.subr.bf16.mxu1 %v7790_v40 }
 0xd14   : > { %v7875_v59 = vpack.c.bf16 %v7861_v29, %v7859_v63  ;;  %8307 = vmatpush1.bf16.msra.mxu1 %v7789_v34  ;;  %v7822_v55 = vpop.permute.xlu0 %7821  ;;  %v7820_v5 = vpop.permute.xlu1 %7819  ;;  %v7876_v27 = vpack.c.bf16 %v7862_v52, %v7860_v46  ;;  %v20145_v63 = vld [vmem:[#allocation14_spill] sm:$0xff] }
 0xd15   : > { %v7834_v35 = vsel %vm1067_vm5, %v20139_v4, %v7822_v55  ;;  %v7842_v43 = vsel %vm1067_vm5, %v7822_v55, %v20139_v4  ;;  %v7833_v7 = vsel %vm1067_vm5, %v20140_v61, %v7820_v5  ;;  %v7841_v42 = vsel %vm1067_vm5, %v7820_v5, %v20140_v61  ;;  %v20146_v55 = vld [vmem:[#allocation20_spill] sm:$0xff] }
 0xd16   : > { %v7865_v60 = vmul.f32 %v18501_v24, %v7834_v35  ;;  %v7866_v19 = vmul.f32 %v18504_v25, %v7842_v43  ;;  %v7863_v58 = vmul.f32 %v18501_v24, %v7833_v7  ;;  %v7864_v20 = vmul.f32 %v18504_v25, %v7841_v42  ;;  %8308 = vmatprep.subr.bf16.mxu1 %v7876_v27  ;;  %v20147_v42 = vld [vmem:[#allocation15_spill] sm:$0xff] }
 0xd18   : > { %v7877_v56 = vpack.c.bf16 %v7865_v60, %v7863_v58  ;;  %8309 = vmatpush1.bf16.msra.mxu1 %v7875_v59  ;;  %v7826_v10 = vpop.permute.xlu0 %7825  ;;  %v7824_v23 = vpop.permute.xlu1 %7823  ;;  %v7878_v6 = vpack.c.bf16 %v7866_v19, %v7864_v20 }
 0xd19   : > { %v7836_v33 = vsel %vm1067_vm5, %v20141_v44, %v7826_v10  ;;  %v7844_v30 = vsel %vm1067_vm5, %v7826_v10, %v20141_v44  ;;  %v7835_v31 = vsel %vm1067_vm5, %v20142_v36, %v7824_v23  ;;  %v7843_v18 = vsel %vm1067_vm5, %v7824_v23, %v20142_v36  ;;  %v20148_v10 = vld [vmem:[#allocation6_spill] sm:$0xff] }
 0xd1a   : > { %v7869_v57 = vmul.f32 %v18501_v24, %v7836_v33  ;;  %v7870_v21 = vmul.f32 %v18504_v25, %v7844_v30  ;;  %v7867_v62 = vmul.f32 %v18501_v24, %v7835_v31  ;;  %v7868_v32 = vmul.f32 %v18504_v25, %v7843_v18  ;;  %8310 = vmatprep.subr.bf16.mxu1 %v7878_v6  ;;  %v20149_v31 = vld [vmem:[#allocation23_spill] sm:$0xff] }
 0xd1c   : > { %v7879_v1 = vpack.c.bf16 %v7869_v57, %v7867_v62  ;;  %8311 = vmatpush1.bf16.msra.mxu1 %v7877_v56  ;;  %v7830_v53 = vpop.permute.xlu0 %7829  ;;  %v7828_v0 = vpop.permute.xlu1 %7827  ;;  %v7880_v15 = vpack.c.bf16 %v7870_v21, %v7868_v32  ;;  %v11135_v62 = vld [vmem:[%s19906_s0 + $0x10] sm:$0x3] }
 0xd1d   : > { %v7838_v13 = vsel %vm1067_vm5, %v20143_v47, %v7830_v53  ;;  %v7846_v34 = vsel %vm1067_vm5, %v7830_v53, %v20143_v47  ;;  %v7837_v28 = vsel %vm1067_vm5, %v20144_v3, %v7828_v0  ;;  %v7845_v40 = vsel %vm1067_vm5, %v7828_v0, %v20144_v3  ;;  %v20150_v53 = vld [vmem:[#allocation34_spill] sm:$0xff] }
 0xd1e   : > { %v7873_v39 = vmul.f32 %v18501_v24, %v7838_v13  ;;  %v7874_v22 = vmul.f32 %v18504_v25, %v7846_v34  ;;  %v7871_v8 = vmul.f32 %v18501_v24, %v7837_v28  ;;  %v7872_v17 = vmul.f32 %v18504_v25, %v7845_v40  ;;  %8312 = vmatprep.subr.bf16.mxu1 %v7880_v15 }
 0xd1f   : > { %v18647_v3 = vrot.slane %v11135_v62, %v12337_v16  ;;  %v18650_v28 = vrot.slane %v11135_v62, %v12328_v14  ;;  %v20152_v16 = vld [vmem:[#allocation13_spill] sm:$0xff] }
 0xd20   : > { %v7881_v2 = vpack.c.bf16 %v7873_v39, %v7871_v8  ;;  %8313 = vmatpush1.bf16.msra.mxu1 %v7879_v1  ;;  %v7910_v49 = vpop.permute.xlu0 %7909  ;;  %v7908_v29 = vpop.permute.xlu1 %7907  ;;  %v7882_v52 = vpack.c.bf16 %v7874_v22, %v7872_v17  ;;  %v20151_v39 = vld [vmem:[#allocation21_spill] sm:$0xff] }
 0xd21   : > { %v7924_v46 = vsel %vm1121_vm6, %v20145_v63, %v7910_v49  ;;  %v7932_v59 = vsel %vm1121_vm6, %v7910_v49, %v20145_v63  ;;  %v7923_v24 = vsel %vm1121_vm6, %v20146_v55, %v7908_v29  ;;  %v7931_v25 = vsel %vm1121_vm6, %v7908_v29, %v20146_v55 }
 0xd22   : > { %v7953_v5 = vmul.f32 %v18574_v37, %v7924_v46  ;;  %v7954_v27 = vmul.f32 %v18577_v9, %v7932_v59  ;;  %v7951_v4 = vmul.f32 %v18574_v37, %v7923_v24  ;;  %v7952_v35 = vmul.f32 %v18577_v9, %v7931_v25  ;;  %8314 = vmatprep.subr.bf16.mxu1 %v7882_v52 }
 0xd24   : > { %v7967_v43 = vpack.c.bf16 %v7953_v5, %v7951_v4  ;;  %8315 = vmatpush1.bf16.msra.mxu1 %v7881_v2  ;;  %v7914_v61 = vpop.permute.xlu0 %7913  ;;  %v7968_v7 = vpack.c.bf16 %v7954_v27, %v7952_v35 }
 0xd25   : > { %v7926_v60 = vsel %vm1121_vm6, %v20147_v42, %v7914_v61  ;;  %v7934_v19 = vsel %vm1121_vm6, %v7914_v61, %v20147_v42  ;;  %v7912_v58 = vpop.permute.xlu1 %7911  ;;  %v11916_v42 = vld [vmem:[%s19769_s20 + $0x34] ss:$20 sps:$4 sm:$0xff]  }
 0xd26   : > { %v7957_v20 = vmul.f32 %v18574_v37, %v7926_v60  ;;  %v7958_v56 = vmul.f32 %v18577_v9, %v7934_v19  ;;  %v7925_v23 = vsel %vm1121_vm6, %v20148_v10, %v7912_v58  ;;  %v7933_v6 = vsel %vm1121_vm6, %v7912_v58, %v20148_v10  ;;  %8316 = vmatprep.subr.bf16.mxu1 %v7968_v7 }
 0xd27   : > { %v7955_v44 = vmul.f32 %v18574_v37, %v7925_v23  ;;  %v7956_v33 = vmul.f32 %v18577_v9, %v7933_v6 }
 0xd28   : > { %8317 = vmatpush1.bf16.msra.mxu1 %v7967_v43  ;;  %v7918_v30 = vpop.permute.xlu0 %7917 }
 0xd29   : > { %v7969_v36 = vpack.c.bf16 %v7957_v20, %v7955_v44  ;;  %v7928_v18 = vsel %vm1121_vm6, %v20149_v31, %v7918_v30  ;;  %v7936_v26 = vsel %vm1121_vm6, %v7918_v30, %v20149_v31  ;;  %v7916_v57 = vpop.permute.xlu1 %7915  ;;  %v7970_v21 = vpack.c.bf16 %v7958_v56, %v7956_v33 }
 0xd2a   : > { %v7961_v32 = vmul.f32 %v18574_v37, %v7928_v18  ;;  %v7962_v1 = vmul.f32 %v18577_v9, %v7936_v26  ;;  %v7927_v0 = vsel %vm1121_vm6, %v20150_v53, %v7916_v57  ;;  %v7935_v15 = vsel %vm1121_vm6, %v7916_v57, %v20150_v53 }
 0xd2b   : > { %v7959_v47 = vmul.f32 %v18574_v37, %v7927_v0  ;;  %v7960_v13 = vmul.f32 %v18577_v9, %v7935_v15  ;;  %8318 = vmatprep.subr.bf16.mxu1 %v7970_v21 }
 0xd2c   : > { %8319 = vmatpush1.bf16.msra.mxu1 %v7969_v36  ;;  %v7922_v34 = vpop.permute.xlu0 %7921 }
 0xd2d   : > { %v7971_v40 = vpack.c.bf16 %v7961_v32, %v7959_v47  ;;  %v7930_v22 = vsel %vm1121_vm6, %v20151_v39, %v7922_v34  ;;  %v7938_v8 = vsel %vm1121_vm6, %v7922_v34, %v20151_v39  ;;  %v7920_v17 = vpop.permute.xlu1 %7919  ;;  %v7972_v2 = vpack.c.bf16 %v7962_v1, %v7960_v13 }
 0xd2e   : > { %v7965_v49 = vmul.f32 %v18574_v37, %v7930_v22  ;;  %v7966_v29 = vmul.f32 %v18577_v9, %v7938_v8  ;;  %v7929_v14 = vsel %vm1121_vm6, %v20152_v16, %v7920_v17  ;;  %v7937_v52 = vsel %vm1121_vm6, %v7920_v17, %v20152_v16  ;;  %v11968_v16 = vld [vmem:[%s19771_s22 + $0x1e4] ss:$16 sps:$4 sm:$0xff]  }
 0xd2f   : > { %v7963_v63 = vmul.f32 %v18574_v37, %v7929_v14  ;;  %v7964_v46 = vmul.f32 %v18577_v9, %v7937_v52  ;;  %8320 = vmatprep.subr.bf16.mxu1 %v7972_v2  ;;  %v11971_v14 = vld [vmem:[%s19771_s22 + $0xc] ss:$16 sps:$4 sm:$0xff]   ;;  %v8900_v52 = vld [vmem:[%s19772_s23] sm:$0xff] }
 0xd30   : > { %8321 = vmatpush1.bf16.msra.mxu1 %v7971_v40  ;;  %v8002_v59 = vpop.permute.xlu0 %8001 }
 0xd31   : > { %v7973_v55 = vpack.c.bf16 %v7965_v49, %v7963_v63  ;;  %v8016_v24 = vsel %vm1175_vm7, %v18351_v11, %v8002_v59  ;;  %v8024_v25 = vsel %vm1175_vm7, %v8002_v59, %v18351_v11  ;;  %v8000_v5 = vpop.permute.xlu1 %7999  ;;  %v7974_v27 = vpack.c.bf16 %v7966_v29, %v7964_v46  ;;  %v11913_v11 = vld [vmem:[%s19769_s20 + $0x8] ss:$20 sps:$4 sm:$0xff]   ;;  %v11919_v29 = vld [vmem:[%s19769_s20 + $0x10] ss:$20 sps:$4 sm:$0xff]  }
 0xd32   : > { %v8045_v4 = vmul.f32 %v18647_v3, %v8016_v24  ;;  %v8046_v37 = vmul.f32 %v18650_v28, %v8024_v25  ;;  %v8015_v9 = vsel %vm1175_vm7, %v18353_v38, %v8000_v5  ;;  %v8023_v35 = vsel %vm1175_vm7, %v8000_v5, %v18353_v38  ;;  %v8904_v63 = vld [vmem:[%s19772_s23 + $0x20] sm:$0xff] }
 0xd33   : > { %v8043_v43 = vmul.f32 %v18647_v3, %v8015_v9  ;;  %v8044_v61 = vmul.f32 %v18650_v28, %v8023_v35  ;;  %8322 = vmatprep.subr.bf16.mxu1 %v7974_v27  ;;  %v11212_v46 = vcombine.low %v8900_v52, %v8904_v63  ;;  %v11213_v59 = vcombine.high %v8900_v52, %v8904_v63  ;;  %v8912_v24 = vld [vmem:[%s19772_s23 + $0x60] sm:$0xff] }
 0xd34   : > { %8323 = vmatpush1.bf16.msra.mxu1 %v7973_v55  ;;  %v8006_v7 = vpop.permute.xlu0 %8005  ;;  %v8908_v55 = vld [vmem:[%s19772_s23 + $0x40] sm:$0xff] }
 0xd35   : > { %v8059_v60 = vpack.c.bf16 %v8045_v4, %v8043_v43  ;;  %v8018_v38 = vsel %vm1175_vm7, %v18372_v50, %v8006_v7  ;;  %v8026_v19 = vsel %vm1175_vm7, %v8006_v7, %v18372_v50  ;;  %v8004_v58 = vpop.permute.xlu1 %8003  ;;  %v8060_v20 = vpack.c.bf16 %v8046_v37, %v8044_v61  ;;  %v8916_v5 = vld [vmem:[%s19772_s23 + $0x80] sm:$0xff] }
 0xd36   : > { %v8049_v56 = vmul.f32 %v18647_v3, %v8018_v38  ;;  %v8050_v10 = vmul.f32 %v18650_v28, %v8026_v19  ;;  %v8017_v23 = vsel %vm1175_vm7, %v18374_v51, %v8004_v58  ;;  %v8025_v6 = vsel %vm1175_vm7, %v8004_v58, %v18374_v51  ;;  %v8920_v27 = vld [vmem:[%s19772_s23 + $0xa0] sm:$0xff] }
 0xd37   : > { %v8047_v44 = vmul.f32 %v18647_v3, %v8017_v23  ;;  %v8048_v33 = vmul.f32 %v18650_v28, %v8025_v6  ;;  %8325 = vmatmul.mubr.bf16.vlgmr.msra.gmra.mrb[80].mxu1 %v11913_v11  ;;  %8345 = vmatprep.subr.bf16.mxu1 %v8060_v20  ;;  %v11221_v25 = vcombine.high %v8908_v55, %v8912_v24  ;;  %v8924_v9 = vld [vmem:[%s19772_s23 + $0xc0] sm:$0xff] }
 0xd38   : > { %8346 = vmatpush1.bf16.msra.mxu1 %v8059_v60  ;;  %v8010_v50 = vpop.permute.xlu0 %8009  ;;  %8334 = vmatprep.mubr.bf16.mxu1 %v11916_v42  ;;  %v11220_v4 = vcombine.low %v8908_v55, %v8912_v24  ;;  %v11229_v37 = vcombine.high %v8916_v5, %v8920_v27  ;;  %v8928_v35 = vld [vmem:[%s19772_s23 + $0xe0] sm:$0xff]  ;;  %v11228_v43 = vcombine.low %v8916_v5, %v8920_v27  ;;  %v11974_v27 = vld [vmem:[%s19771_s22 + $0x2c] ss:$16 sps:$4 sm:$0xff]  }
 0xd39   : > { %v8061_v30 = vpack.c.bf16 %v8049_v56, %v8047_v44  ;;  %v8020_v36 = vsel %vm1175_vm7, %v18393_v45, %v8010_v50  ;;  %v8028_v31 = vsel %vm1175_vm7, %v8010_v50, %v18393_v45  ;;  %v8008_v18 = vpop.permute.xlu1 %8007  ;;  %v8062_v51 = vpack.c.bf16 %v8050_v10, %v8048_v33  ;;  %v11918_v45 = vld [vmem:[%s19769_s20 + $0x30] ss:$20 sps:$4 sm:$0xff]  }
 0xd3a   : > { %v8053_v26 = vmul.f32 %v18647_v3, %v8020_v36  ;;  %v8054_v57 = vmul.f32 %v18650_v28, %v8028_v31  ;;  %v8019_v21 = vsel %vm1175_vm7, %v18395_v54, %v8008_v18  ;;  %v8027_v62 = vsel %vm1175_vm7, %v8008_v18, %v18395_v54  ;;  %v8932_v11 = vld [vmem:[%s19772_s23 + $0x100] sm:$0xff] }
 0xd3b   : > { %v8051_v32 = vmul.f32 %v18647_v3, %v8019_v21  ;;  %v8052_v1 = vmul.f32 %v18650_v28, %v8027_v62  ;;  %8347 = vmatprep.subr.bf16.mxu1 %v8062_v51  ;;  %v11237_v61 = vcombine.high %v8924_v9, %v8928_v35  ;;  %v8936_v7 = vld [vmem:[%s19772_s23 + $0x120] sm:$0xff]  ;;  %v11236_v42 = vcombine.low %v8924_v9, %v8928_v35 }
 0xd3c   : > { %8348 = vmatpush1.bf16.msra.mxu1 %v8061_v30  ;;  %v8014_v53 = vpop.permute.xlu0 %8013  ;;  %v11245_v60 = vcombine.high %v8932_v11, %v8936_v7  ;;  %v8940_v38 = vld [vmem:[%s19772_s23 + $0x140] sm:$0xff]  ;;  %v11244_v58 = vcombine.low %v8932_v11, %v8936_v7  ;;  %v11972_v11 = vld [vmem:[%s19771_s22 + $0x28] ss:$16 sps:$4 sm:$0xff]  }
 0xd3d   : > { %v8063_v0 = vpack.c.bf16 %v8053_v26, %v8051_v32  ;;  %v8022_v15 = vsel %vm1175_vm7, %v18417_v48, %v8014_v53  ;;  %v8030_v54 = vsel %vm1175_vm7, %v8014_v53, %v18417_v48  ;;  %v8012_v47 = vpop.permute.xlu1 %8011  ;;  %v8064_v13 = vpack.c.bf16 %v8054_v57, %v8052_v1  ;;  %v8944_v19 = vld [vmem:[%s19772_s23 + $0x160] sm:$0xff] }
 0xd3e   : > { %v8057_v34 = vmul.f32 %v18647_v3, %v8022_v15  ;;  %v8058_v40 = vmul.f32 %v18650_v28, %v8030_v54  ;;  %v8021_v39 = vsel %vm1175_vm7, %v18419_v41, %v8012_v47  ;;  %v8029_v22 = vsel %vm1175_vm7, %v8012_v47, %v18419_v41  ;;  %v11963_v41 = vld [vmem:[%s19771_s22 + $0x1c0] ss:$16 sps:$4 sm:$0xff]  }
 0xd3f   : > { %v8055_v8 = vmul.f32 %v18647_v3, %v8021_v39  ;;  %v8056_v17 = vmul.f32 %v18650_v28, %v8029_v22  ;;  %8335 = vmatmul.mubr.bf16.gmra.mrb[84].mxu1 %v11918_v45  ;;  %8349 = vmatprep.subr.bf16.mxu1 %v8064_v13  ;;  %v20153_v48 = vmov 0   ;;  %v11965_v3 = vld [vmem:[%s19771_s22 + $0x1c4] ss:$16 sps:$4 sm:$0xff]   ;;  %v11966_v28 = vld [vmem:[%s19771_s22 + $0x1e0] ss:$16 sps:$4 sm:$0xff]   ;;  %v11253_v20 = vcombine.high %v8940_v38, %v8944_v19 }
 0xd40   : > { %8350 = vmatpush1.bf16.msra.mxu1 %v8063_v0  ;;  %8377 = vmatprep.mubr.bf16.mxu1 %v20153_v48  ;;  %v8948_v56 = vld [vmem:[%s19772_s23 + $0x180] sm:$0xff]  ;;  %v11252_v23 = vcombine.low %v8940_v38, %v8944_v19  ;;  %v11977_v38 = vld [vmem:[%s19771_s22 + $0x4c] ss:$16 sps:$4 sm:$0xff]  }
 0xd41   : > { %v8065_v2 = vpack.c.bf16 %v8057_v34, %v8055_v8  ;;  %v8066_v49 = vpack.c.bf16 %v8058_v40, %v8056_v17  ;;  %8814 = vmatprep.subr.bf16.mxu0 %v11965_v3  ;;  %v8952_v10 = vld [vmem:[%s19772_s23 + $0x1a0] sm:$0xff] }
 0xd42   : > { %8815 = vmatpush1.bf16.msra.mxu0 %v11963_v41  ;;  %v11261_v6 = vcombine.high %v8948_v56, %v8952_v10  ;;  %v8956_v44 = vld [vmem:[%s19772_s23 + $0x1c0] sm:$0xff]  ;;  %v11260_v50 = vcombine.low %v8948_v56, %v8952_v10  ;;  %v11975_v10 = vld [vmem:[%s19771_s22 + $0x48] ss:$16 sps:$4 sm:$0xff]  }
 0xd43   : > { %8351 = vmatprep.subr.bf16.mxu1 %v8066_v49  ;;  %8816 = vmatprep.subr.bf16.mxu0 %v11968_v16  ;;  %v8960_v33 = vld [vmem:[%s19772_s23 + $0x1e0] sm:$0xff] }
 0xd44   : > { %8352 = vmatpush1.bf16.msra.mxu1 %v8065_v2  ;;  %v11269_v30 = vcombine.high %v8956_v44, %v8960_v33  ;;  %v8964_v36 = vld [vmem:[%s19772_s23 + $0x200] sm:$0xff]  ;;  %v11268_v18 = vcombine.low %v8956_v44, %v8960_v33  ;;  %v11983_v44 = vld [vmem:[%s19771_s22 + $0x8c] ss:$16 sps:$4 sm:$0xff]   ;;  %v11981_v33 = vld [vmem:[%s19771_s22 + $0x88] ss:$16 sps:$4 sm:$0xff]  }
 0xd45   : > { %10436 = vmatprep.subr.bf16.mxu1 %v11213_v59  ;;  %v8968_v31 = vld [vmem:[%s19772_s23 + $0x220] sm:$0xff] }
 0xd46   : > { %8817 = vmatpush1.bf16.msra.mxu0 %v11966_v28  ;;  %v11277_v51 = vcombine.high %v8964_v36, %v8968_v31  ;;  %v8972_v26 = vld [vmem:[%s19772_s23 + $0x240] sm:$0xff]  ;;  %v11276_v21 = vcombine.low %v8964_v36, %v8968_v31  ;;  %v11989_v36 = vld [vmem:[%s19771_s22 + $0xcc] ss:$16 sps:$4 sm:$0xff]   ;;  %v11987_v31 = vld [vmem:[%s19771_s22 + $0xc8] ss:$16 sps:$4 sm:$0xff]  }
 0xd47   : > { %11146 = vmatmul.mubr.msk.bf16.vlgmr.msra.gmra.mrb[80].mxu1 %vm1632_vm9, %v11919_v29  ;;  %8839 = vmatprep.subr.bf16.mxu0 %v11971_v14  ;;  %v8976_v57 = vld [vmem:[%s19772_s23 + $0x260] sm:$0xff] }
 0xd48   : > { %8387 = vmatprep.mubr.bf16.mxu1 %v20153_v48  ;;  %10437 = vmatpush1.bf16.msra.mxu1 %v11212_v46  ;;  %v11285_v62 = vcombine.high %v8972_v26, %v8976_v57  ;;  %v8980_v32 = vld [vmem:[%s19772_s23 + $0x280] sm:$0xff]  ;;  %v11284_v45 = vcombine.low %v8972_v26, %v8976_v57  ;;  %v11995_v26 = vld [vmem:[%s19771_s22 + $0x10c] ss:$16 sps:$4 sm:$0xff]   ;;  %v11993_v57 = vld [vmem:[%s19771_s22 + $0x108] ss:$16 sps:$4 sm:$0xff]  }
 0xd49   : > { %10438 = vmatprep.subr.bf16.mxu1 %v11221_v25  ;;  %v8984_v1 = vld [vmem:[%s19772_s23 + $0x2a0] sm:$0xff]  ;;  %v11969_v25 = vld [vmem:[%s19771_s22 + $0x8] ss:$16 sps:$4 sm:$0xff]  }
 0xd4a   : > { %v11293_v53 = vcombine.high %v8980_v32, %v8984_v1  ;;  %v8988_v0 = vld [vmem:[%s19772_s23 + $0x2c0] sm:$0xff]  ;;  %v11292_v54 = vcombine.low %v8980_v32, %v8984_v1  ;;  %v12001_v32 = vld [vmem:[%s19771_s22 + $0x14c] ss:$16 sps:$4 sm:$0xff]   ;;  %v11999_v1 = vld [vmem:[%s19771_s22 + $0x148] ss:$16 sps:$4 sm:$0xff]  }
 0xd4b   : > { %v8992_v15 = vld [vmem:[%s19772_s23 + $0x2e0] sm:$0xff] }
 0xd4c   : > { %10439 = vmatpush1.bf16.msra.mxu1 %v11220_v4  ;;  %v11301_v47 = vcombine.high %v8988_v0, %v8992_v15  ;;  %v8996_v13 = vld [vmem:[%s19772_s23 + $0x300] sm:$0xff]  ;;  %v11300_v40 = vcombine.low %v8988_v0, %v8992_v15  ;;  %v12007_v0 = vld [vmem:[%s19771_s22 + $0x18c] ss:$16 sps:$4 sm:$0xff]   ;;  %v12005_v15 = vld [vmem:[%s19771_s22 + $0x188] ss:$16 sps:$4 sm:$0xff]  }
 0xd4d   : > { %10440 = vmatprep.subr.bf16.mxu1 %v11229_v37  ;;  %v9000_v34 = vld [vmem:[%s19772_s23 + $0x320] sm:$0xff]  ;;  %v8171_v48 = vpop.permute.xlu0 %8170 }
 0xd4e   : > { %v11309_v39 = vcombine.high %v8996_v13, %v9000_v34  ;;  %v9004_v22 = vld [vmem:[%s19772_s23 + $0x340] sm:$0xff]  ;;  %v11308_v49 = vcombine.low %v8996_v13, %v9000_v34  ;;  %v8166_v29 = vpop.permute.xlu1 %8165  ;;  %v12013_v13 = vld [vmem:[%s19771_s22 + $0x1cc] ss:$16 sps:$4 sm:$0xff]   ;;  %v12011_v34 = vld [vmem:[%s19771_s22 + $0x1c8] ss:$16 sps:$4 sm:$0xff]  }
 0xd4f   : > { %11147 = vmatmul.mubr.msk.bf16.gmra.mrb[84].mxu1 %vm1632_vm9, %v11920_v12  ;;  %v9008_v8 = vld [vmem:[%s19772_s23 + $0x360] sm:$0xff] }
 0xd50   : > { %10441 = vmatpush1.bf16.msra.mxu1 %v11228_v43  ;;  %v11317_v41 = vcombine.high %v9004_v22, %v9008_v8  ;;  %v9012_v14 = vld [vmem:[%s19772_s23 + $0x380] sm:$0xff]  ;;  %v11316_v55 = vcombine.low %v9004_v22, %v9008_v8  ;;  %v8905_v22 = vld [vmem:[%s19772_s23 + $0x28] sm:$0xff] }
 0xd51   : > { %10442 = vmatprep.subr.bf16.mxu1 %v11237_v61  ;;  %v9016_v52 = vld [vmem:[%s19772_s23 + $0x3a0] sm:$0xff]  ;;  %v8181_v37 = vpop.permute.xlu0 %8180  ;;  %v12014_v8 = vld [vmem:[%s19771_s22 + $0x1e8] ss:$16 sps:$4 sm:$0xff]  }
 0xd52   : > { %v11325_v5 = vcombine.high %v9012_v14, %v9016_v52  ;;  %v11324_v35 = vcombine.low %v9012_v14, %v9016_v52  ;;  %v8176_v43 = vpop.permute.xlu1 %8175  ;;  %v8929_v14 = vld [vmem:[%s19772_s23 + $0xe8] sm:$0xff] }
 0xd54   : > { %10443 = vmatpush1.bf16.msra.mxu1 %v11236_v42 }
 0xd55   : > { %10444 = vmatprep.subr.bf16.mxu1 %v11245_v60 }
 0xd58   : > { %10445 = vmatpush1.bf16.msra.mxu1 %v11244_v58 }
 0xd59   : > { %10446 = vmatprep.subr.bf16.mxu1 %v11253_v20 }
 0xd5c   : > { %10447 = vmatpush1.bf16.msra.mxu1 %v11252_v23  ;;  %v11980_v23 = vld [vmem:[%s19771_s22 + $0x6c] ss:$16 sps:$4 sm:$0xff]  }
 0xd5d   : > { %10448 = vmatprep.subr.bf16.mxu1 %v11261_v6  ;;  %v11978_v6 = vld [vmem:[%s19771_s22 + $0x68] ss:$16 sps:$4 sm:$0xff]  }
 0xd60   : > { %10449 = vmatpush1.bf16.msra.mxu1 %v11260_v50  ;;  %v11986_v50 = vld [vmem:[%s19771_s22 + $0xac] ss:$16 sps:$4 sm:$0xff]  }
 0xd61   : > { %10450 = vmatprep.subr.bf16.mxu1 %v11269_v30  ;;  %v11984_v30 = vld [vmem:[%s19771_s22 + $0xa8] ss:$16 sps:$4 sm:$0xff]  }
 0xd64   : > { %10451 = vmatpush1.bf16.msra.mxu1 %v11268_v18  ;;  %v11992_v18 = vld [vmem:[%s19771_s22 + $0xec] ss:$16 sps:$4 sm:$0xff]  }
 0xd65   : > { %10452 = vmatprep.subr.bf16.mxu1 %v11277_v51  ;;  %v11990_v51 = vld [vmem:[%s19771_s22 + $0xe8] ss:$16 sps:$4 sm:$0xff]  }
 0xd68   : > { %10453 = vmatpush1.bf16.msra.mxu1 %v11276_v21  ;;  %v11998_v21 = vld [vmem:[%s19771_s22 + $0x12c] ss:$16 sps:$4 sm:$0xff]  }
 0xd69   : > { %10454 = vmatprep.subr.bf16.mxu1 %v11285_v62  ;;  %v11996_v62 = vld [vmem:[%s19771_s22 + $0x128] ss:$16 sps:$4 sm:$0xff]  }
 0xd6c   : > { %10455 = vmatpush1.bf16.msra.mxu1 %v11284_v45  ;;  %v12004_v45 = vld [vmem:[%s19771_s22 + $0x16c] ss:$16 sps:$4 sm:$0xff]  }
 0xd6d   : > { %10456 = vmatprep.subr.bf16.mxu1 %v11293_v53  ;;  %v12002_v53 = vld [vmem:[%s19771_s22 + $0x168] ss:$16 sps:$4 sm:$0xff]  }
 0xd70   : > { %10457 = vmatpush1.bf16.msra.mxu1 %v11292_v54  ;;  %v12010_v54 = vld [vmem:[%s19771_s22 + $0x1ac] ss:$16 sps:$4 sm:$0xff]  }
 0xd71   : > { %10458 = vmatprep.subr.bf16.mxu1 %v11301_v47  ;;  %v12008_v47 = vld [vmem:[%s19771_s22 + $0x1a8] ss:$16 sps:$4 sm:$0xff]  }
 0xd74   : > { %10459 = vmatpush1.bf16.msra.mxu1 %v11300_v40  ;;  %v12016_v40 = vld [vmem:[%s19771_s22 + $0x1ec] ss:$16 sps:$4 sm:$0xff]  }
 0xd75   : > { %10460 = vmatprep.subr.bf16.mxu1 %v11309_v39  ;;  %v8901_v39 = vld [vmem:[%s19772_s23 + $0x8] sm:$0xff] }
 0xd78   : > { %10461 = vmatpush1.bf16.msra.mxu1 %v11308_v49  ;;  %v11214_v49 = vcombine.low %v8901_v39, %v8905_v22 }
 0xd79   : > { %10462 = vmatprep.subr.bf16.mxu1 %v11317_v41  ;;  %v8921_v41 = vld [vmem:[%s19772_s23 + $0xa8] sm:$0xff] }
 0xd7c   : > { %10463 = vmatpush1.bf16.msra.mxu1 %v11316_v55 }
 0xd7d   : > { %10464 = vmatprep.subr.bf16.mxu1 %v11325_v5  ;;  %v8945_v5 = vld [vmem:[%s19772_s23 + $0x168] sm:$0xff] }
 0xd80   : > { %10465 = vmatpush1.bf16.msra.mxu1 %v11324_v35 }
 0xe1a   : > { %v8379_v17 = vpop.f32.mrb[80].mxu1 }
 0xe1b   : > { %v8381_v2 = vpop.f32.mrb[81].mxu1  ;;  %v11568_v3 = vadd.f32 %v8379_v17, %v8166_v29  ;;  %v11215_v17 = vcombine.high %v8901_v39, %v8905_v22  ;;  %v9009_v39 = vld [vmem:[%s19772_s23 + $0x368] sm:$0xff] }
 0xe1c   : > { %v8383_v12 = vpop.f32.mrb[82].mxu1  ;;  %v11569_v63 = vadd.f32 %v8381_v2, %v8166_v29  ;;  %v8913_v2 = vld [vmem:[%s19772_s23 + $0x68] sm:$0xff] }
 0xe1d   : > { %v11570_v28 = vadd.f32 %v8383_v12, %v8171_v48  ;;  %v8385_v16 = vpop.f32.mrb[83].mxu1  ;;  %v8917_v12 = vld [vmem:[%s19772_s23 + $0x88] sm:$0xff] }
 0xe1e   : > { %v11571_v46 = vadd.f32 %v8385_v16, %v8171_v48  ;;  %v8909_v48 = vld [vmem:[%s19772_s23 + $0x48] sm:$0xff]  ;;  %v11230_v52 = vcombine.low %v8917_v12, %v8921_v41 }
 0xe1f   : > { %v18856_v59 = vpack.c.bf16 %v11570_v28, %v11568_v3  ;;  %v11223_v29 = vcombine.high %v8909_v48, %v8913_v2  ;;  %v11222_v3 = vcombine.low %v8909_v48, %v8913_v2  ;;  %v11231_v28 = vcombine.high %v8917_v12, %v8921_v41  ;;  %v8925_v16 = vld [vmem:[%s19772_s23 + $0xc8] sm:$0xff] }
 0xe20   : > { %v8399_v24 = vpack.c.bf16 %v11571_v46, %v11569_v63  ;;  %v11239_v63 = vcombine.high %v8925_v16, %v8929_v14  ;;  %v8933_v46 = vld [vmem:[%s19772_s23 + $0x108] sm:$0xff]  ;;  %v11238_v55 = vcombine.low %v8925_v16, %v8929_v14 }
 0xe21   : > { %v9017_v48 = vld [vmem:[%s19772_s23 + $0x3a8] sm:$0xff] }
 0xe22   : > { %v8389_v4 = vpop.f32.mrb[84].mxu1  ;;  %8818 = vmatprep.mubr.bf16.mxu0 %v8399_v24  ;;  %v9025_v12 = vld [vmem:[%s19772_s23 + $0x3e8] sm:$0xff] }
 0xe23   : > { %v8391_v9 = vpop.f32.mrb[85].mxu1  ;;  %8819 = vmatmul.mubr.bf16.vlgmr.msra.gmra.mrb[48].mxu0 %v18856_v59  ;;  %v11572_v7 = vadd.f32 %v8389_v4, %v8176_v43 }
 0xe24   : > { %8840 = vmatpush1.bf16.msra.mxu0 %v11969_v25  ;;  %v8393_v61 = vpop.f32.mrb[86].mxu1  ;;  %v11573_v19 = vadd.f32 %v8391_v9, %v8176_v43  ;;  %v8941_v25 = vld [vmem:[%s19772_s23 + $0x148] sm:$0xff] }
 0xe25   : > { %v11574_v42 = vadd.f32 %v8393_v61, %v8181_v37  ;;  %v8395_v60 = vpop.f32.mrb[87].mxu1  ;;  %8841 = vmatprep.subr.bf16.mxu0 %v11974_v27  ;;  %v11255_v4 = vcombine.high %v8941_v25, %v8945_v5  ;;  %v8953_v9 = vld [vmem:[%s19772_s23 + $0x1a8] sm:$0xff]  ;;  %v11254_v35 = vcombine.low %v8941_v25, %v8945_v5 }
 0xe26   : > { %v11575_v58 = vadd.f32 %v8395_v60, %v8181_v37  ;;  %v8949_v37 = vld [vmem:[%s19772_s23 + $0x188] sm:$0xff]  ;;  %v9020_v60 = vld [vmem:[%s19772_s23 + $0x3c0] sm:$0xff] }
 0xe27   : > { %v18871_v20 = vpack.c.bf16 %v11574_v42, %v11572_v7  ;;  %v11263_v43 = vcombine.high %v8949_v37, %v8953_v9  ;;  %v8957_v61 = vld [vmem:[%s19772_s23 + $0x1c8] sm:$0xff]  ;;  %v11262_v7 = vcombine.low %v8949_v37, %v8953_v9  ;;  %v9044_v9 = vld [vmem:[%s19772_s23 + $0x480] sm:$0xff] }
 0xe28   : > { %v18873_v56 = vpack.c.bf16 %v11575_v58, %v11573_v19  ;;  %8842 = vmatpush1.bf16.msra.mxu0 %v11972_v11  ;;  %v8961_v11 = vld [vmem:[%s19772_s23 + $0x1e8] sm:$0xff] }
 0xe29   : > { %8843 = vmatprep.subr.bf16.mxu0 %v11977_v38  ;;  %v11271_v42 = vcombine.high %v8957_v61, %v8961_v11  ;;  %v9024_v38 = vld [vmem:[%s19772_s23 + $0x3e0] sm:$0xff]  ;;  %v8965_v19 = vld [vmem:[%s19772_s23 + $0x208] sm:$0xff] }
 0xe2a   : > { %8828 = vmatprep.mubr.bf16.mxu0 %v18873_v56  ;;  %v8969_v58 = vld [vmem:[%s19772_s23 + $0x228] sm:$0xff] }
 0xe2b   : > { %8829 = vmatmul.mubr.bf16.gmra.mrb[52].mxu0 %v18871_v20 }
 0xe2c   : > { %8844 = vmatpush1.bf16.msra.mxu0 %v11975_v10  ;;  %8871 = vmatprep.mubr.bf16.mxu0 %v8399_v24  ;;  %v11270_v10 = vcombine.low %v8957_v61, %v8961_v11  ;;  %v9049_v61 = vld [vmem:[%s19772_s23 + $0x4a8] sm:$0xff] }
 0xe2d   : > { %8845 = vmatprep.subr.bf16.mxu0 %v11980_v23  ;;  %v19024_v23 = vld [vmem:[%s19772_s23 + $0x400] sm:$0xff] }
 0xe30   : > { %8846 = vmatpush1.bf16.msra.mxu0 %v11978_v6  ;;  %v19029_v6 = vld [vmem:[%s19772_s23 + $0x420] sm:$0xff] }
 0xe31   : > { %8847 = vmatprep.subr.bf16.mxu0 %v11983_v44  ;;  %v19034_v44 = vld [vmem:[%s19772_s23 + $0x408] sm:$0xff] }
 0xe34   : > { %8848 = vmatpush1.bf16.msra.mxu0 %v11981_v33  ;;  %v11279_v33 = vcombine.high %v8965_v19, %v8969_v58 }
 0xe35   : > { %8849 = vmatprep.subr.bf16.mxu0 %v11986_v50  ;;  %v11340_v50 = vcombine.low %v19024_v23, %v19029_v6 }
 0xe38   : > { %8850 = vmatpush1.bf16.msra.mxu0 %v11984_v30  ;;  %v11341_v30 = vcombine.high %v19024_v23, %v19029_v6  ;;  %v9057_v23 = vld [vmem:[%s19772_s23 + $0x4e8] sm:$0xff] }
 0xe39   : > { %8851 = vmatprep.subr.bf16.mxu0 %v11989_v36  ;;  %v19043_v36 = vld [vmem:[%s19772_s23 + $0x428] sm:$0xff] }
 0xe3a   : > { %v11343_v16 = vcombine.high %v19034_v44, %v19043_v36 }
 0xe3c   : > { %8852 = vmatpush1.bf16.msra.mxu0 %v11987_v31  ;;  %v8973_v31 = vld [vmem:[%s19772_s23 + $0x248] sm:$0xff] }
 0xe3d   : > { %8853 = vmatprep.subr.bf16.mxu0 %v11992_v18  ;;  %v8977_v18 = vld [vmem:[%s19772_s23 + $0x268] sm:$0xff] }
 0xe40   : > { %8854 = vmatpush1.bf16.msra.mxu0 %v11990_v51  ;;  %v11342_v51 = vcombine.low %v19034_v44, %v19043_v36 }
 0xe41   : > { %8855 = vmatprep.subr.bf16.mxu0 %v11995_v26  ;;  %v11278_v26 = vcombine.low %v8965_v19, %v8969_v58  ;;  %v9052_v58 = vld [vmem:[%s19772_s23 + $0x4c0] sm:$0xff] }
 0xe44   : > { %8856 = vmatpush1.bf16.msra.mxu0 %v11993_v57  ;;  %v11287_v57 = vcombine.high %v8973_v31, %v8977_v18 }
 0xe45   : > { %8857 = vmatprep.subr.bf16.mxu0 %v11998_v21  ;;  %v8981_v21 = vld [vmem:[%s19772_s23 + $0x288] sm:$0xff] }
 0xe48   : > { %8858 = vmatpush1.bf16.msra.mxu0 %v11996_v62  ;;  %v8985_v62 = vld [vmem:[%s19772_s23 + $0x2a8] sm:$0xff] }
 0xe49   : > { %8859 = vmatprep.subr.bf16.mxu0 %v12001_v32  ;;  %v11286_v32 = vcombine.low %v8973_v31, %v8977_v18  ;;  %v9060_v18 = vld [vmem:[%s19772_s23 + $0x500] sm:$0xff] }
 0xe4c   : > { %8860 = vmatpush1.bf16.msra.mxu0 %v11999_v1  ;;  %v11295_v1 = vcombine.high %v8981_v21, %v8985_v62 }
 0xe4d   : > { %8861 = vmatprep.subr.bf16.mxu0 %v12004_v45  ;;  %v8989_v45 = vld [vmem:[%s19772_s23 + $0x2c8] sm:$0xff] }
 0xe50   : > { %8862 = vmatpush1.bf16.msra.mxu0 %v12002_v53  ;;  %v8993_v53 = vld [vmem:[%s19772_s23 + $0x2e8] sm:$0xff] }
 0xe51   : > { %8863 = vmatprep.subr.bf16.mxu0 %v12007_v0  ;;  %v11294_v0 = vcombine.low %v8981_v21, %v8985_v62 }
 0xe54   : > { %8864 = vmatpush1.bf16.msra.mxu0 %v12005_v15  ;;  %v11303_v15 = vcombine.high %v8989_v45, %v8993_v53 }
 0xe55   : > { %8865 = vmatprep.subr.bf16.mxu0 %v12010_v54  ;;  %v8997_v54 = vld [vmem:[%s19772_s23 + $0x308] sm:$0xff] }
 0xe58   : > { %8866 = vmatpush1.bf16.msra.mxu0 %v12008_v47  ;;  %v9001_v47 = vld [vmem:[%s19772_s23 + $0x328] sm:$0xff] }
 0xe59   : > { %8867 = vmatprep.subr.bf16.mxu0 %v12013_v13  ;;  %v11302_v13 = vcombine.low %v8989_v45, %v8993_v53  ;;  %v11310_v22 = vcombine.low %v8997_v54, %v9001_v47  ;;  %v9068_v45 = vld [vmem:[%s19772_s23 + $0x540] sm:$0xff] }
 0xe5a   : > { %v9072_v53 = vld [vmem:[%s19772_s23 + $0x560] sm:$0xff] }
 0xe5c   : > { %8868 = vmatpush1.bf16.msra.mxu0 %v12011_v34  ;;  %v11311_v34 = vcombine.high %v8997_v54, %v9001_v47 }
 0xe5d   : > { %8869 = vmatprep.subr.bf16.mxu0 %v12016_v40  ;;  %v9005_v40 = vld [vmem:[%s19772_s23 + $0x348] sm:$0xff] }
 0xe5e   : > { %v11318_v2 = vcombine.low %v9005_v40, %v9009_v39 }
 0xe60   : > { %8870 = vmatpush1.bf16.msra.mxu0 %v12014_v8  ;;  %v11319_v8 = vcombine.high %v9005_v40, %v9009_v39  ;;  %v9076_v40 = vld [vmem:[%s19772_s23 + $0x580] sm:$0xff] }
 0xe61   : > { %10542 = vmatprep.subr.bf16.mxu0 %v11215_v17  ;;  %v9013_v17 = vld [vmem:[%s19772_s23 + $0x388] sm:$0xff]  ;;  %v9080_v39 = vld [vmem:[%s19772_s23 + $0x5a0] sm:$0xff] }
 0xe62   : > { %v11326_v41 = vcombine.low %v9013_v17, %v9017_v48 }
 0xe63   : > { %8872 = vmatmul.mubr.bf16.vlgmr.msra.gmra.mrb[56].mxu0 %v18856_v59  ;;  %v8937_v59 = vld [vmem:[%s19772_s23 + $0x128] sm:$0xff] }
 0xe64   : > { %8881 = vmatprep.mubr.bf16.mxu0 %v18873_v56  ;;  %10543 = vmatpush1.bf16.msra.mxu0 %v11214_v49  ;;  %v11247_v24 = vcombine.high %v8933_v46, %v8937_v59  ;;  %v11246_v27 = vcombine.low %v8933_v46, %v8937_v59  ;;  %v11333_v56 = vcombine.high %v9020_v60, %v9024_v38  ;;  %v9040_v59 = vld [vmem:[%s19772_s23 + $0x460] sm:$0xff] }
 0xe65   : > { %10544 = vmatprep.subr.bf16.mxu0 %v11223_v29  ;;  %v11327_v49 = vcombine.high %v9013_v17, %v9017_v48  ;;  %v9021_v29 = vld [vmem:[%s19772_s23 + $0x3c8] sm:$0xff]  ;;  %v11380_v17 = vcombine.low %v9068_v45, %v9072_v53 }
 0xe66   : > { %10466 = vmatprep.subr.bf16.mxu1 %v11333_v56  ;;  %v9056_v56 = vld [vmem:[%s19772_s23 + $0x4e0] sm:$0xff] }
 0xe67   : > { %v11365_v36 = vcombine.high %v9052_v58, %v9056_v56  ;;  %v11364_v21 = vcombine.low %v9052_v58, %v9056_v56  ;;  %v9109_v58 = vld [vmem:[%s19772_s23 + $0x688] sm:$0xff] }
 0xe68   : > { %10545 = vmatpush1.bf16.msra.mxu0 %v11222_v3  ;;  %v11335_v3 = vcombine.high %v9021_v29, %v9025_v12 }
 0xe69   : > { %10546 = vmatprep.subr.bf16.mxu0 %v11231_v28  ;;  %v11334_v28 = vcombine.low %v9021_v29, %v9025_v12  ;;  %v9084_v29 = vld [vmem:[%s19772_s23 + $0x5c0] sm:$0xff] }
 0xe6a   : > { %v9088_v12 = vld [vmem:[%s19772_s23 + $0x5e0] sm:$0xff] }
 0xe6b   : > { %8882 = vmatmul.mubr.bf16.gmra.mrb[60].mxu0 %v18871_v20  ;;  %v11332_v20 = vcombine.low %v9020_v60, %v9024_v38 }
 0xe6c   : > { %10547 = vmatpush1.bf16.msra.mxu0 %v11230_v52 }
 0xe6d   : > { %10548 = vmatprep.subr.bf16.mxu0 %v11239_v63  ;;  %10467 = vmatpush1.bf16.msra.mxu1 %v11332_v20  ;;  %v9036_v63 = vld [vmem:[%s19772_s23 + $0x440] sm:$0xff] }
 0xe6e   : > { %10489 = vmatprep.subr.bf16.mxu1 %v11341_v30 }
 0xe70   : > { %10549 = vmatpush1.bf16.msra.mxu0 %v11238_v55  ;;  %v9037_v55 = vld [vmem:[%s19772_s23 + $0x448] sm:$0xff] }
 0xe71   : > { %10550 = vmatprep.subr.bf16.mxu0 %v11247_v24  ;;  %v9041_v24 = vld [vmem:[%s19772_s23 + $0x468] sm:$0xff] }
 0xe72   : > { %v11351_v37 = vcombine.high %v9037_v55, %v9041_v24 }
 0xe74   : > { %10551 = vmatpush1.bf16.msra.mxu0 %v11246_v27 }
 0xe75   : > { %10552 = vmatprep.subr.bf16.mxu0 %v11255_v4  ;;  %v11349_v4 = vcombine.high %v9036_v63, %v9040_v59 }
 0xe78   : > { %10553 = vmatpush1.bf16.msra.mxu0 %v11254_v35  ;;  %v9048_v35 = vld [vmem:[%s19772_s23 + $0x4a0] sm:$0xff] }
 0xe79   : > { %10554 = vmatprep.subr.bf16.mxu0 %v11263_v43  ;;  %v9045_v43 = vld [vmem:[%s19772_s23 + $0x488] sm:$0xff]  ;;  %v11357_v38 = vcombine.high %v9044_v9, %v9048_v35 }
 0xe7a   : > { %v11359_v19 = vcombine.high %v9045_v43, %v9049_v61  ;;  %v11358_v30 = vcombine.low %v9045_v43, %v9049_v61  ;;  %v9101_v43 = vld [vmem:[%s19772_s23 + $0x648] sm:$0xff] }
 0xe7b   : > { %v9105_v61 = vld [vmem:[%s19772_s23 + $0x668] sm:$0xff] }
 0xe7c   : > { %10555 = vmatpush1.bf16.msra.mxu0 %v11262_v7  ;;  %v11348_v7 = vcombine.low %v9036_v63, %v9040_v59  ;;  %v9092_v63 = vld [vmem:[%s19772_s23 + $0x600] sm:$0xff]  ;;  %v9093_v59 = vld [vmem:[%s19772_s23 + $0x608] sm:$0xff] }
 0xe7d   : > { %10556 = vmatprep.subr.bf16.mxu0 %v11271_v42  ;;  %v11350_v42 = vcombine.low %v9037_v55, %v9041_v24  ;;  %v9097_v55 = vld [vmem:[%s19772_s23 + $0x628] sm:$0xff]  ;;  %v11396_v24 = vcombine.low %v9084_v29, %v9088_v12 }
 0xe80   : > { %10557 = vmatpush1.bf16.msra.mxu0 %v11270_v10  ;;  %v9053_v10 = vld [vmem:[%s19772_s23 + $0x4c8] sm:$0xff] }
 0xe81   : > { %10558 = vmatprep.subr.bf16.mxu0 %v11279_v33  ;;  %v11367_v31 = vcombine.high %v9053_v10, %v9057_v23  ;;  %v11366_v62 = vcombine.low %v9053_v10, %v9057_v23  ;;  %v11414_v10 = vcombine.low %v9101_v43, %v9105_v61 }
 0xe84   : > { %10559 = vmatpush1.bf16.msra.mxu0 %v11278_v26  ;;  %v9061_v26 = vld [vmem:[%s19772_s23 + $0x508] sm:$0xff] }
 0xe85   : > { %10560 = vmatprep.subr.bf16.mxu0 %v11287_v57  ;;  %v9065_v57 = vld [vmem:[%s19772_s23 + $0x528] sm:$0xff] }
 0xe86   : > { %v11374_v47 = vcombine.low %v9061_v26, %v9065_v57 }
 0xe88   : > { %10561 = vmatpush1.bf16.msra.mxu0 %v11286_v32 }
 0xe89   : > { %10562 = vmatprep.subr.bf16.mxu0 %v11295_v1  ;;  %v11375_v1 = vcombine.high %v9061_v26, %v9065_v57 }
 0xe8c   : > { %10563 = vmatpush1.bf16.msra.mxu0 %v11294_v0  ;;  %v9069_v0 = vld [vmem:[%s19772_s23 + $0x548] sm:$0xff] }
 0xe8d   : > { %10564 = vmatprep.subr.bf16.mxu0 %v11303_v15  ;;  %v9073_v15 = vld [vmem:[%s19772_s23 + $0x568] sm:$0xff] }
 0xe8e   : > { %v11382_v48 = vcombine.low %v9069_v0, %v9073_v15 }
 0xe90   : > { %10565 = vmatpush1.bf16.msra.mxu0 %v11302_v13  ;;  %v11381_v13 = vcombine.high %v9068_v45, %v9072_v53 }
 0xe91   : > { %10566 = vmatprep.subr.bf16.mxu0 %v11311_v34  ;;  %v11383_v34 = vcombine.high %v9069_v0, %v9073_v15 }
 0xe94   : > { %10567 = vmatpush1.bf16.msra.mxu0 %v11310_v22  ;;  %v9077_v22 = vld [vmem:[%s19772_s23 + $0x588] sm:$0xff] }
 0xe95   : > { %10568 = vmatprep.subr.bf16.mxu0 %v11319_v8  ;;  %v9081_v8 = vld [vmem:[%s19772_s23 + $0x5a8] sm:$0xff] }
 0xe98   : > { %10569 = vmatpush1.bf16.msra.mxu0 %v11318_v2  ;;  %v11389_v2 = vcombine.high %v9076_v40, %v9080_v39 }
 0xe99   : > { %10570 = vmatprep.subr.bf16.mxu0 %v11327_v49  ;;  %v11391_v49 = vcombine.high %v9077_v22, %v9081_v8 }
 0xe9c   : > { %10571 = vmatpush1.bf16.msra.mxu0 %v11326_v41  ;;  %v9085_v41 = vld [vmem:[%s19772_s23 + $0x5c8] sm:$0xff] }
 0xe9d   : > { %10572 = vmatprep.subr.bf16.mxu0 %v11335_v3  ;;  %v9089_v3 = vld [vmem:[%s19772_s23 + $0x5e8] sm:$0xff] }
 0xea0   : > { %10573 = vmatpush1.bf16.msra.mxu0 %v11334_v28  ;;  %v11388_v28 = vcombine.low %v9076_v40, %v9080_v39 }
 0xea1   : > { %10595 = vmatprep.subr.bf16.mxu0 %v11343_v16  ;;  %v11390_v16 = vcombine.low %v9077_v22, %v9081_v8 }
 0xef6   : > { %v8820_v14 = vpop.f32.mrb[48].mxu0 }
 0xef7   : > { %v8822_v52 = vpop.f32.mrb[49].mxu0 }
 0xef8   : > { %v8824_v46 = vpop.f32.mrb[50].mxu0 }
 0xef9   : > { %v19103_v25 = vpack.c.bf16 %v8824_v46, %v8820_v14  ;;  %v8826_v5 = vpop.f32.mrb[51].mxu0  ;;  %v11397_v14 = vcombine.high %v9084_v29, %v9088_v12  ;;  %v9096_v46 = vld [vmem:[%s19772_s23 + $0x620] sm:$0xff] }
 0xefa   : > { %v19105_v27 = vpack.c.bf16 %v8826_v5, %v8822_v52  ;;  %v11399_v52 = vcombine.high %v9085_v41, %v9089_v3  ;;  %v11398_v5 = vcombine.low %v9085_v41, %v9089_v3 }
 0xefc   : > { %10468 = vmatprep.mubr.bf16.mxu1 %v19105_v27  ;;  %10574 = vmatprep.mubr.bf16.mxu0 %v19105_v27 }
 0xefd   : > { %10469 = vmatmul.mubr.bf16.vlgmr.msra.gmra.mrb[88].mxu1 %v19103_v25  ;;  %10575 = vmatmul.mubr.bf16.vlgmr.msra.gmra.mrb[64].mxu0 %v19103_v25 }
 0xefe   : > { %10490 = vmatpush1.bf16.msra.mxu1 %v11340_v50  ;;  %10596 = vmatpush1.bf16.msra.mxu0 %v11342_v51  ;;  %v8830_v11 = vpop.f32.mrb[52].mxu0  ;;  %v11356_v50 = vcombine.low %v9044_v9, %v9048_v35  ;;  %v9064_v51 = vld [vmem:[%s19772_s23 + $0x520] sm:$0xff] }
 0xeff   : > { %v8832_v60 = vpop.f32.mrb[53].mxu0  ;;  %10491 = vmatprep.subr.bf16.mxu1 %v11349_v4  ;;  %10597 = vmatprep.subr.bf16.mxu0 %v11351_v37  ;;  %v11373_v32 = vcombine.high %v9060_v18, %v9064_v51  ;;  %v11372_v54 = vcombine.low %v9060_v18, %v9064_v51  ;;  %v11405_v4 = vcombine.high %v9092_v63, %v9096_v46  ;;  %v9100_v9 = vld [vmem:[%s19772_s23 + $0x640] sm:$0xff] }
 0xf00   : > { %v8834_v20 = vpop.f32.mrb[54].mxu0  ;;  %v11407_v37 = vcombine.high %v9093_v59, %v9097_v55  ;;  %v9104_v35 = vld [vmem:[%s19772_s23 + $0x660] sm:$0xff] }
 0xf01   : > { %v19141_v6 = vpack.c.bf16 %v8834_v20, %v8830_v11  ;;  %v8836_v44 = vpop.f32.mrb[55].mxu0  ;;  %v11404_v11 = vcombine.low %v9092_v63, %v9096_v46  ;;  %v9113_v20 = vld [vmem:[%s19772_s23 + $0x6a8] sm:$0xff]  ;;  %v11412_v56 = vcombine.low %v9100_v9, %v9104_v35 }
 0xf02   : > { %v19143_v33 = vpack.c.bf16 %v8836_v44, %v8832_v60  ;;  %10492 = vmatpush1.bf16.msra.mxu1 %v11348_v7  ;;  %10598 = vmatpush1.bf16.msra.mxu0 %v11350_v42  ;;  %v11406_v7 = vcombine.low %v9093_v59, %v9097_v55  ;;  %v11413_v42 = vcombine.high %v9100_v9, %v9104_v35 }
 0xf03   : > { %10493 = vmatprep.subr.bf16.mxu1 %v11357_v38  ;;  %10599 = vmatprep.subr.bf16.mxu0 %v11359_v19  ;;  %v11415_v60 = vcombine.high %v9101_v43, %v9105_v61  ;;  %v9108_v38 = vld [vmem:[%s19772_s23 + $0x680] sm:$0xff]  ;;  %v11423_v44 = vcombine.high %v9109_v58, %v9113_v20  ;;  %v11422_v51 = vcombine.low %v9109_v58, %v9113_v20  ;;  %v8915_v58 = vld [vmem:[%s19772_s23 + $0x78] sm:$0xff] }
 0xf04   : > { %10478 = vmatprep.mubr.bf16.mxu1 %v19143_v33  ;;  %10584 = vmatprep.mubr.bf16.mxu0 %v19143_v33  ;;  %v9112_v19 = vld [vmem:[%s19772_s23 + $0x6a0] sm:$0xff] }
 0xf05   : > { %10479 = vmatmul.mubr.bf16.gmra.mrb[92].mxu1 %v19141_v6  ;;  %10585 = vmatmul.mubr.bf16.gmra.mrb[68].mxu0 %v19141_v6  ;;  %v11421_v23 = vcombine.high %v9108_v38, %v9112_v19  ;;  %v11420_v18 = vcombine.low %v9108_v38, %v9112_v19  ;;  %v8914_v38 = vld [vmem:[%s19772_s23 + $0x70] sm:$0xff]  ;;  %v8911_v19 = vld [vmem:[%s19772_s23 + $0x58] sm:$0xff] }
 0xf06   : > { %10494 = vmatpush1.bf16.msra.mxu1 %v11356_v50  ;;  %10600 = vmatpush1.bf16.msra.mxu0 %v11358_v30  ;;  %v9116_v50 = vld [vmem:[%s19772_s23 + $0x6c0] sm:$0xff] }
 0xf07   : > { %10495 = vmatprep.subr.bf16.mxu1 %v11365_v36  ;;  %10601 = vmatprep.subr.bf16.mxu0 %v11367_v31  ;;  %v9120_v30 = vld [vmem:[%s19772_s23 + $0x6e0] sm:$0xff]  ;;  %v9117_v36 = vld [vmem:[%s19772_s23 + $0x6c8] sm:$0xff] }
 0xf08   : > { %v9121_v31 = vld [vmem:[%s19772_s23 + $0x6e8] sm:$0xff]  ;;  %v11429_v26 = vcombine.high %v9116_v50, %v9120_v30  ;;  %v11428_v45 = vcombine.low %v9116_v50, %v9120_v30  ;;  %v11227_v30 = vcombine.high %v8911_v19, %v8915_v58 }
 0xf09   : > { %v11431_v57 = vcombine.high %v9117_v36, %v9121_v31  ;;  %v11430_v53 = vcombine.low %v9117_v36, %v9121_v31  ;;  %v8918_v36 = vld [vmem:[%s19772_s23 + $0x90] sm:$0xff] }
 0xf0a   : > { %10496 = vmatpush1.bf16.msra.mxu1 %v11364_v21  ;;  %10602 = vmatpush1.bf16.msra.mxu0 %v11366_v62  ;;  %v9124_v21 = vld [vmem:[%s19772_s23 + $0x700] sm:$0xff]  ;;  %v8922_v31 = vld [vmem:[%s19772_s23 + $0xb0] sm:$0xff] }
 0xf0b   : > { %10497 = vmatprep.subr.bf16.mxu1 %v11373_v32  ;;  %10603 = vmatprep.subr.bf16.mxu0 %v11375_v1  ;;  %v9128_v62 = vld [vmem:[%s19772_s23 + $0x720] sm:$0xff]  ;;  %v9125_v32 = vld [vmem:[%s19772_s23 + $0x708] sm:$0xff] }
 0xf0c   : > { %v9129_v1 = vld [vmem:[%s19772_s23 + $0x728] sm:$0xff]  ;;  %v11437_v0 = vcombine.high %v9124_v21, %v9128_v62  ;;  %v11436_v40 = vcombine.low %v9124_v21, %v9128_v62  ;;  %v11226_v21 = vcombine.low %v8911_v19, %v8915_v58 }
 0xf0d   : > { %v11439_v15 = vcombine.high %v9125_v32, %v9129_v1  ;;  %v11438_v39 = vcombine.low %v9125_v32, %v9129_v1  ;;  %v11233_v32 = vcombine.high %v8918_v36, %v8922_v31 }
 0xf0e   : > { %10498 = vmatpush1.bf16.msra.mxu1 %v11372_v54  ;;  %10604 = vmatpush1.bf16.msra.mxu0 %v11374_v47  ;;  %v9132_v54 = vld [vmem:[%s19772_s23 + $0x740] sm:$0xff] }
 0xf0f   : > { %10499 = vmatprep.subr.bf16.mxu1 %v11381_v13  ;;  %10605 = vmatprep.subr.bf16.mxu0 %v11383_v34  ;;  %v9136_v47 = vld [vmem:[%s19772_s23 + $0x760] sm:$0xff]  ;;  %v9133_v13 = vld [vmem:[%s19772_s23 + $0x748] sm:$0xff] }
 0xf10   : > { %v9137_v34 = vld [vmem:[%s19772_s23 + $0x768] sm:$0xff]  ;;  %v11445_v22 = vcombine.high %v9132_v54, %v9136_v47  ;;  %v11444_v29 = vcombine.low %v9132_v54, %v9136_v47  ;;  %v8930_v54 = vld [vmem:[%s19772_s23 + $0xf0] sm:$0xff]  ;;  %v8927_v47 = vld [vmem:[%s19772_s23 + $0xd8] sm:$0xff] }
 0xf11   : > { %v11447_v8 = vcombine.high %v9133_v13, %v9137_v34  ;;  %v11446_v12 = vcombine.low %v9133_v13, %v9137_v34  ;;  %v8931_v13 = vld [vmem:[%s19772_s23 + $0xf8] sm:$0xff] }
 0xf12   : > { %10500 = vmatpush1.bf16.msra.mxu1 %v11380_v17  ;;  %10606 = vmatpush1.bf16.msra.mxu0 %v11382_v48  ;;  %v9140_v17 = vld [vmem:[%s19772_s23 + $0x780] sm:$0xff] }
 0xf13   : > { %10501 = vmatprep.subr.bf16.mxu1 %v11389_v2  ;;  %10607 = vmatprep.subr.bf16.mxu0 %v11391_v49  ;;  %v9144_v48 = vld [vmem:[%s19772_s23 + $0x7a0] sm:$0xff]  ;;  %v9141_v2 = vld [vmem:[%s19772_s23 + $0x788] sm:$0xff] }
 0xf14   : > { %v9145_v49 = vld [vmem:[%s19772_s23 + $0x7a8] sm:$0xff]  ;;  %v11453_v41 = vcombine.high %v9140_v17, %v9144_v48  ;;  %v11452_v63 = vcombine.low %v9140_v17, %v9144_v48  ;;  %v8934_v17 = vld [vmem:[%s19772_s23 + $0x110] sm:$0xff] }
 0xf15   : > { %v11455_v3 = vcombine.high %v9141_v2, %v9145_v49  ;;  %v11454_v46 = vcombine.low %v9141_v2, %v9145_v49  ;;  %v8938_v48 = vld [vmem:[%s19772_s23 + $0x130] sm:$0xff]  ;;  %v8935_v2 = vld [vmem:[%s19772_s23 + $0x118] sm:$0xff] }
 0xf16   : > { %10502 = vmatpush1.bf16.msra.mxu1 %v11388_v28  ;;  %10608 = vmatpush1.bf16.msra.mxu0 %v11390_v16  ;;  %v9148_v28 = vld [vmem:[%s19772_s23 + $0x7c0] sm:$0xff]  ;;  %v8939_v49 = vld [vmem:[%s19772_s23 + $0x138] sm:$0xff] }
 0xf17   : > { %10503 = vmatprep.subr.bf16.mxu1 %v11397_v14  ;;  %10609 = vmatprep.subr.bf16.mxu0 %v11399_v52  ;;  %v9152_v16 = vld [vmem:[%s19772_s23 + $0x7e0] sm:$0xff]  ;;  %v9149_v14 = vld [vmem:[%s19772_s23 + $0x7c8] sm:$0xff] }
 0xf18   : > { %v9153_v52 = vld [vmem:[%s19772_s23 + $0x7e8] sm:$0xff]  ;;  %v11461_v59 = vcombine.high %v9148_v28, %v9152_v16  ;;  %v11460_v35 = vcombine.low %v9148_v28, %v9152_v16  ;;  %v8942_v28 = vld [vmem:[%s19772_s23 + $0x150] sm:$0xff] }
 0xf19   : > { %v11463_v55 = vcombine.high %v9149_v14, %v9153_v52  ;;  %v11462_v43 = vcombine.low %v9149_v14, %v9153_v52  ;;  %v8946_v16 = vld [vmem:[%s19772_s23 + $0x170] sm:$0xff]  ;;  %v8943_v14 = vld [vmem:[%s19772_s23 + $0x158] sm:$0xff]  ;;  %v11248_v52 = vcombine.low %v8934_v17, %v8938_v48 }
 0xf1a   : > { %10504 = vmatpush1.bf16.msra.mxu1 %v11396_v24  ;;  %10610 = vmatpush1.bf16.msra.mxu0 %v11398_v5  ;;  %v8902_v24 = vld [vmem:[%s19772_s23 + $0x10] sm:$0xff] }
 0xf1b   : > { %10505 = vmatprep.subr.bf16.mxu1 %v11405_v4  ;;  %10611 = vmatprep.subr.bf16.mxu0 %v11407_v37  ;;  %v8906_v5 = vld [vmem:[%s19772_s23 + $0x30] sm:$0xff]  ;;  %v8903_v4 = vld [vmem:[%s19772_s23 + $0x18] sm:$0xff] }
 0xf1c   : > { %v8907_v37 = vld [vmem:[%s19772_s23 + $0x38] sm:$0xff] }
 0xf1e   : > { %10506 = vmatpush1.bf16.msra.mxu1 %v11404_v11  ;;  %10612 = vmatpush1.bf16.msra.mxu0 %v11406_v7  ;;  %v11217_v11 = vcombine.high %v8902_v24, %v8906_v5  ;;  %v11219_v7 = vcombine.high %v8903_v4, %v8907_v37 }
 0xf1f   : > { %10507 = vmatprep.subr.bf16.mxu1 %v11413_v42  ;;  %10613 = vmatprep.subr.bf16.mxu0 %v11415_v60  ;;  %v8910_v42 = vld [vmem:[%s19772_s23 + $0x50] sm:$0xff] }
 0xf20   : > { %v11225_v50 = vcombine.high %v8910_v42, %v8914_v38 }
 0xf22   : > { %10508 = vmatpush1.bf16.msra.mxu1 %v11412_v56  ;;  %10614 = vmatpush1.bf16.msra.mxu0 %v11414_v10 }
 0xf23   : > { %10509 = vmatprep.subr.bf16.mxu1 %v11421_v23  ;;  %10615 = vmatprep.subr.bf16.mxu0 %v11423_v44  ;;  %v11216_v23 = vcombine.low %v8902_v24, %v8906_v5  ;;  %v11218_v44 = vcombine.low %v8903_v4, %v8907_v37  ;;  %v8954_v24 = vld [vmem:[%s19772_s23 + $0x1b0] sm:$0xff]  ;;  %v8951_v5 = vld [vmem:[%s19772_s23 + $0x198] sm:$0xff]  ;;  %v11256_v37 = vcombine.low %v8942_v28, %v8946_v16 }
 0xf24   : > { %v8955_v4 = vld [vmem:[%s19772_s23 + $0x1b8] sm:$0xff] }
 0xf26   : > { %10510 = vmatpush1.bf16.msra.mxu1 %v11420_v18  ;;  %10616 = vmatpush1.bf16.msra.mxu0 %v11422_v51  ;;  %v8919_v18 = vld [vmem:[%s19772_s23 + $0x98] sm:$0xff] }
 0xf27   : > { %10511 = vmatprep.subr.bf16.mxu1 %v11429_v26  ;;  %10617 = vmatprep.subr.bf16.mxu0 %v11431_v57  ;;  %v8923_v51 = vld [vmem:[%s19772_s23 + $0xb8] sm:$0xff]  ;;  %v11224_v57 = vcombine.low %v8910_v42, %v8914_v38  ;;  %v11266_v38 = vcombine.low %v8951_v5, %v8955_v4 }
 0xf28   : > { %v11235_v1 = vcombine.high %v8919_v18, %v8923_v51  ;;  %v8963_v42 = vld [vmem:[%s19772_s23 + $0x1f8] sm:$0xff] }
 0xf2a   : > { %10512 = vmatpush1.bf16.msra.mxu1 %v11428_v45  ;;  %10618 = vmatpush1.bf16.msra.mxu0 %v11430_v53  ;;  %v8926_v53 = vld [vmem:[%s19772_s23 + $0xd0] sm:$0xff] }
 0xf2b   : > { %10513 = vmatprep.subr.bf16.mxu1 %v11437_v0  ;;  %10619 = vmatprep.subr.bf16.mxu0 %v11439_v15 }
 0xf2e   : > { %10514 = vmatpush1.bf16.msra.mxu1 %v11436_v40  ;;  %10620 = vmatpush1.bf16.msra.mxu0 %v11438_v39  ;;  %v11232_v40 = vcombine.low %v8918_v36, %v8922_v31  ;;  %v11234_v39 = vcombine.low %v8919_v18, %v8923_v51  ;;  %v8974_v51 = vld [vmem:[%s19772_s23 + $0x250] sm:$0xff] }
 0xf2f   : > { %10515 = vmatprep.subr.bf16.mxu1 %v11445_v22  ;;  %10621 = vmatprep.subr.bf16.mxu0 %v11447_v8  ;;  %v11241_v22 = vcombine.high %v8926_v53, %v8930_v54  ;;  %v11243_v8 = vcombine.high %v8927_v47, %v8931_v13 }
 0xf32   : > { %10516 = vmatpush1.bf16.msra.mxu1 %v11444_v29  ;;  %10622 = vmatpush1.bf16.msra.mxu0 %v11446_v12  ;;  %v11240_v29 = vcombine.low %v8926_v53, %v8930_v54  ;;  %v11242_v12 = vcombine.low %v8927_v47, %v8931_v13  ;;  %v8982_v53 = vld [vmem:[%s19772_s23 + $0x290] sm:$0xff]  ;;  %v8983_v54 = vld [vmem:[%s19772_s23 + $0x298] sm:$0xff] }
 0xf33   : > { %10517 = vmatprep.subr.bf16.mxu1 %v11453_v41  ;;  %10623 = vmatprep.subr.bf16.mxu0 %v11455_v3  ;;  %v11249_v41 = vcombine.high %v8934_v17, %v8938_v48  ;;  %v11251_v3 = vcombine.high %v8935_v2, %v8939_v49  ;;  %v8987_v47 = vld [vmem:[%s19772_s23 + $0x2b8] sm:$0xff]  ;;  %v8994_v17 = vld [vmem:[%s19772_s23 + $0x2f0] sm:$0xff] }
 0xf34   : > { %v8991_v48 = vld [vmem:[%s19772_s23 + $0x2d8] sm:$0xff] }
 0xf36   : > { %v8873_v9 = vpop.f32.mrb[56].mxu0  ;;  %10518 = vmatpush1.bf16.msra.mxu1 %v11452_v63  ;;  %10624 = vmatpush1.bf16.msra.mxu0 %v11454_v46  ;;  %v11250_v63 = vcombine.low %v8935_v2, %v8939_v49  ;;  %v11257_v46 = vcombine.high %v8942_v28, %v8946_v16  ;;  %v8995_v2 = vld [vmem:[%s19772_s23 + $0x2f8] sm:$0xff]  ;;  %v9002_v28 = vld [vmem:[%s19772_s23 + $0x330] sm:$0xff] }
 0xf37   : > { %v8875_v61 = vpop.f32.mrb[57].mxu0  ;;  %10519 = vmatprep.subr.bf16.mxu1 %v11461_v59  ;;  %10625 = vmatprep.subr.bf16.mxu0 %v11463_v55  ;;  %v8950_v55 = vld [vmem:[%s19772_s23 + $0x190] sm:$0xff]  ;;  %v8999_v16 = vld [vmem:[%s19772_s23 + $0x318] sm:$0xff] }
 0xf38   : > { %v8877_v60 = vpop.f32.mrb[58].mxu0 }
 0xf39   : > { %v19317_v20 = vpack.c.bf16 %v8877_v60, %v8873_v9  ;;  %v8879_v56 = vpop.f32.mrb[59].mxu0  ;;  %v11264_v60 = vcombine.low %v8950_v55, %v8954_v24 }
 0xf3a   : > { %v19319_v10 = vpack.c.bf16 %v8879_v56, %v8875_v61  ;;  %10520 = vmatpush1.bf16.msra.mxu1 %v11460_v35  ;;  %10626 = vmatpush1.bf16.msra.mxu0 %v11462_v43  ;;  %v11265_v35 = vcombine.high %v8950_v55, %v8954_v24  ;;  %v11267_v43 = vcombine.high %v8951_v5, %v8955_v4  ;;  %v8958_v61 = vld [vmem:[%s19772_s23 + $0x1d0] sm:$0xff]  ;;  %v9007_v24 = vld [vmem:[%s19772_s23 + $0x358] sm:$0xff] }
 0xf3b   : > { %10648 = vmatprep.subr.bf16.mxu1 %v11217_v11  ;;  %10754 = vmatprep.subr.bf16.mxu0 %v11219_v7  ;;  %v8962_v11 = vld [vmem:[%s19772_s23 + $0x1f0] sm:$0xff]  ;;  %v8959_v7 = vld [vmem:[%s19772_s23 + $0x1d8] sm:$0xff] }
 0xf3c   : > { %10521 = vmatprep.mubr.bf16.mxu1 %v19319_v10  ;;  %10627 = vmatprep.mubr.bf16.mxu0 %v19319_v10  ;;  %v11273_v19 = vcombine.high %v8958_v61, %v8962_v11  ;;  %v11275_v58 = vcombine.high %v8959_v7, %v8963_v42  ;;  %v8966_v56 = vld [vmem:[%s19772_s23 + $0x210] sm:$0xff]  ;;  %v11274_v36 = vcombine.low %v8959_v7, %v8963_v42  ;;  %v9011_v5 = vld [vmem:[%s19772_s23 + $0x378] sm:$0xff] }
 0xf3d   : > { %10522 = vmatmul.mubr.bf16.vlgmr.msra.gmra.mrb[88].mxu1 %v19317_v20  ;;  %10628 = vmatmul.mubr.bf16.vlgmr.msra.gmra.mrb[64].mxu0 %v19317_v20  ;;  %v9010_v55 = vld [vmem:[%s19772_s23 + $0x370] sm:$0xff]  ;;  %v9019_v7 = vld [vmem:[%s19772_s23 + $0x3b8] sm:$0xff] }
 0xf3e   : > { %v8883_v26 = vpop.f32.mrb[60].mxu0  ;;  %10649 = vmatpush1.bf16.msra.mxu1 %v11216_v23  ;;  %10755 = vmatpush1.bf16.msra.mxu0 %v11218_v44  ;;  %v8970_v23 = vld [vmem:[%s19772_s23 + $0x230] sm:$0xff]  ;;  %v8967_v44 = vld [vmem:[%s19772_s23 + $0x218] sm:$0xff] }
 0xf3f   : > { %v8885_v62 = vpop.f32.mrb[61].mxu0  ;;  %10650 = vmatprep.subr.bf16.mxu1 %v11225_v50  ;;  %10756 = vmatprep.subr.bf16.mxu0 %v11227_v30  ;;  %v8971_v50 = vld [vmem:[%s19772_s23 + $0x238] sm:$0xff]  ;;  %v11272_v30 = vcombine.low %v8958_v61, %v8962_v11  ;;  %v11281_v31 = vcombine.high %v8966_v56, %v8970_v23  ;;  %v9018_v61 = vld [vmem:[%s19772_s23 + $0x3b0] sm:$0xff] }
 0xf40   : > { %v8887_v45 = vpop.f32.mrb[62].mxu0  ;;  %v11283_v18 = vcombine.high %v8967_v44, %v8971_v50  ;;  %v9015_v11 = vld [vmem:[%s19772_s23 + $0x398] sm:$0xff] }
 0xf41   : > { %v19340_v0 = vpack.c.bf16 %v8887_v45, %v8883_v26  ;;  %v8889_v15 = vpop.f32.mrb[63].mxu0  ;;  %v8978_v26 = vld [vmem:[%s19772_s23 + $0x270] sm:$0xff] }
 0xf42   : > { %v19351_v34 = vpack.c.bf16 %v8889_v15, %v8885_v62  ;;  %10651 = vmatpush1.bf16.msra.mxu1 %v11224_v57  ;;  %10757 = vmatpush1.bf16.msra.mxu0 %v11226_v21  ;;  %v8975_v57 = vld [vmem:[%s19772_s23 + $0x258] sm:$0xff]  ;;  %v11280_v62 = vcombine.low %v8966_v56, %v8970_v23  ;;  %v8986_v15 = vld [vmem:[%s19772_s23 + $0x2b0] sm:$0xff]  ;;  %v11288_v13 = vcombine.low %v8974_v51, %v8978_v26 }
 0xf43   : > { %10652 = vmatprep.subr.bf16.mxu1 %v11233_v32  ;;  %10758 = vmatprep.subr.bf16.mxu0 %v11235_v1  ;;  %v8979_v21 = vld [vmem:[%s19772_s23 + $0x278] sm:$0xff]  ;;  %v11282_v32 = vcombine.low %v8967_v44, %v8971_v50  ;;  %v11289_v1 = vcombine.high %v8974_v51, %v8978_v26  ;;  %v11296_v49 = vcombine.low %v8982_v53, %v8986_v15  ;;  %v9026_v56 = vld [vmem:[%s19772_s23 + $0x3f0] sm:$0xff] }
 0xf44   : > { %10531 = vmatprep.mubr.bf16.mxu1 %v19351_v34  ;;  %10637 = vmatprep.mubr.bf16.mxu0 %v19351_v34  ;;  %v11291_v45 = vcombine.high %v8975_v57, %v8979_v21  ;;  %v9023_v23 = vld [vmem:[%s19772_s23 + $0x3d8] sm:$0xff]  ;;  %v9034_v51 = vld [vmem:[%s19772_s23 + $0x430] sm:$0xff] }
 0xf45   : > { %10532 = vmatmul.mubr.bf16.gmra.mrb[92].mxu1 %v19340_v0  ;;  %10638 = vmatmul.mubr.bf16.gmra.mrb[68].mxu0 %v19340_v0  ;;  %v9027_v44 = vld [vmem:[%s19772_s23 + $0x3f8] sm:$0xff] }
 0xf46   : > { %10653 = vmatpush1.bf16.msra.mxu1 %v11232_v40  ;;  %10680 = vmatprep.mubr.bf16.mxu1 %v19105_v27  ;;  %v11290_v40 = vcombine.low %v8975_v57, %v8979_v21  ;;  %v9031_v26 = vld [vmem:[%s19772_s23 + $0x418] sm:$0xff] }
 0xf47   : > { %10759 = vmatpush1.bf16.msra.mxu0 %v11234_v39  ;;  %10786 = vmatprep.mubr.bf16.mxu0 %v19105_v27  ;;  %v8947_v27 = vld [vmem:[%s19772_s23 + $0x178] sm:$0xff]  ;;  %v11297_v39 = vcombine.high %v8982_v53, %v8986_v15  ;;  %v9042_v53 = vld [vmem:[%s19772_s23 + $0x470] sm:$0xff] }
 0xf48   : > { %10654 = vmatprep.subr.bf16.mxu1 %v11241_v22  ;;  %10760 = vmatprep.subr.bf16.mxu0 %v11243_v8  ;;  %v11259_v59 = vcombine.high %v8943_v14, %v8947_v27  ;;  %v11258_v9 = vcombine.low %v8943_v14, %v8947_v27  ;;  %v11299_v22 = vcombine.high %v8983_v54, %v8987_v47  ;;  %v8990_v8 = vld [vmem:[%s19772_s23 + $0x2d0] sm:$0xff]  ;;  %v9003_v14 = vld [vmem:[%s19772_s23 + $0x338] sm:$0xff] }
 0xf49   : > { %v11304_v27 = vcombine.low %v8990_v8, %v8994_v17  ;;  %v9035_v57 = vld [vmem:[%s19772_s23 + $0x438] sm:$0xff] }
 0xf4a   : > { %10655 = vmatpush1.bf16.msra.mxu1 %v11240_v29  ;;  %v11298_v29 = vcombine.low %v8983_v54, %v8987_v47  ;;  %v9039_v15 = vld [vmem:[%s19772_s23 + $0x458] sm:$0xff] }
 0xf4b   : > { %10761 = vmatpush1.bf16.msra.mxu0 %v11242_v12  ;;  %10656 = vmatprep.subr.bf16.mxu1 %v11249_v41  ;;  %v11305_v12 = vcombine.high %v8990_v8, %v8994_v17  ;;  %v11307_v41 = vcombine.high %v8991_v48, %v8995_v2  ;;  %v9043_v54 = vld [vmem:[%s19772_s23 + $0x478] sm:$0xff]  ;;  %v9050_v8 = vld [vmem:[%s19772_s23 + $0x4b0] sm:$0xff] }
 0xf4c   : > { %10762 = vmatprep.subr.bf16.mxu0 %v11251_v3  ;;  %v8998_v3 = vld [vmem:[%s19772_s23 + $0x310] sm:$0xff]  ;;  %v9047_v17 = vld [vmem:[%s19772_s23 + $0x498] sm:$0xff] }
 0xf4d   : > { %v11312_v4 = vcombine.low %v8998_v3, %v9002_v28 }
 0xf4e   : > { %10657 = vmatpush1.bf16.msra.mxu1 %v11248_v52  ;;  %v11306_v52 = vcombine.low %v8991_v48, %v8995_v2  ;;  %v9051_v48 = vld [vmem:[%s19772_s23 + $0x4b8] sm:$0xff] }
 0xf4f   : > { %10763 = vmatpush1.bf16.msra.mxu0 %v11250_v63  ;;  %10658 = vmatprep.subr.bf16.mxu1 %v11257_v46  ;;  %v11313_v63 = vcombine.high %v8998_v3, %v9002_v28  ;;  %v11315_v46 = vcombine.high %v8999_v16, %v9003_v14  ;;  %v9055_v3 = vld [vmem:[%s19772_s23 + $0x4d8] sm:$0xff] }
 0xf50   : > { %10764 = vmatprep.subr.bf16.mxu0 %v11259_v59  ;;  %v9006_v59 = vld [vmem:[%s19772_s23 + $0x350] sm:$0xff] }
 0xf51   : > { %v11320_v42 = vcombine.low %v9006_v59, %v9010_v55 }
 0xf52   : > { %10659 = vmatpush1.bf16.msra.mxu1 %v11256_v37  ;;  %v11314_v37 = vcombine.low %v8999_v16, %v9003_v14  ;;  %v11362_v16 = vcombine.low %v9047_v17, %v9051_v48 }
 0xf53   : > { %10765 = vmatpush1.bf16.msra.mxu0 %v11258_v9  ;;  %10660 = vmatprep.subr.bf16.mxu1 %v11265_v35  ;;  %v11321_v9 = vcombine.high %v9006_v59, %v9010_v55  ;;  %v11323_v35 = vcombine.high %v9007_v24, %v9011_v5  ;;  %v9067_v59 = vld [vmem:[%s19772_s23 + $0x538] sm:$0xff] }
 0xf54   : > { %10766 = vmatprep.subr.bf16.mxu0 %v11267_v43  ;;  %v9014_v43 = vld [vmem:[%s19772_s23 + $0x390] sm:$0xff] }
 0xf55   : > { %v11328_v50 = vcombine.low %v9014_v43, %v9018_v61 }
 0xf56   : > { %10661 = vmatpush1.bf16.msra.mxu1 %v11264_v60  ;;  %v11322_v60 = vcombine.low %v9007_v24, %v9011_v5 }
 0xf57   : > { %10767 = vmatpush1.bf16.msra.mxu0 %v11266_v38  ;;  %10662 = vmatprep.subr.bf16.mxu1 %v11273_v19  ;;  %v11329_v38 = vcombine.high %v9014_v43, %v9018_v61  ;;  %v11331_v19 = vcombine.high %v9015_v11, %v9019_v7 }
 0xf58   : > { %10768 = vmatprep.subr.bf16.mxu0 %v11275_v58  ;;  %v9022_v58 = vld [vmem:[%s19772_s23 + $0x3d0] sm:$0xff] }
 0xf59   : > { %v11336_v21 = vcombine.low %v9022_v58, %v9026_v56 }
 0xf5a   : > { %10663 = vmatpush1.bf16.msra.mxu1 %v11272_v30  ;;  %v11330_v30 = vcombine.low %v9015_v11, %v9019_v7  ;;  %v9078_v7 = vld [vmem:[%s19772_s23 + $0x590] sm:$0xff] }
 0xf5b   : > { %10769 = vmatpush1.bf16.msra.mxu0 %v11274_v36  ;;  %10664 = vmatprep.subr.bf16.mxu1 %v11281_v31  ;;  %v11337_v36 = vcombine.high %v9022_v58, %v9026_v56  ;;  %v11339_v31 = vcombine.high %v9023_v23, %v9027_v44 }
 0xf5c   : > { %10770 = vmatprep.subr.bf16.mxu0 %v11283_v18  ;;  %v9030_v18 = vld [vmem:[%s19772_s23 + $0x410] sm:$0xff] }
 0xf5d   : > { %v11344_v47 = vcombine.low %v9030_v18, %v9034_v51 }
 0xf5e   : > { %10665 = vmatpush1.bf16.msra.mxu1 %v11280_v62  ;;  %v11338_v62 = vcombine.low %v9023_v23, %v9027_v44  ;;  %v9086_v44 = vld [vmem:[%s19772_s23 + $0x5d0] sm:$0xff] }
 0xf5f   : > { %10771 = vmatpush1.bf16.msra.mxu0 %v11282_v32  ;;  %10666 = vmatprep.subr.bf16.mxu1 %v11289_v1  ;;  %v11345_v32 = vcombine.high %v9030_v18, %v9034_v51  ;;  %v11347_v1 = vcombine.high %v9031_v26, %v9035_v57 }
 0xf60   : > { %10772 = vmatprep.subr.bf16.mxu0 %v11291_v45  ;;  %v9038_v45 = vld [vmem:[%s19772_s23 + $0x450] sm:$0xff] }
 0xf61   : > { %v11352_v2 = vcombine.low %v9038_v45, %v9042_v53 }
 0xf62   : > { %10667 = vmatpush1.bf16.msra.mxu1 %v11288_v13  ;;  %v11346_v13 = vcombine.low %v9031_v26, %v9035_v57  ;;  %v9094_v57 = vld [vmem:[%s19772_s23 + $0x610] sm:$0xff] }
 0xf63   : > { %10773 = vmatpush1.bf16.msra.mxu0 %v11290_v40  ;;  %10668 = vmatprep.subr.bf16.mxu1 %v11297_v39  ;;  %v11353_v40 = vcombine.high %v9038_v45, %v9042_v53  ;;  %v11355_v39 = vcombine.high %v9039_v15, %v9043_v54 }
 0xf64   : > { %10774 = vmatprep.subr.bf16.mxu0 %v11299_v22  ;;  %v9046_v22 = vld [vmem:[%s19772_s23 + $0x490] sm:$0xff] }
 0xf65   : > { %v11360_v28 = vcombine.low %v9046_v22, %v9050_v8 }
 0xf66   : > { %10669 = vmatpush1.bf16.msra.mxu1 %v11296_v49  ;;  %v11354_v49 = vcombine.low %v9039_v15, %v9043_v54  ;;  %v9102_v54 = vld [vmem:[%s19772_s23 + $0x650] sm:$0xff] }
 0xf67   : > { %10775 = vmatpush1.bf16.msra.mxu0 %v11298_v29  ;;  %10670 = vmatprep.subr.bf16.mxu1 %v11305_v12  ;;  %v11361_v29 = vcombine.high %v9046_v22, %v9050_v8  ;;  %v9054_v12 = vld [vmem:[%s19772_s23 + $0x4d0] sm:$0xff] }
 0xf68   : > { %10776 = vmatprep.subr.bf16.mxu0 %v11307_v41  ;;  %v9058_v41 = vld [vmem:[%s19772_s23 + $0x4f0] sm:$0xff] }
 0xf69   : > { %v11369_v14 = vcombine.high %v9054_v12, %v9058_v41  ;;  %v11368_v55 = vcombine.low %v9054_v12, %v9058_v41 }
 0xf6a   : > { %10671 = vmatpush1.bf16.msra.mxu1 %v11304_v27 }
 0xf6b   : > { %10777 = vmatpush1.bf16.msra.mxu0 %v11306_v52  ;;  %10672 = vmatprep.subr.bf16.mxu1 %v11313_v63  ;;  %v9062_v52 = vld [vmem:[%s19772_s23 + $0x510] sm:$0xff] }
 0xf6c   : > { %10778 = vmatprep.subr.bf16.mxu0 %v11315_v46  ;;  %v9066_v63 = vld [vmem:[%s19772_s23 + $0x530] sm:$0xff]  ;;  %v9063_v46 = vld [vmem:[%s19772_s23 + $0x518] sm:$0xff] }
 0xf6d   : > { %v11377_v5 = vcombine.high %v9062_v52, %v9066_v63  ;;  %v11378_v43 = vcombine.low %v9063_v46, %v9067_v59 }
 0xf6e   : > { %10673 = vmatpush1.bf16.msra.mxu1 %v11312_v4  ;;  %v9070_v4 = vld [vmem:[%s19772_s23 + $0x550] sm:$0xff] }
 0xf6f   : > { %10779 = vmatpush1.bf16.msra.mxu0 %v11314_v37  ;;  %10674 = vmatprep.subr.bf16.mxu1 %v11321_v9  ;;  %v9074_v37 = vld [vmem:[%s19772_s23 + $0x570] sm:$0xff]  ;;  %v9071_v9 = vld [vmem:[%s19772_s23 + $0x558] sm:$0xff] }
 0xf70   : > { %10780 = vmatprep.subr.bf16.mxu0 %v11323_v35  ;;  %v11376_v35 = vcombine.low %v9062_v52, %v9066_v63  ;;  %v11385_v61 = vcombine.high %v9070_v4, %v9074_v37 }
 0xf72   : > { %10675 = vmatpush1.bf16.msra.mxu1 %v11320_v42  ;;  %v9082_v42 = vld [vmem:[%s19772_s23 + $0x5b0] sm:$0xff] }
 0xf73   : > { %10781 = vmatpush1.bf16.msra.mxu0 %v11322_v60  ;;  %10676 = vmatprep.subr.bf16.mxu1 %v11329_v38  ;;  %v9079_v60 = vld [vmem:[%s19772_s23 + $0x598] sm:$0xff]  ;;  %v11393_v56 = vcombine.high %v9078_v7, %v9082_v42 }
 0xf74   : > { %10782 = vmatprep.subr.bf16.mxu0 %v11331_v19  ;;  %v9083_v38 = vld [vmem:[%s19772_s23 + $0x5b8] sm:$0xff]  ;;  %v11384_v19 = vcombine.low %v9070_v4, %v9074_v37 }
 0xf75   : > { %v11395_v23 = vcombine.high %v9079_v60, %v9083_v38  ;;  %v11394_v18 = vcombine.low %v9079_v60, %v9083_v38  ;;  %v9142_v38 = vld [vmem:[%s19772_s23 + $0x790] sm:$0xff] }
 0xf76   : > { %10677 = vmatpush1.bf16.msra.mxu1 %v11328_v50  ;;  %v9090_v50 = vld [vmem:[%s19772_s23 + $0x5f0] sm:$0xff] }
 0xf77   : > { %10783 = vmatpush1.bf16.msra.mxu0 %v11330_v30  ;;  %10678 = vmatprep.subr.bf16.mxu1 %v11337_v36  ;;  %v9087_v30 = vld [vmem:[%s19772_s23 + $0x5d8] sm:$0xff]  ;;  %v11401_v51 = vcombine.high %v9086_v44, %v9090_v50 }
 0xf78   : > { %10784 = vmatprep.subr.bf16.mxu0 %v11339_v31  ;;  %v9091_v36 = vld [vmem:[%s19772_s23 + $0x5f8] sm:$0xff]  ;;  %v11392_v31 = vcombine.low %v9078_v7, %v9082_v42 }
 0xf79   : > { %v11403_v26 = vcombine.high %v9087_v30, %v9091_v36  ;;  %v11402_v45 = vcombine.low %v9087_v30, %v9091_v36  ;;  %v9150_v36 = vld [vmem:[%s19772_s23 + $0x7d0] sm:$0xff] }
 0xf7a   : > { %10679 = vmatpush1.bf16.msra.mxu1 %v11336_v21  ;;  %v9098_v21 = vld [vmem:[%s19772_s23 + $0x630] sm:$0xff] }
 0xf7b   : > { %10785 = vmatpush1.bf16.msra.mxu0 %v11338_v62  ;;  %10701 = vmatprep.subr.bf16.mxu1 %v11345_v32  ;;  %v9095_v62 = vld [vmem:[%s19772_s23 + $0x618] sm:$0xff]  ;;  %v11409_v53 = vcombine.high %v9094_v57, %v9098_v21 }
 0xf7c   : > { %10807 = vmatprep.subr.bf16.mxu0 %v11347_v1  ;;  %v9099_v32 = vld [vmem:[%s19772_s23 + $0x638] sm:$0xff]  ;;  %v11400_v1 = vcombine.low %v9086_v44, %v9090_v50 }
 0xf7d   : > { %10681 = vmatmul.mubr.bf16.vlgmr.msra.gmra.mrb[96].mxu1 %v19103_v25  ;;  %v11411_v15 = vcombine.high %v9095_v62, %v9099_v32  ;;  %v11410_v22 = vcombine.low %v9095_v62, %v9099_v32 }
 0xf7e   : > { %10787 = vmatmul.mubr.bf16.vlgmr.msra.gmra.mrb[72].mxu0 %v19103_v25  ;;  %10690 = vmatprep.mubr.bf16.mxu1 %v19143_v33  ;;  %v11363_v25 = vcombine.high %v9047_v17, %v9051_v48  ;;  %v9110_v48 = vld [vmem:[%s19772_s23 + $0x690] sm:$0xff] }
 0xf7f   : > { %10702 = vmatpush1.bf16.msra.mxu1 %v11344_v47  ;;  %10796 = vmatprep.mubr.bf16.mxu0 %v19143_v33  ;;  %v9059_v33 = vld [vmem:[%s19772_s23 + $0x4f8] sm:$0xff]  ;;  %v9106_v47 = vld [vmem:[%s19772_s23 + $0x670] sm:$0xff] }
 0xf80   : > { %10808 = vmatpush1.bf16.msra.mxu0 %v11346_v13  ;;  %10703 = vmatprep.subr.bf16.mxu1 %v11353_v40  ;;  %v11371_v27 = vcombine.high %v9055_v3, %v9059_v33  ;;  %v11370_v24 = vcombine.low %v9055_v3, %v9059_v33  ;;  %v9103_v13 = vld [vmem:[%s19772_s23 + $0x658] sm:$0xff]  ;;  %v11417_v8 = vcombine.high %v9102_v54, %v9106_v47  ;;  %v9118_v33 = vld [vmem:[%s19772_s23 + $0x6d0] sm:$0xff] }
 0xf81   : > { %10809 = vmatprep.subr.bf16.mxu0 %v11355_v39  ;;  %v9107_v40 = vld [vmem:[%s19772_s23 + $0x678] sm:$0xff]  ;;  %v11408_v39 = vcombine.low %v9094_v57, %v9098_v21 }
 0xf82   : > { %v11419_v17 = vcombine.high %v9103_v13, %v9107_v40  ;;  %v11418_v12 = vcombine.low %v9103_v13, %v9107_v40 }
 0xf83   : > { %10704 = vmatpush1.bf16.msra.mxu1 %v11352_v2  ;;  %v9114_v2 = vld [vmem:[%s19772_s23 + $0x6b0] sm:$0xff] }
 0xf84   : > { %10810 = vmatpush1.bf16.msra.mxu0 %v11354_v49  ;;  %10705 = vmatprep.subr.bf16.mxu1 %v11361_v29  ;;  %v9111_v49 = vld [vmem:[%s19772_s23 + $0x698] sm:$0xff]  ;;  %v11425_v41 = vcombine.high %v9110_v48, %v9114_v2 }
 0xf85   : > { %10691 = vmatmul.mubr.bf16.gmra.mrb[100].mxu1 %v19141_v6  ;;  %10811 = vmatprep.subr.bf16.mxu0 %v11363_v25  ;;  %v9115_v29 = vld [vmem:[%s19772_s23 + $0x6b8] sm:$0xff]  ;;  %v11416_v25 = vcombine.low %v9102_v54, %v9106_v47 }
 0xf86   : > { %10797 = vmatmul.mubr.bf16.gmra.mrb[76].mxu0 %v19141_v6  ;;  %10733 = vmatprep.mubr.bf16.mxu1 %v19319_v10  ;;  %v11379_v6 = vcombine.high %v9063_v46, %v9067_v59  ;;  %v11427_v3 = vcombine.high %v9111_v49, %v9115_v29  ;;  %v11426_v52 = vcombine.low %v9111_v49, %v9115_v29  ;;  %v9126_v59 = vld [vmem:[%s19772_s23 + $0x710] sm:$0xff] }
 0xf87   : > { %10706 = vmatpush1.bf16.msra.mxu1 %v11360_v28  ;;  %10839 = vmatprep.mubr.bf16.mxu0 %v19319_v10  ;;  %v9075_v10 = vld [vmem:[%s19772_s23 + $0x578] sm:$0xff]  ;;  %v9122_v28 = vld [vmem:[%s19772_s23 + $0x6f0] sm:$0xff] }
 0xf88   : > { %10812 = vmatpush1.bf16.msra.mxu0 %v11362_v16  ;;  %10707 = vmatprep.subr.bf16.mxu1 %v11369_v14  ;;  %v11387_v11 = vcombine.high %v9071_v9, %v9075_v10  ;;  %v11386_v58 = vcombine.low %v9071_v9, %v9075_v10  ;;  %v9119_v16 = vld [vmem:[%s19772_s23 + $0x6d8] sm:$0xff]  ;;  %v11433_v63 = vcombine.high %v9118_v33, %v9122_v28  ;;  %v9134_v10 = vld [vmem:[%s19772_s23 + $0x750] sm:$0xff] }
 0xf89   : > { %10813 = vmatprep.subr.bf16.mxu0 %v11371_v27  ;;  %v9123_v14 = vld [vmem:[%s19772_s23 + $0x6f8] sm:$0xff]  ;;  %v11424_v27 = vcombine.low %v9110_v48, %v9114_v2 }
 0xf8a   : > { %v11435_v46 = vcombine.high %v9119_v16, %v9123_v14  ;;  %v11434_v4 = vcombine.low %v9119_v16, %v9123_v14 }
 0xf8b   : > { %10708 = vmatpush1.bf16.msra.mxu1 %v11368_v55  ;;  %v9130_v55 = vld [vmem:[%s19772_s23 + $0x730] sm:$0xff] }
 0xf8c   : > { %10814 = vmatpush1.bf16.msra.mxu0 %v11370_v24  ;;  %10709 = vmatprep.subr.bf16.mxu1 %v11377_v5  ;;  %v9127_v24 = vld [vmem:[%s19772_s23 + $0x718] sm:$0xff]  ;;  %v11441_v37 = vcombine.high %v9126_v59, %v9130_v55 }
 0xf8d   : > { %10815 = vmatprep.subr.bf16.mxu0 %v11379_v6  ;;  %v9131_v5 = vld [vmem:[%s19772_s23 + $0x738] sm:$0xff]  ;;  %v11432_v6 = vcombine.low %v9118_v33, %v9122_v28 }
 0xf8e   : > { %v11443_v9 = vcombine.high %v9127_v24, %v9131_v5  ;;  %v11442_v7 = vcombine.low %v9127_v24, %v9131_v5 }
 0xf8f   : > { %10710 = vmatpush1.bf16.msra.mxu1 %v11376_v35  ;;  %v9138_v35 = vld [vmem:[%s19772_s23 + $0x770] sm:$0xff] }
 0xf90   : > { %10816 = vmatpush1.bf16.msra.mxu0 %v11378_v43  ;;  %10711 = vmatprep.subr.bf16.mxu1 %v11385_v61  ;;  %v9135_v43 = vld [vmem:[%s19772_s23 + $0x758] sm:$0xff]  ;;  %v11449_v42 = vcombine.high %v9134_v10, %v9138_v35 }
 0xf91   : > { %10817 = vmatprep.subr.bf16.mxu0 %v11387_v11  ;;  %v9139_v61 = vld [vmem:[%s19772_s23 + $0x778] sm:$0xff]  ;;  %v11440_v11 = vcombine.low %v9126_v59, %v9130_v55 }
 0xf92   : > { %v11451_v60 = vcombine.high %v9135_v43, %v9139_v61  ;;  %v11450_v44 = vcombine.low %v9135_v43, %v9139_v61 }
 0xf93   : > { %10712 = vmatpush1.bf16.msra.mxu1 %v11384_v19  ;;  %v9146_v19 = vld [vmem:[%s19772_s23 + $0x7b0] sm:$0xff] }
 0xf94   : > { %10818 = vmatpush1.bf16.msra.mxu0 %v11386_v58  ;;  %10713 = vmatprep.subr.bf16.mxu1 %v11393_v56  ;;  %v9143_v58 = vld [vmem:[%s19772_s23 + $0x798] sm:$0xff]  ;;  %v11457_v50 = vcombine.high %v9142_v38, %v9146_v19 }
 0xf95   : > { %10819 = vmatprep.subr.bf16.mxu0 %v11395_v23  ;;  %v9147_v56 = vld [vmem:[%s19772_s23 + $0x7b8] sm:$0xff]  ;;  %v11448_v23 = vcombine.low %v9134_v10, %v9138_v35 }
 0xf96   : > { %v11459_v30 = vcombine.high %v9143_v58, %v9147_v56  ;;  %v11458_v57 = vcombine.low %v9143_v58, %v9147_v56 }
 0xf97   : > { %10714 = vmatpush1.bf16.msra.mxu1 %v11392_v31  ;;  %v9154_v31 = vld [vmem:[%s19772_s23 + $0x7f0] sm:$0xff] }
 0xf98   : > { %10820 = vmatpush1.bf16.msra.mxu0 %v11394_v18  ;;  %10715 = vmatprep.subr.bf16.mxu1 %v11401_v51  ;;  %v9151_v18 = vld [vmem:[%s19772_s23 + $0x7d8] sm:$0xff]  ;;  %v11465_v21 = vcombine.high %v9150_v36, %v9154_v31  ;;  %v11464_v32 = vcombine.low %v9150_v36, %v9154_v31 }
 0xf99   : > { %10821 = vmatprep.subr.bf16.mxu0 %v11403_v26  ;;  %v9155_v51 = vld [vmem:[%s19772_s23 + $0x7f8] sm:$0xff]  ;;  %v11456_v26 = vcombine.low %v9142_v38, %v9146_v19 }
 0xf9a   : > { %v11467_v62 = vcombine.high %v9151_v18, %v9155_v51 }
 0xf9b   : > { %10716 = vmatpush1.bf16.msra.mxu1 %v11400_v1  ;;  %v11466_v1 = vcombine.low %v9151_v18, %v9155_v51 }
 0xf9c   : > { %10822 = vmatpush1.bf16.msra.mxu0 %v11402_v45  ;;  %10717 = vmatprep.subr.bf16.mxu1 %v11409_v53 }
 0xf9d   : > { %10823 = vmatprep.subr.bf16.mxu0 %v11411_v15 }
 0xf9f   : > { %10718 = vmatpush1.bf16.msra.mxu1 %v11408_v39 }
 0xfa0   : > { %10824 = vmatpush1.bf16.msra.mxu0 %v11410_v22  ;;  %10719 = vmatprep.subr.bf16.mxu1 %v11417_v8 }
 0xfa1   : > { %10825 = vmatprep.subr.bf16.mxu0 %v11419_v17 }
 0xfa3   : > { %10720 = vmatpush1.bf16.msra.mxu1 %v11416_v25 }
 0xfa4   : > { %10826 = vmatpush1.bf16.msra.mxu0 %v11418_v12  ;;  %10721 = vmatprep.subr.bf16.mxu1 %v11425_v41 }
 0xfa5   : > { %10827 = vmatprep.subr.bf16.mxu0 %v11427_v3 }
 0xfa7   : > { %10722 = vmatpush1.bf16.msra.mxu1 %v11424_v27 }
 0xfa8   : > { %10828 = vmatpush1.bf16.msra.mxu0 %v11426_v52  ;;  %10723 = vmatprep.subr.bf16.mxu1 %v11433_v63 }
 0xfa9   : > { %10829 = vmatprep.subr.bf16.mxu0 %v11435_v46 }
 0xfab   : > { %10724 = vmatpush1.bf16.msra.mxu1 %v11432_v6 }
 0xfac   : > { %10830 = vmatpush1.bf16.msra.mxu0 %v11434_v4  ;;  %10725 = vmatprep.subr.bf16.mxu1 %v11441_v37 }
 0xfad   : > { %10831 = vmatprep.subr.bf16.mxu0 %v11443_v9 }
 0xfaf   : > { %10726 = vmatpush1.bf16.msra.mxu1 %v11440_v11 }
 0xfb0   : > { %10832 = vmatpush1.bf16.msra.mxu0 %v11442_v7  ;;  %10727 = vmatprep.subr.bf16.mxu1 %v11449_v42 }
 0xfb1   : > { %10833 = vmatprep.subr.bf16.mxu0 %v11451_v60 }
 0xfb3   : > { %10728 = vmatpush1.bf16.msra.mxu1 %v11448_v23 }
 0xfb4   : > { %10834 = vmatpush1.bf16.msra.mxu0 %v11450_v44  ;;  %10729 = vmatprep.subr.bf16.mxu1 %v11457_v50 }
 0xfb5   : > { %10835 = vmatprep.subr.bf16.mxu0 %v11459_v30 }
 0xfb7   : > { %10730 = vmatpush1.bf16.msra.mxu1 %v11456_v26 }
 0xfb8   : > { %10836 = vmatpush1.bf16.msra.mxu0 %v11458_v57  ;;  %10731 = vmatprep.subr.bf16.mxu1 %v11465_v21 }
 0xfb9   : > { %10837 = vmatprep.subr.bf16.mxu0 %v11467_v62 }
 0xfbb   : > { %10732 = vmatpush1.bf16.msra.mxu1 %v11464_v32 }
 0xfbc   : > { %10838 = vmatpush1.bf16.msra.mxu0 %v11466_v1 }
 0xfbe   : > { %10734 = vmatmul.mubr.bf16.vlgmr.msra.gmra.mrb[96].mxu1 %v19317_v20 }
 0xfbf   : > { %10840 = vmatmul.mubr.bf16.vlgmr.msra.gmra.mrb[72].mxu0 %v19317_v20  ;;  %10743 = vmatprep.mubr.bf16.mxu1 %v19351_v34 }
 0xfc0   : > { %10849 = vmatprep.mubr.bf16.mxu0 %v19351_v34 }
 0xfc6   : > { %10744 = vmatmul.mubr.bf16.gmra.mrb[100].mxu1 %v19340_v0 }
 0xfc7   : > { %10850 = vmatmul.mubr.bf16.gmra.mrb[76].mxu0 %v19340_v0 }
0x1010   : > { %v10523_v20 = vpop.f32.mrb[88].mxu1  ;;  %v10629_v34 = vpop.f32.mrb[64].mxu0 }
0x1011   : > { %10860 = vst [vmem:[%s19713_s1] sm:$0xff] %v10523_v20  ;;  %10862 = vst [vmem:[%s19713_s1 + $0x10] sm:$0xff] %v10629_v34  ;;  %v10525_v0 = vpop.f32.mrb[89].mxu1  ;;  %v10631_v45 = vpop.f32.mrb[65].mxu0 }
0x1012   : > { %10861 = vst [vmem:[%s19713_s1 + $0x8] sm:$0xff] %v10525_v0  ;;  %10863 = vst [vmem:[%s19713_s1 + $0x18] sm:$0xff] %v10631_v45  ;;  %v10527_v53 = vpop.f32.mrb[90].mxu1  ;;  %v10633_v15 = vpop.f32.mrb[66].mxu0 }
0x1013   : > { %10868 = vst [vmem:[%s19713_s1 + $0x40] sm:$0xff] %v10527_v53  ;;  %10870 = vst [vmem:[%s19713_s1 + $0x50] sm:$0xff] %v10633_v15  ;;  %v10529_v54 = vpop.f32.mrb[91].mxu1  ;;  %v10635_v47 = vpop.f32.mrb[67].mxu0 }
0x1014   : > { %10869 = vst [vmem:[%s19713_s1 + $0x48] sm:$0xff] %v10529_v54  ;;  %10871 = vst [vmem:[%s19713_s1 + $0x58] sm:$0xff] %v10635_v47 }
0x1018   : > { %v10533_v13 = vpop.f32.mrb[92].mxu1  ;;  %v10639_v40 = vpop.f32.mrb[68].mxu0 }
0x1019   : > { %10876 = vst [vmem:[%s19713_s1 + $0x80] sm:$0xff] %v10533_v13  ;;  %10878 = vst [vmem:[%s19713_s1 + $0x90] sm:$0xff] %v10639_v40  ;;  %v10535_v39 = vpop.f32.mrb[93].mxu1  ;;  %v10641_v22 = vpop.f32.mrb[69].mxu0 }
0x101a   : > { %10877 = vst [vmem:[%s19713_s1 + $0x88] sm:$0xff] %v10535_v39  ;;  %10879 = vst [vmem:[%s19713_s1 + $0x98] sm:$0xff] %v10641_v22  ;;  %v10537_v8 = vpop.f32.mrb[94].mxu1  ;;  %v10643_v17 = vpop.f32.mrb[70].mxu0 }
0x101b   : > { %10884 = vst [vmem:[%s19713_s1 + $0xc0] sm:$0xff] %v10537_v8  ;;  %10886 = vst [vmem:[%s19713_s1 + $0xd0] sm:$0xff] %v10643_v17  ;;  %v10539_v48 = vpop.f32.mrb[95].mxu1  ;;  %v10645_v2 = vpop.f32.mrb[71].mxu0 }
0x101c   : > { %10885 = vst [vmem:[%s19713_s1 + $0xc8] sm:$0xff] %v10539_v48  ;;  %10887 = vst [vmem:[%s19713_s1 + $0xd8] sm:$0xff] %v10645_v2 }
0x1091   : > { %v10735_v49 = vpop.f32.mrb[96].mxu1 }
0x1092   : > { %10864 = vst [vmem:[%s19713_s1 + $0x20] sm:$0xff] %v10735_v49  ;;  %v10841_v29 = vpop.f32.mrb[72].mxu0  ;;  %v10737_v25 = vpop.f32.mrb[97].mxu1 }
0x1093   : > { %10866 = vst [vmem:[%s19713_s1 + $0x30] sm:$0xff] %v10841_v29  ;;  %10865 = vst [vmem:[%s19713_s1 + $0x28] sm:$0xff] %v10737_v25  ;;  %v10843_v12 = vpop.f32.mrb[73].mxu0  ;;  %v10739_v41 = vpop.f32.mrb[98].mxu1 }
0x1094   : > { %10867 = vst [vmem:[%s19713_s1 + $0x38] sm:$0xff] %v10843_v12  ;;  %10872 = vst [vmem:[%s19713_s1 + $0x60] sm:$0xff] %v10739_v41  ;;  %v10845_v3 = vpop.f32.mrb[74].mxu0  ;;  %v10741_v33 = vpop.f32.mrb[99].mxu1 }
0x1095   : > { %10874 = vst [vmem:[%s19713_s1 + $0x70] sm:$0xff] %v10845_v3  ;;  %10873 = vst [vmem:[%s19713_s1 + $0x68] sm:$0xff] %v10741_v33  ;;  %v10847_v28 = vpop.f32.mrb[75].mxu0 }
0x1096   : > { %10875 = vst [vmem:[%s19713_s1 + $0x78] sm:$0xff] %v10847_v28 }
0x1099   : > { %v10745_v16 = vpop.f32.mrb[100].mxu1 }
0x109a   : > { %10880 = vst [vmem:[%s19713_s1 + $0xa0] sm:$0xff] %v10745_v16  ;;  %v10851_v14 = vpop.f32.mrb[76].mxu0  ;;  %v10747_v27 = vpop.f32.mrb[101].mxu1 }
0x109b   : > { %10882 = vst [vmem:[%s19713_s1 + $0xb0] sm:$0xff] %v10851_v14  ;;  %10881 = vst [vmem:[%s19713_s1 + $0xa8] sm:$0xff] %v10747_v27  ;;  %v10853_v52 = vpop.f32.mrb[77].mxu0  ;;  %v10749_v63 = vpop.f32.mrb[102].mxu1 }
0x109c   : > { %10883 = vst [vmem:[%s19713_s1 + $0xb8] sm:$0xff] %v10853_v52  ;;  %10888 = vst [vmem:[%s19713_s1 + $0xe0] sm:$0xff] %v10749_v63  ;;  %v10855_v46 = vpop.f32.mrb[78].mxu0  ;;  %v10751_v59 = vpop.f32.mrb[103].mxu1 }
0x109d   : > { %10890 = vst [vmem:[%s19713_s1 + $0xf0] sm:$0xff] %v10855_v46  ;;  %10889 = vst [vmem:[%s19713_s1 + $0xe8] sm:$0xff] %v10751_v59  ;;  %v10857_v55 = vpop.f32.mrb[79].mxu0 }
0x109e   : > { %10891 = vst [vmem:[%s19713_s1 + $0xf8] sm:$0xff] %v10857_v55 }
0x109f PF: > { %s20155_s2 = sld [smem:[#allocation5_spill]] }
0x10a5   : > { %s38_s6 = sadd.s32 1, %s20155_s2  }
0x10a6   : > { %p35_p4 = scmp.ge.s32.totalorder %s38_s6, 4  }
0x10a8   :  { %37 = sbr.rel (!%p35_p4) target bundleno = 11 (0xb), region = 154 }

</bundles_post_ra>
